<compile_context>
chip_gen: v7x
topology: tpu7x:2x2x1
jax: 0.10.0
libtpu: 0.0.40
codegen_flags: <defaults>
</compile_context>

<pallas_src>
import numpy as np
import jax
import jax.numpy as jnp
from jax.experimental import pallas as pl
from jax.experimental.pallas import tpu as pltpu

NUM_PARTICLES = 20
N_PAD = 24                       # particle axis padded to a sublane multiple (8)
PARTICLE_FEAT = 6
GLOBAL_FEAT = 5
EMB_DIM = 64
NUM_HEADS = 4
HEAD_DIM = EMB_DIM // NUM_HEADS
OUTPUT_DIM = NUM_PARTICLES * PARTICLE_FEAT + GLOBAL_FEAT   # 125
DEC_PAD = 128                    # decoder output padded to a full lane group
WTS_OFF = DEC_PAD + EMB_DIM      # 192: mask weights live at lanes [192, 192+N)
PACK_DIM = 256                   # packed per-sample output width (lane dense)


def _round_up(x, m):
    return ((x + m - 1) // m) * m


# ----------------------------- bias slab layout ------------------------------ #
def _build_bias_layout():
    fields = [("m_b1", 64), ("m_b2", 32), ("m_w3", 32), ("m_b3", 1),
              ("p_b1", 128), ("p_b2", 64), ("p_b3", 64), ("b_qkv", 192),
              ("g_b1", 128), ("g_b2", 64), ("g_b3", 64), ("c_b", 64),
              ("d_b1", 256), ("d_b2", 128), ("d_b3", 128)]
    layout, off = {}, 0
    for name, width in fields:
        layout[name] = (off, width)
        off += _round_up(width, 128)      # 128-aligned slots
    return layout, off


_BIAS_LAYOUT, BIAS_SLAB_WIDTH = _build_bias_layout()


# ------------------------------ kernel helpers ------------------------------ #
_GELU_C = 0.7978845608028654  # sqrt(2/pi)


def _gelu(x):
    # tanh-approximate GELU (transcendental goes to the EUP slot).
    # TODO(synk): use exact erf GELU if bit-level parity with PyTorch is needed.
    return 0.5 * x * (1.0 + jnp.tanh(_GELU_C * (x + 0.044715 * (x * x * x))))


def _mm(a, b):
    return jnp.dot(a, b, preferred_element_type=jnp.float32)


def _bmm_bt(a, b):   # (B, M, K), (B, N, K) -> (B, M, N)
    return jax.lax.dot_general(a, b, (((2,), (2,)), ((0,), (0,))),
                               preferred_element_type=jnp.float32)


def _bmm_bb(a, b):   # (B, M, K), (B, K, N) -> (B, M, N)
    return jax.lax.dot_general(a, b, (((2,), (1,)), ((0,), (0,))),
                               preferred_element_type=jnp.float32)


def _bias(ref, name):
    off, width = _BIAS_LAYOUT[name]
    return ref[:, off:off + width]


# ------------------------------ fused kernel -------------------------------- #
def autoencoder_kernel(pflat_ref, gfeat_ref, bias_ref,
                       m_w1, m_w2, p_w1, p_w2, p_w3, w_qkv, wo_c,
                       g_w1, g_w2, g_w3, cw_g, d_w1, d_w2, d_w3,
                       out_ref):
    tb = gfeat_ref.shape[0]
    bias = lambda n: _bias(bias_ref, n)

    # --------------- flat per-particle stage: rows = tb * N_PAD --------------- #
    x = pflat_ref[...]                                            # (R, 6)

    # Masker: Linear(6,64) GELU Linear(64,32) GELU Linear(32,1) Sigmoid
    h = _gelu(_mm(x, m_w1[...]) + bias("m_b1"))
    h = _gelu(_mm(h, m_w2[...]) + bias("m_b2"))
    logit = jnp.sum(h * bias("m_w3"), axis=-1, keepdims=True) + bias("m_b3")
    w = jax.nn.sigmoid(logit)                                     # (R, 1)

    # Particle projection: Linear(6,128) GELU Linear(128,64) GELU Linear(64,64)
    y = _gelu(_mm(x, p_w1[...]) + bias("p_b1"))
    y = _gelu(_mm(y, p_w2[...]) + bias("p_b2"))
    y = _mm(y, p_w3[...]) + bias("p_b3")                          # (R, 64)

    # Fused masked QKV projection: (w*y) @ Wqkv == w * (y @ Wqkv)
    qkv = w * _mm(y, w_qkv[...]) + bias("b_qkv")                  # (R, 192)

    # flat -> per-sample view: layout-free because N_PAD % 8 == 0; drop the pad
    # particle rows so they cannot contaminate the softmax.
    qkv3 = qkv.reshape(tb, N_PAD, 3 * EMB_DIM)[:, :NUM_PARTICLES, :]

    # --------------- global net + LayerNorm (affine folded into cw_g) --------- #
    g = gfeat_ref[...]                                            # (tb, 5)
    g = _gelu(_mm(g, g_w1[...]) + bias("g_b1"))
    g = _gelu(_mm(g, g_w2[...]) + bias("g_b2"))
    g = _mm(g, g_w3[...]) + bias("g_b3")
    mu = jnp.mean(g, axis=-1, keepdims=True)
    gc = g - mu
    var = jnp.mean(gc * gc, axis=-1, keepdims=True)
    ghat = gc * jax.lax.rsqrt(var + 1e-5)
    # emb = pooled @ (Wo @ Cw_p) + ghat @ (ln_g * Cw_g) + (c_b + bo@Cw_p + ln_b@Cw_g)
    emb = _mm(ghat, cw_g[...]) + bias("c_b")                      # (tb, 64)

    # --------------- 4-head self-attention, mean-pool commuted ---------------- #
    scale = 1.0 / np.sqrt(HEAD_DIM)
    inv_n = 1.0 / NUM_PARTICLES
    pooled_parts = []
    for hh in range(NUM_HEADS):
        lo = hh * HEAD_DIM
        q = qkv3[:, :, lo:lo + HEAD_DIM]                          # (tb, N, Dh)
        k = qkv3[:, :, EMB_DIM + lo:EMB_DIM + lo + HEAD_DIM]
        v = qkv3[:, :, 2 * EMB_DIM + lo:2 * EMB_DIM + lo + HEAD_DIM]
        s = _bmm_bt(q, k) * scale                                 # (tb, N, N)
        s = s - jnp.max(s, axis=-1, keepdims=True)
        e = jnp.exp(s)
        den = jnp.sum(e, axis=-1, keepdims=True)
        r = pl.reciprocal(den, approx=True)                       # EUP slot
        r = r * (2.0 - den * r)                                   # Newton step
        p = e * r
        # mean over queries first:  mean_n(P @ V) == (mean_n P) @ V
        pbar = jnp.sum(p, axis=1, keepdims=True) * inv_n          # (tb, 1, N)
        pooled_parts.append(_bmm_bb(pbar, v))                     # (tb, 1, Dh)
    pooled = jnp.sum(jnp.concatenate(pooled_parts, axis=-1), axis=1)   # (tb, 64)
    emb = emb + _mm(pooled, wo_c[...])                            # out-proj folded

    # ------------------------------ decoder ----------------------------------- #
    d = _gelu(_mm(emb, d_w1[...]) + bias("d_b1"))
    d = _gelu(_mm(d, d_w2[...]) + bias("d_b2"))
    d = _mm(d, d_w3[...]) + bias("d_b3")                          # (tb, 128)

    # ----- lane-pack the mask weights and store one dense (tb, 256) block ----- #
    # (R,1) -> (tb, N_PAD, 1) is layout-free; the degenerate batched matmul vs a
    # ones-vector moves the per-particle scalars into lanes without an
    # unsupported reshape/transpose.
    w3 = w.reshape(tb, N_PAD, 1)
    ones_b = jnp.ones((tb, 1, 1), jnp.float32)
    w_lanes = jnp.sum(_bmm_bt(ones_b, w3), axis=1)                # (tb, N_PAD)

    zpad = jnp.zeros((tb, PACK_DIM - WTS_OFF - N_PAD), jnp.float32)
    out_ref[...] = jnp.concatenate([d, emb, w_lanes, zpad], axis=-1)


# ------------------------------ parameter setup ------------------------------ #
def _linear(key, fin, fout):
    kw, kb = jax.random.split(key)
    bound = 1.0 / np.sqrt(fin)
    wmat = jax.random.uniform(kw, (fin, fout), jnp.float32, -bound, bound)
    bvec = jax.random.uniform(kb, (1, fout), jnp.float32, -bound, bound)
    return wmat, bvec


def init_params(key):
    ks = jax.random.split(key, 17)
    p = {}
    p["m_w1"], p["m_b1"] = _linear(ks[0], PARTICLE_FEAT, 64)
    p["m_w2"], p["m_b2"] = _linear(ks[1], 64, 32)
    p["m_w3"], p["m_b3"] = _linear(ks[2], 32, 1)
    p["p_w1"], p["p_b1"] = _linear(ks[3], PARTICLE_FEAT, 128)
    p["p_w2"], p["p_b2"] = _linear(ks[4], 128, 64)
    p["p_w3"], p["p_b3"] = _linear(ks[5], 64, EMB_DIM)
    p["wq"], p["bq"] = _linear(ks[6], EMB_DIM, EMB_DIM)
    p["wk"], p["bk"] = _linear(ks[7], EMB_DIM, EMB_DIM)
    p["wv"], p["bv"] = _linear(ks[8], EMB_DIM, EMB_DIM)
    p["wo"], p["bo"] = _linear(ks[9], EMB_DIM, EMB_DIM)
    p["g_w1"], p["g_b1"] = _linear(ks[10], GLOBAL_FEAT, 128)
    p["g_w2"], p["g_b2"] = _linear(ks[11], 128, 64)
    p["g_w3"], p["g_b3"] = _linear(ks[12], 64, EMB_DIM)
    p["ln_g"] = jnp.ones((1, EMB_DIM), jnp.float32)
    p["ln_b"] = jnp.zeros((1, EMB_DIM), jnp.float32)
    p["c_w"], p["c_b"] = _linear(ks[13], 2 * EMB_DIM, EMB_DIM)
    p["d_w1"], p["d_b1"] = _linear(ks[14], EMB_DIM, 256)
    p["d_w2"], p["d_b2"] = _linear(ks[15], 256, 128)
    p["d_w3"], p["d_b3"] = _linear(ks[16], 128, OUTPUT_DIM)
    return p


def prepare_params(p):
    """One-time weight packing / algebraic folds (hoisted out of the fwd call)."""
    cw_p = p["c_w"][:EMB_DIM]
    cw_g = p["c_w"][EMB_DIM:]
    w_qkv = jnp.concatenate([p["wq"], p["wk"], p["wv"]], axis=1)     # (64, 192)
    b_qkv = jnp.concatenate([p["bq"], p["bk"], p["bv"]], axis=1)     # (1, 192)
    wo_c = p["wo"] @ cw_p                                            # fold out-proj
    cw_g_eff = cw_g * p["ln_g"].reshape(EMB_DIM, 1)                  # fold LN scale
    c_b_eff = p["c_b"] + p["bo"] @ cw_p + p["ln_b"] @ cw_g           # fold bo/LN bias
    d_w3p = jnp.pad(p["d_w3"], ((0, 0), (0, DEC_PAD - OUTPUT_DIM)))
    d_b3p = jnp.pad(p["d_b3"], ((0, 0), (0, DEC_PAD - OUTPUT_DIM)))

    slab = jnp.zeros((1, BIAS_SLAB_WIDTH), jnp.float32)
    entries = {
        "m_b1": p["m_b1"], "m_b2": p["m_b2"],
        "m_w3": p["m_w3"].reshape(1, 32), "m_b3": p["m_b3"],
        "p_b1": p["p_b1"], "p_b2": p["p_b2"], "p_b3": p["p_b3"],
        "b_qkv": b_qkv,
        "g_b1": p["g_b1"], "g_b2": p["g_b2"], "g_b3": p["g_b3"],
        "c_b": c_b_eff,
        "d_b1": p["d_b1"], "d_b2": p["d_b2"], "d_b3": d_b3p,
    }
    for name, val in entries.items():
        off, width = _BIAS_LAYOUT[name]
        slab = slab.at[:, off:off + width].set(val)

    mats = (p["m_w1"], p["m_w2"], p["p_w1"], p["p_w2"], p["p_w3"], w_qkv, wo_c,
            p["g_w1"], p["g_w2"], p["g_w3"], cw_g_eff, p["d_w1"], p["d_w2"], d_w3p)
    return {"bias": slab, "mats": mats}


# ---------------------------------- wrapper ---------------------------------- #
def run_autoencoder(particles, global_feats, prep, batch_tile=None):
    B = particles.shape[0]
    if batch_tile is None:
        # >=2 grid steps when possible so ("parallel",) can shard across both
        # TensorCores on v7x; the 128 cap keeps per-step VMEM comfortable on
        # v5e/v6e (128 MiB) and v7x (64 MiB).
        tb = min(128, max(8, _round_up(-(-B // 2), 8)))
    else:
        tb = batch_tile
    assert tb % 8 == 0
    Bp = _round_up(B, tb)

    if Bp != B:
        particles = jnp.pad(particles, ((0, Bp - B), (0, 0), (0, 0)))
        global_feats = jnp.pad(global_feats, ((0, Bp - B), (0, 0)))
    # pad the particle axis 20 -> 24 so the in-kernel flat<->batched reshape is a
    # pure layout no-op (24 is a sublane multiple).
    particles = jnp.pad(particles, ((0, 0), (0, N_PAD - NUM_PARTICLES), (0, 0)))
    pflat = particles.reshape(Bp * N_PAD, PARTICLE_FEAT)

    grid = (Bp // tb,)
    # Size the VMEM request from the actual tile bytes rather than a constant.
    vmem_limit = int(min(64 * 2 ** 20,
                         max(16 * 2 ** 20, 8 * 2 ** 20 + tb * 96 * 1024)))
    cparams = pltpu.CompilerParams(dimension_semantics=("parallel",),
                                   vmem_limit_bytes=vmem_limit)

    mats = prep["mats"]
    in_specs = ([pl.BlockSpec((tb * N_PAD, PARTICLE_FEAT), lambda i: (i, 0)),
                 pl.BlockSpec((tb, GLOBAL_FEAT), lambda i: (i, 0)),
                 pl.BlockSpec((1, BIAS_SLAB_WIDTH), lambda i: (0, 0))]
                + [pl.BlockSpec(m.shape, lambda i: (0, 0)) for m in mats])

    packed = pl.pallas_call(
        autoencoder_kernel,
        out_shape=jax.ShapeDtypeStruct((Bp, PACK_DIM), jnp.float32),
        grid=grid,
        in_specs=in_specs,
        out_specs=pl.BlockSpec((tb, PACK_DIM), lambda i: (i, 0)),
        compiler_params=cparams,
    )(pflat, global_feats, prep["bias"], *mats)

    dec = packed[:B, :OUTPUT_DIM]
    emb = packed[:B, DEC_PAD:DEC_PAD + EMB_DIM]
    weights = packed[:B, WTS_OFF:WTS_OFF + NUM_PARTICLES].reshape(
        B, NUM_PARTICLES, 1)
    particles_recon = dec[:, :NUM_PARTICLES * PARTICLE_FEAT].reshape(
        B, NUM_PARTICLES, PARTICLE_FEAT)
    global_recon = dec[:, NUM_PARTICLES * PARTICLE_FEAT:]
    return particles_recon, global_recon, emb, weights


# ----------------------------- plain-JAX reference --------------------------- #
def reference_forward(particles, gfeat, p):
    gelu = lambda x: jax.nn.gelu(x, approximate=False)   # exact erf (torch default)
    B = particles.shape[0]
    h = gelu(particles @ p["m_w1"] + p["m_b1"])
    h = gelu(h @ p["m_w2"] + p["m_b2"])
    weights = jax.nn.sigmoid(h @ p["m_w3"] + p["m_b3"])             # (B, N, 1)
    x = gelu(particles @ p["p_w1"] + p["p_b1"])
    x = gelu(x @ p["p_w2"] + p["p_b2"])
    x = (x @ p["p_w3"] + p["p_b3"]) * weights
    q = x @ p["wq"] + p["bq"]
    k = x @ p["wk"] + p["bk"]
    v = x @ p["wv"] + p["bv"]
    heads = lambda t: t.reshape(B, NUM_PARTICLES, NUM_HEADS, HEAD_DIM).transpose(0, 2, 1, 3)
    qh, kh, vh = heads(q), heads(k), heads(v)
    s = jnp.einsum("bhnd,bhmd->bhnm", qh, kh) / np.sqrt(HEAD_DIM)
    a = jax.nn.softmax(s, axis=-1)
    o = jnp.einsum("bhnm,bhmd->bhnd", a, vh).transpose(0, 2, 1, 3).reshape(
        B, NUM_PARTICLES, EMB_DIM)
    attn = o @ p["wo"] + p["bo"]
    pooled = attn.mean(axis=1)
    g = gelu(gfeat @ p["g_w1"] + p["g_b1"])
    g = gelu(g @ p["g_w2"] + p["g_b2"])
    g = g @ p["g_w3"] + p["g_b3"]
    mu = g.mean(-1, keepdims=True)
    var = ((g - mu) ** 2).mean(-1, keepdims=True)
    g = (g - mu) / jnp.sqrt(var + 1e-5) * p["ln_g"] + p["ln_b"]
    emb = jnp.concatenate([pooled, g], axis=1) @ p["c_w"] + p["c_b"]
    d = gelu(emb @ p["d_w1"] + p["d_b1"])
    d = gelu(d @ p["d_w2"] + p["d_b2"])
    d = d @ p["d_w3"] + p["d_b3"]
    pr = d[:, :NUM_PARTICLES * PARTICLE_FEAT].reshape(B, NUM_PARTICLES, PARTICLE_FEAT)
    gr = d[:, NUM_PARTICLES * PARTICLE_FEAT:]
    return pr, gr, emb, weights


if __name__ == "__main__":
    key = jax.random.PRNGKey(0)
    kp, ka, kg = jax.random.split(key, 3)
    B = 4
    particles = jax.random.normal(ka, (B, NUM_PARTICLES, PARTICLE_FEAT), jnp.float32)
    global_feats = jax.random.normal(kg, (B, GLOBAL_FEAT), jnp.float32)
    params = init_params(kp)
    prep = prepare_params(params)          # one-time weight packing / folds

    fwd = jax.jit(run_autoencoder)
    outs = jax.block_until_ready(fwd(particles, global_feats, prep))

    refs = reference_forward(particles, global_feats, params)
    # Kernel uses tanh-GELU (exact-erf GELU in the reference); |diff| <= ~1e-3.
    for o, r in zip(outs, refs):
        np.testing.assert_allclose(np.asarray(o), np.asarray(r), atol=3e-3, rtol=3e-3)

    print("KERNEL_OK")
</pallas_src>

<mosaic_0001>
module attributes {stable_mosaic.version = 11 : i64} {
  func.func @autoencoder_kernel(%arg0: i32, %arg1: memref<192x6xf32, #tpu.memory_space<vmem>>, %arg2: memref<8x5xf32, #tpu.memory_space<vmem>>, %arg3: memref<1x2176xf32, #tpu.memory_space<vmem>>, %arg4: memref<6x64xf32, #tpu.memory_space<vmem>>, %arg5: memref<64x32xf32, #tpu.memory_space<vmem>>, %arg6: memref<6x128xf32, #tpu.memory_space<vmem>>, %arg7: memref<128x64xf32, #tpu.memory_space<vmem>>, %arg8: memref<64x64xf32, #tpu.memory_space<vmem>>, %arg9: memref<64x192xf32, #tpu.memory_space<vmem>>, %arg10: memref<64x64xf32, #tpu.memory_space<vmem>>, %arg11: memref<5x128xf32, #tpu.memory_space<vmem>>, %arg12: memref<128x64xf32, #tpu.memory_space<vmem>>, %arg13: memref<64x64xf32, #tpu.memory_space<vmem>>, %arg14: memref<64x64xf32, #tpu.memory_space<vmem>>, %arg15: memref<64x256xf32, #tpu.memory_space<vmem>>, %arg16: memref<256x128xf32, #tpu.memory_space<vmem>>, %arg17: memref<128x128xf32, #tpu.memory_space<vmem>>, %arg18: memref<8x256xf32, #tpu.memory_space<vmem>>) attributes {dimension_semantics = [#tpu.dimension_semantics<parallel>], iteration_bounds = array<i64: 1>, scalar_prefetch = 0 : i64, scratch_operands = 0 : i64, tpu.core_type = #tpu.core_type<tc>, window_params = [{transform_indices = @transform_0, window_bounds = array<i64: 192, 6>}, {transform_indices = @transform_1, window_bounds = array<i64: 8, 5>}, {pipeline_mode = #tpu.pipeline_mode<synchronous>, transform_indices = @transform_2, window_bounds = array<i64: 1, 2176>}, {pipeline_mode = #tpu.pipeline_mode<synchronous>, transform_indices = @transform_3, window_bounds = array<i64: 6, 64>}, {pipeline_mode = #tpu.pipeline_mode<synchronous>, transform_indices = @transform_4, window_bounds = array<i64: 64, 32>}, {pipeline_mode = #tpu.pipeline_mode<synchronous>, transform_indices = @transform_5, window_bounds = array<i64: 6, 128>}, {pipeline_mode = #tpu.pipeline_mode<synchronous>, transform_indices = @transform_6, window_bounds = array<i64: 128, 64>}, {pipeline_mode = #tpu.pipeline_mode<synchronous>, transform_indices = @transform_7, window_bounds = array<i64: 64, 64>}, {pipeline_mode = #tpu.pipeline_mode<synchronous>, transform_indices = @transform_8, window_bounds = array<i64: 64, 192>}, {pipeline_mode = #tpu.pipeline_mode<synchronous>, transform_indices = @transform_9, window_bounds = array<i64: 64, 64>}, {pipeline_mode = #tpu.pipeline_mode<synchronous>, transform_indices = @transform_10, window_bounds = array<i64: 5, 128>}, {pipeline_mode = #tpu.pipeline_mode<synchronous>, transform_indices = @transform_11, window_bounds = array<i64: 128, 64>}, {pipeline_mode = #tpu.pipeline_mode<synchronous>, transform_indices = @transform_12, window_bounds = array<i64: 64, 64>}, {pipeline_mode = #tpu.pipeline_mode<synchronous>, transform_indices = @transform_13, window_bounds = array<i64: 64, 64>}, {pipeline_mode = #tpu.pipeline_mode<synchronous>, transform_indices = @transform_14, window_bounds = array<i64: 64, 256>}, {pipeline_mode = #tpu.pipeline_mode<synchronous>, transform_indices = @transform_15, window_bounds = array<i64: 256, 128>}, {pipeline_mode = #tpu.pipeline_mode<synchronous>, transform_indices = @transform_16, window_bounds = array<i64: 128, 128>}, {transform_indices = @transform_17, window_bounds = array<i64: 8, 256>}]} {
    %c0 = arith.constant 0 : index
    %c0_0 = arith.constant 0 : index
    %0 = vector.load %arg1[%c0, %c0_0] : memref<192x6xf32, #tpu.memory_space<vmem>>, vector<192x6xf32>
    %c0_1 = arith.constant 0 : index
    %c0_2 = arith.constant 0 : index
    %1 = vector.load %arg4[%c0_1, %c0_2] : memref<6x64xf32, #tpu.memory_space<vmem>>, vector<6x64xf32>
    %cst = arith.constant dense<0.000000e+00> : vector<192x64xf32>
    %2 = tpu.matmul %0, %1, %cst {dimension_numbers = #tpu.dot_dimension_numbers<[1], [0], [0], [1], [0, 0, 1, 1], [], []>} : vector<192x6xf32>, vector<6x64xf32>, vector<192x64xf32> -> vector<192x64xf32>
    %c0_3 = arith.constant 0 : index
    %c0_4 = arith.constant 0 : index
    %3 = vector.load %arg3[%c0_3, %c0_4] : memref<1x2176xf32, #tpu.memory_space<vmem>>, vector<1x64xf32>
    %4 = vector.broadcast %3 : vector<1x64xf32> to vector<192x64xf32>
    %5 = arith.addf %2, %4 : vector<192x64xf32>
    %cst_5 = arith.constant 5.000000e-01 : f32
    %6 = vector.broadcast %cst_5 : f32 to vector<192x64xf32>
    %7 = arith.mulf %6, %5 : vector<192x64xf32>
    %8 = arith.mulf %5, %5 : vector<192x64xf32>
    %9 = arith.mulf %8, %5 : vector<192x64xf32>
    %cst_6 = arith.constant 4.471500e-02 : f32
    %10 = vector.broadcast %cst_6 : f32 to vector<192x64xf32>
    %11 = arith.mulf %10, %9 : vector<192x64xf32>
    %12 = arith.addf %5, %11 : vector<192x64xf32>
    %cst_7 = arith.constant 0.797884583 : f32
    %13 = vector.broadcast %cst_7 : f32 to vector<192x64xf32>
    %14 = arith.mulf %13, %12 : vector<192x64xf32>
    %15 = math.tanh %14 : vector<192x64xf32>
    %cst_8 = arith.constant 1.000000e+00 : f32
    %16 = vector.broadcast %cst_8 : f32 to vector<192x64xf32>
    %17 = arith.addf %16, %15 : vector<192x64xf32>
    %18 = arith.mulf %7, %17 : vector<192x64xf32>
    %c0_9 = arith.constant 0 : index
    %c0_10 = arith.constant 0 : index
    %19 = vector.load %arg5[%c0_9, %c0_10] : memref<64x32xf32, #tpu.memory_space<vmem>>, vector<64x32xf32>
    %cst_11 = arith.constant dense<0.000000e+00> : vector<192x32xf32>
    %20 = tpu.matmul %18, %19, %cst_11 {dimension_numbers = #tpu.dot_dimension_numbers<[1], [0], [0], [1], [0, 0, 1, 1], [], []>} : vector<192x64xf32>, vector<64x32xf32>, vector<192x32xf32> -> vector<192x32xf32>
    %c0_12 = arith.constant 0 : index
    %c128 = arith.constant 128 : index
    %21 = vector.load %arg3[%c0_12, %c128] : memref<1x2176xf32, #tpu.memory_space<vmem>>, vector<1x32xf32>
    %22 = vector.broadcast %21 : vector<1x32xf32> to vector<192x32xf32>
    %23 = arith.addf %20, %22 : vector<192x32xf32>
    %cst_13 = arith.constant 5.000000e-01 : f32
    %24 = vector.broadcast %cst_13 : f32 to vector<192x32xf32>
    %25 = arith.mulf %24, %23 : vector<192x32xf32>
    %26 = arith.mulf %23, %23 : vector<192x32xf32>
    %27 = arith.mulf %26, %23 : vector<192x32xf32>
    %cst_14 = arith.constant 4.471500e-02 : f32
    %28 = vector.broadcast %cst_14 : f32 to vector<192x32xf32>
    %29 = arith.mulf %28, %27 : vector<192x32xf32>
    %30 = arith.addf %23, %29 : vector<192x32xf32>
    %cst_15 = arith.constant 0.797884583 : f32
    %31 = vector.broadcast %cst_15 : f32 to vector<192x32xf32>
    %32 = arith.mulf %31, %30 : vector<192x32xf32>
    %33 = math.tanh %32 : vector<192x32xf32>
    %cst_16 = arith.constant 1.000000e+00 : f32
    %34 = vector.broadcast %cst_16 : f32 to vector<192x32xf32>
    %35 = arith.addf %34, %33 : vector<192x32xf32>
    %36 = arith.mulf %25, %35 : vector<192x32xf32>
    %c0_17 = arith.constant 0 : index
    %c256 = arith.constant 256 : index
    %37 = vector.load %arg3[%c0_17, %c256] : memref<1x2176xf32, #tpu.memory_space<vmem>>, vector<1x32xf32>
    %38 = vector.broadcast %37 : vector<1x32xf32> to vector<192x32xf32>
    %39 = arith.mulf %36, %38 : vector<192x32xf32>
    %cst_18 = arith.constant dense<0.000000e+00> : vector<192xf32>
    %40 = vector.multi_reduction <add>, %39, %cst_18 [1] : vector<192x32xf32> to vector<192xf32>
    %41 = vector.shape_cast %40 : vector<192xf32> to vector<192x1xf32>
    %c0_19 = arith.constant 0 : index
    %c384 = arith.constant 384 : index
    %42 = vector.load %arg3[%c0_19, %c384] : memref<1x2176xf32, #tpu.memory_space<vmem>>, vector<1x1xf32>
    %43 = vector.broadcast %42 : vector<1x1xf32> to vector<192x1xf32>
    %44 = arith.addf %41, %43 : vector<192x1xf32>
    %45 = arith.negf %44 : vector<192x1xf32>
    %46 = math.exp %45 : vector<192x1xf32>
    %cst_20 = arith.constant 1.000000e+00 : f32
    %47 = vector.broadcast %cst_20 : f32 to vector<192x1xf32>
    %48 = arith.addf %47, %46 : vector<192x1xf32>
    %49 = arith.divf %47, %48 : vector<192x1xf32>
    %c0_21 = arith.constant 0 : index
    %c0_22 = arith.constant 0 : index
    %50 = vector.load %arg6[%c0_21, %c0_22] : memref<6x128xf32, #tpu.memory_space<vmem>>, vector<6x128xf32>
    %cst_23 = arith.constant dense<0.000000e+00> : vector<192x128xf32>
    %51 = tpu.matmul %0, %50, %cst_23 {dimension_numbers = #tpu.dot_dimension_numbers<[1], [0], [0], [1], [0, 0, 1, 1], [], []>} : vector<192x6xf32>, vector<6x128xf32>, vector<192x128xf32> -> vector<192x128xf32>
    %c0_24 = arith.constant 0 : index
    %c512 = arith.constant 512 : index
    %52 = vector.load %arg3[%c0_24, %c512] : memref<1x2176xf32, #tpu.memory_space<vmem>>, vector<1x128xf32>
    %53 = vector.broadcast %52 : vector<1x128xf32> to vector<192x128xf32>
    %54 = arith.addf %51, %53 : vector<192x128xf32>
    %cst_25 = arith.constant 5.000000e-01 : f32
    %55 = vector.broadcast %cst_25 : f32 to vector<192x128xf32>
    %56 = arith.mulf %55, %54 : vector<192x128xf32>
    %57 = arith.mulf %54, %54 : vector<192x128xf32>
    %58 = arith.mulf %57, %54 : vector<192x128xf32>
    %cst_26 = arith.constant 4.471500e-02 : f32
    %59 = vector.broadcast %cst_26 : f32 to vector<192x128xf32>
    %60 = arith.mulf %59, %58 : vector<192x128xf32>
    %61 = arith.addf %54, %60 : vector<192x128xf32>
    %cst_27 = arith.constant 0.797884583 : f32
    %62 = vector.broadcast %cst_27 : f32 to vector<192x128xf32>
    %63 = arith.mulf %62, %61 : vector<192x128xf32>
    %64 = math.tanh %63 : vector<192x128xf32>
    %cst_28 = arith.constant 1.000000e+00 : f32
    %65 = vector.broadcast %cst_28 : f32 to vector<192x128xf32>
    %66 = arith.addf %65, %64 : vector<192x128xf32>
    %67 = arith.mulf %56, %66 : vector<192x128xf32>
    %c0_29 = arith.constant 0 : index
    %c0_30 = arith.constant 0 : index
    %68 = vector.load %arg7[%c0_29, %c0_30] : memref<128x64xf32, #tpu.memory_space<vmem>>, vector<128x64xf32>
    %cst_31 = arith.constant dense<0.000000e+00> : vector<192x64xf32>
    %69 = tpu.matmul %67, %68, %cst_31 {dimension_numbers = #tpu.dot_dimension_numbers<[1], [0], [0], [1], [0, 0, 1, 1], [], []>} : vector<192x128xf32>, vector<128x64xf32>, vector<192x64xf32> -> vector<192x64xf32>
    %c0_32 = arith.constant 0 : index
    %c640 = arith.constant 640 : index
    %70 = vector.load %arg3[%c0_32, %c640] : memref<1x2176xf32, #tpu.memory_space<vmem>>, vector<1x64xf32>
    %71 = vector.broadcast %70 : vector<1x64xf32> to vector<192x64xf32>
    %72 = arith.addf %69, %71 : vector<192x64xf32>
    %cst_33 = arith.constant 5.000000e-01 : f32
    %73 = vector.broadcast %cst_33 : f32 to vector<192x64xf32>
    %74 = arith.mulf %73, %72 : vector<192x64xf32>
    %75 = arith.mulf %72, %72 : vector<192x64xf32>
    %76 = arith.mulf %75, %72 : vector<192x64xf32>
    %cst_34 = arith.constant 4.471500e-02 : f32
    %77 = vector.broadcast %cst_34 : f32 to vector<192x64xf32>
    %78 = arith.mulf %77, %76 : vector<192x64xf32>
    %79 = arith.addf %72, %78 : vector<192x64xf32>
    %cst_35 = arith.constant 0.797884583 : f32
    %80 = vector.broadcast %cst_35 : f32 to vector<192x64xf32>
    %81 = arith.mulf %80, %79 : vector<192x64xf32>
    %82 = math.tanh %81 : vector<192x64xf32>
    %cst_36 = arith.constant 1.000000e+00 : f32
    %83 = vector.broadcast %cst_36 : f32 to vector<192x64xf32>
    %84 = arith.addf %83, %82 : vector<192x64xf32>
    %85 = arith.mulf %74, %84 : vector<192x64xf32>
    %c0_37 = arith.constant 0 : index
    %c0_38 = arith.constant 0 : index
    %86 = vector.load %arg8[%c0_37, %c0_38] : memref<64x64xf32, #tpu.memory_space<vmem>>, vector<64x64xf32>
    %cst_39 = arith.constant dense<0.000000e+00> : vector<192x64xf32>
    %87 = tpu.matmul %85, %86, %cst_39 {dimension_numbers = #tpu.dot_dimension_numbers<[1], [0], [0], [1], [0, 0, 1, 1], [], []>} : vector<192x64xf32>, vector<64x64xf32>, vector<192x64xf32> -> vector<192x64xf32>
    %c0_40 = arith.constant 0 : index
    %c768 = arith.constant 768 : index
    %88 = vector.load %arg3[%c0_40, %c768] : memref<1x2176xf32, #tpu.memory_space<vmem>>, vector<1x64xf32>
    %89 = vector.broadcast %88 : vector<1x64xf32> to vector<192x64xf32>
    %90 = arith.addf %87, %89 : vector<192x64xf32>
    %c0_41 = arith.constant 0 : index
    %c0_42 = arith.constant 0 : index
    %91 = vector.load %arg9[%c0_41, %c0_42] : memref<64x192xf32, #tpu.memory_space<vmem>>, vector<64x192xf32>
    %cst_43 = arith.constant dense<0.000000e+00> : vector<192x192xf32>
    %92 = tpu.matmul %90, %91, %cst_43 {dimension_numbers = #tpu.dot_dimension_numbers<[1], [0], [0], [1], [0, 0, 1, 1], [], []>} : vector<192x64xf32>, vector<64x192xf32>, vector<192x192xf32> -> vector<192x192xf32>
    %93 = vector.broadcast %49 : vector<192x1xf32> to vector<192x192xf32>
    %94 = arith.mulf %93, %92 : vector<192x192xf32>
    %c0_44 = arith.constant 0 : index
    %c896 = arith.constant 896 : index
    %95 = vector.load %arg3[%c0_44, %c896] : memref<1x2176xf32, #tpu.memory_space<vmem>>, vector<1x192xf32>
    %96 = vector.broadcast %95 : vector<1x192xf32> to vector<192x192xf32>
    %97 = arith.addf %94, %96 : vector<192x192xf32>
    %98 = vector.shape_cast %97 : vector<192x192xf32> to vector<8x24x192xf32>
    %99 = vector.extract_strided_slice %98 {offsets = [0, 0, 0], sizes = [8, 20, 192], strides = [1, 1, 1]} : vector<8x24x192xf32> to vector<8x20x192xf32>
    %c0_45 = arith.constant 0 : index
    %c0_46 = arith.constant 0 : index
    %100 = vector.load %arg2[%c0_45, %c0_46] : memref<8x5xf32, #tpu.memory_space<vmem>>, vector<8x5xf32>
    %c0_47 = arith.constant 0 : index
    %c0_48 = arith.constant 0 : index
    %101 = vector.load %arg11[%c0_47, %c0_48] : memref<5x128xf32, #tpu.memory_space<vmem>>, vector<5x128xf32>
    %cst_49 = arith.constant dense<0.000000e+00> : vector<8x128xf32>
    %102 = tpu.matmul %100, %101, %cst_49 {dimension_numbers = #tpu.dot_dimension_numbers<[1], [0], [0], [1], [0, 0, 1, 1], [], []>} : vector<8x5xf32>, vector<5x128xf32>, vector<8x128xf32> -> vector<8x128xf32>
    %c0_50 = arith.constant 0 : index
    %c1152 = arith.constant 1152 : index
    %103 = vector.load %arg3[%c0_50, %c1152] : memref<1x2176xf32, #tpu.memory_space<vmem>>, vector<1x128xf32>
    %104 = vector.broadcast %103 : vector<1x128xf32> to vector<8x128xf32>
    %105 = arith.addf %102, %104 : vector<8x128xf32>
    %cst_51 = arith.constant 5.000000e-01 : f32
    %106 = vector.broadcast %cst_51 : f32 to vector<8x128xf32>
    %107 = arith.mulf %106, %105 : vector<8x128xf32>
    %108 = arith.mulf %105, %105 : vector<8x128xf32>
    %109 = arith.mulf %108, %105 : vector<8x128xf32>
    %cst_52 = arith.constant 4.471500e-02 : f32
    %110 = vector.broadcast %cst_52 : f32 to vector<8x128xf32>
    %111 = arith.mulf %110, %109 : vector<8x128xf32>
    %112 = arith.addf %105, %111 : vector<8x128xf32>
    %cst_53 = arith.constant 0.797884583 : f32
    %113 = vector.broadcast %cst_53 : f32 to vector<8x128xf32>
    %114 = arith.mulf %113, %112 : vector<8x128xf32>
    %115 = math.tanh %114 : vector<8x128xf32>
    %cst_54 = arith.constant 1.000000e+00 : f32
    %116 = vector.broadcast %cst_54 : f32 to vector<8x128xf32>
    %117 = arith.addf %116, %115 : vector<8x128xf32>
    %118 = arith.mulf %107, %117 : vector<8x128xf32>
    %c0_55 = arith.constant 0 : index
    %c0_56 = arith.constant 0 : index
    %119 = vector.load %arg12[%c0_55, %c0_56] : memref<128x64xf32, #tpu.memory_space<vmem>>, vector<128x64xf32>
    %cst_57 = arith.constant dense<0.000000e+00> : vector<8x64xf32>
    %120 = tpu.matmul %118, %119, %cst_57 {dimension_numbers = #tpu.dot_dimension_numbers<[1], [0], [0], [1], [0, 0, 1, 1], [], []>} : vector<8x128xf32>, vector<128x64xf32>, vector<8x64xf32> -> vector<8x64xf32>
    %c0_58 = arith.constant 0 : index
    %c1280 = arith.constant 1280 : index
    %121 = vector.load %arg3[%c0_58, %c1280] : memref<1x2176xf32, #tpu.memory_space<vmem>>, vector<1x64xf32>
    %122 = vector.broadcast %121 : vector<1x64xf32> to vector<8x64xf32>
    %123 = arith.addf %120, %122 : vector<8x64xf32>
    %cst_59 = arith.constant 5.000000e-01 : f32
    %124 = vector.broadcast %cst_59 : f32 to vector<8x64xf32>
    %125 = arith.mulf %124, %123 : vector<8x64xf32>
    %126 = arith.mulf %123, %123 : vector<8x64xf32>
    %127 = arith.mulf %126, %123 : vector<8x64xf32>
    %cst_60 = arith.constant 4.471500e-02 : f32
    %128 = vector.broadcast %cst_60 : f32 to vector<8x64xf32>
    %129 = arith.mulf %128, %127 : vector<8x64xf32>
    %130 = arith.addf %123, %129 : vector<8x64xf32>
    %cst_61 = arith.constant 0.797884583 : f32
    %131 = vector.broadcast %cst_61 : f32 to vector<8x64xf32>
    %132 = arith.mulf %131, %130 : vector<8x64xf32>
    %133 = math.tanh %132 : vector<8x64xf32>
    %cst_62 = arith.constant 1.000000e+00 : f32
    %134 = vector.broadcast %cst_62 : f32 to vector<8x64xf32>
    %135 = arith.addf %134, %133 : vector<8x64xf32>
    %136 = arith.mulf %125, %135 : vector<8x64xf32>
    %c0_63 = arith.constant 0 : index
    %c0_64 = arith.constant 0 : index
    %137 = vector.load %arg13[%c0_63, %c0_64] : memref<64x64xf32, #tpu.memory_space<vmem>>, vector<64x64xf32>
    %cst_65 = arith.constant dense<0.000000e+00> : vector<8x64xf32>
    %138 = tpu.matmul %136, %137, %cst_65 {dimension_numbers = #tpu.dot_dimension_numbers<[1], [0], [0], [1], [0, 0, 1, 1], [], []>} : vector<8x64xf32>, vector<64x64xf32>, vector<8x64xf32> -> vector<8x64xf32>
    %c0_66 = arith.constant 0 : index
    %c1408 = arith.constant 1408 : index
    %139 = vector.load %arg3[%c0_66, %c1408] : memref<1x2176xf32, #tpu.memory_space<vmem>>, vector<1x64xf32>
    %140 = vector.broadcast %139 : vector<1x64xf32> to vector<8x64xf32>
    %141 = arith.addf %138, %140 : vector<8x64xf32>
    %cst_67 = arith.constant dense<0.000000e+00> : vector<8xf32>
    %142 = vector.multi_reduction <add>, %141, %cst_67 [1] : vector<8x64xf32> to vector<8xf32>
    %143 = vector.shape_cast %142 : vector<8xf32> to vector<8x1xf32>
    %cst_68 = arith.constant 6.400000e+01 : f32
    %144 = vector.broadcast %cst_68 : f32 to vector<8x1xf32>
    %145 = arith.divf %143, %144 : vector<8x1xf32>
    %146 = vector.broadcast %145 : vector<8x1xf32> to vector<8x64xf32>
    %147 = arith.subf %141, %146 : vector<8x64xf32>
    %148 = arith.mulf %147, %147 : vector<8x64xf32>
    %cst_69 = arith.constant dense<0.000000e+00> : vector<8xf32>
    %149 = vector.multi_reduction <add>, %148, %cst_69 [1] : vector<8x64xf32> to vector<8xf32>
    %150 = vector.shape_cast %149 : vector<8xf32> to vector<8x1xf32>
    %cst_70 = arith.constant 6.400000e+01 : f32
    %151 = vector.broadcast %cst_70 : f32 to vector<8x1xf32>
    %152 = arith.divf %150, %151 : vector<8x1xf32>
    %cst_71 = arith.constant 9.99999974E-6 : f32
    %153 = vector.broadcast %cst_71 : f32 to vector<8x1xf32>
    %154 = arith.addf %152, %153 : vector<8x1xf32>
    %155 = math.rsqrt %154 : vector<8x1xf32>
    %156 = vector.broadcast %155 : vector<8x1xf32> to vector<8x64xf32>
    %157 = arith.mulf %147, %156 : vector<8x64xf32>
    %c0_72 = arith.constant 0 : index
    %c0_73 = arith.constant 0 : index
    %158 = vector.load %arg14[%c0_72, %c0_73] : memref<64x64xf32, #tpu.memory_space<vmem>>, vector<64x64xf32>
    %cst_74 = arith.constant dense<0.000000e+00> : vector<8x64xf32>
    %159 = tpu.matmul %157, %158, %cst_74 {dimension_numbers = #tpu.dot_dimension_numbers<[1], [0], [0], [1], [0, 0, 1, 1], [], []>} : vector<8x64xf32>, vector<64x64xf32>, vector<8x64xf32> -> vector<8x64xf32>
    %c0_75 = arith.constant 0 : index
    %c1536 = arith.constant 1536 : index
    %160 = vector.load %arg3[%c0_75, %c1536] : memref<1x2176xf32, #tpu.memory_space<vmem>>, vector<1x64xf32>
    %161 = vector.broadcast %160 : vector<1x64xf32> to vector<8x64xf32>
    %162 = arith.addf %159, %161 : vector<8x64xf32>
    %163 = vector.extract_strided_slice %99 {offsets = [0, 0, 0], sizes = [8, 20, 16], strides = [1, 1, 1]} : vector<8x20x192xf32> to vector<8x20x16xf32>
    %164 = vector.extract_strided_slice %99 {offsets = [0, 0, 64], sizes = [8, 20, 16], strides = [1, 1, 1]} : vector<8x20x192xf32> to vector<8x20x16xf32>
    %165 = vector.extract_strided_slice %99 {offsets = [0, 0, 128], sizes = [8, 20, 16], strides = [1, 1, 1]} : vector<8x20x192xf32> to vector<8x20x16xf32>
    %cst_76 = arith.constant dense<0.000000e+00> : vector<8x20x20xf32>
    %166 = tpu.matmul %163, %164, %cst_76 {dimension_numbers = #tpu.dot_dimension_numbers<[2], [2], [1], [1], [0, 0, 0, 1, 1, 1], [0], [0]>} : vector<8x20x16xf32>, vector<8x20x16xf32>, vector<8x20x20xf32> -> vector<8x20x20xf32>
    %cst_77 = arith.constant 2.500000e-01 : f32
    %167 = vector.broadcast %cst_77 : f32 to vector<8x20x20xf32>
    %168 = arith.mulf %166, %167 : vector<8x20x20xf32>
    %cst_78 = arith.constant dense<0xFF800000> : vector<8x20xf32>
    %169 = vector.multi_reduction <maximumf>, %168, %cst_78 [2] : vector<8x20x20xf32> to vector<8x20xf32>
    %170 = vector.shape_cast %169 : vector<8x20xf32> to vector<8x20x1xf32>
    %171 = vector.broadcast %170 : vector<8x20x1xf32> to vector<8x20x20xf32>
    %172 = arith.subf %168, %171 : vector<8x20x20xf32>
    %173 = math.exp %172 : vector<8x20x20xf32>
    %cst_79 = arith.constant dense<0.000000e+00> : vector<8x20xf32>
    %174 = vector.multi_reduction <add>, %173, %cst_79 [2] : vector<8x20x20xf32> to vector<8x20xf32>
    %175 = vector.shape_cast %174 : vector<8x20xf32> to vector<8x20x1xf32>
    %176 = tpu.reciprocal %175 {approx = true} : vector<8x20x1xf32> -> vector<8x20x1xf32>
    %177 = arith.mulf %175, %176 : vector<8x20x1xf32>
    %cst_80 = arith.constant 2.000000e+00 : f32
    %178 = vector.broadcast %cst_80 : f32 to vector<8x20x1xf32>
    %179 = arith.subf %178, %177 : vector<8x20x1xf32>
    %180 = arith.mulf %176, %179 : vector<8x20x1xf32>
    %181 = vector.broadcast %180 : vector<8x20x1xf32> to vector<8x20x20xf32>
    %182 = arith.mulf %173, %181 : vector<8x20x20xf32>
    %cst_81 = arith.constant dense<0.000000e+00> : vector<8x20xf32>
    %183 = vector.multi_reduction <add>, %182, %cst_81 [1] : vector<8x20x20xf32> to vector<8x20xf32>
    %184 = vector.shape_cast %183 : vector<8x20xf32> to vector<8x1x20xf32>
    %cst_82 = arith.constant 5.000000e-02 : f32
    %185 = vector.broadcast %cst_82 : f32 to vector<8x1x20xf32>
    %186 = arith.mulf %184, %185 : vector<8x1x20xf32>
    %cst_83 = arith.constant dense<0.000000e+00> : vector<8x1x16xf32>
    %187 = tpu.matmul %186, %165, %cst_83 {dimension_numbers = #tpu.dot_dimension_numbers<[2], [1], [1], [2], [0, 0, 0, 1, 1, 2], [0], [0]>} : vector<8x1x20xf32>, vector<8x20x16xf32>, vector<8x1x16xf32> -> vector<8x1x16xf32>
    %188 = vector.extract_strided_slice %99 {offsets = [0, 0, 16], sizes = [8, 20, 16], strides = [1, 1, 1]} : vector<8x20x192xf32> to vector<8x20x16xf32>
    %189 = vector.extract_strided_slice %99 {offsets = [0, 0, 80], sizes = [8, 20, 16], strides = [1, 1, 1]} : vector<8x20x192xf32> to vector<8x20x16xf32>
    %190 = vector.extract_strided_slice %99 {offsets = [0, 0, 144], sizes = [8, 20, 16], strides = [1, 1, 1]} : vector<8x20x192xf32> to vector<8x20x16xf32>
    %cst_84 = arith.constant dense<0.000000e+00> : vector<8x20x20xf32>
    %191 = tpu.matmul %188, %189, %cst_84 {dimension_numbers = #tpu.dot_dimension_numbers<[2], [2], [1], [1], [0, 0, 0, 1, 1, 1], [0], [0]>} : vector<8x20x16xf32>, vector<8x20x16xf32>, vector<8x20x20xf32> -> vector<8x20x20xf32>
    %cst_85 = arith.constant 2.500000e-01 : f32
    %192 = vector.broadcast %cst_85 : f32 to vector<8x20x20xf32>
    %193 = arith.mulf %191, %192 : vector<8x20x20xf32>
    %cst_86 = arith.constant dense<0xFF800000> : vector<8x20xf32>
    %194 = vector.multi_reduction <maximumf>, %193, %cst_86 [2] : vector<8x20x20xf32> to vector<8x20xf32>
    %195 = vector.shape_cast %194 : vector<8x20xf32> to vector<8x20x1xf32>
    %196 = vector.broadcast %195 : vector<8x20x1xf32> to vector<8x20x20xf32>
    %197 = arith.subf %193, %196 : vector<8x20x20xf32>
    %198 = math.exp %197 : vector<8x20x20xf32>
    %cst_87 = arith.constant dense<0.000000e+00> : vector<8x20xf32>
    %199 = vector.multi_reduction <add>, %198, %cst_87 [2] : vector<8x20x20xf32> to vector<8x20xf32>
    %200 = vector.shape_cast %199 : vector<8x20xf32> to vector<8x20x1xf32>
    %201 = tpu.reciprocal %200 {approx = true} : vector<8x20x1xf32> -> vector<8x20x1xf32>
    %202 = arith.mulf %200, %201 : vector<8x20x1xf32>
    %cst_88 = arith.constant 2.000000e+00 : f32
    %203 = vector.broadcast %cst_88 : f32 to vector<8x20x1xf32>
    %204 = arith.subf %203, %202 : vector<8x20x1xf32>
    %205 = arith.mulf %201, %204 : vector<8x20x1xf32>
    %206 = vector.broadcast %205 : vector<8x20x1xf32> to vector<8x20x20xf32>
    %207 = arith.mulf %198, %206 : vector<8x20x20xf32>
    %cst_89 = arith.constant dense<0.000000e+00> : vector<8x20xf32>
    %208 = vector.multi_reduction <add>, %207, %cst_89 [1] : vector<8x20x20xf32> to vector<8x20xf32>
    %209 = vector.shape_cast %208 : vector<8x20xf32> to vector<8x1x20xf32>
    %cst_90 = arith.constant 5.000000e-02 : f32
    %210 = vector.broadcast %cst_90 : f32 to vector<8x1x20xf32>
    %211 = arith.mulf %209, %210 : vector<8x1x20xf32>
    %cst_91 = arith.constant dense<0.000000e+00> : vector<8x1x16xf32>
    %212 = tpu.matmul %211, %190, %cst_91 {dimension_numbers = #tpu.dot_dimension_numbers<[2], [1], [1], [2], [0, 0, 0, 1, 1, 2], [0], [0]>} : vector<8x1x20xf32>, vector<8x20x16xf32>, vector<8x1x16xf32> -> vector<8x1x16xf32>
    %213 = vector.extract_strided_slice %99 {offsets = [0, 0, 32], sizes = [8, 20, 16], strides = [1, 1, 1]} : vector<8x20x192xf32> to vector<8x20x16xf32>
    %214 = vector.extract_strided_slice %99 {offsets = [0, 0, 96], sizes = [8, 20, 16], strides = [1, 1, 1]} : vector<8x20x192xf32> to vector<8x20x16xf32>
    %215 = vector.extract_strided_slice %99 {offsets = [0, 0, 160], sizes = [8, 20, 16], strides = [1, 1, 1]} : vector<8x20x192xf32> to vector<8x20x16xf32>
    %cst_92 = arith.constant dense<0.000000e+00> : vector<8x20x20xf32>
    %216 = tpu.matmul %213, %214, %cst_92 {dimension_numbers = #tpu.dot_dimension_numbers<[2], [2], [1], [1], [0, 0, 0, 1, 1, 1], [0], [0]>} : vector<8x20x16xf32>, vector<8x20x16xf32>, vector<8x20x20xf32> -> vector<8x20x20xf32>
    %cst_93 = arith.constant 2.500000e-01 : f32
    %217 = vector.broadcast %cst_93 : f32 to vector<8x20x20xf32>
    %218 = arith.mulf %216, %217 : vector<8x20x20xf32>
    %cst_94 = arith.constant dense<0xFF800000> : vector<8x20xf32>
    %219 = vector.multi_reduction <maximumf>, %218, %cst_94 [2] : vector<8x20x20xf32> to vector<8x20xf32>
    %220 = vector.shape_cast %219 : vector<8x20xf32> to vector<8x20x1xf32>
    %221 = vector.broadcast %220 : vector<8x20x1xf32> to vector<8x20x20xf32>
    %222 = arith.subf %218, %221 : vector<8x20x20xf32>
    %223 = math.exp %222 : vector<8x20x20xf32>
    %cst_95 = arith.constant dense<0.000000e+00> : vector<8x20xf32>
    %224 = vector.multi_reduction <add>, %223, %cst_95 [2] : vector<8x20x20xf32> to vector<8x20xf32>
    %225 = vector.shape_cast %224 : vector<8x20xf32> to vector<8x20x1xf32>
    %226 = tpu.reciprocal %225 {approx = true} : vector<8x20x1xf32> -> vector<8x20x1xf32>
    %227 = arith.mulf %225, %226 : vector<8x20x1xf32>
    %cst_96 = arith.constant 2.000000e+00 : f32
    %228 = vector.broadcast %cst_96 : f32 to vector<8x20x1xf32>
    %229 = arith.subf %228, %227 : vector<8x20x1xf32>
    %230 = arith.mulf %226, %229 : vector<8x20x1xf32>
    %231 = vector.broadcast %230 : vector<8x20x1xf32> to vector<8x20x20xf32>
    %232 = arith.mulf %223, %231 : vector<8x20x20xf32>
    %cst_97 = arith.constant dense<0.000000e+00> : vector<8x20xf32>
    %233 = vector.multi_reduction <add>, %232, %cst_97 [1] : vector<8x20x20xf32> to vector<8x20xf32>
    %234 = vector.shape_cast %233 : vector<8x20xf32> to vector<8x1x20xf32>
    %cst_98 = arith.constant 5.000000e-02 : f32
    %235 = vector.broadcast %cst_98 : f32 to vector<8x1x20xf32>
    %236 = arith.mulf %234, %235 : vector<8x1x20xf32>
    %cst_99 = arith.constant dense<0.000000e+00> : vector<8x1x16xf32>
    %237 = tpu.matmul %236, %215, %cst_99 {dimension_numbers = #tpu.dot_dimension_numbers<[2], [1], [1], [2], [0, 0, 0, 1, 1, 2], [0], [0]>} : vector<8x1x20xf32>, vector<8x20x16xf32>, vector<8x1x16xf32> -> vector<8x1x16xf32>
    %238 = vector.extract_strided_slice %99 {offsets = [0, 0, 48], sizes = [8, 20, 16], strides = [1, 1, 1]} : vector<8x20x192xf32> to vector<8x20x16xf32>
    %239 = vector.extract_strided_slice %99 {offsets = [0, 0, 112], sizes = [8, 20, 16], strides = [1, 1, 1]} : vector<8x20x192xf32> to vector<8x20x16xf32>
    %240 = vector.extract_strided_slice %99 {offsets = [0, 0, 176], sizes = [8, 20, 16], strides = [1, 1, 1]} : vector<8x20x192xf32> to vector<8x20x16xf32>
    %cst_100 = arith.constant dense<0.000000e+00> : vector<8x20x20xf32>
    %241 = tpu.matmul %238, %239, %cst_100 {dimension_numbers = #tpu.dot_dimension_numbers<[2], [2], [1], [1], [0, 0, 0, 1, 1, 1], [0], [0]>} : vector<8x20x16xf32>, vector<8x20x16xf32>, vector<8x20x20xf32> -> vector<8x20x20xf32>
    %cst_101 = arith.constant 2.500000e-01 : f32
    %242 = vector.broadcast %cst_101 : f32 to vector<8x20x20xf32>
    %243 = arith.mulf %241, %242 : vector<8x20x20xf32>
    %cst_102 = arith.constant dense<0xFF800000> : vector<8x20xf32>
    %244 = vector.multi_reduction <maximumf>, %243, %cst_102 [2] : vector<8x20x20xf32> to vector<8x20xf32>
    %245 = vector.shape_cast %244 : vector<8x20xf32> to vector<8x20x1xf32>
    %246 = vector.broadcast %245 : vector<8x20x1xf32> to vector<8x20x20xf32>
    %247 = arith.subf %243, %246 : vector<8x20x20xf32>
    %248 = math.exp %247 : vector<8x20x20xf32>
    %cst_103 = arith.constant dense<0.000000e+00> : vector<8x20xf32>
    %249 = vector.multi_reduction <add>, %248, %cst_103 [2] : vector<8x20x20xf32> to vector<8x20xf32>
    %250 = vector.shape_cast %249 : vector<8x20xf32> to vector<8x20x1xf32>
    %251 = tpu.reciprocal %250 {approx = true} : vector<8x20x1xf32> -> vector<8x20x1xf32>
    %252 = arith.mulf %250, %251 : vector<8x20x1xf32>
    %cst_104 = arith.constant 2.000000e+00 : f32
    %253 = vector.broadcast %cst_104 : f32 to vector<8x20x1xf32>
    %254 = arith.subf %253, %252 : vector<8x20x1xf32>
    %255 = arith.mulf %251, %254 : vector<8x20x1xf32>
    %256 = vector.broadcast %255 : vector<8x20x1xf32> to vector<8x20x20xf32>
    %257 = arith.mulf %248, %256 : vector<8x20x20xf32>
    %cst_105 = arith.constant dense<0.000000e+00> : vector<8x20xf32>
    %258 = vector.multi_reduction <add>, %257, %cst_105 [1] : vector<8x20x20xf32> to vector<8x20xf32>
    %259 = vector.shape_cast %258 : vector<8x20xf32> to vector<8x1x20xf32>
    %cst_106 = arith.constant 5.000000e-02 : f32
    %260 = vector.broadcast %cst_106 : f32 to vector<8x1x20xf32>
    %261 = arith.mulf %259, %260 : vector<8x1x20xf32>
    %cst_107 = arith.constant dense<0.000000e+00> : vector<8x1x16xf32>
    %262 = tpu.matmul %261, %240, %cst_107 {dimension_numbers = #tpu.dot_dimension_numbers<[2], [1], [1], [2], [0, 0, 0, 1, 1, 2], [0], [0]>} : vector<8x1x20xf32>, vector<8x20x16xf32>, vector<8x1x16xf32> -> vector<8x1x16xf32>
    %263 = tpu.concatenate %187, %212, %237, %262 in 2 : vector<8x1x16xf32>, vector<8x1x16xf32>, vector<8x1x16xf32>, vector<8x1x16xf32> -> vector<8x1x64xf32>
    %cst_108 = arith.constant dense<0.000000e+00> : vector<8x64xf32>
    %264 = vector.multi_reduction <add>, %263, %cst_108 [1] : vector<8x1x64xf32> to vector<8x64xf32>
    %c0_109 = arith.constant 0 : index
    %c0_110 = arith.constant 0 : index
    %265 = vector.load %arg10[%c0_109, %c0_110] : memref<64x64xf32, #tpu.memory_space<vmem>>, vector<64x64xf32>
    %cst_111 = arith.constant dense<0.000000e+00> : vector<8x64xf32>
    %266 = tpu.matmul %264, %265, %cst_111 {dimension_numbers = #tpu.dot_dimension_numbers<[1], [0], [0], [1], [0, 0, 1, 1], [], []>} : vector<8x64xf32>, vector<64x64xf32>, vector<8x64xf32> -> vector<8x64xf32>
    %267 = arith.addf %162, %266 : vector<8x64xf32>
    %c0_112 = arith.constant 0 : index
    %c0_113 = arith.constant 0 : index
    %268 = vector.load %arg15[%c0_112, %c0_113] : memref<64x256xf32, #tpu.memory_space<vmem>>, vector<64x256xf32>
    %cst_114 = arith.constant dense<0.000000e+00> : vector<8x256xf32>
    %269 = tpu.matmul %267, %268, %cst_114 {dimension_numbers = #tpu.dot_dimension_numbers<[1], [0], [0], [1], [0, 0, 1, 1], [], []>} : vector<8x64xf32>, vector<64x256xf32>, vector<8x256xf32> -> vector<8x256xf32>
    %c0_115 = arith.constant 0 : index
    %c1664 = arith.constant 1664 : index
    %270 = vector.load %arg3[%c0_115, %c1664] : memref<1x2176xf32, #tpu.memory_space<vmem>>, vector<1x256xf32>
    %271 = vector.broadcast %270 : vector<1x256xf32> to vector<8x256xf32>
    %272 = arith.addf %269, %271 : vector<8x256xf32>
    %cst_116 = arith.constant 5.000000e-01 : f32
    %273 = vector.broadcast %cst_116 : f32 to vector<8x256xf32>
    %274 = arith.mulf %273, %272 : vector<8x256xf32>
    %275 = arith.mulf %272, %272 : vector<8x256xf32>
    %276 = arith.mulf %275, %272 : vector<8x256xf32>
    %cst_117 = arith.constant 4.471500e-02 : f32
    %277 = vector.broadcast %cst_117 : f32 to vector<8x256xf32>
    %278 = arith.mulf %277, %276 : vector<8x256xf32>
    %279 = arith.addf %272, %278 : vector<8x256xf32>
    %cst_118 = arith.constant 0.797884583 : f32
    %280 = vector.broadcast %cst_118 : f32 to vector<8x256xf32>
    %281 = arith.mulf %280, %279 : vector<8x256xf32>
    %282 = math.tanh %281 : vector<8x256xf32>
    %cst_119 = arith.constant 1.000000e+00 : f32
    %283 = vector.broadcast %cst_119 : f32 to vector<8x256xf32>
    %284 = arith.addf %283, %282 : vector<8x256xf32>
    %285 = arith.mulf %274, %284 : vector<8x256xf32>
    %c0_120 = arith.constant 0 : index
    %c0_121 = arith.constant 0 : index
    %286 = vector.load %arg16[%c0_120, %c0_121] : memref<256x128xf32, #tpu.memory_space<vmem>>, vector<256x128xf32>
    %cst_122 = arith.constant dense<0.000000e+00> : vector<8x128xf32>
    %287 = tpu.matmul %285, %286, %cst_122 {dimension_numbers = #tpu.dot_dimension_numbers<[1], [0], [0], [1], [0, 0, 1, 1], [], []>} : vector<8x256xf32>, vector<256x128xf32>, vector<8x128xf32> -> vector<8x128xf32>
    %c0_123 = arith.constant 0 : index
    %c1920 = arith.constant 1920 : index
    %288 = vector.load %arg3[%c0_123, %c1920] : memref<1x2176xf32, #tpu.memory_space<vmem>>, vector<1x128xf32>
    %289 = vector.broadcast %288 : vector<1x128xf32> to vector<8x128xf32>
    %290 = arith.addf %287, %289 : vector<8x128xf32>
    %cst_124 = arith.constant 5.000000e-01 : f32
    %291 = vector.broadcast %cst_124 : f32 to vector<8x128xf32>
    %292 = arith.mulf %291, %290 : vector<8x128xf32>
    %293 = arith.mulf %290, %290 : vector<8x128xf32>
    %294 = arith.mulf %293, %290 : vector<8x128xf32>
    %cst_125 = arith.constant 4.471500e-02 : f32
    %295 = vector.broadcast %cst_125 : f32 to vector<8x128xf32>
    %296 = arith.mulf %295, %294 : vector<8x128xf32>
    %297 = arith.addf %290, %296 : vector<8x128xf32>
    %cst_126 = arith.constant 0.797884583 : f32
    %298 = vector.broadcast %cst_126 : f32 to vector<8x128xf32>
    %299 = arith.mulf %298, %297 : vector<8x128xf32>
    %300 = math.tanh %299 : vector<8x128xf32>
    %cst_127 = arith.constant 1.000000e+00 : f32
    %301 = vector.broadcast %cst_127 : f32 to vector<8x128xf32>
    %302 = arith.addf %301, %300 : vector<8x128xf32>
    %303 = arith.mulf %292, %302 : vector<8x128xf32>
    %c0_128 = arith.constant 0 : index
    %c0_129 = arith.constant 0 : index
    %304 = vector.load %arg17[%c0_128, %c0_129] : memref<128x128xf32, #tpu.memory_space<vmem>>, vector<128x128xf32>
    %cst_130 = arith.constant dense<0.000000e+00> : vector<8x128xf32>
    %305 = tpu.matmul %303, %304, %cst_130 {dimension_numbers = #tpu.dot_dimension_numbers<[1], [0], [0], [1], [0, 0, 1, 1], [], []>} : vector<8x128xf32>, vector<128x128xf32>, vector<8x128xf32> -> vector<8x128xf32>
    %c0_131 = arith.constant 0 : index
    %c2048 = arith.constant 2048 : index
    %306 = vector.load %arg3[%c0_131, %c2048] : memref<1x2176xf32, #tpu.memory_space<vmem>>, vector<1x128xf32>
    %307 = vector.broadcast %306 : vector<1x128xf32> to vector<8x128xf32>
    %308 = arith.addf %305, %307 : vector<8x128xf32>
    %309 = vector.shape_cast %49 : vector<192x1xf32> to vector<8x24x1xf32>
    %cst_132 = arith.constant 1.000000e+00 : f32
    %310 = vector.broadcast %cst_132 : f32 to vector<8x1x1xf32>
    %cst_133 = arith.constant dense<0.000000e+00> : vector<8x1x24xf32>
    %311 = tpu.matmul %310, %309, %cst_133 {dimension_numbers = #tpu.dot_dimension_numbers<[2], [2], [1], [1], [0, 0, 0, 1, 1, 1], [0], [0]>} : vector<8x1x1xf32>, vector<8x24x1xf32>, vector<8x1x24xf32> -> vector<8x1x24xf32>
    %cst_134 = arith.constant dense<0.000000e+00> : vector<8x24xf32>
    %312 = vector.multi_reduction <add>, %311, %cst_134 [1] : vector<8x1x24xf32> to vector<8x24xf32>
    %cst_135 = arith.constant 0.000000e+00 : f32
    %313 = vector.broadcast %cst_135 : f32 to vector<8x40xf32>
    %314 = tpu.concatenate %308, %267, %312, %313 in 1 : vector<8x128xf32>, vector<8x64xf32>, vector<8x24xf32>, vector<8x40xf32> -> vector<8x256xf32>
    %c0_136 = arith.constant 0 : index
    %c0_137 = arith.constant 0 : index
    %315 = vector.load %arg18[%c0_136, %c0_137] : memref<8x256xf32, #tpu.memory_space<vmem>>, vector<8x256xf32>
    tpu.vector_store %arg18[%c0_136, %c0_137], %314 {strides = array<i32>} : memref<8x256xf32, #tpu.memory_space<vmem>>, vector<8x256xf32>,
    return
  }
  func.func @transform_0(%arg0: i32) -> (i32, i32) {
    %c0_i32 = arith.constant 0 : i32
    %c0_i32_0 = arith.constant 0 : i32
    return %arg0, %c0_i32 : i32, i32
  }
  func.func @transform_1(%arg0: i32) -> (i32, i32) {
    %c0_i32 = arith.constant 0 : i32
    %c0_i32_0 = arith.constant 0 : i32
    return %arg0, %c0_i32 : i32, i32
  }
  func.func @transform_2(%arg0: i32) -> (i32, i32) {
    %c0_i32 = arith.constant 0 : i32
    %c0_i32_0 = arith.constant 0 : i32
    %c0_i32_1 = arith.constant 0 : i32
    return %c0_i32, %c0_i32_0 : i32, i32
  }
  func.func @transform_3(%arg0: i32) -> (i32, i32) {
    %c0_i32 = arith.constant 0 : i32
    %c0_i32_0 = arith.constant 0 : i32
    %c0_i32_1 = arith.constant 0 : i32
    return %c0_i32, %c0_i32_0 : i32, i32
  }
  func.func @transform_4(%arg0: i32) -> (i32, i32) {
    %c0_i32 = arith.constant 0 : i32
    %c0_i32_0 = arith.constant 0 : i32
    %c0_i32_1 = arith.constant 0 : i32
    return %c0_i32, %c0_i32_0 : i32, i32
  }
  func.func @transform_5(%arg0: i32) -> (i32, i32) {
    %c0_i32 = arith.constant 0 : i32
    %c0_i32_0 = arith.constant 0 : i32
    %c0_i32_1 = arith.constant 0 : i32
    return %c0_i32, %c0_i32_0 : i32, i32
  }
  func.func @transform_6(%arg0: i32) -> (i32, i32) {
    %c0_i32 = arith.constant 0 : i32
    %c0_i32_0 = arith.constant 0 : i32
    %c0_i32_1 = arith.constant 0 : i32
    return %c0_i32, %c0_i32_0 : i32, i32
  }
  func.func @transform_7(%arg0: i32) -> (i32, i32) {
    %c0_i32 = arith.constant 0 : i32
    %c0_i32_0 = arith.constant 0 : i32
    %c0_i32_1 = arith.constant 0 : i32
    return %c0_i32, %c0_i32_0 : i32, i32
  }
  func.func @transform_8(%arg0: i32) -> (i32, i32) {
    %c0_i32 = arith.constant 0 : i32
    %c0_i32_0 = arith.constant 0 : i32
    %c0_i32_1 = arith.constant 0 : i32
    return %c0_i32, %c0_i32_0 : i32, i32
  }
  func.func @transform_9(%arg0: i32) -> (i32, i32) {
    %c0_i32 = arith.constant 0 : i32
    %c0_i32_0 = arith.constant 0 : i32
    %c0_i32_1 = arith.constant 0 : i32
    return %c0_i32, %c0_i32_0 : i32, i32
  }
  func.func @transform_10(%arg0: i32) -> (i32, i32) {
    %c0_i32 = arith.constant 0 : i32
    %c0_i32_0 = arith.constant 0 : i32
    %c0_i32_1 = arith.constant 0 : i32
    return %c0_i32, %c0_i32_0 : i32, i32
  }
  func.func @transform_11(%arg0: i32) -> (i32, i32) {
    %c0_i32 = arith.constant 0 : i32
    %c0_i32_0 = arith.constant 0 : i32
    %c0_i32_1 = arith.constant 0 : i32
    return %c0_i32, %c0_i32_0 : i32, i32
  }
  func.func @transform_12(%arg0: i32) -> (i32, i32) {
    %c0_i32 = arith.constant 0 : i32
    %c0_i32_0 = arith.constant 0 : i32
    %c0_i32_1 = arith.constant 0 : i32
    return %c0_i32, %c0_i32_0 : i32, i32
  }
  func.func @transform_13(%arg0: i32) -> (i32, i32) {
    %c0_i32 = arith.constant 0 : i32
    %c0_i32_0 = arith.constant 0 : i32
    %c0_i32_1 = arith.constant 0 : i32
    return %c0_i32, %c0_i32_0 : i32, i32
  }
  func.func @transform_14(%arg0: i32) -> (i32, i32) {
    %c0_i32 = arith.constant 0 : i32
    %c0_i32_0 = arith.constant 0 : i32
    %c0_i32_1 = arith.constant 0 : i32
    return %c0_i32, %c0_i32_0 : i32, i32
  }
  func.func @transform_15(%arg0: i32) -> (i32, i32) {
    %c0_i32 = arith.constant 0 : i32
    %c0_i32_0 = arith.constant 0 : i32
    %c0_i32_1 = arith.constant 0 : i32
    return %c0_i32, %c0_i32_0 : i32, i32
  }
  func.func @transform_16(%arg0: i32) -> (i32, i32) {
    %c0_i32 = arith.constant 0 : i32
    %c0_i32_0 = arith.constant 0 : i32
    %c0_i32_1 = arith.constant 0 : i32
    return %c0_i32, %c0_i32_0 : i32, i32
  }
  func.func @transform_17(%arg0: i32) -> (i32, i32) {
    %c0_i32 = arith.constant 0 : i32
    %c0_i32_0 = arith.constant 0 : i32
    return %arg0, %c0_i32 : i32, i32
  }
}

</mosaic_0001>

<bundles_post_ra>
// kernel: run_autoencoder.1
= control target key start
LH: loop header
LB: loop body
LE: loop exit
PB: predicated region body
PF: predicated region fallthrough
CT: control target
= control target key end

     0   :  { %s21294_s0 = inlined_call_operand.vmem [shape: f32[192,6], index: 0, kind: input, shape index: {}]   ;;  %s21295_s1 = inlined_call_operand.vmem [shape: f32[8,5], index: 1, kind: input, shape index: {}]   ;;  %s21296_s2 = inlined_call_operand.hbm [shape: f32[1,2176], index: 2, kind: input, shape index: {}]   ;;  %s21297_s3 = inlined_call_operand.vmem [shape: f32[6,64], index: 3, kind: input, shape index: {}]   ;;  %s21298_s4 = inlined_call_operand.vmem [shape: f32[64,32], index: 4, kind: input, shape index: {}]   ;;  %s21299_s5 = inlined_call_operand.vmem [shape: f32[6,128], index: 5, kind: input, shape index: {}]   ;;  %s21300_s6 = inlined_call_operand.vmem [shape: f32[128,64], index: 6, kind: input, shape index: {}]   ;;  %s21301_s7 = inlined_call_operand.vmem [shape: f32[64,64], index: 7, kind: input, shape index: {}]   ;;  %s21302_s8 = inlined_call_operand.vmem [shape: f32[64,192], index: 8, kind: input, shape index: {}]   ;;  %s21303_s9 = inlined_call_operand.vmem [shape: f32[64,64], index: 9, kind: input, shape index: {}]   ;;  %s21304_s10 = inlined_call_operand.vmem [shape: f32[5,128], index: 10, kind: input, shape index: {}]   ;;  %s21305_s11 = inlined_call_operand.vmem [shape: f32[128,64], index: 11, kind: input, shape index: {}]   ;;  %s21306_s12 = inlined_call_operand.hbm [shape: f32[64,64], index: 12, kind: input, shape index: {}]   ;;  %s21307_s13 = inlined_call_operand.hbm [shape: f32[64,64], index: 13, kind: input, shape index: {}]   ;;  %s21308_s14 = inlined_call_operand.vmem [shape: f32[64,256], index: 14, kind: input, shape index: {}]   ;;  %s21309_s15 = inlined_call_operand.vmem [shape: f32[256,128], index: 15, kind: input, shape index: {}]   ;;  %s21310_s16 = inlined_call_operand.vmem [shape: f32[128,128], index: 16, kind: input, shape index: {}]   ;;  %s21311_s17 = inlined_call_operand.vmem [shape: f32[8,256], index: 17, kind: output, shape index: {}]  }
   0x1   :  { %21462 = sst [smem:[#allocation103_spill]] %s21294_s0 }
   0x2   :  { %21463 = sst [smem:[#allocation104_spill]] %s21295_s1 }
   0x3   :  { %21464 = sst [smem:[#allocation105_spill]] %s21311_s17 }
   0x4   :  { %22 = vsyncpa [#allocation3], 0 }
   0x5   :  { %23 = vsyncpa [#allocation5], 0  ;;  %s16170_s24 = smov [#allocation4]   ;;  %s16100_s28 = scalar_lea.hbm %s21306_s12, 1024 }
   0x6   :  { %s61_s25 = sshll.u32 %s16170_s24, 4  ;;  %p16101_p0 = scmp.ne.s32.totalorder %s21306_s12, %s16100_s28  ;;  %s62_s25 = int_to_ptr.vmem [resolvable:$true] %s61_s25 }
   0x7   :  { %p16104_p1 = scmp.lt.u32.totalorder %s16100_s28, %s21306_s12 }
   0x9   :  { %p16106_p2 = pnand %p16104_p1, %p16101_p0 }
   0xb   :  { %16109 = shalt.err (!%p16106_p2)
}
   0xc   :  { %s16110_s19 = scalar_lea.vmem %s62_s25, 1024  ;;  %p16115_p4 = scmp.lt.s32.totalorder %s62_s25, %s62_s25 }
   0xd   :  { %p16111_p3 = scmp.ne.s32.totalorder %s62_s25, %s16110_s19  ;;  %p16116_p5 = scmp.lt.s32.totalorder %s16110_s19, %s16110_s19 }
   0xf   :  { %p16117_p6 = por %p16116_p5, %p16115_p4 }
  0x11   :  { %p16118_p7 = pnand %p16117_p6, %p16111_p3 }
  0x13   :  { %16121 = shalt.err (!%p16118_p7)
}
  0x14   :  { %s16171_s1 = smov 128   ;;  %s16172_s20 = smov 8  }
  0x15   :  { %67 = dma.hbm_to_vmem [thread:$0]  %s21306_s12, 1024, %s62_s25, [#allocation5], %s16171_s1, %s16171_s1, %s16172_s20  }
  0x16   :  { %s16173_s23 = smov [#allocation2]   ;;  %s16174_s26 = smov [#allocation6]  }
  0x17   :  { %s34_s24 = sshll.u32 %s16173_s23, 4  ;;  %s73_s27 = sshll.u32 %s16174_s26, 4  ;;  %s35_s24 = int_to_ptr.vmem [resolvable:$true] %s34_s24  ;;  %s74_s27 = int_to_ptr.vmem [resolvable:$true] %s73_s27 }
  0x18   :  { %s16122_s0 = scalar_lea.hbm %s21296_s2, 272 }
  0x19   :  { %p16123_p8 = scmp.ne.s32.totalorder %s21296_s2, %s16122_s0  ;;  %p16126_p9 = scmp.lt.u32.totalorder %s16122_s0, %s21296_s2 }
  0x1b   :  { %p16128_p10 = pnand %p16126_p9, %p16123_p8 }
  0x1d   :  { %16131 = shalt.err (!%p16128_p10)
}
  0x1e   :  { %s16132_s12 = scalar_lea.vmem %s35_s24, 272  ;;  %s16136_s25 = scalar_lea.vmem %s35_s24, 288 }
  0x1f   :  { %p16133_p11 = scmp.ne.s32.totalorder %s35_s24, %s16132_s12  ;;  %p16137_p12 = scmp.lt.s32.totalorder %s35_s24, %s35_s24 }
  0x20   :  { %p16138_p13 = scmp.lt.s32.totalorder %s16136_s25, %s16132_s12 }
  0x22   :  { %p16139_p0 = por %p16138_p13, %p16137_p12 }
  0x24   :  { %p16140_p1 = pnand %p16139_p0, %p16133_p11 }
  0x26   :  { %16143 = shalt.err (!%p16140_p1)
}
  0x27   :  { %37 = dma.hbm_to_vmem [thread:$0]  %s21296_s2, 272, %s35_s24, [#allocation3]  }
  0x28   :  { %s16144_s17 = scalar_lea.hbm %s21307_s13, 1024 }
  0x29   :  { %p16145_p2 = scmp.ne.s32.totalorder %s21307_s13, %s16144_s17  ;;  %p16148_p3 = scmp.lt.u32.totalorder %s16144_s17, %s21307_s13 }
  0x2b   :  { %p16150_p4 = pnand %p16148_p3, %p16145_p2 }
  0x2d   :  { %16153 = shalt.err (!%p16150_p4)
}
  0x2e   :  { %s16154_s18 = scalar_lea.vmem %s74_s27, 1024  ;;  %p16159_p6 = scmp.lt.s32.totalorder %s74_s27, %s74_s27 }
  0x2f   :  { %p16155_p5 = scmp.ne.s32.totalorder %s74_s27, %s16154_s18  ;;  %p16160_p7 = scmp.lt.s32.totalorder %s16154_s18, %s16154_s18 }
  0x31   :  { %p16161_p8 = por %p16160_p7, %p16159_p6 }
  0x33   :  { %p16162_p9 = pnand %p16161_p8, %p16155_p5 }
  0x35   :  { %16165 = shalt.err (!%p16162_p9)
}
  0x36   :  { %79 = dma.hbm_to_vmem [thread:$0]  %s21307_s13, 1024, %s74_s27, [#allocation5], %s16171_s1, %s16171_s1, %s16172_s20  }
  0x37   :  { %16166 = dma.done.wait [#allocation3], 272  }
  0x38   :  { %16167 = vsyncadd [#allocation3], 4294967024 }
  0x39   :  { %16168 = dma.done.wait [#allocation5], 2048  }
  0x3a   :  { %16169 = vsyncadd [#allocation5], 4294965248  ;;  %vm200_vm0 = vcmask 1045504   ;;  %vm127_vm1 = vcmask 48128   ;;  %v119_v0 = vld [vmem:[%s21297_s3] sm:$0x3f] }
  0x3b   :  { %s21465_s22 = sld [smem:[#allocation103_spill]]  ;;  %13425 = vmatprep.subr.msk.mxu0 %vm200_vm0, %v119_v0  ;;  %v1373_v3 = vld [vmem:[%s21299_s5] sm:$0x3f]  ;;  %v606_v27 = vld [vmem:[%s21298_s4 + $0x8] sm:$0xff]  ;;  %v607_v29 = vld [vmem:[%s21298_s4 + $0x10] sm:$0xff]  ;;  %vm620_vm2 = vcmask 523264  }
  0x3c   :  { %13426 = vmatpush3.msk.msra.mxu0 %vm200_vm0, %v119_v0  ;;  %v605_v26 = vld [vmem:[%s21298_s4] sm:$0xff]  ;;  %v608_v30 = vld [vmem:[%s21298_s4 + $0x18] sm:$0xff]  ;;  %v610_v33 = vld [vmem:[%s21298_s4 + $0x28] sm:$0xff]  ;;  %vm1125_vm3 = vcmask 261120   ;;  %vm3019_vm4 = vcmask 1044480   ;;  %vm16177_vm5 = vmmov 0  }
  0x3d   :  { %13515 = vmatprep.subr.msk.mxu0 %vm200_vm0, %v1373_v3  ;;  %v14645_v28 = vpack.c.bf16 %v606_v27, %v605_v26  ;;  %v14649_v31 = vpack.c.bf16 %v608_v30, %v607_v29  ;;  %v609_v32 = vld [vmem:[%s21298_s4 + $0x20] sm:$0xff]  ;;  %v611_v35 = vld [vmem:[%s21298_s4 + $0x30] sm:$0xff]  ;;  %v612_v36 = vld [vmem:[%s21298_s4 + $0x38] sm:$0xff]  ;;  %s21466_s17 = sld [smem:[#allocation104_spill]]  ;;  %vm3015_vm6 = vcmask 39936   ;;  %vm3403_vm7 = vcmask 130048  }
  0x3e   :  { %v14653_v34 = vpack.c.bf16 %v610_v33, %v609_v32  ;;  %v14657_v37 = vpack.c.bf16 %v612_v36, %v611_v35  ;;  %v1785_v38 = vld [vmem:[%s21300_s6] sm:$0xff]  ;;  %v1786_v39 = vld [vmem:[%s21300_s6 + $0x8] sm:$0xff]  ;;  %v1787_v0 = vld [vmem:[%s21300_s6 + $0x10] sm:$0xff]  ;;  %vm4227_vm9 = vcmask 162816   ;;  %vm4234_vm10 = vcmask 158720   ;;  %s16180_s25 = smov 48  }
  0x3f   :  { %14646 = vmatprep.subr.bf16.mxu1 %v14645_v28  ;;  %v16475_v40 = vpack.c.bf16 %v1786_v39, %v1785_v38  ;;  %v16478_v41 = vld [vmem:[#allocation2] ss:$0 sm:$0xff]  ;;  %v1798_v27 = vld [vmem:[%s21300_s6 + $0x68] sm:$0xff]  ;;  %vm18161_vm8 = vmpackc.low %vm3403_vm7, %vm3403_vm7  ;;  %vm4664_vm11 = vcmask 1043456   ;;  %s16181_s21 = smov 112   ;;  %s16182_s23 = smov 32  }
  0x40   :  { %14648 = vmatpush3.bf16.msra.mxu1 %v14645_v28  ;;  %v1797_v26 = vld [vmem:[%s21300_s6 + $0x60] sm:$0xff]  ;;  %s16183_s26 = smov 96   ;;  %s16184_s13 = smov 16   ;;  %vm11254_vm12 = vcmask 392192   ;;  %vm11288_vm13 = vcmask 1041409   ;;  %vm11291_vm14 = vcmask 1042434  }
  0x41   :  { %v95_v1 = vld [vmem:[%s21465_s22] sm:$0xff]  ;;  %v96_v2 = vld [vmem:[%s21465_s22 + $0x8] sm:$0xff]  ;;  %v97_v4 = vld [vmem:[%s21465_s22 + $0x10] sm:$0xff]  ;;  %14650 = vmatprep.subr.bf16.mxu1 %v14649_v31  ;;  %s16185_s1 = smov 80   ;;  %vm11294_vm15 = vcmask 1043459  }
  0x42   :  { %13427 = vmatprep.mubr.msk.f32.mxu0 %vm127_vm1, %v95_v1  ;;  %v98_v5 = vld [vmem:[%s21465_s22 + $0x18] sm:$0xff]  ;;  %v99_v6 = vld [vmem:[%s21465_s22 + $0x20] sm:$0xff]  ;;  %v100_v7 = vld [vmem:[%s21465_s22 + $0x28] sm:$0xff] }
  0x43   :  { %13428 = vmatmul.mubr.msk.f32.vlgmr.msra.gmra.mrb[0].mxu0 %vm127_vm1, %v96_v2  ;;  %v101_v8 = vld [vmem:[%s21465_s22 + $0x30] sm:$0xff]  ;;  %v102_v9 = vld [vmem:[%s21465_s22 + $0x38] sm:$0xff]  ;;  %v103_v10 = vld [vmem:[%s21465_s22 + $0x40] sm:$0xff] }
  0x44   :  { %13430 = vmatprep.mubr.msk.f32.mxu0 %vm127_vm1, %v97_v4  ;;  %13516 = vmatpush3.msk.msra.mxu0 %vm200_vm0, %v1373_v3  ;;  %v104_v11 = vld [vmem:[%s21465_s22 + $0x48] sm:$0xff]  ;;  %v105_v12 = vld [vmem:[%s21465_s22 + $0x50] sm:$0xff]  ;;  %v106_v13 = vld [vmem:[%s21465_s22 + $0x58] sm:$0xff]  ;;  %vm11297_vm0 = vcmask 1044484  }
  0x45   :  { %v107_v14 = vld [vmem:[%s21465_s22 + $0x60] sm:$0xff]  ;;  %v108_v15 = vld [vmem:[%s21465_s22 + $0x68] sm:$0xff]  ;;  %v109_v16 = vld [vmem:[%s21465_s22 + $0x70] sm:$0xff]  ;;  %14652 = vmatpush3.bf16.msra.mxu1 %v14649_v31 }
  0x46   :  { %v110_v17 = vld [vmem:[%s21465_s22 + $0x78] sm:$0xff]  ;;  %v111_v18 = vld [vmem:[%s21465_s22 + $0x80] sm:$0xff]  ;;  %v112_v19 = vld [vmem:[%s21465_s22 + $0x88] sm:$0xff]  ;;  %14654 = vmatprep.subr.bf16.mxu1 %v14653_v34 }
  0x47   :  { %13431 = vmatmul.mubr.msk.f32.gmra.mrb[2].mxu0 %vm127_vm1, %v98_v5  ;;  %v113_v20 = vld [vmem:[%s21465_s22 + $0x90] sm:$0xff]  ;;  %v114_v21 = vld [vmem:[%s21465_s22 + $0x98] sm:$0xff]  ;;  %v115_v22 = vld [vmem:[%s21465_s22 + $0xa0] sm:$0xff] }
  0x48   :  { %13433 = vmatprep.mubr.msk.f32.mxu0 %vm127_vm1, %v99_v6  ;;  %v116_v23 = vld [vmem:[%s21465_s22 + $0xa8] sm:$0xff]  ;;  %v117_v24 = vld [vmem:[%s21465_s22 + $0xb0] sm:$0xff]  ;;  %v118_v25 = vld [vmem:[%s21465_s22 + $0xb8] sm:$0xff] }
  0x49   :  { %14656 = vmatpush3.bf16.msra.mxu1 %v14653_v34  ;;  %v1789_v3 = vld [vmem:[%s21300_s6 + $0x20] sm:$0xff] }
  0x4a   :  { %14658 = vmatprep.subr.bf16.mxu1 %v14657_v37 }
  0x4b   :  { %13434 = vmatmul.mubr.msk.f32.gmra.mrb[4].mxu0 %vm127_vm1, %v100_v7 }
  0x4c   :  { %13436 = vmatprep.mubr.msk.f32.mxu0 %vm127_vm1, %v101_v8 }
  0x4d   :  { %14660 = vmatpush3.bf16.msra.mxu1 %v14657_v37 }
  0x4e   :  { %14662 = vmatprep.subr.bf16.mxu1 %v16475_v40 }
  0x4f   :  { %13437 = vmatmul.mubr.msk.f32.gmra.mrb[6].mxu0 %vm127_vm1, %v102_v9 }
  0x50   :  { %13439 = vmatprep.mubr.msk.f32.mxu0 %vm127_vm1, %v103_v10 }
  0x53   :  { %13440 = vmatmul.mubr.msk.f32.gmra.mrb[8].mxu0 %vm127_vm1, %v104_v11 }
  0x54   :  { %13442 = vmatprep.mubr.msk.f32.mxu0 %vm127_vm1, %v105_v12 }
  0x57   :  { %13443 = vmatmul.mubr.msk.f32.gmra.mrb[10].mxu0 %vm127_vm1, %v106_v13 }
  0x58   :  { %13445 = vmatprep.mubr.msk.f32.mxu0 %vm127_vm1, %v107_v14 }
  0x5b   :  { %13446 = vmatmul.mubr.msk.f32.gmra.mrb[12].mxu0 %vm127_vm1, %v108_v15 }
  0x5c   :  { %13448 = vmatprep.mubr.msk.f32.mxu0 %vm127_vm1, %v109_v16 }
  0x5f   :  { %13449 = vmatmul.mubr.msk.f32.gmra.mrb[14].mxu0 %vm127_vm1, %v110_v17 }
  0x60   :  { %13451 = vmatprep.mubr.msk.f32.mxu0 %vm127_vm1, %v111_v18 }
  0x63   :  { %13452 = vmatmul.mubr.msk.f32.gmra.mrb[16].mxu0 %vm127_vm1, %v112_v19 }
  0x64   :  { %13454 = vmatprep.mubr.msk.f32.mxu0 %vm127_vm1, %v113_v20 }
  0x67   :  { %13455 = vmatmul.mubr.msk.f32.gmra.mrb[18].mxu0 %vm127_vm1, %v114_v21 }
  0x68   :  { %13457 = vmatprep.mubr.msk.f32.mxu0 %vm127_vm1, %v115_v22 }
  0x6b   :  { %13458 = vmatmul.mubr.msk.f32.gmra.mrb[20].mxu0 %vm127_vm1, %v116_v23 }
  0x6c   :  { %13460 = vmatprep.mubr.msk.f32.mxu0 %vm127_vm1, %v117_v24 }
  0x6f   :  { %13461 = vmatmul.mubr.msk.f32.gmra.mrb[22].mxu0 %vm127_vm1, %v118_v25 }
  0x70   :  { %13517 = vmatprep.mubr.msk.f32.mxu0 %vm127_vm1, %v95_v1 }
  0x73   :  { %13518 = vmatmul.mubr.msk.f32.vlgmr.msra.gmra.mrb[24].mxu0 %vm127_vm1, %v96_v2  ;;  %v1788_v2 = vld [vmem:[%s21300_s6 + $0x18] sm:$0xff] }
  0x74   :  { %13520 = vmatprep.mubr.msk.f32.mxu0 %vm127_vm1, %v97_v4  ;;  %v1790_v4 = vld [vmem:[%s21300_s6 + $0x28] sm:$0xff] }
  0x77   :  { %13521 = vmatmul.mubr.msk.f32.gmra.mrb[26].mxu0 %vm127_vm1, %v98_v5 }
  0x78   :  { %13523 = vmatprep.mubr.msk.f32.mxu0 %vm127_vm1, %v99_v6 }
  0x7b   :  { %13524 = vmatmul.mubr.msk.f32.gmra.mrb[28].mxu0 %vm127_vm1, %v100_v7 }
  0x7c   :  { %13526 = vmatprep.mubr.msk.f32.mxu0 %vm127_vm1, %v101_v8  ;;  %v1791_v8 = vld [vmem:[%s21300_s6 + $0x30] sm:$0xff] }
  0x7f   :  { %13527 = vmatmul.mubr.msk.f32.gmra.mrb[30].mxu0 %vm127_vm1, %v102_v9  ;;  %v1792_v9 = vld [vmem:[%s21300_s6 + $0x38] sm:$0xff] }
  0x80   :  { %13529 = vmatprep.mubr.msk.f32.mxu0 %vm127_vm1, %v103_v10  ;;  %v1793_v10 = vld [vmem:[%s21300_s6 + $0x40] sm:$0xff] }
  0x83   :  { %13530 = vmatmul.mubr.msk.f32.gmra.mrb[32].mxu0 %vm127_vm1, %v104_v11 }
  0x84   :  { %13532 = vmatprep.mubr.msk.f32.mxu0 %vm127_vm1, %v105_v12 }
  0x87   :  { %13533 = vmatmul.mubr.msk.f32.gmra.mrb[34].mxu0 %vm127_vm1, %v106_v13 }
  0x88   :  { %13535 = vmatprep.mubr.msk.f32.mxu0 %vm127_vm1, %v107_v14 }
  0x8b   :  { %13536 = vmatmul.mubr.msk.f32.gmra.mrb[36].mxu0 %vm127_vm1, %v108_v15  ;;  %v1794_v15 = vld [vmem:[%s21300_s6 + $0x48] sm:$0xff] }
  0x8c   :  { %13538 = vmatprep.mubr.msk.f32.mxu0 %vm127_vm1, %v109_v16  ;;  %v1795_v16 = vld [vmem:[%s21300_s6 + $0x50] sm:$0xff]  ;;  %v16570_v31 = vpack.c.bf16 %v1794_v15, %v1793_v10 }
  0x8f   :  { %13539 = vmatmul.mubr.msk.f32.gmra.mrb[38].mxu0 %vm127_vm1, %v110_v17  ;;  %v1796_v17 = vld [vmem:[%s21300_s6 + $0x58] sm:$0xff] }
  0x90   :  { %13541 = vmatprep.mubr.msk.f32.mxu0 %vm127_vm1, %v111_v18  ;;  %v16572_v32 = vpack.c.bf16 %v1796_v17, %v1795_v16 }
  0x93   :  { %13542 = vmatmul.mubr.msk.f32.gmra.mrb[40].mxu0 %vm127_vm1, %v112_v19 }
  0x94   :  { %13544 = vmatprep.mubr.msk.f32.mxu0 %vm127_vm1, %v113_v20 }
  0x97   :  { %13545 = vmatmul.mubr.msk.f32.gmra.mrb[42].mxu0 %vm127_vm1, %v114_v21  ;;  %v16553_v21 = vpack.c.bf16 %v1788_v2, %v1787_v0 }
  0x98   :  { %13547 = vmatprep.mubr.msk.f32.mxu0 %vm127_vm1, %v115_v22 }
  0x9b   :  { %13548 = vmatmul.mubr.msk.f32.gmra.mrb[44].mxu0 %vm127_vm1, %v116_v23 }
  0x9c   :  { %13550 = vmatprep.mubr.msk.f32.mxu0 %vm127_vm1, %v117_v24  ;;  %v16558_v24 = vpack.c.bf16 %v1790_v4, %v1789_v3 }
  0x9f   :  { %13551 = vmatmul.mubr.msk.f32.gmra.mrb[46].mxu0 %vm127_vm1, %v118_v25  ;;  %v16560_v25 = vpack.c.bf16 %v1792_v9, %v1791_v8  ;;  %vm11300_vm1 = vcmask 1045509  }
 0x116   :  { %v13429_v42 = vpop.f32.mrb[0].mxu0 }
 0x117   :  { %v16481_v43 = vadd.f32 %v13429_v42, %v16478_v41  ;;  %v270_v44 = vpop.f32.mrb[1].mxu0 }
 0x118   :  { %v16484_v45 = vadd.f32 %v16478_v41, %v270_v44  ;;  %v16583_v44 = vpack.c.bf16 %v1798_v27, %v1797_v26 }
 0x119   :  { %v414_v46 = vmul.f32 %v16481_v43, %v16481_v43 }
 0x11a   :  { %v413_v47 = vmul.f32 %v16484_v45, %v16484_v45  ;;  %v13432_v48 = vpop.f32.mrb[2].mxu0 }
 0x11b   :  { %v438_v49 = vmul.f32 %v414_v46, %v16481_v43  ;;  %v16492_v50 = vadd.f32 %v13432_v48, %v16478_v41  ;;  %v280_v51 = vpop.f32.mrb[3].mxu0  ;;  %v16586_v46 = vmul.f32 0.5, %v16481_v43 }
 0x11c   :  { %v437_v52 = vmul.f32 %v413_v47, %v16484_v45  ;;  %v16496_v53 = vadd.f32 %v16478_v41, %v280_v51 }
 0x11d   :  { %v416_v54 = vmul.f32 %v16492_v50, %v16492_v50  ;;  %v462_v58 = vmul.f32 0.044715, %v438_v49 }
 0x11e   :  { %v461_v55 = vmul.f32 0.044715, %v437_v52  ;;  %v415_v56 = vmul.f32 %v16496_v53, %v16496_v53  ;;  %v13435_v57 = vpop.f32.mrb[4].mxu0  ;;  %v16612_v4 = vmul.f32 0.5, %v16496_v53 }
 0x11f   :  { %v440_v59 = vmul.f32 %v416_v54, %v16492_v50  ;;  %v16504_v60 = vadd.f32 %v13435_v57, %v16478_v41  ;;  %v290_v61 = vpop.f32.mrb[5].mxu0  ;;  %v486_v11 = vadd.f32 %v462_v58, %v16481_v43 }
 0x120   :  { %v439_v62 = vmul.f32 %v415_v56, %v16496_v53  ;;  %v16508_v63 = vadd.f32 %v16478_v41, %v290_v61  ;;  %v485_v7 = vadd.f32 %v461_v55, %v16484_v45  ;;  %v16594_v55 = vmul.f32 0.5, %v16484_v45 }
 0x121   :  { %v418_v1 = vmul.f32 %v16504_v60, %v16504_v60  ;;  %v464_v12 = vmul.f32 0.044715, %v440_v59  ;;  %v510_v33 = vmul.f32 0.7978846, %v486_v11  ;;  %v16606_v45 = vmul.f32 0.5, %v16492_v50 }
 0x122   :  { %v417_v5 = vmul.f32 %v16508_v63, %v16508_v63  ;;  %v13438_v6 = vpop.f32.mrb[6].mxu0  ;;  %v463_v18 = vmul.f32 0.044715, %v439_v62  ;;  %v509_v30 = vmul.f32 0.7978846, %v485_v7  ;;  %v16626_v15 = vmul.f32 0.5, %v16504_v60 }
 0x123   :  { %v16538_v13 = vadd.f32 %v13438_v6, %v16478_v41  ;;  %v300_v14 = vpop.f32.mrb[7].mxu0  ;;  %v442_v22 = vmul.f32 %v418_v1, %v16504_v60  ;;  %v488_v34 = vadd.f32 %v464_v12, %v16492_v50 }
 0x124   :  { %v441_v19 = vmul.f32 %v417_v5, %v16508_v63  ;;  %v16551_v20 = vadd.f32 %v16478_v41, %v300_v14  ;;  %v487_v38 = vadd.f32 %v463_v18, %v16496_v53  ;;  %15415 = vtanh.f32 %v509_v30 }
 0x125   :  { %v420_v23 = vmul.f32 %v16538_v13, %v16538_v13  ;;  %v466_v47 = vmul.f32 0.044715, %v442_v22  ;;  %15417 = vtanh.f32 %v510_v33  ;;  %v512_v56 = vmul.f32 0.7978846, %v488_v34 }
 0x126   :  { %v419_v28 = vmul.f32 %v16551_v20, %v16551_v20  ;;  %v13441_v29 = vpop.f32.mrb[8].mxu0  ;;  %v465_v39 = vmul.f32 0.044715, %v441_v19  ;;  %v511_v59 = vmul.f32 0.7978846, %v487_v38 }
 0x127   :  { %v444_v35 = vmul.f32 %v420_v23, %v16538_v13  ;;  %v16577_v36 = vadd.f32 %v13441_v29, %v16478_v41  ;;  %v310_v37 = vpop.f32.mrb[9].mxu0  ;;  %v490_v1 = vadd.f32 %v466_v47, %v16504_v60  ;;  %15419 = vtanh.f32 %v512_v56 }
 0x128   :  { %v16581_v42 = vadd.f32 %v16478_v41, %v310_v37  ;;  %v443_v48 = vmul.f32 %v419_v28, %v16551_v20  ;;  %v489_v61 = vadd.f32 %v465_v39, %v16508_v63  ;;  %15421 = vtanh.f32 %v511_v59 }
 0x129   :  { %v422_v49 = vmul.f32 %v16577_v36, %v16577_v36  ;;  %v468_v51 = vmul.f32 0.044715, %v444_v35  ;;  %v514_v16 = vmul.f32 0.7978846, %v490_v1  ;;  %v16640_v35 = vmul.f32 0.5, %v16508_v63 }
 0x12a   :  { %v421_v52 = vmul.f32 %v16581_v42, %v16581_v42  ;;  %v13444_v54 = vpop.f32.mrb[10].mxu0  ;;  %v467_v2 = vmul.f32 0.044715, %v443_v48  ;;  %v513_v12 = vmul.f32 0.7978846, %v489_v61 }
 0x12b   :  { %v446_v43 = vmul.f32 %v422_v49, %v16577_v36  ;;  %v16598_v57 = vadd.f32 %v13444_v54, %v16478_v41  ;;  %v320_v58 = vpop.f32.mrb[11].mxu0  ;;  %v492_v5 = vadd.f32 %v468_v51, %v16538_v13 }
 0x12c   :  { %v445_v62 = vmul.f32 %v421_v52, %v16581_v42  ;;  %v16603_v0 = vadd.f32 %v16478_v41, %v320_v58  ;;  %v491_v17 = vadd.f32 %v467_v2, %v16551_v20  ;;  %15423 = vtanh.f32 %v513_v12 }
 0x12d   :  { %v424_v3 = vmul.f32 %v16598_v57, %v16598_v57  ;;  %v470_v6 = vmul.f32 0.044715, %v446_v43  ;;  %v516_v19 = vmul.f32 0.7978846, %v492_v5  ;;  %15425 = vtanh.f32 %v514_v16 }
 0x12e   :  { %v423_v7 = vmul.f32 %v16603_v0, %v16603_v0  ;;  %v13447_v8 = vpop.f32.mrb[12].mxu0  ;;  %v469_v9 = vmul.f32 0.044715, %v445_v62  ;;  %v15416_v34 = vpop.eup %15415  ;;  %v515_v47 = vmul.f32 0.7978846, %v491_v17  ;;  %v16664_v16 = vmul.f32 0.5, %v16538_v13 }
 0x12f   :  { %v448_v50 = vmul.f32 %v424_v3, %v16598_v57  ;;  %v16619_v10 = vadd.f32 %v13447_v8, %v16478_v41  ;;  %v330_v11 = vpop.f32.mrb[13].mxu0  ;;  %v494_v22 = vadd.f32 %v470_v6, %v16577_v36  ;;  %v15418_v39 = vpop.eup %15417  ;;  %15427 = vtanh.f32 %v516_v19 }
 0x130   :  { %v447_v53 = vmul.f32 %v423_v7, %v16603_v0  ;;  %v16623_v14 = vadd.f32 %v16478_v41, %v330_v11  ;;  %v493_v28 = vadd.f32 %v469_v9, %v16581_v42  ;;  %v557_v59 = vadd.f32 1.0, %v15416_v34 }
 0x131   :  { %v426_v18 = vmul.f32 %v16619_v10, %v16619_v10  ;;  %v472_v23 = vmul.f32 0.044715, %v448_v50  ;;  %v518_v51 = vmul.f32 0.7978846, %v494_v22  ;;  %v558_v3 = vadd.f32 1.0, %v15418_v39  ;;  %v15420_v5 = vpop.eup %15419 }
 0x132   :  { %v425_v26 = vmul.f32 %v16623_v14, %v16623_v14  ;;  %v13450_v27 = vpop.f32.mrb[14].mxu0  ;;  %v471_v29 = vmul.f32 0.044715, %v447_v53  ;;  %v517_v56 = vmul.f32 0.7978846, %v493_v28  ;;  %15429 = vtanh.f32 %v515_v47  ;;  %v15422_v9 = vpop.eup %15421 }
 0x133   :  { %v450_v60 = vmul.f32 %v426_v18, %v16619_v10  ;;  %v16637_v30 = vadd.f32 %v13450_v27, %v16478_v41  ;;  %v340_v33 = vpop.f32.mrb[15].mxu0  ;;  %v496_v52 = vadd.f32 %v472_v23, %v16598_v57  ;;  %v581_v7 = vmul.f32 %v557_v59, %v16594_v55 }
 0x134   :  { %v449_v37 = vmul.f32 %v425_v26, %v16623_v14  ;;  %v16644_v38 = vadd.f32 %v16478_v41, %v340_v33  ;;  %v495_v43 = vadd.f32 %v471_v29, %v16603_v0  ;;  %15431 = vtanh.f32 %v518_v51 }
 0x135   :  { %v474_v48 = vmul.f32 0.044715, %v450_v60  ;;  %v428_v49 = vmul.f32 %v16637_v30, %v16637_v30  ;;  %v520_v50 = vmul.f32 0.7978846, %v496_v52  ;;  %v582_v11 = vmul.f32 %v558_v3, %v16586_v46  ;;  %13479 = vmatprep.mubr.msk.f32.mxu1 %vm620_vm2, %v581_v7 }
 0x136   :  { %v427_v63 = vmul.f32 %v16644_v38, %v16644_v38  ;;  %v13453_v54 = vpop.f32.mrb[16].mxu0  ;;  %v473_v1 = vmul.f32 0.044715, %v449_v37  ;;  %15433 = vtanh.f32 %v517_v56  ;;  %v519_v17 = vmul.f32 0.7978846, %v495_v43  ;;  %v15424_v29 = vpop.eup %15423 }
 0x137   :  { %v452_v58 = vmul.f32 %v428_v49, %v16637_v30  ;;  %v350_v61 = vpop.f32.mrb[17].mxu0  ;;  %v498_v62 = vadd.f32 %v474_v48, %v16619_v10  ;;  %v16657_v8 = vadd.f32 %v13453_v54, %v16478_v41  ;;  %13480 = vmatmul.mubr.msk.f32.vlgmr.msra.gmra.mrb[0].mxu1 %vm620_vm2, %v582_v11  ;;  %v559_v27 = vadd.f32 1.0, %v15422_v9  ;;  %v15426_v39 = vpop.eup %15425 }
 0x138   :  { %v451_v2 = vmul.f32 %v427_v63, %v16644_v38  ;;  %v16661_v12 = vadd.f32 %v16478_v41, %v350_v61  ;;  %v497_v22 = vadd.f32 %v473_v1, %v16623_v14  ;;  %14664 = vmatpush3.bf16.msra.mxu1 %v16475_v40  ;;  %v560_v28 = vadd.f32 1.0, %v15420_v5 }
 0x139   :  { %v476_v6 = vmul.f32 0.044715, %v452_v58  ;;  %v430_v55 = vmul.f32 %v16657_v8, %v16657_v8  ;;  %v522_v19 = vmul.f32 0.7978846, %v498_v62  ;;  %15435 = vtanh.f32 %v520_v50  ;;  %14666 = vmatprep.subr.bf16.mxu1 %v16553_v21  ;;  %v15428_v51 = vpop.eup %15427 }
 0x13a   :  { %v13456_v53 = vpop.f32.mrb[18].mxu0  ;;  %v475_v23 = vmul.f32 0.044715, %v451_v2  ;;  %v429_v46 = vmul.f32 %v16661_v12, %v16661_v12  ;;  %v395_v47 = vmul.f32 0.5, %v16551_v20  ;;  %15437 = vtanh.f32 %v519_v17 }
 0x13b   :  { %v360_v18 = vpop.f32.mrb[19].mxu0  ;;  %v500_v13 = vadd.f32 %v476_v6, %v16637_v30  ;;  %v454_v26 = vmul.f32 %v430_v55, %v16657_v8  ;;  %v16678_v33 = vadd.f32 %v13456_v53, %v16478_v41  ;;  %v583_v40 = vmul.f32 %v559_v27, %v16612_v4 }
 0x13c   :  { %v453_v60 = vmul.f32 %v429_v46, %v16661_v12  ;;  %v16681_v34 = vadd.f32 %v16478_v41, %v360_v18  ;;  %15439 = vtanh.f32 %v522_v19  ;;  %v521_v52 = vmul.f32 0.7978846, %v497_v22  ;;  %14668 = vmatpush3.bf16.msra.mxu1 %v16553_v21  ;;  %v15430_v1 = vpop.eup %15429 }
 0x13d   :  { %v478_v48 = vmul.f32 0.044715, %v454_v26  ;;  %v584_v63 = vmul.f32 %v560_v28, %v16606_v45  ;;  %v432_v54 = vmul.f32 %v16678_v33, %v16678_v33  ;;  %v524_v56 = vmul.f32 0.7978846, %v500_v13  ;;  %13482 = vmatprep.mubr.msk.f32.mxu1 %vm620_vm2, %v583_v40  ;;  %14670 = vmatprep.subr.bf16.mxu1 %v16558_v24 }
 0x13e   :  { %v13459_v37 = vpop.f32.mrb[20].mxu0  ;;  %v499_v43 = vadd.f32 %v475_v23, %v16644_v38  ;;  %v431_v20 = vmul.f32 %v16681_v34, %v16681_v34  ;;  %v561_v58 = vadd.f32 1.0, %v15424_v29  ;;  %v477_v59 = vmul.f32 0.044715, %v453_v60  ;;  %v15432_v7 = vpop.eup %15431 }
 0x13f   :  { %v370_v49 = vpop.f32.mrb[21].mxu0  ;;  %v502_v4 = vadd.f32 %v478_v48, %v16657_v8  ;;  %13483 = vmatmul.mubr.msk.f32.gmra.mrb[2].mxu1 %vm620_vm2, %v584_v63  ;;  %v562_v45 = vadd.f32 1.0, %v15426_v39  ;;  %v16697_v61 = vadd.f32 %v13459_v37, %v16478_v41  ;;  %v456_v2 = vmul.f32 %v432_v54, %v16678_v33 }
 0x140   :  { %v455_v3 = vmul.f32 %v431_v20, %v16681_v34  ;;  %v585_v5 = vmul.f32 %v561_v58, %v16640_v35  ;;  %v16704_v21 = vadd.f32 %v16478_v41, %v370_v49  ;;  %v398_v9 = vmul.f32 0.5, %v16577_v36  ;;  %v15434_v53 = vpop.eup %15433  ;;  %14672 = vmatpush3.bf16.msra.mxu1 %v16558_v24  ;;  %v16730_v49 = vld [vmem:[#allocation2 + $0x4] ss:$0 sm:$0xff] }
 0x141   :  { %v397_v50 = vmul.f32 0.5, %v16581_v42  ;;  %15441 = vtanh.f32 %v521_v52  ;;  %v586_v11 = vmul.f32 %v562_v45, %v16626_v15  ;;  %v523_v17 = vmul.f32 0.7978846, %v499_v43  ;;  %14674 = vmatprep.subr.bf16.mxu1 %v16560_v25 }
 0x142   :  { %v13462_v62 = vpop.f32.mrb[22].mxu0  ;;  %15443 = vtanh.f32 %v524_v56  ;;  %v479_v55 = vmul.f32 0.044715, %v455_v3  ;;  %13485 = vmatprep.mubr.msk.f32.mxu1 %vm620_vm2, %v585_v5  ;;  %v434_v35 = vmul.f32 %v16697_v61, %v16697_v61  ;;  %v526_v18 = vmul.f32 0.7978846, %v502_v4 }
 0x143   :  { %v380_v6 = vpop.f32.mrb[23].mxu0  ;;  %v501_v19 = vadd.f32 %v477_v59, %v16661_v12  ;;  %13486 = vmatmul.mubr.msk.f32.gmra.mrb[4].mxu1 %vm620_vm2, %v586_v11  ;;  %v433_v36 = vmul.f32 %v16704_v21, %v16704_v21  ;;  %v563_v42 = vadd.f32 1.0, %v15430_v1  ;;  %v480_v22 = vmul.f32 0.044715, %v456_v2  ;;  %v15436_v26 = vpop.eup %15435 }
 0x144   :  { %v503_v23 = vadd.f32 %v479_v55, %v16681_v34  ;;  %v564_v46 = vadd.f32 1.0, %v15428_v51  ;;  %v16720_v13 = vadd.f32 %v13462_v62, %v16478_v41  ;;  %v458_v27 = vmul.f32 %v434_v35, %v16697_v61  ;;  %v15438_v37 = vpop.eup %15437  ;;  %14676 = vmatpush3.bf16.msra.mxu1 %v16560_v25 }
 0x145   :  { %v457_v28 = vmul.f32 %v433_v36, %v16704_v21  ;;  %v587_v29 = vmul.f32 %v563_v42, %v395_v47  ;;  %v16725_v60 = vadd.f32 %v16478_v41, %v380_v6  ;;  %v400_v39 = vmul.f32 0.5, %v16598_v57  ;;  %14678 = vmatprep.subr.bf16.mxu1 %v16570_v31 }
 0x146   :  { %v13519_v15 = vpop.f32.mrb[24].mxu0  ;;  %v399_v48 = vmul.f32 0.5, %v16603_v0  ;;  %15445 = vtanh.f32 %v523_v17  ;;  %v588_v40 = vmul.f32 %v564_v46, %v16664_v16  ;;  %v16733_v51 = vpop.eup %15439  ;;  %v525_v52 = vmul.f32 0.7978846, %v501_v19 }
 0x147   :  { %v1450_v24 = vpop.f32.mrb[25].mxu0  ;;  %15447 = vtanh.f32 %v526_v18  ;;  %v481_v47 = vmul.f32 0.044715, %v457_v28  ;;  %13488 = vmatprep.mubr.msk.f32.mxu1 %vm620_vm2, %v587_v29  ;;  %v436_v41 = vmul.f32 %v16720_v13, %v16720_v13  ;;  %v504_v0 = vadd.f32 %v480_v22, %v16678_v33 }
 0x148   :  { %v527_v16 = vmul.f32 0.7978846, %v503_v23  ;;  %13489 = vmatmul.mubr.msk.f32.gmra.mrb[6].mxu1 %vm620_vm2, %v588_v40  ;;  %v435_v25 = vmul.f32 %v16725_v60, %v16725_v60  ;;  %v565_v63 = vadd.f32 1.0, %v15434_v53  ;;  %v482_v56 = vmul.f32 0.044715, %v458_v27 }
 0x149   :  { %v460_v43 = vmul.f32 %v436_v41, %v16720_v13  ;;  %v566_v20 = vadd.f32 1.0, %v15432_v7  ;;  %v16745_v58 = vadd.f32 %v13519_v15, %v16730_v49  ;;  %v505_v4 = vadd.f32 %v481_v47, %v16704_v21  ;;  %14680 = vmatpush3.bf16.msra.mxu1 %v16570_v31  ;;  %v1799_v7 = vld [vmem:[%s21300_s6 + $0x70] sm:$0xff] }
 0x14a   :  { %v13522_v57 = vpop.f32.mrb[26].mxu0  ;;  %v459_v59 = vmul.f32 %v435_v25, %v16725_v60  ;;  %v589_v45 = vmul.f32 %v565_v63, %v397_v50  ;;  %v567_v62 = vadd.f32 1.0, %v15438_v37  ;;  %v401_v2 = vmul.f32 0.5, %v16623_v14  ;;  %14682 = vmatprep.subr.bf16.mxu1 %v16572_v32 }
 0x14b   :  { %v1460_v54 = vpop.f32.mrb[27].mxu0  ;;  %v15442_v1 = vpop.eup %15441  ;;  %15449 = vtanh.f32 %v525_v52  ;;  %v484_v3 = vmul.f32 0.044715, %v460_v43  ;;  %v590_v5 = vmul.f32 %v566_v20, %v398_v9  ;;  %v528_v53 = vmul.f32 0.7978846, %v504_v0  ;;  %v1800_v9 = vld [vmem:[%s21300_s6 + $0x78] sm:$0xff] }
 0x14c   :  { %v15444_v11 = vpop.eup %15443  ;;  %v483_v50 = vmul.f32 0.044715, %v459_v59  ;;  %13491 = vmatprep.mubr.msk.f32.mxu1 %vm620_vm2, %v589_v45  ;;  %v1594_v31 = vmul.f32 %v16745_v58, %v16745_v58  ;;  %v591_v14 = vmul.f32 %v567_v62, %v399_v48  ;;  %15451 = vtanh.f32 %v527_v16 }
 0x14d   :  { %v506_v55 = vadd.f32 %v482_v56, %v16697_v61  ;;  %13492 = vmatmul.mubr.msk.f32.gmra.mrb[8].mxu1 %vm620_vm2, %v590_v5  ;;  %v16766_v35 = vadd.f32 %v16730_v49, %v1450_v24  ;;  %v568_v18 = vadd.f32 1.0, %v15436_v26  ;;  %v529_v19 = vmul.f32 0.7978846, %v505_v4 }
 0x14e   :  { %v16751_v6 = vpop.f32.mrb[28].mxu0  ;;  %v1618_v36 = vmul.f32 %v1594_v31, %v16745_v58  ;;  %13494 = vmatprep.mubr.msk.f32.mxu1 %vm620_vm2, %v591_v14  ;;  %v16771_v42 = vadd.f32 %v13522_v57, %v16730_v49  ;;  %v569_v15 = vadd.f32 1.0, %v15442_v1  ;;  %14684 = vmatpush3.bf16.msra.mxu1 %v16572_v32  ;;  %v508_v22 = vadd.f32 %v484_v3, %v16720_v13 }
 0x14f   :  { %v1470_v17 = vpop.f32.mrb[29].mxu0  ;;  %v592_v23 = vmul.f32 %v568_v18, %v400_v39  ;;  %14686 = vmatprep.subr.bf16.mxu1 %v16583_v44  ;;  %v14689_v24 = vpack.c.bf16 %v1800_v9, %v1799_v7  ;;  %15453 = vtanh.f32 %v528_v53  ;;  %v507_v27 = vadd.f32 %v483_v50, %v16725_v60 }
 0x150   :  { %v15446_v26 = vpop.eup %15445  ;;  %v1593_v28 = vmul.f32 %v16766_v35, %v16766_v35  ;;  %v593_v29 = vmul.f32 %v569_v15, %v401_v2  ;;  %v402_v32 = vmul.f32 0.5, %v16619_v10  ;;  %v1642_v40 = vmul.f32 0.044715, %v1618_v36 }
 0x151   :  { %v15448_v48 = vpop.eup %15447  ;;  %13495 = vmatmul.mubr.msk.f32.gmra.mrb[10].mxu1 %vm620_vm2, %v592_v23  ;;  %v16786_v39 = vadd.f32 %v16730_v49, %v1460_v54  ;;  %v570_v52 = vadd.f32 1.0, %v16733_v51  ;;  %v530_v47 = vmul.f32 0.7978846, %v506_v55  ;;  %15455 = vtanh.f32 %v529_v19 }
 0x152   :  { %v16775_v46 = vpop.f32.mrb[30].mxu0  ;;  %v1596_v41 = vmul.f32 %v16771_v42, %v16771_v42  ;;  %13497 = vmatprep.mubr.msk.f32.mxu1 %vm620_vm2, %v593_v29  ;;  %14688 = vmatpush3.bf16.msra.mxu1 %v16583_v44  ;;  %v403_v57 = vmul.f32 0.5, %v16644_v38  ;;  %v532_v10 = vmul.f32 0.7978846, %v508_v22  ;;  %v571_v16 = vadd.f32 1.0, %v15446_v26 }
 0x153   :  { %v16781_v37 = vpop.f32.mrb[31].mxu0  ;;  %v594_v0 = vmul.f32 %v570_v52, %v402_v32  ;;  %14690 = vmatprep.subr.bf16.mxu1 %v14689_v24  ;;  %v404_v63 = vmul.f32 0.5, %v16637_v30  ;;  %v406_v51 = vmul.f32 0.5, %v16657_v8  ;;  %v531_v54 = vmul.f32 0.7978846, %v507_v27 }
 0x154   :  { %v1617_v56 = vmul.f32 %v1593_v28, %v16766_v35  ;;  %v1666_v4 = vadd.f32 %v1642_v40, %v16745_v58  ;;  %v1595_v44 = vmul.f32 %v16786_v39, %v16786_v39  ;;  %v595_v38 = vmul.f32 %v571_v16, %v403_v57 }
 0x155   :  { %v15450_v20 = vpop.eup %15449  ;;  %13498 = vmatmul.mubr.msk.f32.gmra.mrb[12].mxu1 %vm620_vm2, %v594_v0  ;;  %v572_v59 = vadd.f32 1.0, %v15444_v11  ;;  %15457 = vtanh.f32 %v530_v47  ;;  %v1620_v45 = vmul.f32 %v1596_v41, %v16771_v42  ;;  %v16804_v30 = vadd.f32 %v16751_v6, %v16730_v49 }
 0x156   :  { %v13531_v25 = vpop.f32.mrb[32].mxu0  ;;  %v16807_v8 = vadd.f32 %v16730_v49, %v1470_v17  ;;  %14692 = vmatpush3.bf16.msra.mxu1 %v14689_v24  ;;  %v15452_v62 = vpop.eup %15451  ;;  %v405_v1 = vmul.f32 0.5, %v16661_v12  ;;  %v408_v2 = vmul.f32 0.5, %v16678_v33  ;;  %15459 = vtanh.f32 %v532_v10  ;;  %13500 = vmatprep.mubr.msk.f32.mxu1 %vm620_vm2, %v595_v38 }
 0x157   :  { %v1490_v43 = vpop.f32.mrb[33].mxu0  ;;  %v596_v3 = vmul.f32 %v572_v59, %v404_v63  ;;  %v407_v7 = vmul.f32 0.5, %v16681_v34  ;;  %v16814_v11 = vmul.f32 0.5, %v16697_v61  ;;  %15461 = vtanh.f32 %v531_v54 }
 0x158   :  { %v573_v6 = vadd.f32 1.0, %v15450_v20  ;;  %v1690_v50 = vmul.f32 0.7978846, %v1666_v4  ;;  %v1641_v31 = vmul.f32 0.044715, %v1617_v56  ;;  %v1619_v14 = vmul.f32 %v1595_v44, %v16786_v39 }
 0x159   :  { %13501 = vmatmul.mubr.msk.f32.gmra.mrb[14].mxu1 %vm620_vm2, %v596_v3  ;;  %v574_v12 = vadd.f32 1.0, %v15448_v48  ;;  %v15454_v33 = vpop.eup %15453  ;;  %v1644_v17 = vmul.f32 0.044715, %v1620_v45  ;;  %v1598_v9 = vmul.f32 %v16804_v30, %v16804_v30  ;;  %v1597_v34 = vmul.f32 %v16807_v8, %v16807_v8 }
 0x15a   :  { %v13534_v5 = vpop.f32.mrb[34].mxu0  ;;  %v597_v61 = vmul.f32 %v573_v6, %v405_v1  ;;  %v409_v55 = vmul.f32 0.5, %v16704_v21  ;;  %v16825_v18 = vadd.f32 %v16775_v46, %v16730_v49  ;;  %v575_v36 = vadd.f32 1.0, %v15452_v62 }
 0x15b   :  { %v1500_v53 = vpop.f32.mrb[35].mxu0  ;;  %v598_v19 = vmul.f32 %v574_v12, %v406_v51  ;;  %v15456_v22 = vpop.eup %15455  ;;  %v16828_v23 = vmul.f32 0.5, %v16720_v13  ;;  %v16833_v24 = vadd.f32 %v16730_v49, %v16781_v37  ;;  %v16836_v26 = vadd.f32 %v13531_v25, %v16730_v49 }
 0x15c   :  { %13503 = vmatprep.mubr.msk.f32.mxu1 %vm620_vm2, %v597_v61  ;;  %v16839_v21 = vadd.f32 %v16730_v49, %v1490_v43  ;;  %v1665_v27 = vadd.f32 %v1641_v31, %v16766_v35  ;;  %v1643_v28 = vmul.f32 0.044715, %v1619_v14  ;;  %v599_v13 = vmul.f32 %v575_v36, %v407_v7 }
 0x15d   :  { %13504 = vmatmul.mubr.msk.f32.gmra.mrb[16].mxu1 %vm620_vm2, %v598_v19  ;;  %v576_v29 = vadd.f32 1.0, %v15454_v33  ;;  %15463 = vtanh.f32 %v1690_v50  ;;  %v1668_v48 = vadd.f32 %v1644_v17, %v16771_v42  ;;  %v1622_v37 = vmul.f32 %v1598_v9, %v16804_v30 }
 0x15e   :  { %v13537_v15 = vpop.f32.mrb[36].mxu0  ;;  %v1621_v32 = vmul.f32 %v1597_v34, %v16807_v8  ;;  %v1600_v40 = vmul.f32 %v16825_v18, %v16825_v18  ;;  %13506 = vmatprep.mubr.msk.f32.mxu1 %vm620_vm2, %v599_v13  ;;  %v16850_v47 = vadd.f32 %v13534_v5, %v16730_v49  ;;  %v577_v41 = vadd.f32 1.0, %v15456_v22 }
 0x15f   :  { %v1510_v46 = vpop.f32.mrb[37].mxu0  ;;  %v600_v52 = vmul.f32 %v576_v29, %v408_v2  ;;  %v15458_v10 = vpop.eup %15457  ;;  %v1599_v0 = vmul.f32 %v16833_v24, %v16833_v24  ;;  %v1602_v16 = vmul.f32 %v16836_v26, %v16836_v26  ;;  %v1601_v25 = vmul.f32 %v16839_v21, %v16839_v21 }
 0x160   :  { %v16859_v63 = vadd.f32 %v16730_v49, %v1500_v53  ;;  %v15460_v54 = vpop.eup %15459  ;;  %v411_v56 = vmul.f32 0.5, %v16725_v60  ;;  %v16863_v43 = vmul.f32 0.5, %v16745_v58  ;;  %v1689_v20 = vmul.f32 0.7978846, %v1665_v27 }
 0x161   :  { %13507 = vmatmul.mubr.msk.f32.gmra.mrb[18].mxu1 %vm620_vm2, %v600_v52  ;;  %v601_v4 = vmul.f32 %v577_v41, %v409_v55  ;;  %v15462_v44 = vpop.eup %15461  ;;  %v1692_v38 = vmul.f32 0.7978846, %v1668_v48  ;;  %v1667_v59 = vadd.f32 %v1643_v28, %v16786_v39  ;;  %v1646_v45 = vmul.f32 0.044715, %v1622_v37 }
 0x162   :  { %v13540_v57 = vpop.f32.mrb[38].mxu0  ;;  %v1645_v62 = vmul.f32 0.044715, %v1621_v32  ;;  %v1624_v1 = vmul.f32 %v1600_v40, %v16825_v18  ;;  %v1604_v2 = vmul.f32 %v16850_v47, %v16850_v47  ;;  %v578_v60 = vadd.f32 1.0, %v15458_v10 }
 0x163   :  { %v1520_v51 = vpop.f32.mrb[39].mxu0  ;;  %13509 = vmatprep.mubr.msk.f32.mxu1 %vm620_vm2, %v601_v4  ;;  %v16872_v58 = vadd.f32 %v13537_v15, %v16730_v49  ;;  %v1623_v5 = vmul.f32 %v1599_v0, %v16833_v24  ;;  %v1626_v7 = vmul.f32 %v1602_v16, %v16836_v26  ;;  %v1625_v6 = vmul.f32 %v1601_v25, %v16839_v21 }
 0x164   :  { %v1603_v53 = vmul.f32 %v16859_v63, %v16859_v63  ;;  %v602_v31 = vmul.f32 %v578_v60, %v16814_v11  ;;  %v579_v12 = vadd.f32 1.0, %v15462_v44  ;;  %v16883_v33 = vadd.f32 %v16730_v49, %v1510_v46 }
 0x165   :  { %v1606_v14 = vmul.f32 %v16872_v58, %v16872_v58  ;;  %v1691_v17 = vmul.f32 0.7978846, %v1667_v59  ;;  %v1670_v9 = vadd.f32 %v1646_v45, %v16804_v30  ;;  %v1669_v34 = vadd.f32 %v1645_v62, %v16807_v8 }
 0x166   :  { %v13543_v3 = vpop.f32.mrb[40].mxu0  ;;  %v580_v61 = vadd.f32 1.0, %v15460_v54  ;;  %v1648_v55 = vmul.f32 0.044715, %v1624_v1  ;;  %v1628_v19 = vmul.f32 %v1604_v2, %v16850_v47  ;;  %13510 = vmatmul.mubr.msk.f32.gmra.mrb[20].mxu1 %vm620_vm2, %v602_v31  ;;  %v603_v36 = vmul.f32 %v579_v12, %v411_v56 }
 0x167   :  { %v1530_v50 = vpop.f32.mrb[41].mxu0  ;;  %v16890_v11 = vadd.f32 %v13540_v57, %v16730_v49  ;;  %v15464_v22 = vpop.eup %15463  ;;  %v1647_v27 = vmul.f32 0.044715, %v1623_v5  ;;  %v1627_v46 = vmul.f32 %v1603_v53, %v16859_v63  ;;  %v1605_v28 = vmul.f32 %v16883_v33, %v16883_v33 }
 0x168   :  { %v16896_v13 = vadd.f32 %v16730_v49, %v1520_v51  ;;  %v1650_v48 = vmul.f32 0.044715, %v1626_v7  ;;  %v1649_v37 = vmul.f32 0.044715, %v1625_v6  ;;  %v1630_v32 = vmul.f32 %v1606_v14, %v16872_v58  ;;  %13512 = vmatprep.mubr.msk.f32.mxu1 %vm620_vm2, %v603_v36 }
 0x169   :  { %v604_v40 = vmul.f32 %v580_v61, %v16828_v23  ;;  %v1693_v52 = vmul.f32 0.7978846, %v1669_v34  ;;  %v1608_v41 = vmul.f32 %v16890_v11, %v16890_v11  ;;  %15465 = vtanh.f32 %v1689_v20 }
 0x16a   :  { %v13546_v15 = vpop.f32.mrb[42].mxu0  ;;  %v1607_v57 = vmul.f32 %v16896_v13, %v16896_v13  ;;  %v1738_v10 = vadd.f32 1.0, %v15464_v22  ;;  %v1672_v0 = vadd.f32 %v1648_v55, %v16825_v18  ;;  %v1652_v16 = vmul.f32 0.044715, %v1628_v19 }
 0x16b   :  { %v1540_v29 = vpop.f32.mrb[43].mxu0  ;;  %13513 = vmatmul.mubr.msk.f32.gmra.mrb[22].mxu1 %vm620_vm2, %v604_v40  ;;  %v16908_v25 = vadd.f32 %v16730_v49, %v1530_v50  ;;  %v1671_v23 = vadd.f32 %v1647_v27, %v16833_v24  ;;  %v1651_v54 = vmul.f32 0.044715, %v1627_v46  ;;  %v1629_v56 = vmul.f32 %v1605_v28, %v16883_v33 }
 0x16c   :  { %15467 = vtanh.f32 %v1691_v17  ;;  %v1674_v20 = vadd.f32 %v1650_v48, %v16836_v26  ;;  %v1673_v44 = vadd.f32 %v1649_v37, %v16839_v21  ;;  %v1654_v59 = vmul.f32 0.044715, %v1630_v32 }
 0x16d   :  { %v16917_v45 = vadd.f32 %v13543_v3, %v16730_v49  ;;  %v1632_v62 = vmul.f32 %v1608_v41, %v16890_v11  ;;  %v1631_v1 = vmul.f32 %v1607_v57, %v16896_v13  ;;  %v1609_v2 = vmul.f32 %v16908_v25, %v16908_v25 }
 0x16e   :  { %v16910_v51 = vpop.f32.mrb[44].mxu0  ;;  %15469 = vtanh.f32 %v1692_v38  ;;  %v1762_v60 = vmul.f32 %v1738_v10, %v16863_v43  ;;  %v1694_v5 = vmul.f32 0.7978846, %v1670_v9  ;;  %v1696_v7 = vmul.f32 0.7978846, %v1672_v0 }
 0x16f   :  { %v1550_v4 = vpop.f32.mrb[45].mxu0  ;;  %v1676_v6 = vadd.f32 %v1652_v16, %v16850_v47  ;;  %v1695_v50 = vmul.f32 0.7978846, %v1671_v23  ;;  %v1675_v3 = vadd.f32 %v1651_v54, %v16859_v63  ;;  %v1653_v31 = vmul.f32 0.044715, %v1629_v56 }
 0x170   :  { %v16929_v14 = vadd.f32 %v16730_v49, %v1540_v29  ;;  %v1698_v17 = vmul.f32 0.7978846, %v1674_v20  ;;  %v1678_v34 = vadd.f32 %v1654_v59, %v16872_v58  ;;  %v1610_v43 = vmul.f32 %v16917_v45, %v16917_v45 }
 0x171   :  { %15471 = vtanh.f32 %v1693_v52  ;;  %v1697_v38 = vmul.f32 0.7978846, %v1673_v44  ;;  %v1656_v9 = vmul.f32 0.044715, %v1632_v62  ;;  %v1655_v61 = vmul.f32 0.044715, %v1631_v1 }
 0x172   :  { %v16925_v53 = vpop.f32.mrb[46].mxu0  ;;  %v1633_v55 = vmul.f32 %v1609_v2, %v16908_v25  ;;  %v16935_v19 = vmul.f32 0.7978846, %v1676_v6  ;;  %v1569_v36 = vmul.f32 0.5, %v16766_v35  ;;  %v16939_v22 = vadd.f32 %v13546_v15, %v16730_v49 }
 0x173   :  { %v1560_v12 = vpop.f32.mrb[47].mxu0  ;;  %15473 = vtanh.f32 %v1694_v5  ;;  %v15466_v27 = vpop.eup %15465  ;;  %v1699_v46 = vmul.f32 0.7978846, %v1675_v3  ;;  %v1677_v28 = vadd.f32 %v1653_v31, %v16883_v33  ;;  %v1611_v29 = vmul.f32 %v16929_v14, %v16929_v14 }
 0x174   :  { %v16945_v48 = vadd.f32 %v16730_v49, %v1550_v4  ;;  %v16947_v37 = vmul.f32 0.7978846, %v1678_v34  ;;  %v1737_v32 = vadd.f32 1.0, %v15466_v27  ;;  %v1634_v40 = vmul.f32 %v1610_v43, %v16917_v45 }
 0x175   :  { %v1571_v35 = vmul.f32 0.5, %v16786_v39  ;;  %v1680_v52 = vadd.f32 %v1656_v9, %v16890_v11  ;;  %v1679_v41 = vadd.f32 %v1655_v61, %v16896_v13  ;;  %v1657_v57 = vmul.f32 0.044715, %v1633_v55 }
 0x176   :  { %v15468_v15 = vpop.eup %15467  ;;  %15475 = vtanh.f32 %v1695_v50  ;;  %v1761_v10 = vmul.f32 %v1737_v32, %v1569_v36  ;;  %v1612_v16 = vmul.f32 %v16939_v22, %v16939_v22  ;;  %v1613_v23 = vmul.f32 %v16945_v48, %v16945_v48 }
 0x177   :  { %v1739_v0 = vadd.f32 1.0, %v15468_v15  ;;  %v1701_v56 = vmul.f32 0.7978846, %v1677_v28  ;;  %v1572_v4 = vmul.f32 0.5, %v16771_v42  ;;  %v1635_v39 = vmul.f32 %v1611_v29, %v16929_v14 }
 0x178   :  { %v15470_v54 = vpop.eup %15469  ;;  %15477 = vtanh.f32 %v1696_v7  ;;  %13585 = vmatprep.mubr.f32.mxu1 %v1761_v10  ;;  %v1658_v20 = vmul.f32 0.044715, %v1634_v40  ;;  %v16961_v62 = vadd.f32 %v16910_v51, %v16730_v49  ;;  %v1704_v1 = vmul.f32 0.7978846, %v1680_v52 }
 0x179   :  { %v1763_v44 = vmul.f32 %v1739_v0, %v1571_v35  ;;  %v1740_v59 = vadd.f32 1.0, %v15470_v54  ;;  %v1703_v2 = vmul.f32 0.7978846, %v1679_v41  ;;  %13586 = vmatmul.mubr.f32.vlgmr.msra.gmra.mrb[24].mxu1 %v1762_v60  ;;  %v1573_v5 = vmul.f32 0.5, %v16807_v8 }
 0x17a   :  { %v16965_v6 = vadd.f32 %v16730_v49, %v1560_v12  ;;  %v1681_v50 = vadd.f32 %v1657_v57, %v16908_v25  ;;  %v1636_v7 = vmul.f32 %v1612_v16, %v16939_v22  ;;  %v1637_v3 = vmul.f32 %v1613_v23, %v16945_v48 }
 0x17b   :  { %v15472_v42 = vpop.eup %15471  ;;  %13588 = vmatprep.mubr.f32.mxu1 %v1763_v44  ;;  %15479 = vtanh.f32 %v1697_v38  ;;  %v1764_v31 = vmul.f32 %v1740_v59, %v1572_v4  ;;  %v1659_v51 = vmul.f32 0.044715, %v1635_v39  ;;  %v1682_v8 = vadd.f32 %v1658_v20, %v16917_v45 }
 0x17c   :  { %v1741_v34 = vadd.f32 1.0, %v15472_v42  ;;  %v1615_v60 = vmul.f32 %v16965_v6, %v16965_v6  ;;  %v1614_v12 = vmul.f32 %v16961_v62, %v16961_v62  ;;  %v16977_v9 = vadd.f32 %v16925_v53, %v16730_v49 }
 0x17d   :  { %v15474_v43 = vpop.eup %15473  ;;  %15481 = vtanh.f32 %v1698_v17  ;;  %13589 = vmatmul.mubr.f32.gmra.mrb[26].mxu1 %v1764_v31  ;;  %v1574_v38 = vmul.f32 0.5, %v16804_v30  ;;  %v1575_v36 = vmul.f32 0.5, %v16833_v24  ;;  %v1705_v27 = vmul.f32 0.7978846, %v1681_v50 }
 0x17e   :  { %v1765_v61 = vmul.f32 %v1741_v34, %v1573_v5  ;;  %v1742_v55 = vadd.f32 1.0, %v15474_v43  ;;  %v1660_v28 = vmul.f32 0.044715, %v1636_v7  ;;  %v1661_v29 = vmul.f32 0.044715, %v1637_v3 }
 0x17f   :  { %15483 = vtanh.f32 %v1699_v46  ;;  %v1683_v40 = vadd.f32 %v1659_v51, %v16929_v14  ;;  %v1639_v49 = vmul.f32 %v1615_v60, %v16965_v6  ;;  %v1638_v53 = vmul.f32 %v1614_v12, %v16961_v62 }
 0x180   :  { %v15476_v32 = vpop.eup %15475  ;;  %13591 = vmatprep.mubr.f32.mxu1 %v1765_v61  ;;  %v1766_v35 = vmul.f32 %v1742_v55, %v1574_v38  ;;  %15485 = vtanh.f32 %v16935_v19  ;;  %v1616_v30 = vmul.f32 %v16977_v9, %v16977_v9  ;;  %v1706_v15 = vmul.f32 0.7978846, %v1682_v8 }
 0x181   :  { %v1743_v17 = vadd.f32 1.0, %v15476_v32  ;;  %15487 = vtanh.f32 %v1701_v56  ;;  %v1576_v46 = vmul.f32 0.5, %v16825_v18  ;;  %v1685_v52 = vadd.f32 %v1661_v29, %v16945_v48 }
 0x182   :  { %v15478_v24 = vpop.eup %15477  ;;  %13592 = vmatmul.mubr.f32.gmra.mrb[28].mxu1 %v1766_v35  ;;  %15489 = vtanh.f32 %v16947_v37  ;;  %v1684_v19 = vadd.f32 %v1660_v28, %v16939_v22  ;;  %v1707_v10 = vmul.f32 0.7978846, %v1683_v40  ;;  %v1663_v0 = vmul.f32 0.044715, %v1639_v49 }
 0x183   :  { %v1767_v41 = vmul.f32 %v1743_v17, %v1575_v36  ;;  %v1744_v57 = vadd.f32 1.0, %v15478_v24  ;;  %15491 = vtanh.f32 %v1703_v2  ;;  %v1662_v23 = vmul.f32 0.044715, %v1638_v53 }
 0x184   :  { %15493 = vtanh.f32 %v1704_v1  ;;  %v1640_v56 = vmul.f32 %v1616_v30, %v16977_v9  ;;  %v1577_v18 = vmul.f32 0.5, %v16839_v21  ;;  %v1709_v39 = vmul.f32 0.7978846, %v1685_v52 }
 0x185   :  { %v15480_v16 = vpop.eup %15479  ;;  %13594 = vmatprep.mubr.f32.mxu1 %v1767_v41  ;;  %v1768_v54 = vmul.f32 %v1744_v57, %v1576_v46  ;;  %15495 = vtanh.f32 %v1705_v27  ;;  %v1578_v20 = vmul.f32 0.5, %v16836_v26  ;;  %v1687_v44 = vadd.f32 %v1663_v0, %v16965_v6 }
 0x186   :  { %v1745_v37 = vadd.f32 1.0, %v15480_v16  ;;  %15497 = vtanh.f32 %v1707_v10  ;;  %v1708_v5 = vmul.f32 0.7978846, %v1684_v19  ;;  %v1686_v42 = vadd.f32 %v1662_v23, %v16961_v62 }
 0x187   :  { %v15482_v4 = vpop.eup %15481  ;;  %13595 = vmatmul.mubr.f32.gmra.mrb[30].mxu1 %v1768_v54  ;;  %v1664_v50 = vmul.f32 0.044715, %v1640_v56  ;;  %15499 = vtanh.f32 %v1706_v15  ;;  %v1579_v3 = vmul.f32 0.5, %v16859_v63  ;;  %v1580_v26 = vmul.f32 0.5, %v16850_v47 }
 0x188   :  { %v1769_v59 = vmul.f32 %v1745_v37, %v1577_v18  ;;  %v1746_v2 = vadd.f32 1.0, %v15482_v4  ;;  %v1581_v60 = vmul.f32 0.5, %v16883_v33  ;;  %v1711_v8 = vmul.f32 0.7978846, %v1687_v44 }
 0x189   :  { %v15484_v1 = vpop.eup %15483  ;;  %15501 = vtanh.f32 %v1709_v39  ;;  %v1710_v55 = vmul.f32 0.7978846, %v1686_v42  ;;  %v1688_v36 = vadd.f32 %v1664_v50, %v16977_v9  ;;  %v1583_v33 = vmul.f32 0.5, %v16896_v13  ;;  %v2209_v50 = vld [vmem:[%s21301_s7] sm:$0xff] }
 0x18a   :  { %v15486_v7 = vpop.eup %15485  ;;  %13597 = vmatprep.mubr.f32.mxu1 %v1769_v59  ;;  %v1770_v21 = vmul.f32 %v1746_v2, %v1578_v20  ;;  %v1747_v31 = vadd.f32 1.0, %v15484_v1  ;;  %15503 = vtanh.f32 %v1708_v5  ;;  %v1582_v40 = vmul.f32 0.5, %v16872_v58 }
 0x18b   :  { %v15488_v51 = vpop.eup %15487  ;;  %v1748_v34 = vadd.f32 1.0, %v15486_v7  ;;  %15505 = vtanh.f32 %v1711_v8  ;;  %v1712_v35 = vmul.f32 0.7978846, %v1688_v36  ;;  %v1585_v46 = vmul.f32 0.5, %v16908_v25  ;;  %v17037_v8 = vld [vmem:[#allocation2 + $0x1] ss:$0 sm:$0xff] }
 0x18c   :  { %v15490_v43 = vpop.eup %15489  ;;  %13598 = vmatmul.mubr.f32.gmra.mrb[32].mxu1 %v1770_v21  ;;  %v1771_v12 = vmul.f32 %v1747_v31, %v1579_v3  ;;  %v1749_v61 = vadd.f32 1.0, %v15488_v51  ;;  %15507 = vtanh.f32 %v1710_v55  ;;  %v1584_v52 = vmul.f32 0.5, %v16890_v11  ;;  %v2213_v3 = vld [vmem:[%s21301_s7 + $0x20] sm:$0xff]  ;;  %v2214_v31 = vld [vmem:[%s21301_s7 + $0x28] sm:$0xff] }
 0x18d   :  { %v15492_v38 = vpop.eup %15491  ;;  %v1772_v63 = vmul.f32 %v1748_v34, %v1580_v26  ;;  %v1750_v29 = vadd.f32 1.0, %v15490_v43  ;;  %15509 = vtanh.f32 %v1712_v35  ;;  %v1587_v0 = vmul.f32 0.5, %v16929_v14  ;;  %v2215_v26 = vld [vmem:[%s21301_s7 + $0x30] sm:$0xff]  ;;  %v2216_v34 = vld [vmem:[%s21301_s7 + $0x38] sm:$0xff] }
 0x18e   :  { %v15494_v27 = vpop.eup %15493  ;;  %13600 = vmatprep.mubr.f32.mxu1 %v1771_v12  ;;  %v1773_v28 = vmul.f32 %v1749_v61, %v1581_v60  ;;  %v1751_v47 = vadd.f32 1.0, %v15492_v38  ;;  %v1586_v16 = vmul.f32 0.5, %v16917_v45  ;;  %v1589_v37 = vmul.f32 0.5, %v16945_v48 }
 0x18f   :  { %v15496_v32 = vpop.eup %15495  ;;  %v1774_v30 = vmul.f32 %v1750_v29, %v1582_v40  ;;  %v1752_v24 = vadd.f32 1.0, %v15494_v27  ;;  %v1588_v4 = vmul.f32 0.5, %v16939_v22  ;;  %v1591_v45 = vmul.f32 0.5, %v16965_v6  ;;  %v2210_v6 = vld [vmem:[%s21301_s7 + $0x8] sm:$0xff] }
 0x190   :  { %13601 = vmatmul.mubr.f32.gmra.mrb[34].mxu1 %v1772_v63  ;;  %v1775_v49 = vmul.f32 %v1751_v47, %v1583_v33  ;;  %v1753_v53 = vadd.f32 1.0, %v15496_v32  ;;  %v15498_v17 = vpop.eup %15497  ;;  %v1590_v2 = vmul.f32 0.5, %v16961_v62  ;;  %v1592_v48 = vmul.f32 0.5, %v16977_v9  ;;  %v2211_v62 = vld [vmem:[%s21301_s7 + $0x10] sm:$0xff]  ;;  %v2212_v9 = vld [vmem:[%s21301_s7 + $0x18] sm:$0xff] }
 0x191   :  { %13603 = vmatprep.mubr.f32.mxu1 %v1773_v28  ;;  %v15500_v15 = vpop.eup %15499  ;;  %v1755_v41 = vadd.f32 1.0, %v15498_v17  ;;  %v1776_v57 = vmul.f32 %v1752_v24, %v1584_v52  ;;  %v14693_v7 = vpack.c.bf16 %v2210_v6, %v2209_v50  ;;  %v14697_v21 = vpack.c.bf16 %v2212_v9, %v2211_v62 }
 0x192   :  { %v1777_v13 = vmul.f32 %v1753_v53, %v1585_v46  ;;  %v1754_v19 = vadd.f32 1.0, %v15500_v15  ;;  %v14701_v51 = vpack.c.bf16 %v2214_v31, %v2213_v3  ;;  %v14705_v60 = vpack.c.bf16 %v2216_v34, %v2215_v26 }
 0x193   :  { %v15502_v58 = vpop.eup %15501  ;;  %v1779_v23 = vmul.f32 %v1755_v41, %v1587_v0  ;;  %14694 = vmatprep.subr.bf16.mxu0 %v14693_v7  ;;  %v21318_v43 = vmov 0.0  }
 0x194   :  { %13604 = vmatmul.mubr.f32.gmra.mrb[36].mxu1 %v1774_v30  ;;  %v15504_v10 = vpop.eup %15503  ;;  %v1757_v54 = vadd.f32 1.0, %v15502_v58  ;;  %v1778_v56 = vmul.f32 %v1754_v19, %v1586_v16  ;;  %14696 = vmatpush3.bf16.msra.mxu0 %v14693_v7 }
 0x195   :  { %13606 = vmatprep.mubr.f32.mxu1 %v1775_v49  ;;  %v15506_v25 = vpop.eup %15505  ;;  %v1756_v18 = vadd.f32 1.0, %v15504_v10  ;;  %14698 = vmatprep.subr.bf16.mxu0 %v14697_v21 }
 0x196   :  { %v15508_v11 = vpop.eup %15507  ;;  %v1781_v39 = vmul.f32 %v1757_v54, %v1589_v37  ;;  %v1759_v20 = vadd.f32 1.0, %v15506_v25 }
 0x197   :  { %v1780_v44 = vmul.f32 %v1756_v18, %v1588_v4  ;;  %v1758_v14 = vadd.f32 1.0, %v15508_v11  ;;  %v15510_v59 = vpop.eup %15509 }
 0x198   :  { %13607 = vmatmul.mubr.f32.gmra.mrb[38].mxu1 %v1776_v57  ;;  %v1783_v1 = vmul.f32 %v1759_v20, %v1591_v45  ;;  %v1760_v42 = vadd.f32 1.0, %v15510_v59  ;;  %14700 = vmatpush3.bf16.msra.mxu0 %v14697_v21 }
 0x199   :  { %13609 = vmatprep.mubr.f32.mxu1 %v1777_v13  ;;  %v1782_v5 = vmul.f32 %v1758_v14, %v1590_v2  ;;  %14702 = vmatprep.subr.bf16.mxu0 %v14701_v51 }
 0x19a   :  { %v1784_v22 = vmul.f32 %v1760_v42, %v1592_v48 }
 0x19c   :  { %13610 = vmatmul.mubr.f32.gmra.mrb[40].mxu1 %v1778_v56  ;;  %14704 = vmatpush3.bf16.msra.mxu0 %v14701_v51 }
 0x19d   :  { %13612 = vmatprep.mubr.f32.mxu1 %v1779_v23  ;;  %14706 = vmatprep.subr.bf16.mxu0 %v14705_v60 }
 0x1a0   :  { %13613 = vmatmul.mubr.f32.gmra.mrb[42].mxu1 %v1780_v44  ;;  %14708 = vmatpush3.bf16.msra.mxu0 %v14705_v60 }
 0x1a1   :  { %13615 = vmatprep.mubr.f32.mxu1 %v1781_v39  ;;  %13673 = vmatprep.subr.mxu0 %v21318_v43 }
 0x1a4   :  { %13616 = vmatmul.mubr.f32.gmra.mrb[44].mxu1 %v1782_v5 }
 0x1a5   :  { %13618 = vmatprep.mubr.f32.mxu1 %v1783_v1 }
 0x1a8   :  { %13619 = vmatmul.mubr.f32.gmra.mrb[46].mxu1 %v1784_v22 }
 0x1a9   :  { %2633 = vmatprep.mubr.f32.mxu1 %v21318_v43 }
 0x20a   :  { %v13481_v12 = vpop.f32.mrb[0].mxu1 }
 0x20b   :  { %v765_v61 = vadd.f32 %v13481_v12, %v17037_v8  ;;  %v759_v38 = vpop.f32.mrb[1].mxu1 }
 0x20c   :  { %v760_v55 = vadd.f32 %v17037_v8, %v759_v38 }
 0x20d   :  { %v903_v36 = vmul.f32 %v765_v61, %v765_v61  ;;  %v879_v21 = vmul.f32 0.5, %v765_v61 }
 0x20e   :  { %v902_v27 = vmul.f32 %v760_v55, %v760_v55  ;;  %v878_v60 = vmul.f32 0.5, %v760_v55 }
 0x20f   :  { %v927_v63 = vmul.f32 %v903_v36, %v765_v61 }
 0x210   :  { %v926_v28 = vmul.f32 %v902_v27, %v760_v55 }
 0x211   :  { %v951_v47 = vmul.f32 0.044715, %v927_v63  ;;  %v17095_v63 = vld [vmem:[#allocation2 + $0x2] ss:$0 sm:$0xff] }
 0x212   :  { %v13484_v29 = vpop.f32.mrb[2].mxu1  ;;  %v950_v40 = vmul.f32 0.044715, %v926_v28 }
 0x213   :  { %v17042_v32 = vadd.f32 %v13484_v29, %v17037_v8  ;;  %v769_v33 = vpop.f32.mrb[3].mxu1  ;;  %v975_v49 = vadd.f32 %v951_v47, %v765_v61 }
 0x214   :  { %v17045_v35 = vadd.f32 %v17037_v8, %v769_v33  ;;  %v974_v17 = vadd.f32 %v950_v40, %v760_v55 }
 0x215   :  { %v905_v53 = vmul.f32 %v17042_v32, %v17042_v32  ;;  %v999_v13 = vmul.f32 0.7978846, %v975_v49 }
 0x216   :  { %v904_v30 = vmul.f32 %v17045_v35, %v17045_v35  ;;  %v13487_v24 = vpop.f32.mrb[4].mxu1  ;;  %v998_v41 = vmul.f32 0.7978846, %v974_v17 }
 0x217   :  { %v929_v15 = vmul.f32 %v905_v53, %v17042_v32  ;;  %v17053_v46 = vadd.f32 %v13487_v24, %v17037_v8  ;;  %v779_v52 = vpop.f32.mrb[5].mxu1  ;;  %15511 = vtanh.f32 %v999_v13 }
 0x218   :  { %v928_v58 = vmul.f32 %v904_v30, %v17045_v35  ;;  %v17057_v57 = vadd.f32 %v17037_v8, %v779_v52  ;;  %15513 = vtanh.f32 %v998_v41  ;;  %v881_v41 = vmul.f32 0.5, %v17042_v32 }
 0x219   :  { %v953_v19 = vmul.f32 0.044715, %v929_v15  ;;  %v907_v10 = vmul.f32 %v17053_v46, %v17053_v46 }
 0x21a   :  { %v952_v0 = vmul.f32 0.044715, %v928_v58  ;;  %v906_v16 = vmul.f32 %v17057_v57, %v17057_v57 }
 0x21b   :  { %v977_v23 = vadd.f32 %v953_v19, %v17042_v32  ;;  %v931_v54 = vmul.f32 %v907_v10, %v17053_v46  ;;  %v13490_v25 = vpop.f32.mrb[6].mxu1 }
 0x21c   :  { %v976_v56 = vadd.f32 %v952_v0, %v17045_v35  ;;  %v930_v18 = vmul.f32 %v906_v16, %v17057_v57  ;;  %v17068_v11 = vadd.f32 %v13490_v25, %v17037_v8  ;;  %v789_v37 = vpop.f32.mrb[7].mxu1 }
 0x21d   :  { %v1001_v4 = vmul.f32 0.7978846, %v977_v23  ;;  %v955_v39 = vmul.f32 0.044715, %v931_v54  ;;  %v17071_v20 = vadd.f32 %v17037_v8, %v789_v37 }
 0x21e   :  { %v954_v44 = vmul.f32 0.044715, %v930_v18  ;;  %v909_v14 = vmul.f32 %v17068_v11, %v17068_v11  ;;  %v1000_v59 = vmul.f32 0.7978846, %v976_v56  ;;  %v880_v56 = vmul.f32 0.5, %v17045_v35 }
 0x21f   :  { %15515 = vtanh.f32 %v1001_v4  ;;  %v979_v45 = vadd.f32 %v955_v39, %v17053_v46  ;;  %v908_v42 = vmul.f32 %v17071_v20, %v17071_v20  ;;  %v883_v39 = vmul.f32 0.5, %v17053_v46 }
 0x220   :  { %v978_v2 = vadd.f32 %v954_v44, %v17057_v57  ;;  %v933_v1 = vmul.f32 %v909_v14, %v17068_v11  ;;  %v13493_v5 = vpop.f32.mrb[8].mxu1  ;;  %15517 = vtanh.f32 %v1000_v59 }
 0x221   :  { %v17081_v48 = vadd.f32 %v13493_v5, %v17037_v8  ;;  %v799_v22 = vpop.f32.mrb[9].mxu1  ;;  %v15512_v7 = vpop.eup %15511  ;;  %v1003_v31 = vmul.f32 0.7978846, %v979_v45  ;;  %v932_v38 = vmul.f32 %v908_v42, %v17071_v20  ;;  %v882_v45 = vmul.f32 0.5, %v17057_v57 }
 0x222   :  { %v957_v50 = vmul.f32 0.044715, %v933_v1  ;;  %v17084_v6 = vadd.f32 %v17037_v8, %v799_v22  ;;  %v1002_v62 = vmul.f32 0.7978846, %v978_v2  ;;  %v15514_v3 = vpop.eup %15513  ;;  %v1047_v34 = vadd.f32 1.0, %v15512_v7 }
 0x223   :  { %v911_v9 = vmul.f32 %v17081_v48, %v17081_v48  ;;  %v1046_v28 = vadd.f32 1.0, %v15514_v3  ;;  %v956_v15 = vmul.f32 0.044715, %v932_v38 }
 0x224   :  { %v910_v51 = vmul.f32 %v17084_v6, %v17084_v6  ;;  %v13496_v26 = vpop.f32.mrb[10].mxu1  ;;  %v981_v12 = vadd.f32 %v957_v50, %v17068_v11  ;;  %v1071_v47 = vmul.f32 %v1047_v34, %v879_v21  ;;  %15519 = vtanh.f32 %v1002_v62 }
 0x225   :  { %v17093_v36 = vadd.f32 %v13496_v26, %v17037_v8  ;;  %v809_v27 = vpop.f32.mrb[11].mxu1  ;;  %v935_v61 = vmul.f32 %v911_v9, %v17081_v48  ;;  %v1070_v40 = vmul.f32 %v1046_v28, %v878_v60  ;;  %15521 = vtanh.f32 %v1003_v31 }
 0x226   :  { %v17099_v29 = vadd.f32 %v17037_v8, %v809_v27  ;;  %v934_v55 = vmul.f32 %v910_v51, %v17084_v6  ;;  %v1102_v17 = vmul.f32 %v17095_v63, %v1071_v47  ;;  %v1005_v24 = vmul.f32 0.7978846, %v981_v12 }
 0x227   :  { %v913_v33 = vmul.f32 %v17093_v36, %v17093_v36  ;;  %v959_v19 = vmul.f32 0.044715, %v935_v61  ;;  %v1101_v16 = vmul.f32 %v17095_v63, %v1070_v40  ;;  %v980_v2 = vadd.f32 %v956_v15, %v17071_v20 }
 0x228   :  { %v912_v49 = vmul.f32 %v17099_v29, %v17099_v29  ;;  %v13499_v53 = vpop.f32.mrb[12].mxu1  ;;  %v1129_v0 = vsel %vm1125_vm3, %v1102_v17, 0.0  ;;  %v958_v23 = vmul.f32 0.044715, %v934_v55  ;;  %15523 = vtanh.f32 %v1005_v24 }
 0x229   :  { %v15516_v30 = vpop.eup %15515  ;;  %v17108_v52 = vadd.f32 %v13499_v53, %v17037_v8  ;;  %v819_v13 = vpop.f32.mrb[13].mxu1  ;;  %v937_v54 = vmul.f32 %v913_v33, %v17093_v36  ;;  %1130 = vadd.xlane.f32.xlu0 %v1129_v0  ;;  %v983_v35 = vadd.f32 %v959_v19, %v17081_v48  ;;  %v1126_v1 = vsel %vm1125_vm3, %v1101_v16, 0.0 }
 0x22a   :  { %v15518_v58 = vpop.eup %15517  ;;  %v17112_v10 = vadd.f32 %v17037_v8, %v819_v13  ;;  %v936_v32 = vmul.f32 %v912_v49, %v17099_v29  ;;  %v1049_v59 = vadd.f32 1.0, %v15516_v30  ;;  %v982_v42 = vadd.f32 %v958_v23, %v17084_v6 }
 0x22b   :  { %v915_v25 = vmul.f32 %v17108_v52, %v17108_v52  ;;  %v1048_v4 = vadd.f32 1.0, %v15518_v58  ;;  %v961_v22 = vmul.f32 0.044715, %v937_v54  ;;  %v17142_v34 = vmul.f32 0.5, %v17071_v20 }
 0x22c   :  { %v914_v18 = vmul.f32 %v17112_v10, %v17112_v10  ;;  %v13502_v37 = vpop.f32.mrb[14].mxu1  ;;  %v1073_v46 = vmul.f32 %v1049_v59, %v881_v41  ;;  %v960_v7 = vmul.f32 0.044715, %v936_v32  ;;  %v885_v60 = vmul.f32 0.5, %v17068_v11 }
 0x22d   :  { %v939_v44 = vmul.f32 %v915_v25, %v17108_v52  ;;  %v829_v14 = vpop.f32.mrb[15].mxu1  ;;  %v1072_v5 = vmul.f32 %v1048_v4, %v880_v56  ;;  %v17131_v50 = vadd.f32 %v13502_v37, %v17037_v8  ;;  %1127 = vadd.xlane.f32.xlu0 %v1126_v1  ;;  %v1004_v38 = vmul.f32 0.7978846, %v980_v2 }
 0x22e   :  { %v938_v62 = vmul.f32 %v914_v18, %v17112_v10  ;;  %v17135_v57 = vadd.f32 %v17037_v8, %v829_v14  ;;  %v15520_v3 = vpop.eup %15519  ;;  %v1104_v61 = vmul.f32 %v17095_v63, %v1073_v46  ;;  %v1007_v47 = vmul.f32 0.7978846, %v983_v35 }
 0x22f   :  { %v1103_v21 = vmul.f32 %v17095_v63, %v1072_v5  ;;  %v963_v31 = vmul.f32 0.044715, %v939_v44  ;;  %v15522_v12 = vpop.eup %15521  ;;  %v17150_v55 = vmul.f32 0.7978846, %v982_v42  ;;  %v985_v33 = vadd.f32 %v961_v22, %v17093_v36 }
 0x230   :  { %v13505_v9 = vpop.f32.mrb[16].mxu1  ;;  %v917_v20 = vmul.f32 %v17131_v50, %v17131_v50  ;;  %v984_v11 = vadd.f32 %v960_v7, %v17099_v29  ;;  %v962_v40 = vmul.f32 0.044715, %v938_v62  ;;  %v916_v49 = vmul.f32 %v17135_v57, %v17135_v57 }
 0x231   :  { %v17139_v51 = vadd.f32 %v13505_v9, %v17037_v8  ;;  %v839_v26 = vpop.f32.mrb[17].mxu1  ;;  %v1132_v28 = vsel %vm1125_vm3, %v1103_v21, 0.0  ;;  %v1050_v17 = vadd.f32 1.0, %v15520_v3  ;;  %v987_v30 = vadd.f32 %v963_v31, %v17108_v52 }
 0x232   :  { %v17146_v27 = vadd.f32 %v17037_v8, %v839_v26  ;;  %1133 = vadd.xlane.f32.xlu1 %v1132_v28  ;;  %v1051_v41 = vadd.f32 1.0, %v15522_v12  ;;  %v1135_v0 = vsel %vm1125_vm3, %v1104_v61, 0.0  ;;  %v15524_v23 = vpop.eup %15523  ;;  %v1009_v54 = vmul.f32 0.7978846, %v985_v33 }
 0x233   :  { %v919_v24 = vmul.f32 %v17139_v51, %v17139_v51  ;;  %v1074_v16 = vmul.f32 %v1050_v17, %v882_v45  ;;  %v941_v25 = vmul.f32 %v917_v20, %v17131_v50  ;;  %v1008_v18 = vmul.f32 0.7978846, %v984_v11 }
 0x234   :  { %v13508_v53 = vpop.f32.mrb[18].mxu1  ;;  %v918_v58 = vmul.f32 %v17146_v27, %v17146_v27  ;;  %v1075_v32 = vmul.f32 %v1051_v41, %v883_v39  ;;  %v986_v37 = vadd.f32 %v962_v40, %v17112_v10  ;;  %v940_v14 = vmul.f32 %v916_v49, %v17135_v57 }
 0x235   :  { %v17162_v15 = vadd.f32 %v13508_v53, %v17037_v8  ;;  %v849_v13 = vpop.f32.mrb[19].mxu1  ;;  %v1105_v44 = vmul.f32 %v17095_v63, %v1074_v16  ;;  %v943_v59 = vmul.f32 %v919_v24, %v17139_v51  ;;  %15525 = vtanh.f32 %v1004_v38 }
 0x236   :  { %v17167_v19 = vadd.f32 %v17037_v8, %v849_v13  ;;  %1136 = vadd.xlane.f32.xlu1 %v1135_v0  ;;  %v1106_v45 = vmul.f32 %v17095_v63, %v1075_v32  ;;  %v1011_v2 = vmul.f32 0.7978846, %v987_v30  ;;  %v942_v35 = vmul.f32 %v918_v58, %v17146_v27 }
 0x237   :  { %v921_v56 = vmul.f32 %v17162_v15, %v17162_v15  ;;  %v1138_v39 = vsel %vm1125_vm3, %v1105_v44, 0.0  ;;  %v1053_v5 = vadd.f32 1.0, %v15524_v23  ;;  %v965_v42 = vmul.f32 0.044715, %v941_v25 }
 0x238   :  { %v920_v4 = vmul.f32 %v17167_v19, %v17167_v19  ;;  %1139 = vadd.xlane.f32.xlu0 %v1138_v39  ;;  %v1141_v62 = vsel %vm1125_vm3, %v1106_v45, 0.0  ;;  %v1010_v9 = vmul.f32 0.7978846, %v986_v37  ;;  %v964_v26 = vmul.f32 0.044715, %v940_v14 }
 0x239   :  { %v13511_v1 = vpop.f32.mrb[20].mxu1  ;;  %v945_v22 = vmul.f32 %v921_v56, %v17162_v15  ;;  %v1077_v31 = vmul.f32 %v1053_v5, %v885_v60  ;;  %v967_v12 = vmul.f32 0.044715, %v943_v59  ;;  %15527 = vtanh.f32 %v1007_v47 }
 0x23a   :  { %v17184_v46 = vadd.f32 %v13511_v1, %v17037_v8  ;;  %v859_v7 = vpop.f32.mrb[21].mxu1  ;;  %v944_v21 = vmul.f32 %v920_v4, %v17167_v19  ;;  %1142 = vadd.xlane.f32.xlu1 %v1141_v62  ;;  %v966_v28 = vmul.f32 0.044715, %v942_v35  ;;  %15529 = vtanh.f32 %v1008_v18 }
 0x23b   :  { %v17189_v3 = vadd.f32 %v17037_v8, %v859_v7  ;;  %v1108_v20 = vmul.f32 %v17095_v63, %v1077_v31  ;;  %v989_v11 = vadd.f32 %v965_v42, %v17131_v50  ;;  %v969_v40 = vmul.f32 0.044715, %v945_v22 }
 0x23c   :  { %v923_v38 = vmul.f32 %v17184_v46, %v17184_v46  ;;  %v968_v17 = vmul.f32 0.044715, %v944_v21  ;;  %v988_v13 = vadd.f32 %v964_v26, %v17135_v57  ;;  %v991_v41 = vadd.f32 %v967_v12, %v17139_v51  ;;  %v17238_v12 = vld [vmem:[#allocation2 + $0x5] ss:$0 sm:$0xff] }
 0x23d   :  { %v922_v61 = vmul.f32 %v17189_v3, %v17189_v3  ;;  %v1147_v24 = vsel %vm1125_vm3, %v1108_v20, 0.0  ;;  %15531 = vtanh.f32 %v17150_v55  ;;  %v990_v0 = vadd.f32 %v966_v28, %v17146_v27 }
 0x23e   :  { %v13514_v33 = vpop.f32.mrb[22].mxu1  ;;  %v947_v49 = vmul.f32 %v923_v38, %v17184_v46  ;;  %1148 = vadd.xlane.f32.xlu1 %v1147_v24  ;;  %v887_v23 = vmul.f32 0.5, %v17081_v48  ;;  %15533 = vtanh.f32 %v1009_v54  ;;  %v993_v25 = vadd.f32 %v969_v40, %v17162_v15 }
 0x23f   :  { %v17199_v60 = vadd.f32 %v13514_v33, %v17037_v8  ;;  %v869_v53 = vpop.f32.mrb[23].mxu1  ;;  %v946_v47 = vmul.f32 %v922_v61, %v17189_v3  ;;  %15535 = vtanh.f32 %v1010_v9  ;;  %v992_v18 = vadd.f32 %v968_v17, %v17167_v19 }
 0x240   :  { %v17203_v30 = vadd.f32 %v17037_v8, %v869_v53  ;;  %v971_v16 = vmul.f32 0.044715, %v947_v49  ;;  %v15526_v8 = vpop.eup %15525  ;;  %15537 = vtanh.f32 %v1011_v2  ;;  %v1013_v55 = vmul.f32 0.7978846, %v989_v11 }
 0x241   :  { %v925_v58 = vmul.f32 %v17199_v60, %v17199_v60  ;;  %v970_v56 = vmul.f32 0.044715, %v946_v47  ;;  %v1052_v4 = vadd.f32 1.0, %v15526_v8  ;;  %v17218_v44 = vmul.f32 0.7978846, %v988_v13 }
 0x242   :  { %v924_v32 = vmul.f32 %v17203_v30, %v17203_v30  ;;  %v17220_v14 = vmul.f32 0.7978846, %v991_v41  ;;  %v1014_v48 = vmul.f32 0.7978846, %v990_v0  ;;  %v995_v54 = vadd.f32 %v971_v16, %v17184_v46 }
 0x243   :  { %v949_v37 = vmul.f32 %v925_v58, %v17199_v60  ;;  %v1076_v59 = vmul.f32 %v1052_v4, %v17142_v34  ;;  %v888_v45 = vmul.f32 0.5, %v17099_v29  ;;  %v15528_v35 = vpop.eup %15527  ;;  %v17225_v1 = vmul.f32 0.7978846, %v993_v25 }
 0x244   :  { %v994_v39 = vadd.f32 %v970_v56, %v17189_v3  ;;  %v948_v5 = vmul.f32 %v924_v32, %v17203_v30  ;;  %v886_v2 = vmul.f32 0.5, %v17084_v6  ;;  %v15530_v42 = vpop.eup %15529  ;;  %v17230_v22 = vmul.f32 0.7978846, %v992_v18 }
 0x245   :  { %v973_v7 = vmul.f32 0.044715, %v949_v37  ;;  %v1107_v62 = vmul.f32 %v17095_v63, %v1076_v59  ;;  %v1055_v9 = vadd.f32 1.0, %v15528_v35  ;;  %v1056_v21 = vadd.f32 1.0, %v15530_v42 }
 0x246   :  { %v889_v34 = vmul.f32 0.5, %v17093_v36  ;;  %v890_v29 = vmul.f32 0.5, %v17112_v10  ;;  %15539 = vtanh.f32 %v1013_v55  ;;  %v17235_v31 = vmul.f32 0.7978846, %v995_v54 }
 0x247   :  { %v1144_v26 = vsel %vm1125_vm3, %v1107_v62, 0.0  ;;  %v1079_v6 = vmul.f32 %v1055_v9, %v887_v23  ;;  %v891_v38 = vmul.f32 0.5, %v17108_v52  ;;  %v15532_v28 = vpop.eup %15531  ;;  %v17241_v61 = vmul.f32 0.7978846, %v994_v39 }
 0x248   :  { %1145 = vadd.xlane.f32.xlu0 %v1144_v26  ;;  %v972_v33 = vmul.f32 0.044715, %v948_v5  ;;  %v1080_v20 = vmul.f32 %v1056_v21, %v888_v45  ;;  %v17244_v36 = vmul.f32 0.5, %v17131_v50  ;;  %v15534_v10 = vpop.eup %15533  ;;  %v997_v11 = vadd.f32 %v973_v7, %v17199_v60 }
 0x249   :  { %v1110_v40 = vmul.f32 %v17095_v63, %v1079_v6  ;;  %v1054_v49 = vadd.f32 1.0, %v15532_v28  ;;  %v17249_v53 = vmul.f32 0.5, %v17146_v27  ;;  %v15536_v17 = vpop.eup %15535  ;;  %v1057_v24 = vadd.f32 1.0, %v15534_v10 }
 0x24a   :  { %v1111_v47 = vmul.f32 %v17095_v63, %v1080_v20  ;;  %15541 = vtanh.f32 %v1014_v48  ;;  %v17253_v13 = vmul.f32 0.5, %v17135_v57  ;;  %v15538_v50 = vpop.eup %15537  ;;  %v1058_v23 = vadd.f32 1.0, %v15536_v17 }
 0x24b   :  { %v1153_v58 = vsel %vm1125_vm3, %v1110_v40, 0.0  ;;  %v1078_v16 = vmul.f32 %v1054_v49, %v886_v2  ;;  %v1081_v25 = vmul.f32 %v1057_v24, %v889_v34  ;;  %v1059_v56 = vadd.f32 1.0, %v15538_v50 }
 0x24c   :  { %v13587_v52 = vpop.f32.mrb[24].mxu1  ;;  %1154 = vadd.xlane.f32.xlu0 %v1153_v58  ;;  %v1156_v8 = vsel %vm1125_vm3, %v1111_v47, 0.0  ;;  %v1082_v18 = vmul.f32 %v1058_v23, %v890_v29  ;;  %v17267_v37 = vmul.f32 0.5, %v17139_v51  ;;  %v996_v4 = vadd.f32 %v972_v33, %v17203_v30 }
 0x24d   :  { %v17256_v41 = vadd.f32 %v13587_v52, %v17238_v12  ;;  %v1874_v0 = vpop.f32.mrb[25].mxu1  ;;  %1157 = vadd.xlane.f32.xlu1 %v1156_v8  ;;  %v1109_v32 = vmul.f32 %v17095_v63, %v1078_v16  ;;  %v1112_v54 = vmul.f32 %v17095_v63, %v1081_v25  ;;  %v1083_v59 = vmul.f32 %v1059_v56, %v891_v38 }
 0x24e   :  { %v17260_v27 = vadd.f32 %v17238_v12, %v1874_v0  ;;  %v1113_v51 = vmul.f32 %v17095_v63, %v1082_v18  ;;  %15543 = vtanh.f32 %v17218_v44  ;;  %v17285_v9 = vmul.f32 0.7978846, %v997_v11 }
 0x24f   :  { %v2018_v57 = vmul.f32 %v17256_v41, %v17256_v41  ;;  %v1150_v39 = vsel %vm1125_vm3, %v1109_v32, 0.0  ;;  %v1159_v7 = vsel %vm1125_vm3, %v1112_v54, 0.0  ;;  %v1114_v62 = vmul.f32 %v17095_v63, %v1083_v59 }
 0x250   :  { %v2017_v55 = vmul.f32 %v17260_v27, %v17260_v27  ;;  %v13590_v48 = vpop.f32.mrb[26].mxu1  ;;  %v15540_v2 = vpop.eup %15539  ;;  %1151 = vadd.xlane.f32.xlu0 %v1150_v39  ;;  %v1162_v34 = vsel %vm1125_vm3, %v1113_v51, 0.0  ;;  %15545 = vtanh.f32 %v17220_v14  ;;  %v1020_v29 = vmul.f32 0.7978846, %v996_v4 }
 0x251   :  { %v2042_v45 = vmul.f32 %v2018_v57, %v17256_v41  ;;  %v17275_v35 = vadd.f32 %v13590_v48, %v17238_v12  ;;  %v1884_v5 = vpop.f32.mrb[27].mxu1  ;;  %1160 = vadd.xlane.f32.xlu1 %v1159_v7  ;;  %v17295_v28 = vmul.f32 0.5, %v17167_v19  ;;  %v1061_v10 = vadd.f32 1.0, %v15540_v2 }
 0x252   :  { %v17280_v42 = vadd.f32 %v17238_v12, %v1884_v5  ;;  %v2041_v26 = vmul.f32 %v2017_v55, %v17260_v27  ;;  %15547 = vtanh.f32 %v17230_v22  ;;  %v1165_v17 = vsel %vm1125_vm3, %v1114_v62, 0.0 }
 0x253   :  { %v2020_v21 = vmul.f32 %v17275_v35, %v17275_v35  ;;  %v2066_v44 = vmul.f32 0.044715, %v2042_v45  ;;  %v17306_v52 = vmul.f32 0.5, %v17162_v15  ;;  %15549 = vtanh.f32 %v17225_v1 }
 0x254   :  { %v2019_v6 = vmul.f32 %v17280_v42, %v17280_v42  ;;  %v15542_v11 = vpop.eup %15541  ;;  %1163 = vadd.xlane.f32.xlu0 %v1162_v34  ;;  %v17310_v22 = vmul.f32 0.5, %v17184_v46  ;;  %v2065_v47 = vmul.f32 0.044715, %v2041_v26  ;;  %15551 = vtanh.f32 %v17235_v31 }
 0x255   :  { %v13593_v38 = vpop.f32.mrb[28].mxu1  ;;  %v2044_v14 = vmul.f32 %v2020_v21, %v17275_v35  ;;  %1166 = vadd.xlane.f32.xlu1 %v1165_v17  ;;  %v17316_v50 = vmul.f32 0.5, %v17203_v30  ;;  %v2090_v58 = vadd.f32 %v2066_v44, %v17256_v41  ;;  %v1085_v15 = vmul.f32 %v1061_v10, %v17244_v36 }
 0x256   :  { %v1900_v33 = vadd.f32 %v13593_v38, %v17238_v12  ;;  %v1894_v20 = vpop.f32.mrb[29].mxu1  ;;  %v2043_v40 = vmul.f32 %v2019_v6, %v17280_v42  ;;  %15553 = vtanh.f32 %v1020_v29  ;;  %v1062_v56 = vadd.f32 1.0, %v15542_v11 }
 0x257   :  { %v17302_v49 = vadd.f32 %v17238_v12, %v1894_v20  ;;  %v2068_v1 = vmul.f32 0.044715, %v2044_v14  ;;  %v1116_v31 = vmul.f32 %v17095_v63, %v1085_v15  ;;  %v17329_v57 = vmul.f32 0.5, %v17189_v3 }
 0x258   :  { %v2022_v19 = vmul.f32 %v1900_v33, %v1900_v33  ;;  %v2067_v23 = vmul.f32 0.044715, %v2043_v40  ;;  %v15544_v32 = vpop.eup %15543  ;;  %v17332_v36 = vmul.f32 0.5, %v17256_v41  ;;  %v2089_v18 = vadd.f32 %v2065_v47, %v17260_v27 }
 0x259   :  { %v2021_v24 = vmul.f32 %v17302_v49, %v17302_v49  ;;  %v2114_v54 = vmul.f32 0.7978846, %v2090_v58  ;;  %v17338_v59 = vmul.f32 0.5, %v17260_v27  ;;  %v17341_v45 = vmul.f32 0.5, %v17275_v35 }
 0x25a   :  { %v2046_v0 = vmul.f32 %v2022_v19, %v1900_v33  ;;  %v13596_v16 = vpop.f32.mrb[30].mxu1  ;;  %v15546_v48 = vpop.eup %15545  ;;  %v1171_v3 = vsel %vm1125_vm3, %v1116_v31, 0.0  ;;  %v2092_v39 = vadd.f32 %v2068_v1, %v17275_v35  ;;  %v2091_v41 = vadd.f32 %v2067_v23, %v17280_v42 }
 0x25b   :  { %v2045_v46 = vmul.f32 %v2021_v24, %v17302_v49  ;;  %v17322_v8 = vadd.f32 %v13596_v16, %v17238_v12  ;;  %v1904_v25 = vpop.f32.mrb[31].mxu1  ;;  %1172 = vadd.xlane.f32.xlu0 %v1171_v3  ;;  %v1086_v21 = vmul.f32 %v1062_v56, %v17249_v53  ;;  %v1060_v34 = vadd.f32 1.0, %v15544_v32 }
 0x25c   :  { %v17326_v30 = vadd.f32 %v17238_v12, %v1904_v25  ;;  %v2070_v4 = vmul.f32 0.044715, %v2046_v0  ;;  %v15548_v7 = vpop.eup %15547  ;;  %v2113_v26 = vmul.f32 0.7978846, %v2089_v18  ;;  %v17354_v35 = vmul.f32 0.5, %v17280_v42 }
 0x25d   :  { %v2024_v55 = vmul.f32 %v17322_v8, %v17322_v8  ;;  %v2069_v5 = vmul.f32 0.044715, %v2045_v46  ;;  %v15550_v44 = vpop.eup %15549  ;;  %v17359_v20 = vmul.f32 0.5, %v1900_v33  ;;  %v1117_v53 = vmul.f32 %v17095_v63, %v1086_v21 }
 0x25e   :  { %v2023_v51 = vmul.f32 %v17326_v30, %v17326_v30  ;;  %v2094_v6 = vadd.f32 %v2070_v4, %v1900_v33  ;;  %v15552_v14 = vpop.eup %15551  ;;  %15555 = vtanh.f32 %v2114_v54  ;;  %v2116_v40 = vmul.f32 0.7978846, %v2092_v39 }
 0x25f   :  { %v13599_v2 = vpop.f32.mrb[32].mxu1  ;;  %v2048_v62 = vmul.f32 %v2024_v55, %v17322_v8  ;;  %v17366_v42 = vmul.f32 0.5, %v17302_v49  ;;  %v1084_v17 = vmul.f32 %v1060_v34, %v17253_v13  ;;  %v2115_v33 = vmul.f32 0.7978846, %v2091_v41 }
 0x260   :  { %v17350_v27 = vadd.f32 %v13599_v2, %v17238_v12  ;;  %v1914_v29 = vpop.f32.mrb[33].mxu1  ;;  %v2047_v10 = vmul.f32 %v2023_v51, %v17326_v30  ;;  %v17369_v47 = vpop.eup %15553  ;;  %v2093_v24 = vadd.f32 %v2069_v5, %v17302_v49  ;;  %v1174_v0 = vsel %vm1125_vm3, %v1117_v53, 0.0 }
 0x261   :  { %v17357_v38 = vadd.f32 %v17238_v12, %v1914_v29  ;;  %v2072_v58 = vmul.f32 0.044715, %v2048_v62  ;;  %15557 = vtanh.f32 %v2113_v26  ;;  %v2118_v15 = vmul.f32 0.7978846, %v2094_v6  ;;  %1175 = vadd.xlane.f32.xlu1 %v1174_v0 }
 0x262   :  { %v2026_v11 = vmul.f32 %v17350_v27, %v17350_v27  ;;  %v1115_v1 = vmul.f32 %v17095_v63, %v1084_v17  ;;  %v2071_v46 = vmul.f32 0.044715, %v2047_v10  ;;  %v1063_v31 = vadd.f32 1.0, %v15546_v48 }
 0x263   :  { %v13602_v19 = vpop.f32.mrb[34].mxu1  ;;  %v2025_v23 = vmul.f32 %v17357_v38, %v17357_v38  ;;  %15559 = vtanh.f32 %v2116_v40  ;;  %v17381_v49 = vmul.f32 0.5, %v17322_v8  ;;  %v17384_v56 = vmul.f32 0.5, %v17326_v30 }
 0x264   :  { %v1924_v16 = vpop.f32.mrb[35].mxu1  ;;  %v2050_v13 = vmul.f32 %v2026_v11, %v17350_v27  ;;  %v17378_v25 = vadd.f32 %v13602_v19, %v17238_v12  ;;  %v1168_v32 = vsel %vm1125_vm3, %v1115_v1, 0.0  ;;  %15561 = vtanh.f32 %v2115_v33 }
 0x265   :  { %v2117_v4 = vmul.f32 0.7978846, %v2093_v24  ;;  %v2096_v55 = vadd.f32 %v2072_v58, %v17322_v8  ;;  %1169 = vadd.xlane.f32.xlu0 %v1168_v32  ;;  %v2049_v48 = vmul.f32 %v2025_v23, %v17357_v38  ;;  %v1087_v39 = vmul.f32 %v1063_v31, %v17267_v37 }
 0x266   :  { %v2028_v54 = vmul.f32 %v17378_v25, %v17378_v25  ;;  %v1064_v41 = vadd.f32 1.0, %v15548_v7  ;;  %v17393_v5 = vadd.f32 %v17238_v12, %v1924_v16  ;;  %15563 = vtanh.f32 %v2118_v15 }
 0x267   :  { %v13605_v18 = vpop.f32.mrb[36].mxu1  ;;  %v2095_v51 = vadd.f32 %v2071_v46, %v17326_v30  ;;  %v2074_v2 = vmul.f32 0.044715, %v2050_v13  ;;  %v1118_v8 = vmul.f32 %v17095_v63, %v1087_v39  ;;  %15565 = vtanh.f32 %v2117_v4 }
 0x268   :  { %v1934_v3 = vpop.f32.mrb[37].mxu1  ;;  %v2052_v62 = vmul.f32 %v2028_v54, %v17378_v25  ;;  %v1088_v21 = vmul.f32 %v1064_v41, %v17295_v28  ;;  %v2027_v34 = vmul.f32 %v17393_v5, %v17393_v5  ;;  %v17402_v29 = vadd.f32 %v13605_v18, %v17238_v12  ;;  %v15556_v10 = vpop.eup %15555 }
 0x269   :  { %v2120_v7 = vmul.f32 0.7978846, %v2096_v55  ;;  %v17405_v26 = vmul.f32 0.5, %v17350_v27  ;;  %v17408_v30 = vmul.f32 0.5, %v17357_v38  ;;  %v2073_v11 = vmul.f32 0.044715, %v2049_v48 }
 0x26a   :  { %v1177_v28 = vsel %vm1125_vm3, %v1118_v8, 0.0  ;;  %v1119_v53 = vmul.f32 %v17095_v63, %v1088_v21  ;;  %v2051_v40 = vmul.f32 %v2027_v34, %v17393_v5  ;;  %v2119_v17 = vmul.f32 0.7978846, %v2095_v51 }
 0x26b   :  { %v13608_v37 = vpop.f32.mrb[38].mxu1  ;;  %v2098_v19 = vadd.f32 %v2074_v2, %v17350_v27  ;;  %1178 = vadd.xlane.f32.xlu1 %v1177_v28  ;;  %v1065_v33 = vadd.f32 1.0, %v15550_v44  ;;  %v1067_v24 = vadd.f32 1.0, %v15552_v14  ;;  %v15558_v58 = vpop.eup %15557  ;;  %v2076_v0 = vmul.f32 0.044715, %v2052_v62 }
 0x26c   :  { %v1944_v6 = vpop.f32.mrb[39].mxu1  ;;  %v1180_v16 = vsel %vm1125_vm3, %v1119_v53, 0.0  ;;  %v2030_v15 = vmul.f32 %v17402_v29, %v17402_v29  ;;  %v17418_v1 = vadd.f32 %v17238_v12, %v1934_v3  ;;  %v2162_v46 = vadd.f32 1.0, %v15556_v10 }
 0x26d   :  { %1181 = vadd.xlane.f32.xlu0 %v1180_v16  ;;  %v1089_v13 = vmul.f32 %v1065_v33, %v17306_v52  ;;  %v1091_v27 = vmul.f32 %v1067_v24, %v17310_v22  ;;  %v17423_v44 = vadd.f32 %v13608_v37, %v17238_v12  ;;  %v17425_v31 = vpop.eup %15559  ;;  %15567 = vtanh.f32 %v2120_v7 }
 0x26e   :  { %v2097_v32 = vadd.f32 %v2073_v11, %v17357_v38  ;;  %v2075_v18 = vmul.f32 0.044715, %v2051_v40  ;;  %v2029_v4 = vmul.f32 %v17418_v1, %v17418_v1  ;;  %v15562_v55 = vpop.eup %15561  ;;  %15569 = vtanh.f32 %v2119_v17 }
 0x26f   :  { %v13611_v23 = vpop.f32.mrb[40].mxu1  ;;  %v2122_v54 = vmul.f32 0.7978846, %v2098_v19  ;;  %v1120_v52 = vmul.f32 %v17095_v63, %v1089_v13  ;;  %v1122_v22 = vmul.f32 %v17095_v63, %v1091_v27  ;;  %v2100_v3 = vadd.f32 %v2076_v0, %v17378_v25 }
 0x270   :  { %v1954_v14 = vpop.f32.mrb[41].mxu1  ;;  %v2054_v48 = vmul.f32 %v2030_v15, %v17402_v29  ;;  %v2053_v39 = vmul.f32 %v2029_v4, %v17418_v1  ;;  %v2032_v38 = vmul.f32 %v17423_v44, %v17423_v44  ;;  %v17437_v51 = vpop.eup %15563  ;;  %v1068_v8 = vadd.f32 1.0, %v17369_v47 }
 0x271   :  { %v1183_v2 = vsel %vm1125_vm3, %v1120_v52, 0.0  ;;  %v1189_v62 = vsel %vm1125_vm3, %v1122_v22, 0.0  ;;  %15571 = vtanh.f32 %v17241_v61  ;;  %v2121_v34 = vmul.f32 0.7978846, %v2097_v32  ;;  %v17445_v11 = vpop.eup %15565 }
 0x272   :  { %v2099_v37 = vadd.f32 %v2075_v18, %v17393_v5  ;;  %1184 = vadd.xlane.f32.xlu1 %v1183_v2  ;;  %1190 = vadd.xlane.f32.xlu0 %v1189_v62  ;;  %v2077_v7 = vmul.f32 0.044715, %v2053_v39  ;;  %v2056_v10 = vmul.f32 %v2032_v38, %v17423_v44  ;;  %v1092_v28 = vmul.f32 %v1068_v8, %v17316_v50 }
 0x273   :  { %v13614_v41 = vpop.f32.mrb[42].mxu1  ;;  %v17449_v53 = vadd.f32 %v17238_v12, %v1944_v6  ;;  %v2161_v40 = vadd.f32 1.0, %v15558_v58  ;;  %v17452_v47 = vadd.f32 %v13611_v23, %v17238_v12  ;;  %v2186_v61 = vmul.f32 %v2162_v46, %v17332_v36  ;;  %v3007_v23 = vld [vmem:[%s21304_s10] sm:$0x1f] }
 0x274   :  { %v1964_v21 = vpop.f32.mrb[43].mxu1  ;;  %15573 = vtanh.f32 %v2122_v54  ;;  %v2124_v17 = vmul.f32 0.7978846, %v2100_v3  ;;  %v2078_v19 = vmul.f32 0.044715, %v2054_v48  ;;  %v2101_v24 = vadd.f32 %v2077_v7, %v17418_v1 }
 0x275   :  { %v1123_v0 = vmul.f32 %v17095_v63, %v1092_v28  ;;  %v2031_v50 = vmul.f32 %v17449_v53, %v17449_v53  ;;  %v2185_v6 = vmul.f32 %v2161_v40, %v17338_v59  ;;  %15575 = vtanh.f32 %v2121_v34 }
 0x276   :  { %v2123_v16 = vmul.f32 0.7978846, %v2099_v37  ;;  %v2080_v15 = vmul.f32 0.044715, %v2056_v10  ;;  %v2034_v36 = vmul.f32 %v17452_v47, %v17452_v47  ;;  %15577 = vtanh.f32 %v17285_v9 }
 0x277   :  { %v17455_v33 = vpop.f32.mrb[44].mxu1  ;;  %v1192_v46 = vsel %vm1125_vm3, %v1123_v0, 0.0  ;;  %v2055_v13 = vmul.f32 %v2031_v50, %v17449_v53  ;;  %13637 = vmatprep.mubr.msk.f32.mxu0 %vm620_vm2, %v2185_v6  ;;  %v17474_v59 = vadd.f32 %v17238_v12, %v1954_v14  ;;  %v17476_v27 = vpop.eup %15567  ;;  %15579 = vtanh.f32 %v2124_v17 }
 0x278   :  { %v17462_v58 = vpop.f32.mrb[45].mxu1  ;;  %v2102_v32 = vadd.f32 %v2078_v19, %v17402_v29  ;;  %1193 = vadd.xlane.f32.xlu1 %v1192_v46  ;;  %13638 = vmatmul.mubr.msk.f32.vlgmr.msra.gmra.mrb[48].mxu0 %vm620_vm2, %v2186_v61  ;;  %v2058_v18 = vmul.f32 %v2034_v36, %v17452_v47  ;;  %v2163_v4 = vadd.f32 1.0, %v15562_v55  ;;  %v17483_v52 = vpop.eup %15569  ;;  %v2125_v22 = vmul.f32 0.7978846, %v2101_v24 }
 0x279   :  { %v2079_v9 = vmul.f32 0.044715, %v2055_v13  ;;  %v2033_v14 = vmul.f32 %v17474_v59, %v17474_v59  ;;  %13674 = vmatpush3.msk.msra.mxu0 %vm3019_vm4, %v3007_v23  ;;  %v2164_v3 = vadd.f32 1.0, %v17425_v31  ;;  %15581 = vtanh.f32 %v2123_v16 }
 0x27a   :  { %v2104_v39 = vadd.f32 %v2080_v15, %v17423_v44  ;;  %v2187_v55 = vmul.f32 %v2163_v4, %v17354_v35  ;;  %v17494_v38 = vadd.f32 %v13614_v41, %v17238_v12  ;;  %v17500_v37 = vadd.f32 %v17238_v12, %v1964_v21 }
 0x27b   :  { %v17481_v54 = vpop.f32.mrb[46].mxu1  ;;  %v15572_v2 = vpop.eup %15571  ;;  %v2103_v62 = vadd.f32 %v2079_v9, %v17449_v53  ;;  %v2057_v8 = vmul.f32 %v2033_v14, %v17474_v59  ;;  %v2188_v34 = vmul.f32 %v2164_v3, %v17341_v45  ;;  %v2126_v31 = vmul.f32 0.7978846, %v2102_v32 }
 0x27c   :  { %v17489_v48 = vpop.f32.mrb[47].mxu1  ;;  %v1066_v7 = vadd.f32 1.0, %v15572_v2  ;;  %v2082_v10 = vmul.f32 0.044715, %v2058_v18  ;;  %13640 = vmatprep.mubr.msk.f32.mxu0 %vm620_vm2, %v2187_v55  ;;  %v2036_v35 = vmul.f32 %v17494_v38, %v17494_v38  ;;  %15583 = vtanh.f32 %v2125_v22 }
 0x27d   :  { %v901_v41 = vmul.f32 0.5, %v17199_v60  ;;  %v2081_v28 = vmul.f32 0.044715, %v2057_v8  ;;  %13641 = vmatmul.mubr.msk.f32.gmra.mrb[50].mxu0 %vm620_vm2, %v2188_v34  ;;  %v2035_v45 = vmul.f32 %v17500_v37, %v17500_v37  ;;  %v2127_v61 = vmul.f32 0.7978846, %v2103_v62 }
 0x27e   :  { %v15574_v40 = vpop.eup %15573  ;;  %v1090_v21 = vmul.f32 %v1066_v7, %v17329_v57  ;;  %v2060_v17 = vmul.f32 %v2036_v35, %v17494_v38  ;;  %v2165_v19 = vadd.f32 1.0, %v17445_v11  ;;  %v2128_v24 = vmul.f32 0.7978846, %v2104_v39 }
 0x27f   :  { %v2105_v0 = vadd.f32 %v2081_v28, %v17474_v59  ;;  %v2059_v50 = vmul.f32 %v2035_v45, %v17500_v37  ;;  %v2166_v60 = vadd.f32 1.0, %v17437_v51  ;;  %v15576_v6 = vpop.eup %15575  ;;  %v2106_v15 = vadd.f32 %v2082_v10, %v17452_v47 }
 0x280   :  { %v1121_v16 = vmul.f32 %v17095_v63, %v1090_v21  ;;  %v2084_v36 = vmul.f32 0.044715, %v2060_v17  ;;  %v2189_v57 = vmul.f32 %v2165_v19, %v17366_v42  ;;  %v15578_v23 = vpop.eup %15577  ;;  %v17521_v32 = vadd.f32 %v17455_v33, %v17238_v12 }
 0x281   :  { %v2129_v46 = vmul.f32 0.7978846, %v2105_v0  ;;  %v2083_v13 = vmul.f32 0.044715, %v2059_v50  ;;  %v2190_v11 = vmul.f32 %v2166_v60, %v17359_v20  ;;  %v15580_v18 = vpop.eup %15579  ;;  %15585 = vtanh.f32 %v2127_v61 }
 0x282   :  { %v1186_v51 = vsel %vm1125_vm3, %v1121_v16, 0.0  ;;  %v1069_v4 = vadd.f32 1.0, %v15578_v23  ;;  %13643 = vmatprep.mubr.msk.f32.mxu0 %vm620_vm2, %v2189_v57  ;;  %v17527_v22 = vadd.f32 %v17238_v12, %v17462_v58  ;;  %15587 = vtanh.f32 %v2126_v31 }
 0x283   :  { %1187 = vadd.xlane.f32.xlu0 %v1186_v51  ;;  %v2108_v42 = vadd.f32 %v2084_v36, %v17494_v38  ;;  %v2107_v20 = vadd.f32 %v2083_v13, %v17500_v37  ;;  %13644 = vmatmul.mubr.msk.f32.gmra.mrb[52].mxu0 %vm620_vm2, %v2190_v11  ;;  %v2038_v33 = vmul.f32 %v17521_v32, %v17521_v32  ;;  %v15582_v9 = vpop.eup %15581  ;;  %v2003_v14 = vmul.f32 0.5, %v17393_v5 }
 0x284   :  { %v1093_v3 = vmul.f32 %v1069_v4, %v901_v41  ;;  %15589 = vtanh.f32 %v2129_v46  ;;  %v2037_v58 = vmul.f32 %v17527_v22, %v17527_v22  ;;  %v2167_v2 = vadd.f32 1.0, %v17483_v52 }
 0x285   :  { %v2131_v39 = vmul.f32 0.7978846, %v2107_v20  ;;  %v2062_v55 = vmul.f32 %v2038_v33, %v17521_v32  ;;  %v2168_v62 = vadd.f32 1.0, %v17476_v27  ;;  %15591 = vtanh.f32 %v2128_v24 }
 0x286   :  { %v1124_v8 = vmul.f32 %v17095_v63, %v1093_v3  ;;  %v2061_v34 = vmul.f32 %v2037_v58, %v17527_v22  ;;  %v17544_v5 = vadd.f32 %v17481_v54, %v17238_v12  ;;  %v15584_v31 = vpop.eup %15583  ;;  %v2130_v7 = vmul.f32 0.7978846, %v2106_v15 }
 0x287   :  { %v2132_v10 = vmul.f32 0.7978846, %v2108_v42  ;;  %v2086_v35 = vmul.f32 0.044715, %v2062_v55  ;;  %v2191_v41 = vmul.f32 %v2167_v2, %v17384_v56  ;;  %v2192_v27 = vmul.f32 %v2168_v62, %v17381_v49 }
 0x288   :  { %v1195_v28 = vsel %vm1125_vm3, %v1124_v8, 0.0  ;;  %v2085_v52 = vmul.f32 0.044715, %v2061_v34  ;;  %v2040_v63 = vmul.f32 %v17544_v5, %v17544_v5  ;;  %15593 = vtanh.f32 %v2131_v39 }
 0x289   :  { %1196 = vadd.xlane.f32.xlu1 %v1195_v28  ;;  %13646 = vmatprep.mubr.msk.f32.mxu0 %vm620_vm2, %v2191_v41  ;;  %v17554_v54 = vadd.f32 %v17238_v12, %v17489_v48  ;;  %v2169_v45 = vadd.f32 1.0, %v15576_v6  ;;  %v2170_v21 = vadd.f32 1.0, %v15574_v40  ;;  %v2110_v56 = vadd.f32 %v2086_v35, %v17521_v32 }
 0x28a   :  { %v2109_v61 = vadd.f32 %v2085_v52, %v17527_v22  ;;  %13647 = vmatmul.mubr.msk.f32.gmra.mrb[54].mxu0 %vm620_vm2, %v2192_v27  ;;  %v2064_v49 = vmul.f32 %v2040_v63, %v17544_v5  ;;  %v2171_v17 = vadd.f32 1.0, %v15582_v9  ;;  %15595 = vtanh.f32 %v2130_v7 }
 0x28b   :  { %v2039_v19 = vmul.f32 %v17554_v54, %v17554_v54  ;;  %v2193_v24 = vmul.f32 %v2169_v45, %v17408_v30  ;;  %v2172_v0 = vadd.f32 1.0, %v15580_v18  ;;  %v15586_v12 = vpop.eup %15585  ;;  %v2194_v40 = vmul.f32 %v2170_v21, %v17405_v26 }
 0x28c   :  { %v2133_v48 = vmul.f32 0.7978846, %v2109_v61  ;;  %v2088_v50 = vmul.f32 0.044715, %v2064_v49  ;;  %v2195_v60 = vmul.f32 %v2171_v17, %v2003_v14  ;;  %v15588_v6 = vpop.eup %15587  ;;  %v2005_v16 = vmul.f32 0.5, %v17418_v1 }
 0x28d   :  { %15597 = vtanh.f32 %v2132_v10  ;;  %v2063_v15 = vmul.f32 %v2039_v19, %v17554_v54  ;;  %13649 = vmatprep.mubr.msk.f32.mxu0 %vm620_vm2, %v2193_v24  ;;  %v2173_v36 = vadd.f32 1.0, %v15584_v31  ;;  %v2004_v23 = vmul.f32 0.5, %v17378_v25 }
 0x28e   :  { %v15590_v57 = vpop.eup %15589  ;;  %v2134_v30 = vmul.f32 0.7978846, %v2110_v56  ;;  %15599 = vtanh.f32 %v2133_v48  ;;  %13650 = vmatmul.mubr.msk.f32.gmra.mrb[56].mxu0 %vm620_vm2, %v2194_v40  ;;  %v2112_v46 = vadd.f32 %v2088_v50, %v17544_v5  ;;  %v2175_v1 = vadd.f32 1.0, %v15586_v12  ;;  %v2484_v48 = vld [vmem:[%s21302_s8 + $0x18] sm:$0xff]  ;;  %v2481_v50 = vld [vmem:[%s21302_s8] sm:$0xff] }
 0x28f   :  { %v2087_v26 = vmul.f32 0.044715, %v2063_v15  ;;  %13652 = vmatprep.mubr.msk.f32.mxu0 %vm620_vm2, %v2195_v60  ;;  %v2197_v13 = vmul.f32 %v2173_v36, %v2005_v16  ;;  %v15592_v11 = vpop.eup %15591  ;;  %v2196_v18 = vmul.f32 %v2172_v0, %v2004_v23  ;;  %v2174_v51 = vadd.f32 1.0, %v15588_v6  ;;  %v2483_v60 = vld [vmem:[%s21302_s8 + $0x10] sm:$0xff]  ;;  %v2486_v6 = vld [vmem:[%s21302_s8 + $0x28] sm:$0xff]  ;;  %v2488_v16 = vld [vmem:[%s21302_s8 + $0x38] sm:$0xff] }
 0x290   :  { %v2007_v4 = vmul.f32 0.5, %v17449_v53  ;;  %v2006_v25 = vmul.f32 0.5, %v17402_v29  ;;  %15601 = vtanh.f32 %v2134_v30  ;;  %v2177_v20 = vadd.f32 1.0, %v15590_v57  ;;  %v2485_v23 = vld [vmem:[%s21302_s8 + $0x20] sm:$0xff]  ;;  %v2487_v30 = vld [vmem:[%s21302_s8 + $0x30] sm:$0xff] }
 0x291   :  { %v2111_v42 = vadd.f32 %v2087_v26, %v17554_v54  ;;  %v2136_v9 = vmul.f32 0.7978846, %v2112_v46  ;;  %v2176_v39 = vadd.f32 1.0, %v15592_v11  ;;  %v16176_v55 = vmov 0   ;;  %v2490_v46 = vld [vmem:[%s21302_s8 + $0x48] sm:$0xff] }
 0x292   :  { %13653 = vmatmul.mubr.msk.f32.gmra.mrb[58].mxu0 %vm620_vm2, %v2196_v18  ;;  %v15594_v33 = vpop.eup %15593  ;;  %v2199_v3 = vmul.f32 %v2175_v1, %v2007_v4  ;;  %v2198_v58 = vmul.f32 %v2174_v51, %v2006_v25  ;;  %15133 = vset.pattern.permute.xlu0 %v16176_v55  ;;  %v2009_v2 = vmul.f32 0.5, %v17474_v59  ;;  %v2008_v29 = vmul.f32 0.5, %v17423_v44  ;;  %v2489_v51 = vld [vmem:[%s21302_s8 + $0x40] sm:$0xff]  ;;  %v2491_v4 = vld [vmem:[%s21302_s8 + $0x50] sm:$0xff] }
 0x293   :  { %v2135_v14 = vmul.f32 0.7978846, %v2111_v42  ;;  %13655 = vmatprep.mubr.msk.f32.mxu0 %vm620_vm2, %v2197_v13  ;;  %15134 = vset.pattern.permute.xlu1 %v16176_v55  ;;  %v2179_v34 = vadd.f32 1.0, %v15594_v33  ;;  %v2011_v35 = vmul.f32 0.5, %v17500_v37  ;;  %v2010_v41 = vmul.f32 0.5, %v17452_v47  ;;  %v2492_v13 = vld [vmem:[%s21302_s8 + $0x58] sm:$0xff] }
 0x294   :  { %v15596_v53 = vpop.eup %15595  ;;  %v2201_v8 = vmul.f32 %v2177_v20, %v2009_v2  ;;  %v2200_v7 = vmul.f32 %v2176_v39, %v2008_v29  ;;  %v2013_v63 = vmul.f32 0.5, %v17527_v22  ;;  %v2012_v45 = vmul.f32 0.5, %v17494_v38 }
 0x295   :  { %15603 = vtanh.f32 %v2135_v14  ;;  %v2178_v10 = vadd.f32 1.0, %v15596_v53  ;;  %v2203_v44 = vmul.f32 %v2179_v34, %v2011_v35  ;;  %v2015_v17 = vmul.f32 0.5, %v17554_v54  ;;  %v2482_v54 = vld [vmem:[%s21302_s8 + $0x8] sm:$0xff] }
 0x296   :  { %13656 = vmatmul.mubr.msk.f32.gmra.mrb[60].mxu0 %vm620_vm2, %v2198_v58  ;;  %15605 = vtanh.f32 %v2136_v9  ;;  %v2014_v19 = vmul.f32 0.5, %v17521_v32  ;;  %v2016_v0 = vmul.f32 0.5, %v17544_v5  ;;  %v3006_v32 = vld [vmem:[%s21466_s17] sm:$0xff]  ;;  %v14709_v40 = vpack.c.bf16 %v2484_v48, %v2482_v54  ;;  %s21794_s17 = sld [smem:[#allocation105_spill]] }
 0x297   :  { %v15598_v62 = vpop.eup %15597  ;;  %13658 = vmatprep.mubr.msk.f32.mxu0 %vm620_vm2, %v2199_v3  ;;  %v2202_v52 = vmul.f32 %v2178_v10, %v2010_v41  ;;  %v17603_v5 = vld [vmem:[#allocation2 + $0x3] ss:$0 sm:$0xff]  ;;  %v14711_v36 = vpack.c.bf16 %v2483_v60, %v2481_v50  ;;  %v14713_v57 = vpack.c.bf16 %v2488_v16, %v2486_v6  ;;  %v14715_v1 = vpack.c.bf16 %v2487_v30, %v2485_v23 }
 0x298   :  { %v15600_v31 = vpop.eup %15599  ;;  %v2180_v27 = vadd.f32 1.0, %v15598_v62  ;;  %14710 = vmatprep.subr.bf16.mxu1 %v14709_v40  ;;  %v14717_v18 = vpack.c.bf16 %v2492_v13, %v2490_v46  ;;  %v14719_v20 = vpack.c.bf16 %v2491_v4, %v2489_v51  ;;  %vm11303_vm4 = vcmask 1046534  }
 0x299   :  { %v2181_v59 = vadd.f32 1.0, %v15600_v31  ;;  %14712 = vmatpush1.bf16.msra.mxu1 %v14711_v36 }
 0x29a   :  { %13659 = vmatmul.mubr.msk.f32.gmra.mrb[62].mxu0 %vm620_vm2, %v2200_v7  ;;  %v15602_v28 = vpop.eup %15601  ;;  %v2204_v47 = vmul.f32 %v2180_v27, %v2012_v45  ;;  %14714 = vmatprep.subr.bf16.mxu1 %v14713_v57  ;;  %v2493_v27 = vld [vmem:[%s21302_s8 + $0x60] sm:$0xff] }
 0x29b   :  { %13661 = vmatprep.mubr.msk.f32.mxu0 %vm620_vm2, %v2201_v8  ;;  %v2205_v37 = vmul.f32 %v2181_v59, %v2013_v63  ;;  %v2182_v56 = vadd.f32 1.0, %v15602_v28  ;;  %v2494_v59 = vld [vmem:[%s21302_s8 + $0x68] sm:$0xff]  ;;  %v2496_v28 = vld [vmem:[%s21302_s8 + $0x78] sm:$0xff]  ;;  %v2495_v63 = vld [vmem:[%s21302_s8 + $0x70] sm:$0xff] }
 0x29d   :  { %v2206_v38 = vmul.f32 %v2182_v56, %v2014_v19  ;;  %14716 = vmatpush1.bf16.msra.mxu1 %v14715_v1 }
 0x29e   :  { %13662 = vmatmul.mubr.msk.f32.gmra.mrb[64].mxu0 %vm620_vm2, %v2202_v52  ;;  %14718 = vmatprep.subr.bf16.mxu1 %v14717_v18  ;;  %v14721_v52 = vpack.c.bf16 %v2496_v28, %v2494_v59 }
 0x29f   :  { %v15604_v21 = vpop.eup %15603  ;;  %13664 = vmatprep.mubr.msk.f32.mxu0 %vm620_vm2, %v2203_v44 }
 0x2a0   :  { %v2183_v61 = vadd.f32 1.0, %v15604_v21  ;;  %v15606_v49 = vpop.eup %15605  ;;  %v14723_v21 = vpack.c.bf16 %v2495_v63, %v2493_v27 }
 0x2a1   :  { %v2184_v24 = vadd.f32 1.0, %v15606_v49  ;;  %14720 = vmatpush1.bf16.msra.mxu1 %v14719_v20 }
 0x2a2   :  { %13665 = vmatmul.mubr.msk.f32.gmra.mrb[66].mxu0 %vm620_vm2, %v2204_v47  ;;  %v2207_v22 = vmul.f32 %v2183_v61, %v2015_v17  ;;  %14722 = vmatprep.subr.bf16.mxu1 %v14721_v52 }
 0x2a3   :  { %13667 = vmatprep.mubr.msk.f32.mxu0 %vm620_vm2, %v2205_v37  ;;  %v2208_v12 = vmul.f32 %v2184_v24, %v2016_v0 }
 0x2a5   :  { %14724 = vmatpush1.bf16.msra.mxu1 %v14723_v21 }
 0x2a6   :  { %13668 = vmatmul.mubr.msk.f32.gmra.mrb[68].mxu0 %vm620_vm2, %v2206_v38 }
 0x2a7   :  { %13670 = vmatprep.mubr.msk.f32.mxu0 %vm620_vm2, %v2207_v22 }
 0x2aa   :  { %13671 = vmatmul.mubr.msk.f32.gmra.mrb[70].mxu0 %vm620_vm2, %v2208_v12 }
 0x2ab   :  { %13675 = vmatprep.mubr.msk.f32.mxu0 %vm16177_vm5, %v21318_v43 }
 0x2ae   :  { %13676 = vmatmul.mubr.msk.f32.vlgmr.msra.gmra.mrb[72].mxu0 %vm3015_vm6, %v3006_v32  ;;  %vm11306_vm6 = vcmask 1047559  }
 0x2af   :  { %13710 = vmatprep.mubr.msk.f32.mxu0 %vm16177_vm5, %v21318_v43 }
 0x2b6   :  { %v1131_v15 = vpop.xlane.xlu0 %1130 }
 0x2b7   :  { %v1206_v26 = vadd.f32 %v17603_v5, %v1131_v15 }
 0x2b9   :  { %v12422_v11 = vmul.f32 -1.442695, %v1206_v26 }
 0x2ba   :  { %v1128_v42 = vpop.xlane.xlu0 %1127 }
 0x2bb   :  { %15607 = vpow2.f32 %v12422_v11  ;;  %v1205_v25 = vadd.f32 %v17603_v5, %v1128_v42 }
 0x2bd   :  { %v12421_v33 = vmul.f32 -1.442695, %v1205_v25 }
 0x2bf   :  { %v1134_v9 = vpop.xlane.xlu1 %1133  ;;  %15609 = vpow2.f32 %v12421_v33 }
 0x2c0   :  { %v1207_v14 = vadd.f32 %v17603_v5, %v1134_v9 }
 0x2c2   :  { %v12423_v3 = vmul.f32 -1.442695, %v1207_v14 }
 0x2c3   :  { %v1137_v58 = vpop.xlane.xlu1 %1136 }
 0x2c4   :  { %v1208_v39 = vadd.f32 %v17603_v5, %v1137_v58  ;;  %15611 = vpow2.f32 %v12423_v3 }
 0x2c5   :  { %v15608_v55 = vpop.eup %15607  ;;  %v1140_v29 = vpop.xlane.xlu0 %1139 }
 0x2c6   :  { %v12424_v53 = vmul.f32 -1.442695, %v1208_v39  ;;  %v1302_v2 = vadd.f32 1.0, %v15608_v55  ;;  %v1209_v62 = vadd.f32 %v17603_v5, %v1140_v29 }
 0x2c7   :  { %v1143_v8 = vpop.xlane.xlu1 %1142 }
 0x2c8   :  { %15613 = vpow2.f32 %v12424_v53  ;;  %v1210_v34 = vadd.f32 %v17603_v5, %v1143_v8  ;;  %v12425_v7 = vmul.f32 -1.442695, %v1209_v62 }
 0x2c9   :  { %15615 = vrcp.f32 %v1302_v2  ;;  %v15610_v31 = vpop.eup %15609 }
 0x2ca   :  { %v1301_v10 = vadd.f32 1.0, %v15610_v31  ;;  %v12426_v35 = vmul.f32 -1.442695, %v1210_v34  ;;  %15617 = vpow2.f32 %v12425_v7 }
 0x2cb   :  { %v1149_v41 = vpop.xlane.xlu1 %1148 }
 0x2cc   :  { %15619 = vrcp.f32 %v1301_v10  ;;  %v1212_v44 = vadd.f32 %v17603_v5, %v1149_v41 }
 0x2cd   :  { %15621 = vpow2.f32 %v12426_v35 }
 0x2ce   :  { %v12428_v45 = vmul.f32 -1.442695, %v1212_v44  ;;  %v15612_v37 = vpop.eup %15611 }
 0x2cf   :  { %v1303_v49 = vadd.f32 1.0, %v15612_v37 }
 0x2d0   :  { %15623 = vpow2.f32 %v12428_v45 }
 0x2d2   :  { %v15614_v47 = vpop.eup %15613 }
 0x2d3   :  { %v17660_v56 = vpop.eup %15615  ;;  %v1304_v61 = vadd.f32 1.0, %v15614_v47 }
 0x2d4   :  { %21467 = vst [vmem:[#allocation9_spill] sm:$0xff] %v17660_v56  ;;  %2785 = vperm.xlu0 %15133, %v17660_v56   ;;  %v15618_v17 = vpop.eup %15617 }
 0x2d5   :  { %15625 = vrcp.f32 %v1304_v61  ;;  %v1305_v22 = vadd.f32 1.0, %v15618_v17  ;;  %v1146_v38 = vpop.xlane.xlu0 %1145 }
 0x2d6   :  { %v17663_v19 = vpop.eup %15619  ;;  %15627 = vrcp.f32 %v1303_v49  ;;  %v1211_v0 = vadd.f32 %v17603_v5, %v1146_v38 }
 0x2d7   :  { %21468 = vst [vmem:[#allocation10_spill] sm:$0xff] %v17663_v19  ;;  %v15622_v24 = vpop.eup %15621  ;;  %2780 = vperm.xlu1 %15134, %v17663_v19   ;;  %15629 = vrcp.f32 %v1305_v22 }
 0x2d8   :  { %v1306_v32 = vadd.f32 1.0, %v15622_v24  ;;  %v12427_v54 = vmul.f32 -1.442695, %v1211_v0 }
 0x2d9   :  { %v1155_v48 = vpop.xlane.xlu0 %1154 }
 0x2da   :  { %v15624_v50 = vpop.eup %15623  ;;  %15631 = vpow2.f32 %v12427_v54  ;;  %v1214_v40 = vadd.f32 %v17603_v5, %v1155_v48  ;;  %v1158_v60 = vpop.xlane.xlu1 %1157 }
 0x2db   :  { %15633 = vrcp.f32 %v1306_v32  ;;  %v1215_v6 = vadd.f32 %v17603_v5, %v1158_v60  ;;  %v1308_v36 = vadd.f32 1.0, %v15624_v50 }
 0x2dc   :  { %v12430_v16 = vmul.f32 -1.442695, %v1214_v40 }
 0x2dd   :  { %v12431_v57 = vmul.f32 -1.442695, %v1215_v6  ;;  %v1152_v23 = vpop.xlane.xlu0 %1151 }
 0x2de   :  { %15635 = vpow2.f32 %v12430_v16  ;;  %v1213_v30 = vadd.f32 %v17603_v5, %v1152_v23  ;;  %v1161_v46 = vpop.xlane.xlu1 %1160 }
 0x2df   :  { %v17671_v15 = vpop.eup %15625  ;;  %15637 = vpow2.f32 %v12431_v57  ;;  %v1216_v26 = vadd.f32 %v17603_v5, %v1161_v46  ;;  %v21316_v46 = vmov 0.0|0.0  }
 0x2e0   :  { %21469 = vst [vmem:[#allocation11_spill] sm:$0xff] %v17671_v15  ;;  %2795 = vperm.xlu1 %15134, %v17671_v15   ;;  %v17676_v13 = vpop.eup %15627  ;;  %v12429_v1 = vmul.f32 -1.442695, %v1213_v30  ;;  %15639 = vrcp.f32 %v1308_v36  ;;  %14725 = vmatprep.subr.bf16.mxu0 %v21316_v46 }
 0x2e1   :  { %21470 = vst [vmem:[#allocation12_spill] sm:$0xff] %v17676_v13  ;;  %v17678_v11 = vpop.eup %15629  ;;  %v12432_v18 = vmul.f32 -1.442695, %v1216_v26  ;;  %v1164_v51 = vpop.xlane.xlu0 %1163  ;;  %v3102_v26 = vld [vmem:[%s21305_s11] sm:$0xff]  ;;  %14761 = vmatprep.subr.bf16.mxu1 %v21316_v46 }
 0x2e2   :  { %21471 = vst [vmem:[#allocation13_spill] sm:$0xff] %v17678_v11  ;;  %15641 = vpow2.f32 %v12429_v1  ;;  %v1217_v4 = vadd.f32 %v17603_v5, %v1164_v51  ;;  %v1167_v42 = vpop.xlane.xlu1 %1166  ;;  %v3103_v1 = vld [vmem:[%s21305_s11 + $0x8] sm:$0xff] }
 0x2e3   :  { %15643 = vpow2.f32 %v12432_v18  ;;  %v1218_v20 = vadd.f32 %v17603_v5, %v1167_v42  ;;  %v14726_v51 = vpack.c.bf16 %v3103_v1, %v3102_v26  ;;  %v3114_v1 = vld [vmem:[%s21305_s11 + $0x60] sm:$0xff] }
 0x2e4   :  { %2790 = vperm.xlu1 %15134, %v17676_v13   ;;  %v15632_v33 = vpop.eup %15631  ;;  %v12433_v9 = vmul.f32 -1.442695, %v1217_v4 }
 0x2e5   :  { %v17685_v14 = vpop.eup %15633  ;;  %v1307_v3 = vadd.f32 1.0, %v15632_v33  ;;  %v12434_v58 = vmul.f32 -1.442695, %v1218_v20  ;;  %14727 = vmatpush3.bf16.msra.mxu0 %v14726_v51 }
 0x2e6   :  { %21472 = vst [vmem:[#allocation14_spill] sm:$0xff] %v17685_v14  ;;  %15645 = vpow2.f32 %v12433_v9  ;;  %14728 = vmatprep.subr.bf16.mxu0 %v21316_v46 }
 0x2e7   :  { %15647 = vrcp.f32 %v1307_v3 }
 0x2e8   :  { %2805 = vperm.xlu1 %15134, %v17685_v14   ;;  %v15636_v39 = vpop.eup %15635  ;;  %15649 = vpow2.f32 %v12434_v58  ;;  %v1173_v2 = vpop.xlane.xlu0 %1172 }
 0x2e9   :  { %v15638_v55 = vpop.eup %15637  ;;  %v1310_v53 = vadd.f32 1.0, %v15636_v39  ;;  %v1220_v62 = vadd.f32 %v17603_v5, %v1173_v2 }
 0x2ea   :  { %v1311_v29 = vadd.f32 1.0, %v15638_v55  ;;  %v17690_v8 = vpop.eup %15639 }
 0x2eb   :  { %21473 = vst [vmem:[#allocation15_spill] sm:$0xff] %v17690_v8  ;;  %15651 = vrcp.f32 %v1310_v53  ;;  %v12436_v31 = vmul.f32 -1.442695, %v1220_v62 }
 0x2ec   :  { %2800 = vperm.xlu1 %15134, %v17678_v11   ;;  %v15642_v34 = vpop.eup %15641  ;;  %15653 = vrcp.f32 %v1311_v29 }
 0x2ed   :  { %v15644_v7 = vpop.eup %15643  ;;  %v1309_v10 = vadd.f32 1.0, %v15642_v34  ;;  %15655 = vpow2.f32 %v12436_v31 }
 0x2ee   :  { %v1312_v35 = vadd.f32 1.0, %v15644_v7  ;;  %v1176_v41 = vpop.xlane.xlu1 %1175  ;;  %v3104_v7 = vld [vmem:[%s21305_s11 + $0x10] sm:$0xff] }
 0x2ef   :  { %15657 = vrcp.f32 %v1309_v10  ;;  %v1221_v59 = vadd.f32 %v17603_v5, %v1176_v41  ;;  %v3105_v10 = vld [vmem:[%s21305_s11 + $0x18] sm:$0xff] }
 0x2f0   :  { %2815 = vperm.xlu1 %15134, %v17690_v8   ;;  %v15646_v44 = vpop.eup %15645  ;;  %15659 = vrcp.f32 %v1312_v35  ;;  %v3106_v35 = vld [vmem:[%s21305_s11 + $0x20] sm:$0xff] }
 0x2f1   :  { %v17694_v28 = vpop.eup %15647  ;;  %v1313_v52 = vadd.f32 1.0, %v15646_v44  ;;  %v12437_v63 = vmul.f32 -1.442695, %v1221_v59  ;;  %v14729_v44 = vpack.c.bf16 %v3105_v10, %v3104_v7  ;;  %v3107_v59 = vld [vmem:[%s21305_s11 + $0x28] sm:$0xff] }
 0x2f2   :  { %21474 = vst [vmem:[#allocation16_spill] sm:$0xff] %v17694_v28  ;;  %v15650_v27 = vpop.eup %15649  ;;  %v1170_v45 = vpop.xlane.xlu0 %1169 }
 0x2f3   :  { %15661 = vrcp.f32 %v1313_v52  ;;  %v1314_v37 = vadd.f32 1.0, %v15650_v27  ;;  %v1219_v47 = vadd.f32 %v17603_v5, %v1170_v45  ;;  %14730 = vmatpush3.bf16.msra.mxu0 %v14729_v44  ;;  %v14732_v27 = vpack.c.bf16 %v3107_v59, %v3106_v35  ;;  %v3109_v45 = vld [vmem:[%s21305_s11 + $0x38] sm:$0xff] }
 0x2f4   :  { %2810 = vperm.xlu1 %15134, %v17694_v28   ;;  %15663 = vpow2.f32 %v12437_v63  ;;  %14731 = vmatprep.subr.bf16.mxu0 %v21316_v46  ;;  %v3108_v63 = vld [vmem:[%s21305_s11 + $0x30] sm:$0xff] }
 0x2f5   :  { %v17700_v61 = vpop.eup %15651  ;;  %15665 = vrcp.f32 %v1314_v37  ;;  %v12435_v49 = vmul.f32 -1.442695, %v1219_v47 }
 0x2f6   :  { %21475 = vst [vmem:[#allocation17_spill] sm:$0xff] %v17700_v61  ;;  %v17702_v17 = vpop.eup %15653 }
 0x2f7   :  { %21476 = vst [vmem:[#allocation18_spill] sm:$0xff] %v17702_v17  ;;  %15667 = vpow2.f32 %v12435_v49  ;;  %v15656_v38 = vpop.eup %15655  ;;  %14733 = vmatpush3.bf16.msra.mxu0 %v14732_v27  ;;  %v14735_v49 = vpack.c.bf16 %v3109_v45, %v3108_v63 }
 0x2f8   :  { %2825 = vperm.xlu1 %15134, %v17700_v61   ;;  %v1179_v24 = vpop.xlane.xlu1 %1178  ;;  %v1316_v32 = vadd.f32 1.0, %v15656_v38  ;;  %14734 = vmatprep.subr.bf16.mxu0 %v21316_v46 }
 0x2f9   :  { %v17707_v0 = vpop.eup %15657  ;;  %v1222_v54 = vadd.f32 %v17603_v5, %v1179_v24 }
 0x2fa   :  { %21477 = vst [vmem:[#allocation19_spill] sm:$0xff] %v17707_v0  ;;  %v1182_v48 = vpop.xlane.xlu0 %1181  ;;  %2820 = vperm.xlu0 %15133, %v17707_v0   ;;  %15669 = vrcp.f32 %v1316_v32  ;;  %v17713_v60 = vpop.eup %15659 }
 0x2fb   :  { %v12438_v50 = vmul.f32 -1.442695, %v1222_v54  ;;  %v1223_v40 = vadd.f32 %v17603_v5, %v1182_v48  ;;  %21478 = vst [vmem:[#allocation20_spill] sm:$0xff] %v17713_v60  ;;  %v3110_v54 = vld [vmem:[%s21305_s11 + $0x40] sm:$0xff]  ;;  %v3111_v48 = vld [vmem:[%s21305_s11 + $0x48] sm:$0xff]  ;;  %14736 = vmatpush3.bf16.msra.mxu0 %v14735_v49 }
 0x2fc   :  { %2830 = vperm.xlu1 %15134, %v17702_v17   ;;  %14737 = vmatprep.subr.bf16.mxu0 %v21316_v46 }
 0x2fd   :  { %v17715_v6 = vpop.eup %15661  ;;  %15671 = vpow2.f32 %v12438_v50  ;;  %v12439_v16 = vmul.f32 -1.442695, %v1223_v40 }
 0x2fe   :  { %21479 = vst [vmem:[#allocation21_spill] sm:$0xff] %v17715_v6  ;;  %v15664_v36 = vpop.eup %15663  ;;  %2840 = vperm.xlu0 %15133, %v17715_v6  }
 0x2ff   :  { %v17719_v57 = vpop.eup %15665  ;;  %v1317_v23 = vadd.f32 1.0, %v15664_v36  ;;  %15673 = vpow2.f32 %v12439_v16  ;;  %v1185_v30 = vpop.xlane.xlu1 %1184  ;;  %v14738_v16 = vpack.c.bf16 %v3111_v48, %v3110_v54  ;;  %v3112_v36 = vld [vmem:[%s21305_s11 + $0x50] sm:$0xff] }
 0x300   :  { %2835 = vperm.xlu1 %15134, %v17713_v60   ;;  %21480 = vst [vmem:[#allocation22_spill] sm:$0xff] %v17719_v57  ;;  %v1224_v18 = vadd.f32 %v17603_v5, %v1185_v30 }
 0x301   :  { %v15668_v42 = vpop.eup %15667  ;;  %15675 = vrcp.f32 %v1317_v23  ;;  %v3113_v23 = vld [vmem:[%s21305_s11 + $0x58] sm:$0xff]  ;;  %14739 = vmatpush3.bf16.msra.mxu0 %v14738_v16 }
 0x302   :  { %v1315_v20 = vadd.f32 1.0, %v15668_v42  ;;  %v12440_v33 = vmul.f32 -1.442695, %v1224_v18  ;;  %14740 = vmatprep.subr.bf16.mxu0 %v21316_v46  ;;  %v3115_v18 = vld [vmem:[%s21305_s11 + $0x68] sm:$0xff] }
 0x303   :  { %v14744_v51 = vpack.c.bf16 %v3115_v18, %v3114_v1 }
 0x304   :  { %2845 = vperm.xlu1 %15134, %v17719_v57   ;;  %15677 = vrcp.f32 %v1315_v20  ;;  %v17734_v9 = vpop.eup %15669  ;;  %v3116_v20 = vld [vmem:[%s21305_s11 + $0x70] sm:$0xff] }
 0x305   :  { %21481 = vst [vmem:[#allocation23_spill] sm:$0xff] %v17734_v9  ;;  %15679 = vpow2.f32 %v12440_v33  ;;  %v1194_v3 = vpop.xlane.xlu1 %1193  ;;  %2855 = vperm.xlu0 %15133, %v17734_v9   ;;  %v3117_v33 = vld [vmem:[%s21305_s11 + $0x78] sm:$0xff]  ;;  %s16179_s11 = smov 64  }
 0x306   :  { %v1227_v58 = vadd.f32 %v17603_v5, %v1194_v3 }
 0x307   :  { %v15672_v39 = vpop.eup %15671 }
 0x308   :  { %v1318_v55 = vadd.f32 1.0, %v15672_v39  ;;  %v12443_v53 = vmul.f32 -1.442695, %v1227_v58  ;;  %v14747_v58 = vpack.c.bf16 %v3117_v33, %v3116_v20 }
 0x309   :  { %v15674_v2 = vpop.eup %15673 }
 0x30a   :  { %15681 = vrcp.f32 %v1318_v55  ;;  %v1319_v29 = vadd.f32 1.0, %v15674_v2 }
 0x30b   :  { %v17738_v62 = vpop.eup %15675  ;;  %15683 = vpow2.f32 %v12443_v53  ;;  %v17813_v53 = vld [vmem:[#allocation2 + $0x6] ss:$0 sm:$0xff] }
 0x30c   :  { %21482 = vst [vmem:[#allocation24_spill] sm:$0xff] %v17738_v62  ;;  %15685 = vrcp.f32 %v1319_v29  ;;  %2860 = vperm.xlu1 %15134, %v17738_v62  }
 0x30e   :  { %v17743_v31 = vpop.eup %15677 }
 0x30f   :  { %21483 = vst [vmem:[#allocation25_spill] sm:$0xff] %v17743_v31  ;;  %v15680_v41 = vpop.eup %15679  ;;  %2850 = vperm.xlu0 %15133, %v17743_v31  }
 0x310   :  { %v1320_v52 = vadd.f32 1.0, %v15680_v41 }
 0x312   :  { %15687 = vrcp.f32 %v1320_v52 }
 0x314   :  { %v17765_v37 = vpop.eup %15681 }
 0x315   :  { %21484 = vst [vmem:[#allocation26_spill] sm:$0xff] %v17765_v37  ;;  %v15684_v47 = vpop.eup %15683  ;;  %2865 = vperm.xlu1 %15134, %v17765_v37  }
 0x316   :  { %v17768_v38 = vpop.eup %15685  ;;  %v1323_v24 = vadd.f32 1.0, %v15684_v47  ;;  %v1197_v32 = vpop.xlane.xlu1 %1196 }
 0x317   :  { %21485 = vst [vmem:[#allocation27_spill] sm:$0xff] %v17768_v38  ;;  %v1228_v50 = vadd.f32 %v17603_v5, %v1197_v32  ;;  %2870 = vperm.xlu0 %15133, %v17768_v38   ;;  %v14741_v5 = vpack.c.bf16 %v3113_v23, %v3112_v36 }
 0x318   :  { %15689 = vrcp.f32 %v1323_v24 }
 0x319   :  { %v12444_v40 = vmul.f32 -1.442695, %v1228_v50  ;;  %14742 = vmatpush3.bf16.msra.mxu0 %v14741_v5 }
 0x31a   :  { %14743 = vmatprep.subr.bf16.mxu0 %v21316_v46 }
 0x31b   :  { %15691 = vpow2.f32 %v12444_v40 }
 0x31c   :  { %v17786_v30 = vpop.eup %15687 }
 0x31d   :  { %21486 = vst [vmem:[#allocation28_spill] sm:$0xff] %v17786_v30  ;;  %2875 = vperm.xlu1 %15134, %v17786_v30   ;;  %14745 = vmatpush3.bf16.msra.mxu0 %v14744_v51 }
 0x31e   :  { %14746 = vmatprep.subr.bf16.mxu0 %v21316_v46 }
 0x321   :  { %14748 = vmatpush3.bf16.msra.mxu0 %v14747_v58 }
 0x322   :  { %v17798_v42 = vpop.eup %15689  ;;  %14749 = vmatprep.subr.bf16.mxu0 %v21316_v46 }
 0x323   :  { %21487 = vst [vmem:[#allocation29_spill] sm:$0xff] %v17798_v42  ;;  %2890 = vperm.xlu1 %15134, %v17798_v42  }
 0x325   :  { %v15692_v3 = vpop.eup %15691 }
 0x326   :  { %v1324_v39 = vadd.f32 1.0, %v15692_v3 }
 0x328   :  { %15693 = vrcp.f32 %v1324_v39 }
 0x332   :  { %v17810_v55 = vpop.eup %15693 }
 0x333   :  { %21488 = vst [vmem:[#allocation30_spill] sm:$0xff] %v17810_v55  ;;  %2895 = vperm.xlu1 %15134, %v17810_v55  }
 0x34b   :  { %v13639_v2 = vpop.f32.mrb[48].mxu0 }
 0x34c   :  { %v2362_v29 = vpop.f32.mrb[49].mxu0  ;;  %v2368_v35 = vadd.f32 %v13639_v2, %v17813_v53 }
 0x34d   :  { %v2363_v7 = vadd.f32 %v17813_v53, %v2362_v29 }
 0x34f   :  { %12497 = vmatmul.mubr.msk.f32.vlgmr.msra.gmra.mrb[48].mxu1 %vm620_vm2, %v2363_v7 }
 0x350   :  { %v13642_v10 = vpop.f32.mrb[50].mxu0  ;;  %2639 = vmatprep.mubr.f32.mxu1 %v21318_v43 }
 0x351   :  { %v2372_v41 = vpop.f32.mrb[51].mxu0  ;;  %v2378_v27 = vadd.f32 %v13642_v10, %v17813_v53 }
 0x352   :  { %v2373_v44 = vadd.f32 %v17813_v53, %v2372_v41 }
 0x353   :  { %12498 = vmatmul.mubr.msk.f32.gmra.mrb[50].mxu1 %vm620_vm2, %v2368_v35 }
 0x354   :  { %2645 = vmatprep.mubr.f32.mxu1 %v21318_v43 }
 0x356   :  { %v13645_v59 = vpop.f32.mrb[52].mxu0 }
 0x357   :  { %v2382_v52 = vpop.f32.mrb[53].mxu0  ;;  %12499 = vmatmul.mubr.msk.f32.gmra.mrb[52].mxu1 %vm620_vm2, %v2373_v44  ;;  %v2388_v49 = vadd.f32 %v13645_v59, %v17813_v53 }
 0x358   :  { %2651 = vmatprep.mubr.f32.mxu1 %v21318_v43  ;;  %v2383_v63 = vadd.f32 %v17813_v53, %v2382_v52 }
 0x35b   :  { %12500 = vmatmul.mubr.msk.f32.gmra.mrb[54].mxu1 %vm620_vm2, %v2378_v27 }
 0x35c   :  { %2657 = vmatprep.mubr.f32.mxu1 %v21318_v43 }
 0x35d   :  { %v13648_v45 = vpop.f32.mrb[54].mxu0 }
 0x35e   :  { %v2392_v47 = vpop.f32.mrb[55].mxu0  ;;  %v2398_v40 = vadd.f32 %v13648_v45, %v17813_v53 }
 0x35f   :  { %12501 = vmatmul.mubr.msk.f32.gmra.mrb[56].mxu1 %vm620_vm2, %v2383_v63  ;;  %v2393_v54 = vadd.f32 %v17813_v53, %v2392_v47 }
 0x360   :  { %2663 = vmatprep.mubr.f32.mxu1 %v21318_v43 }
 0x361   :  { %v13651_v24 = vpop.f32.mrb[56].mxu0 }
 0x362   :  { %v2402_v32 = vpop.f32.mrb[57].mxu0  ;;  %v2408_v18 = vadd.f32 %v13651_v24, %v17813_v53 }
 0x363   :  { %12502 = vmatmul.mubr.msk.f32.gmra.mrb[58].mxu1 %vm620_vm2, %v2388_v49  ;;  %v2403_v23 = vadd.f32 %v17813_v53, %v2402_v32  ;;  %v12521_v49 = vld [vmem:[#allocation2 + $0x9] ss:$0 sm:$0xff] }
 0x364   :  { %2669 = vmatprep.mubr.f32.mxu1 %v21318_v43 }
 0x365   :  { %v13654_v48 = vpop.f32.mrb[58].mxu0 }
 0x366   :  { %v2412_v50 = vpop.f32.mrb[59].mxu0  ;;  %v2418_v10 = vadd.f32 %v13654_v48, %v17813_v53 }
 0x367   :  { %12503 = vmatmul.mubr.msk.f32.gmra.mrb[60].mxu1 %vm620_vm2, %v2393_v54  ;;  %v2413_v58 = vadd.f32 %v17813_v53, %v2412_v50 }
 0x368   :  { %2675 = vmatprep.mubr.f32.mxu1 %v21318_v43 }
 0x369   :  { %v13657_v16 = vpop.f32.mrb[60].mxu0 }
 0x36a   :  { %v2422_v36 = vpop.f32.mrb[61].mxu0  ;;  %v2428_v24 = vadd.f32 %v13657_v16, %v17813_v53 }
 0x36b   :  { %12504 = vmatmul.mubr.msk.f32.gmra.mrb[62].mxu1 %vm620_vm2, %v2398_v40  ;;  %v2423_v52 = vadd.f32 %v17813_v53, %v2422_v36 }
 0x36c   :  { %2681 = vmatprep.mubr.f32.mxu1 %v21318_v43 }
 0x36d   :  { %v13660_v5 = vpop.f32.mrb[62].mxu0 }
 0x36e   :  { %v2432_v1 = vpop.f32.mrb[63].mxu0 }
 0x36f   :  { %12505 = vmatmul.mubr.msk.f32.gmra.mrb[64].mxu1 %vm620_vm2, %v2403_v23  ;;  %v2433_v40 = vadd.f32 %v17813_v53, %v2432_v1 }
 0x370   :  { %2687 = vmatprep.mubr.f32.mxu1 %v21318_v43 }
 0x371   :  { %v13663_v51 = vpop.f32.mrb[64].mxu0 }
 0x372   :  { %v2448_v20 = vadd.f32 %v13663_v51, %v17813_v53  ;;  %v2442_v33 = vpop.f32.mrb[65].mxu0 }
 0x373   :  { %v2443_v3 = vadd.f32 %v17813_v53, %v2442_v33  ;;  %12506 = vmatmul.mubr.msk.f32.gmra.mrb[66].mxu1 %vm620_vm2, %v2408_v18  ;;  %v2438_v18 = vadd.f32 %v13660_v5, %v17813_v53 }
 0x374   :  { %2693 = vmatprep.mubr.f32.mxu1 %v21318_v43 }
 0x375   :  { %v13666_v39 = vpop.f32.mrb[66].mxu0 }
 0x376   :  { %v2458_v2 = vadd.f32 %v13666_v39, %v17813_v53  ;;  %v2452_v29 = vpop.f32.mrb[67].mxu0 }
 0x377   :  { %v2453_v7 = vadd.f32 %v17813_v53, %v2452_v29  ;;  %12507 = vmatmul.mubr.msk.f32.gmra.mrb[68].mxu1 %vm620_vm2, %v2413_v58  ;;  %v3206_v58 = vld [vmem:[#allocation4 + $0x10] sm:$0xff] }
 0x378   :  { %2699 = vmatprep.mubr.f32.mxu1 %v21318_v43 }
 0x379   :  { %v13669_v35 = vpop.f32.mrb[68].mxu0 }
 0x37a   :  { %v2468_v41 = vadd.f32 %v13669_v35, %v17813_v53  ;;  %v2462_v44 = vpop.f32.mrb[69].mxu0 }
 0x37b   :  { %v2463_v59 = vadd.f32 %v17813_v53, %v2462_v44  ;;  %12508 = vmatmul.mubr.msk.f32.gmra.mrb[70].mxu1 %vm620_vm2, %v2418_v10  ;;  %v3209_v10 = vld [vmem:[#allocation4 + $0x28] sm:$0xff]  ;;  %v3211_v44 = vld [vmem:[#allocation4 + $0x38] sm:$0xff] }
 0x37c   :  { %2705 = vmatprep.mubr.f32.mxu1 %v21318_v43 }
 0x37d   :  { %v13672_v27 = vpop.f32.mrb[70].mxu0 }
 0x37e   :  { %v2478_v63 = vadd.f32 %v13672_v27, %v17813_v53  ;;  %v2472_v45 = vpop.f32.mrb[71].mxu0  ;;  %v2948_v27 = vlaneseq }
 0x37f   :  { %v2473_v47 = vadd.f32 %v17813_v53, %v2472_v45  ;;  %12509 = vmatmul.mubr.msk.f32.gmra.mrb[72].mxu1 %vm620_vm2, %v2423_v52  ;;  %v2781_v52 = vpop.permute.xlu1 %2780 }
 0x380   :  { %2711 = vmatprep.mubr.f32.mxu1 %v21318_v43  ;;  %v17896_v45 = vshrl.u32 %v2948_v27, 7 }
 0x381   :  { %v3089_v32 = vpop.f32.mrb[72].mxu0 }
 0x382   :  { %v3090_v54 = vadd.f32 %v12521_v49, %v3089_v32  ;;  %v13677_v48 = vpop.f32.mrb[73].mxu0  ;;  %21489 = vst [vmem:[#allocation31_spill] sm:$0xff] %v17896_v45  ;;  %v21315_v49 = vsub.s32 0, %v17896_v45 }
 0x383   :  { %12510 = vmatmul.mubr.msk.f32.gmra.mrb[74].mxu1 %vm620_vm2, %v2428_v24  ;;  %v21314_v48 = vsub.s32 1, %v17896_v45 }
 0x384   :  { %v3094_v50 = vmul.f32 %v3090_v54, %v3090_v54  ;;  %2717 = vmatprep.mubr.f32.mxu1 %v21318_v43  ;;  %v3093_v53 = vmul.f32 0.5, %v3090_v54 }
 0x386   :  { %v3095_v36 = vmul.f32 %v3094_v50, %v3090_v54 }
 0x387   :  { %12511 = vmatmul.mubr.msk.f32.gmra.mrb[76].mxu1 %vm620_vm2, %v2433_v40 }
 0x388   :  { %v3096_v23 = vmul.f32 0.044715, %v3095_v36  ;;  %2723 = vmatprep.mubr.f32.mxu1 %v21318_v43 }
 0x38a   :  { %v3097_v51 = vadd.f32 %v3096_v23, %v3090_v54  ;;  %v2946_v54 = vld [vmem:[#allocation2 + $0x7] sm:$0x3] }
 0x38b   :  { %12512 = vmatmul.mubr.msk.f32.gmra.mrb[78].mxu1 %vm620_vm2, %v2438_v18  ;;  %v17906_v23 = vrot.slane %v2946_v54, %v21315_v49 }
 0x38c   :  { %v3098_v16 = vmul.f32 0.7978846, %v3097_v51  ;;  %2729 = vmatprep.mubr.f32.mxu1 %v21318_v43 }
 0x38e   :  { %15695 = vtanh.f32 %v3098_v16  ;;  %v17910_v16 = vrot.slane %v2946_v54, %v21314_v48 }
 0x38f   :  { %12513 = vmatmul.mubr.msk.f32.gmra.mrb[80].mxu1 %vm620_vm2, %v2443_v3  ;;  %v3205_v3 = vld [vmem:[#allocation4 + $0x8] sm:$0xff] }
 0x390   :  { %2735 = vmatprep.mubr.f32.mxu1 %v21318_v43 }
 0x393   :  { %12514 = vmatmul.mubr.msk.f32.gmra.mrb[82].mxu1 %vm620_vm2, %v2448_v20  ;;  %v3204_v20 = vld [vmem:[#allocation4] sm:$0xff] }
 0x394   :  { %2741 = vmatprep.mubr.f32.mxu1 %v21318_v43  ;;  %v14750_v39 = vpack.c.bf16 %v3205_v3, %v3204_v20 }
 0x397   :  { %12515 = vmatmul.mubr.msk.f32.gmra.mrb[84].mxu1 %vm620_vm2, %v2453_v7  ;;  %v3208_v7 = vld [vmem:[#allocation4 + $0x20] sm:$0xff] }
 0x398   :  { %v15696_v1 = vpop.eup %15695  ;;  %2747 = vmatprep.mubr.f32.mxu1 %v21318_v43  ;;  %v14756_v35 = vpack.c.bf16 %v3209_v10, %v3208_v7 }
 0x399   :  { %v3100_v5 = vadd.f32 1.0, %v15696_v1 }
 0x39b   :  { %v3101_v33 = vmul.f32 %v3100_v5, %v3093_v53  ;;  %12516 = vmatmul.mubr.msk.f32.gmra.mrb[86].mxu1 %vm620_vm2, %v2458_v2  ;;  %v3207_v2 = vld [vmem:[#allocation4 + $0x18] sm:$0xff] }
 0x39c   :  { %2753 = vmatprep.mubr.f32.mxu1 %v21318_v43  ;;  %v14753_v29 = vpack.c.bf16 %v3207_v2, %v3206_v58 }
 0x39d   :  { %13711 = vmatmul.mubr.f32.vlgmr.msra.gmra.mrb[74].mxu0 %v3101_v33 }
 0x39e   :  { %13729 = vmatprep.mubr.msk.f32.mxu0 %vm16177_vm5, %v21318_v43  ;;  %14751 = vmatpush3.bf16.msra.mxu0 %v14750_v39 }
 0x39f   :  { %12517 = vmatmul.mubr.msk.f32.gmra.mrb[88].mxu1 %vm620_vm2, %v2463_v59  ;;  %14752 = vmatprep.subr.bf16.mxu0 %v21316_v46 }
 0x3a0   :  { %2759 = vmatprep.mubr.f32.mxu1 %v21318_v43 }
 0x3a2   :  { %14754 = vmatpush3.bf16.msra.mxu0 %v14753_v29 }
 0x3a3   :  { %12518 = vmatmul.mubr.msk.f32.gmra.mrb[90].mxu1 %vm620_vm2, %v2468_v41  ;;  %14755 = vmatprep.subr.bf16.mxu0 %v21316_v46  ;;  %v3210_v41 = vld [vmem:[#allocation4 + $0x30] sm:$0xff] }
 0x3a4   :  { %2765 = vmatprep.mubr.f32.mxu1 %v21318_v43  ;;  %v14759_v59 = vpack.c.bf16 %v3211_v44, %v3210_v41 }
 0x3a6   :  { %14757 = vmatpush3.bf16.msra.mxu0 %v14756_v35 }
 0x3a7   :  { %12519 = vmatmul.mubr.msk.f32.gmra.mrb[92].mxu1 %vm620_vm2, %v2473_v47  ;;  %14758 = vmatprep.subr.bf16.mxu0 %v21316_v46  ;;  %v2796_v47 = vpop.permute.xlu1 %2795 }
 0x3a8   :  { %2771 = vmatprep.mubr.f32.mxu1 %v21318_v43 }
 0x3aa   :  { %14760 = vmatpush3.bf16.msra.mxu0 %v14759_v59 }
 0x3ab   :  { %12520 = vmatmul.mubr.msk.f32.gmra.mrb[94].mxu1 %vm620_vm2, %v2478_v63  ;;  %14773 = vmatprep.subr.bf16.mxu0 %v21316_v46  ;;  %v17894_v63 = vpop.xlane.xlu0 %1190  ;;  %v17902_v40 = vpop.permute.xlu1 %2790 }
 0x3ac   :  { %13748 = vmatprep.mubr.msk.f32.mxu1 %vm16177_vm5, %v21318_v43 }
 0x3af   :  { %v17899_v24 = vpop.xlane.xlu0 %1187  ;;  %v17918_v58 = vpop.permute.xlu1 %2805 }
 0x3b3   :  { %v2786_v18 = vpop.permute.xlu0 %2785 }
 0x3b7   :  { %v18010_v42 = vpop.permute.xlu0 %2820 }
 0x3bb   :  { %v18041_v62 = vpop.permute.xlu0 %2840 }
 0x3bf   :  { %v2856_v31 = vpop.permute.xlu0 %2855 }
 0x3c3   :  { %v18076_v38 = vpop.permute.xlu0 %2850 }
 0x3c4   :  { %21517 = vst [vmem:[#allocation59_spill] sm:$0xff] %v18076_v38 }
 0x422   :  { %v2635_v32 = vpop.f32.mrb[48].mxu1 }
 0x423   :  { %v2637_v50 = vpop.f32.mrb[49].mxu1  ;;  %v2898_v36 = vmul.f32 %v2781_v52, %v2635_v32  ;;  %v2801_v32 = vpop.permute.xlu1 %2800 }
 0x424   :  { %v2899_v51 = vmul.f32 %v2781_v52, %v2637_v50 }
 0x425   :  { %v17913_v20 = vadd.f32 %v17906_v23, %v2898_v36 }
 0x426   :  { %v2641_v1 = vpop.f32.mrb[50].mxu1  ;;  %v17921_v39 = vadd.f32 %v17910_v16, %v2899_v51 }
 0x427   :  { %v2900_v53 = vmul.f32 %v2786_v18, %v2641_v1  ;;  %v2643_v5 = vpop.f32.mrb[51].mxu1  ;;  %21490 = vst [vmem:[#allocation32_spill] sm:$0xff] %v17913_v20 }
 0x428   :  { %v2901_v33 = vmul.f32 %v2786_v18, %v2643_v5 }
 0x429   :  { %v17916_v3 = vadd.f32 %v17906_v23, %v2900_v53 }
 0x42a   :  { %v17924_v2 = vadd.f32 %v17910_v16, %v2901_v33  ;;  %v2647_v29 = vpop.f32.mrb[52].mxu1  ;;  %v2816_v33 = vpop.permute.xlu1 %2815 }
 0x42b   :  { %21491 = vst [vmem:[#allocation33_spill] sm:$0xff] %v17916_v3  ;;  %v2902_v7 = vmul.f32 %v17902_v40, %v2647_v29  ;;  %v17927_v10 = vpop.f32.mrb[53].mxu1  ;;  %v17931_v35 = vpack.i.bf16 %v17916_v3, %v17913_v20 }
 0x42c   :  { %v17937_v44 = vpack.i.bf16 %v17924_v2, %v17921_v39 }
 0x42d   :  { %15136 = vrot.lane.b32.xlu1 %v17931_v35, %s16179_s11  ;;  %v17942_v52 = vadd.f32 %v17906_v23, %v2902_v7 }
 0x42e   :  { %21492 = vst [vmem:[#allocation34_spill] sm:$0xff] %v17937_v44  ;;  %v2653_v59 = vpop.f32.mrb[54].mxu1 }
 0x42f   :  { %v2655_v27 = vpop.f32.mrb[55].mxu1  ;;  %v2904_v54 = vmul.f32 %v2796_v47, %v2653_v59 }
 0x430   :  { %v2905_v50 = vmul.f32 %v2796_v47, %v2655_v27 }
 0x431   :  { %3401 = vrot.lane.b32.xlu1 %v17942_v52, %s16179_s11  ;;  %v17947_v53 = vadd.f32 %v17906_v23, %v2904_v54 }
 0x432   :  { %v2659_v36 = vpop.f32.mrb[56].mxu1  ;;  %v17953_v29 = vadd.f32 %v17910_v16, %v2905_v50 }
 0x433   :  { %v2906_v18 = vmul.f32 %v2801_v32, %v2659_v36  ;;  %v2661_v51 = vpop.f32.mrb[57].mxu1  ;;  %21493 = vst [vmem:[#allocation35_spill] sm:$0xff] %v17947_v53 }
 0x434   :  { %v2907_v1 = vmul.f32 %v2801_v32, %v2661_v51  ;;  %21495 = vst [vmem:[#allocation37_spill] sm:$0xff] %v17953_v29 }
 0x435   :  { %v17950_v5 = vadd.f32 %v17906_v23, %v2906_v18 }
 0x436   :  { %v17956_v7 = vadd.f32 %v17910_v16, %v2907_v1  ;;  %v2665_v59 = vpop.f32.mrb[58].mxu1  ;;  %v2811_v1 = vpop.permute.xlu1 %2810 }
 0x437   :  { %21494 = vst [vmem:[#allocation36_spill] sm:$0xff] %v17950_v5  ;;  %v2908_v47 = vmul.f32 %v17918_v58, %v2665_v59  ;;  %v17959_v27 = vpop.f32.mrb[59].mxu1  ;;  %v17963_v32 = vpack.i.bf16 %v17950_v5, %v17947_v53 }
 0x438   :  { %21496 = vst [vmem:[#allocation38_spill] sm:$0xff] %v17956_v7  ;;  %v17969_v36 = vpack.i.bf16 %v17956_v7, %v17953_v29  ;;  %v3309_v29 = vld [vmem:[#allocation6 + $0x18] sm:$0xff] }
 0x439   :  { %15141 = vrot.lane.b32.xlu1 %v17963_v32, %s16179_s11  ;;  %v17974_v18 = vadd.f32 %v17906_v23, %v2908_v47 }
 0x43a   :  { %21497 = vst [vmem:[#allocation39_spill] sm:$0xff] %v17969_v36  ;;  %v2671_v50 = vpop.f32.mrb[60].mxu1 }
 0x43b   :  { %21498 = vst [vmem:[#allocation40_spill] sm:$0xff] %v17974_v18  ;;  %v2673_v51 = vpop.f32.mrb[61].mxu1  ;;  %v2910_v59 = vmul.f32 %v2811_v1, %v2671_v50 }
 0x43c   :  { %v2911_v34 = vmul.f32 %v2811_v1, %v2673_v51 }
 0x43d   :  { %3503 = vrot.lane.b32.xlu1 %v17974_v18, %s16179_s11  ;;  %v17979_v21 = vadd.f32 %v17906_v23, %v2910_v59 }
 0x43e   :  { %v2677_v22 = vpop.f32.mrb[62].mxu1  ;;  %v17985_v47 = vadd.f32 %v17910_v16, %v2911_v34 }
 0x43f   :  { %v2912_v25 = vmul.f32 %v2816_v33, %v2677_v22  ;;  %v2679_v26 = vpop.f32.mrb[63].mxu1  ;;  %21499 = vst [vmem:[#allocation41_spill] sm:$0xff] %v17979_v21 }
 0x440   :  { %v2913_v4 = vmul.f32 %v2816_v33, %v2679_v26  ;;  %v2826_v26 = vpop.permute.xlu1 %2825 }
 0x441   :  { %v17982_v12 = vadd.f32 %v17906_v23, %v2912_v25 }
 0x442   :  { %v17988_v48 = vadd.f32 %v17910_v16, %v2913_v4  ;;  %v2683_v50 = vpop.f32.mrb[64].mxu1 }
 0x443   :  { %v17990_v49 = vpop.f32.mrb[65].mxu1  ;;  %v17994_v22 = vpack.i.bf16 %v17982_v12, %v17979_v21 }
 0x444   :  { %v18000_v25 = vpack.i.bf16 %v17988_v48, %v17985_v47  ;;  %v2831_v1 = vpop.permute.xlu1 %2830 }
 0x445   :  { %21500 = vst [vmem:[#allocation42_spill] sm:$0xff] %v17994_v22  ;;  %15146 = vrot.lane.b32.xlu1 %v17994_v22, %s16179_s11  ;;  %v3311_v22 = vld [vmem:[#allocation6 + $0x28] sm:$0xff] }
 0x446   :  { %21501 = vst [vmem:[#allocation43_spill] sm:$0xff] %v18000_v25  ;;  %v2689_v4 = vpop.f32.mrb[66].mxu1 }
 0x447   :  { %v2691_v34 = vpop.f32.mrb[67].mxu1  ;;  %v2916_v51 = vmul.f32 %v2826_v26, %v2689_v4 }
 0x448   :  { %v2917_v59 = vmul.f32 %v2826_v26, %v2691_v34  ;;  %v2914_v26 = vmul.f32 %v18010_v42, %v2683_v50 }
 0x449   :  { %v18005_v55 = vadd.f32 %v17906_v23, %v2916_v51  ;;  %v18031_v51 = vpop.permute.xlu1 %2835 }
 0x44a   :  { %v2695_v54 = vpop.f32.mrb[68].mxu1  ;;  %v18013_v37 = vadd.f32 %v17910_v16, %v2917_v59  ;;  %21509 = vst [vmem:[#allocation51_spill] sm:$0xff] %v18031_v51  ;;  %v18038_v50 = vadd.f32 %v17906_v23, %v2914_v26 }
 0x44b   :  { %v2918_v41 = vmul.f32 %v2831_v1, %v2695_v54  ;;  %v2697_v46 = vpop.f32.mrb[69].mxu1  ;;  %21502 = vst [vmem:[#allocation44_spill] sm:$0xff] %v18005_v55 }
 0x44c   :  { %v2919_v43 = vmul.f32 %v2831_v1, %v2697_v46  ;;  %21504 = vst [vmem:[#allocation46_spill] sm:$0xff] %v18013_v37 }
 0x44d   :  { %v18008_v33 = vadd.f32 %v17906_v23, %v2918_v41  ;;  %v18048_v61 = vpop.permute.xlu1 %2845 }
 0x44e   :  { %v18016_v9 = vadd.f32 %v17910_v16, %v2919_v43  ;;  %v2701_v4 = vpop.f32.mrb[70].mxu1 }
 0x44f   :  { %21503 = vst [vmem:[#allocation45_spill] sm:$0xff] %v18008_v33  ;;  %v18019_v54 = vpop.f32.mrb[71].mxu1  ;;  %v18023_v46 = vpack.i.bf16 %v18008_v33, %v18005_v55  ;;  %v2920_v1 = vmul.f32 %v18031_v51, %v2701_v4 }
 0x450   :  { %21505 = vst [vmem:[#allocation47_spill] sm:$0xff] %v18016_v9  ;;  %21506 = vst [vmem:[#allocation48_spill] sm:$0xff] %v18019_v54  ;;  %v18029_v34 = vpack.i.bf16 %v18016_v9, %v18013_v37  ;;  %v21538_v37 = vmov 0.0|0.0  }
 0x451   :  { %21507 = vst [vmem:[#allocation49_spill] sm:$0xff] %v18023_v46  ;;  %15151 = vrot.lane.b32.xlu1 %v18023_v46, %s16179_s11  ;;  %v18051_v17 = vadd.f32 %v17906_v23, %v2920_v1  ;;  %v2861_v57 = vpop.permute.xlu1 %2860  ;;  %v3308_v46 = vld [vmem:[#allocation6 + $0x10] sm:$0xff] }
 0x452   :  { %21508 = vst [vmem:[#allocation50_spill] sm:$0xff] %v18029_v34  ;;  %v18035_v43 = vpop.f32.mrb[72].mxu1  ;;  %v12524_v34 = vld [vmem:[#allocation2 + $0xa] ss:$0 sm:$0xff]  ;;  %v14765_v7 = vpack.c.bf16 %v3309_v29, %v3308_v46 }
 0x453   :  { %v2709_v59 = vpop.f32.mrb[73].mxu1  ;;  %21510 = vst [vmem:[#allocation52_spill] sm:$0xff] %v18051_v17 }
 0x454   :  { %v2923_v41 = vmul.f32 %v18041_v62, %v2709_v59 }
 0x455   :  { %3604 = vrot.lane.b32.xlu1 %v18038_v50, %s16179_s11 }
 0x456   :  { %v18046_v60 = vpop.f32.mrb[74].mxu1  ;;  %v18057_v4 = vadd.f32 %v17910_v16, %v2923_v41 }
 0x457   :  { %v2715_v14 = vpop.f32.mrb[75].mxu1 }
 0x458   :  { %v2925_v26 = vmul.f32 %v18048_v61, %v2715_v14  ;;  %21511 = vst [vmem:[#allocation53_spill] sm:$0xff] %v18057_v4 }
 0x459   :  { %3705 = vrot.lane.b32.xlu1 %v18051_v17, %s16179_s11 }
 0x45a   :  { %v18060_v15 = vadd.f32 %v17910_v16, %v2925_v26  ;;  %v2719_v59 = vpop.f32.mrb[76].mxu1 }
 0x45b   :  { %v18062_v11 = vpop.f32.mrb[77].mxu1 }
 0x45c   :  { %21512 = vst [vmem:[#allocation54_spill] sm:$0xff] %v18060_v15  ;;  %21513 = vst [vmem:[#allocation55_spill] sm:$0xff] %v18062_v11  ;;  %v18068_v1 = vpack.i.bf16 %v18060_v15, %v18057_v4 }
 0x45e   :  { %21514 = vst [vmem:[#allocation56_spill] sm:$0xff] %v18068_v1  ;;  %v2725_v14 = vpop.f32.mrb[78].mxu1  ;;  %v2871_v1 = vpop.permute.xlu0 %2870 }
 0x45f   :  { %v2727_v30 = vpop.f32.mrb[79].mxu1  ;;  %v2928_v6 = vmul.f32 %v2856_v31, %v2725_v14 }
 0x460   :  { %v2929_v41 = vmul.f32 %v2856_v31, %v2727_v30  ;;  %v2926_v31 = vmul.f32 %v18076_v38, %v2719_v59 }
 0x461   :  { %v18071_v13 = vadd.f32 %v17906_v23, %v2928_v6 }
 0x462   :  { %v2731_v0 = vpop.f32.mrb[80].mxu1  ;;  %v18079_v56 = vadd.f32 %v17910_v16, %v2929_v41  ;;  %v18102_v59 = vadd.f32 %v17906_v23, %v2926_v31 }
 0x463   :  { %v2930_v28 = vmul.f32 %v2861_v57, %v2731_v0  ;;  %v2733_v26 = vpop.f32.mrb[81].mxu1  ;;  %21515 = vst [vmem:[#allocation57_spill] sm:$0xff] %v18071_v13 }
 0x464   :  { %v2931_v8 = vmul.f32 %v2861_v57, %v2733_v26  ;;  %21518 = vst [vmem:[#allocation60_spill] sm:$0xff] %v18079_v56  ;;  %v18091_v57 = vpop.permute.xlu1 %2865 }
 0x465   :  { %v18074_v19 = vadd.f32 %v17906_v23, %v2930_v28  ;;  %21522 = vst [vmem:[#allocation64_spill] sm:$0xff] %v18091_v57 }
 0x466   :  { %v18082_v45 = vadd.f32 %v17910_v16, %v2931_v8  ;;  %v2737_v14 = vpop.f32.mrb[82].mxu1 }
 0x467   :  { %21516 = vst [vmem:[#allocation58_spill] sm:$0xff] %v18074_v19  ;;  %v18085_v0 = vpop.f32.mrb[83].mxu1  ;;  %v18089_v6 = vpack.i.bf16 %v18074_v19, %v18071_v13  ;;  %v2932_v41 = vmul.f32 %v18091_v57, %v2737_v14 }
 0x468   :  { %21519 = vst [vmem:[#allocation61_spill] sm:$0xff] %v18082_v45  ;;  %21520 = vst [vmem:[#allocation62_spill] sm:$0xff] %v18085_v0  ;;  %v18097_v30 = vpack.i.bf16 %v18082_v45, %v18079_v56  ;;  %v2876_v28 = vpop.permute.xlu1 %2875 }
 0x469   :  { %21521 = vst [vmem:[#allocation63_spill] sm:$0xff] %v18089_v6  ;;  %15161 = vrot.lane.b32.xlu1 %v18089_v6, %s16179_s11 }
 0x46a   :  { %21523 = vst [vmem:[#allocation65_spill] sm:$0xff] %v18097_v30  ;;  %v2743_v8 = vpop.f32.mrb[84].mxu1  ;;  %v18108_v30 = vadd.f32 %v17906_v23, %v2932_v41 }
 0x46b   :  { %v2745_v26 = vpop.f32.mrb[85].mxu1  ;;  %v2934_v36 = vmul.f32 %v2871_v1, %v2743_v8 }
 0x46c   :  { %v2935_v25 = vmul.f32 %v2871_v1, %v2745_v26  ;;  %21524 = vst [vmem:[#allocation66_spill] sm:$0xff] %v18108_v30 }
 0x46d   :  { %3806 = vrot.lane.b32.xlu1 %v18102_v59, %s16179_s11  ;;  %v18111_v11 = vadd.f32 %v17906_v23, %v2934_v36 }
 0x46e   :  { %v2749_v44 = vpop.f32.mrb[86].mxu1  ;;  %v18119_v1 = vadd.f32 %v17910_v16, %v2935_v25 }
 0x46f   :  { %v2936_v4 = vmul.f32 %v2876_v28, %v2749_v44  ;;  %v2751_v15 = vpop.f32.mrb[87].mxu1  ;;  %21525 = vst [vmem:[#allocation67_spill] sm:$0xff] %v18111_v11 }
 0x470   :  { %v3191_v38 = vpop.f32.mrb[74].mxu0  ;;  %v2937_v31 = vmul.f32 %v2876_v28, %v2751_v15  ;;  %21527 = vst [vmem:[#allocation69_spill] sm:$0xff] %v18119_v1 }
 0x471   :  { %v3192_v14 = vadd.f32 %v12524_v34, %v3191_v38  ;;  %v13712_v6 = vpop.f32.mrb[75].mxu0  ;;  %v18114_v8 = vadd.f32 %v17906_v23, %v2936_v4  ;;  %3907 = vrot.lane.b32.xlu1 %v18108_v30, %s16179_s11 }
 0x472   :  { %v18122_v41 = vadd.f32 %v17910_v16, %v2937_v31  ;;  %v18124_v44 = vpop.f32.mrb[88].mxu1 }
 0x473   :  { %21526 = vst [vmem:[#allocation68_spill] sm:$0xff] %v18114_v8  ;;  %v3196_v15 = vmul.f32 %v3192_v14, %v3192_v14  ;;  %v18126_v28 = vpop.f32.mrb[89].mxu1  ;;  %v18130_v38 = vpack.i.bf16 %v18114_v8, %v18111_v11 }
 0x474   :  { %21528 = vst [vmem:[#allocation70_spill] sm:$0xff] %v18122_v41  ;;  %21529 = vst [vmem:[#allocation71_spill] sm:$0xff] %v18126_v28  ;;  %v18136_v34 = vpack.i.bf16 %v18122_v41, %v18119_v1 }
 0x475   :  { %21530 = vst [vmem:[#allocation72_spill] sm:$0xff] %v18130_v38  ;;  %v3197_v25 = vmul.f32 %v3196_v15, %v3192_v14  ;;  %15166 = vrot.lane.b32.xlu1 %v18130_v38, %s16179_s11 }
 0x476   :  { %21531 = vst [vmem:[#allocation73_spill] sm:$0xff] %v18136_v34  ;;  %v18140_v4 = vpop.f32.mrb[90].mxu1  ;;  %v3195_v34 = vmul.f32 0.5, %v3192_v14 }
 0x477   :  { %v3198_v6 = vmul.f32 0.044715, %v3197_v25  ;;  %v18142_v26 = vpop.f32.mrb[91].mxu1  ;;  %v21533_v25 = vmov 0.0  }
 0x479   :  { %v3199_v31 = vadd.f32 %v3198_v6, %v3192_v14  ;;  %v18155_v6 = vpop.permute.xlu1 %2890 }
 0x47a   :  { %v18144_v28 = vpop.f32.mrb[92].mxu1 }
 0x47b   :  { %v3200_v56 = vmul.f32 0.7978846, %v3199_v31  ;;  %v18146_v45 = vpop.f32.mrb[93].mxu1 }
 0x47d   :  { %15697 = vtanh.f32 %v3200_v56  ;;  %v18157_v57 = vpop.permute.xlu1 %2895 }
 0x47e   :  { %v18148_v36 = vpop.f32.mrb[94].mxu1  ;;  %21534 = vst [vmem:[#allocation75_spill] sm:$0xff] %v18157_v57 }
 0x47f   :  { %v18150_v1 = vpop.f32.mrb[95].mxu1 }
 0x480   :  { %21532 = vst [vmem:[#allocation74_spill] sm:$0xff] %v18150_v1  ;;  %v21535_v1 = vmov 0 }
 0x481   :  { %v21536_v1 = vsel %vm18161_vm8, 4294967295, %v21535_v1 }
 0x482   :  { %21537 = vst [vmem:[#allocation76_spill] sm:$0xff] %v21536_v1 }
 0x487   :  { %v15698_v15 = vpop.eup %15697 }
 0x488   :  { %v3202_v41 = vadd.f32 1.0, %v15698_v15 }
 0x48a   :  { %v3203_v38 = vmul.f32 %v3202_v41, %v3195_v34 }
 0x48c   :  { %13730 = vmatmul.mubr.msk.f32.vlgmr.msra.gmra.mrb[76].mxu0 %vm620_vm2, %v3203_v38 }
 0x48d   :  { %13757 = vmatprep.mubr.msk.f32.mxu0 %vm16177_vm5, %v21533_v25 }
 0x49f   :  { %v15137_v31 = vpop.permute.xlu1 %15136 }
 0x4a0   :  { %v15139_v56 = vunpack.i.h.bf16 %v15137_v31  ;;  %v15138_v0 = vunpack.i.l.bf16 %v15137_v31 }
 0x4a2   :  { %v14774_v14 = vpack.c.bf16 %v15139_v56, %v15138_v0 }
 0x4a3   :  { %v3402_v41 = vpop.permute.xlu1 %3401 }
 0x4a4   :  { %14776 = vmatpush3.bf16.xpose.msk.msra.mxu0 %vm18161_vm8, %v14774_v14 }
 0x4a5   :  { %13755 = vmatprep.subr.mxu0 %v21533_v25 }
 0x4ab   :  { %v15142_v38 = vpop.permute.xlu1 %15141 }
 0x4ac   :  { %v15144_v34 = vunpack.i.h.bf16 %v15142_v38  ;;  %v15143_v15 = vunpack.i.l.bf16 %v15142_v38  ;;  %13756 = vmatpush3.xpose.msk.msra.mxu0 %vm3403_vm7, %v3402_v41 }
 0x4ad   :  { %14777 = vmatprep.subr.bf16.mxu0 %v21538_v37 }
 0x4ae   :  { %v14778_v31 = vpack.c.bf16 %v15144_v34, %v15143_v15 }
 0x4af   :  { %13758 = vmatmul.mubr.msk.f32.vlgmr.msra.gmra.mrb[78].mxu0 %vm3403_vm7, %v17913_v20  ;;  %v3504_v0 = vpop.permute.xlu1 %3503 }
 0x4b0   :  { %14780 = vmatpush3.bf16.xpose.msk.msra.mxu0 %vm18161_vm8, %v14778_v31  ;;  %13760 = vmatprep.mubr.msk.f32.mxu0 %vm16177_vm5, %v21533_v25 }
 0x4b1   :  { %13770 = vmatprep.subr.mxu0 %v21533_v25 }
 0x4b3   :  { %13761 = vmatmul.mubr.msk.f32.gmra.mrb[80].mxu0 %vm3403_vm7, %v17916_v3  ;;  %v3306_v3 = vld [vmem:[#allocation6] sm:$0xff] }
 0x4b4   :  { %13763 = vmatprep.mubr.msk.f32.mxu0 %vm16177_vm5, %v21533_v25 }
 0x4b7   :  { %13764 = vmatmul.mubr.msk.f32.gmra.mrb[82].mxu0 %vm3403_vm7, %v17942_v52  ;;  %v18191_v56 = vpop.permute.xlu1 %15146 }
 0x4b8   :  { %13771 = vmatpush3.xpose.msk.msra.mxu0 %vm3403_vm7, %v3504_v0  ;;  %13772 = vmatprep.mubr.msk.f32.mxu0 %vm16177_vm5, %v21533_v25 }
 0x4b9   :  { %14785 = vmatprep.subr.bf16.mxu0 %v21538_v37 }
 0x4bb   :  { %13773 = vmatmul.mubr.msk.f32.vlgmr.msra.gmra.mrb[84].mxu0 %vm3403_vm7, %v17947_v53 }
 0x4bc   :  { %13775 = vmatprep.mubr.msk.f32.mxu0 %vm16177_vm5, %v21533_v25 }
 0x4bf   :  { %13776 = vmatmul.mubr.msk.f32.gmra.mrb[86].mxu0 %vm3403_vm7, %v17950_v5 }
 0x4c0   :  { %13778 = vmatprep.mubr.msk.f32.mxu0 %vm16177_vm5, %v21533_v25 }
 0x4c3   :  { %v15152_v14 = vpop.permute.xlu1 %15151  ;;  %13779 = vmatmul.mubr.msk.f32.gmra.mrb[88].mxu0 %vm3403_vm7, %v17974_v18 }
 0x4c4   :  { %v15154_v41 = vunpack.i.h.bf16 %v15152_v14  ;;  %v15153_v38 = vunpack.i.l.bf16 %v15152_v14  ;;  %13802 = vmatprep.mubr.msk.f32.mxu0 %vm16177_vm5, %v21533_v25 }
 0x4c6   :  { %v14786_v34 = vpack.c.bf16 %v15154_v41, %v15153_v38 }
 0x4c7   :  { %v18203_v15 = vpop.permute.xlu1 %3604 }
 0x4c8   :  { %14788 = vmatpush3.bf16.xpose.msk.msra.mxu0 %vm18161_vm8, %v14786_v34 }
 0x4c9   :  { %13800 = vmatprep.subr.mxu0 %v21533_v25 }
 0x4cb   :  { %v3706_v31 = vpop.permute.xlu1 %3705 }
 0x4d0   :  { %13801 = vmatpush3.xpose.msk.msra.mxu0 %vm3403_vm7, %v3706_v31 }
 0x4d1   :  { %14793 = vmatprep.subr.bf16.mxu0 %v21538_v37 }
 0x4d3   :  { %13803 = vmatmul.mubr.msk.f32.vlgmr.msra.gmra.mrb[90].mxu0 %vm3403_vm7, %v18005_v55 }
 0x4d4   :  { %13805 = vmatprep.mubr.msk.f32.mxu0 %vm16177_vm5, %v21533_v25 }
 0x4d7   :  { %13806 = vmatmul.mubr.msk.f32.gmra.mrb[92].mxu0 %vm3403_vm7, %v18008_v33 }
 0x4d8   :  { %13808 = vmatprep.mubr.msk.f32.mxu0 %vm16177_vm5, %v21533_v25 }
 0x4db   :  { %13809 = vmatmul.mubr.msk.f32.gmra.mrb[94].mxu0 %vm3403_vm7, %v18051_v17  ;;  %v15162_v0 = vpop.permute.xlu1 %15161 }
 0x4dc   :  { %v15164_v14 = vunpack.i.h.bf16 %v15162_v0  ;;  %v15163_v41 = vunpack.i.l.bf16 %v15162_v0  ;;  %13832 = vmatprep.mubr.msk.f32.mxu0 %vm16177_vm5, %v21533_v25  ;;  %v16099_v0 = vld [vmem:[#allocation2 + $0x3] ss:$0 sm:$0xff] }
 0x4de   :  { %v14794_v38 = vpack.c.bf16 %v15164_v14, %v15163_v41  ;;  %v1226_v14 = vadd.f32 %v16099_v0, %v17894_v63 }
 0x4df   :  { %v18222_v34 = vpop.permute.xlu1 %3806 }
 0x4e0   :  { %14796 = vmatpush3.bf16.xpose.msk.msra.mxu0 %vm18161_vm8, %v14794_v38  ;;  %v12442_v41 = vmul.f32 -1.442695, %v1226_v14  ;;  %v1225_v38 = vadd.f32 %v16099_v0, %v17899_v24 }
 0x4e1   :  { %13830 = vmatprep.subr.mxu0 %v21533_v25 }
 0x4e2   :  { %15699 = vpow2.f32 %v12442_v41 }
 0x4e3   :  { %v3908_v31 = vpop.permute.xlu1 %3907 }
 0x4e8   :  { %13831 = vmatpush3.xpose.msk.msra.mxu0 %vm3403_vm7, %v3908_v31  ;;  %v12441_v31 = vmul.f32 -1.442695, %v1225_v38 }
 0x4e9   :  { %14801 = vmatprep.subr.bf16.mxu0 %v21538_v37 }
 0x4ea   :  { %15701 = vpow2.f32 %v12441_v31 }
 0x4eb   :  { %13833 = vmatmul.mubr.msk.f32.vlgmr.msra.gmra.mrb[96].mxu0 %vm3403_vm7, %v18071_v13  ;;  %v12525_v13 = vld [vmem:[#allocation2 + $0xb] ss:$0 sm:$0xff] }
 0x4ec   :  { %13835 = vmatprep.mubr.msk.f32.mxu0 %vm16177_vm5, %v21533_v25 }
 0x4ef   :  { %13836 = vmatmul.mubr.msk.f32.gmra.mrb[98].mxu0 %vm3403_vm7, %v18074_v19 }
 0x4f0   :  { %13838 = vmatprep.mubr.msk.f32.mxu0 %vm16177_vm5, %v21533_v25 }
 0x4f3   :  { %13839 = vmatmul.mubr.msk.f32.gmra.mrb[100].mxu0 %vm3403_vm7, %v18108_v30  ;;  %v15700_v30 = vpop.eup %15699 }
 0x4f4   :  { %13862 = vmatprep.mubr.msk.f32.mxu0 %vm16177_vm5, %v21533_v25  ;;  %v1322_v5 = vadd.f32 1.0, %v15700_v30  ;;  %v15702_v53 = vpop.eup %15701 }
 0x4f5   :  { %v1321_v20 = vadd.f32 1.0, %v15702_v53 }
 0x4f6   :  { %15703 = vrcp.f32 %v1322_v5 }
 0x4f7   :  { %15705 = vrcp.f32 %v1321_v20 }
 0x500   :  { %v18242_v63 = vpop.eup %15703 }
 0x501   :  { %21539 = vst [vmem:[#allocation77_spill] sm:$0xff] %v18242_v63  ;;  %v18245_v24 = vpop.eup %15705 }
 0x502   :  { %21540 = vst [vmem:[#allocation78_spill] sm:$0xff] %v18245_v24 }
 0x55f   :  { %v3288_v33 = vpop.f32.mrb[76].mxu0 }
 0x560   :  { %v3289_v19 = vadd.f32 %v12525_v13, %v3288_v33  ;;  %v13731_v55 = vpop.f32.mrb[77].mxu0 }
 0x562   :  { %v3292_v17 = vsel %vm620_vm2, %v3289_v19, 0.0 }
 0x563   :  { %3293 = vadd.xlane.f32.xlu0 %v3292_v17 }
 0x579   :  { %2885 = vperm.xlu0 %15133, %v18242_v63  }
 0x57d   :  { %2880 = vperm.xlu0 %15133, %v18245_v24  }
 0x582   :  { %v18248_v13 = vpop.f32.mrb[78].mxu0 }
 0x583   :  { %v13759_v55 = vpop.f32.mrb[79].mxu0 }
 0x586   :  { %v18250_v33 = vpop.f32.mrb[80].mxu0 }
 0x587   :  { %v13762_v17 = vpop.f32.mrb[81].mxu0 }
 0x58a   :  { %v18252_v0 = vpop.f32.mrb[82].mxu0 }
 0x58b   :  { %v13765_v30 = vpop.f32.mrb[83].mxu0 }
 0x58c   :  { %v3307_v30 = vld [vmem:[#allocation6 + $0x8] sm:$0xff] }
 0x58d   :  { %v14762_v9 = vpack.c.bf16 %v3307_v30, %v3306_v3 }
 0x58e   :  { %v18254_v5 = vpop.f32.mrb[84].mxu0 }
 0x58f   :  { %v13774_v20 = vpop.f32.mrb[85].mxu0  ;;  %14763 = vmatpush3.bf16.msra.mxu1 %v14762_v9 }
 0x590   :  { %14764 = vmatprep.subr.bf16.mxu1 %v21538_v37 }
 0x592   :  { %v18256_v53 = vpop.f32.mrb[86].mxu0 }
 0x593   :  { %v13777_v14 = vpop.f32.mrb[87].mxu0  ;;  %14766 = vmatpush3.bf16.msra.mxu1 %v14765_v7  ;;  %v2943_v7 = vmul.f32 %v18155_v6, %v18146_v45  ;;  %v2944_v45 = vmul.f32 %v18157_v57, %v18148_v36 }
 0x594   :  { %14767 = vmatprep.subr.bf16.mxu1 %v21538_v37 }
 0x596   :  { %v18258_v41 = vpop.f32.mrb[88].mxu0 }
 0x597   :  { %v13780_v38 = vpop.f32.mrb[89].mxu0 }
 0x5a6   :  { %v18260_v31 = vpop.f32.mrb[90].mxu0 }
 0x5a7   :  { %v13804_v63 = vpop.f32.mrb[91].mxu0 }
 0x5aa   :  { %v18262_v24 = vpop.f32.mrb[92].mxu0 }
 0x5ab   :  { %v13807_v55 = vpop.f32.mrb[93].mxu0 }
 0x5ac   :  { %v3310_v55 = vld [vmem:[#allocation6 + $0x20] sm:$0xff] }
 0x5ae   :  { %v18264_v18 = vpop.f32.mrb[94].mxu0 }
 0x5af   :  { %v13810_v17 = vpop.f32.mrb[95].mxu0 }
 0x5b0   :  { %v14768_v17 = vpack.c.bf16 %v3311_v22, %v3310_v55 }
 0x5b2   :  { %14769 = vmatpush3.bf16.msra.mxu1 %v14768_v17 }
 0x5b3   :  { %14770 = vmatprep.subr.bf16.mxu1 %v21538_v37 }
 0x5be   :  { %v3987_v20 = vpop.f32.mrb[96].mxu0 }
 0x5bf   :  { %v13834_v14 = vpop.f32.mrb[97].mxu0 }
 0x5c2   :  { %v18267_v51 = vpop.f32.mrb[98].mxu0 }
 0x5c3   :  { %v13837_v38 = vpop.f32.mrb[99].mxu0 }
 0x5c4   :  { %v2942_v38 = vmul.f32 %v18155_v6, %v18144_v28  ;;  %v18294_v28 = vadd.f32 %v17910_v16, %v2943_v7 }
 0x5c6   :  { %v18269_v54 = vpop.f32.mrb[100].mxu0  ;;  %21544 = vst [vmem:[#allocation82_spill] sm:$0xff] %v18294_v28 }
 0x5c7   :  { %v13840_v63 = vpop.f32.mrb[101].mxu0 }
 0x5f0   :  { %v3294_v9 = vpop.xlane.xlu0 %3293 }
 0x5f1   :  { %v3296_v3 = vmul.f32 0.015625, %v3294_v9  ;;  %v18311_v9 = vadd.f32 %v17906_v23, %v2944_v45  ;;  %v18350_v45 = vmul.f32 0.25, %v18260_v31 }
 0x5f3   :  { %v18273_v30 = vsub.f32 %v3289_v19, %v3296_v3  ;;  %v18285_v19 = vadd.f32 %v17906_v23, %v2942_v38  ;;  %21547 = vst [vmem:[#allocation85_spill] sm:$0xff] %v18311_v9  ;;  %v3312_v3 = vld [vmem:[#allocation6 + $0x30] sm:$0xff]  ;;  %v2924_v38 = vmul.f32 %v18048_v61, %v18046_v60 }
 0x5f5   :  { %v3298_v14 = vmul.f32 %v18273_v30, %v18273_v30  ;;  %21541 = vst [vmem:[#allocation79_spill] sm:$0xff] %v18285_v19  ;;  %v18321_v7 = vadd.f32 %v17906_v23, %v2924_v38  ;;  %v18374_v38 = vmul.f32 0.25, %v18258_v41  ;;  %v18389_v41 = vmul.f32 0.25, %v18267_v51 }
 0x5f7   :  { %v3299_v29 = vsel %vm620_vm2, %v3298_v14, 0.0  ;;  %v3313_v14 = vld [vmem:[#allocation6 + $0x38] sm:$0xff]  ;;  %21548 = vst [vmem:[#allocation86_spill] sm:$0xff] %v18321_v7 }
 0x5f8   :  { %3300 = vadd.xlane.f32.xlu0 %v3299_v29  ;;  %v2886_v22 = vpop.permute.xlu0 %2885  ;;  %v14771_v36 = vpack.c.bf16 %v3313_v14, %v3312_v3  ;;  %v2922_v29 = vmul.f32 %v18041_v62, %v18035_v43  ;;  %v18342_v62 = vmul.f32 0.25, %v18250_v33  ;;  %v18345_v43 = vmul.f32 0.25, %v18256_v53 }
 0x5f9   :  { %v2940_v46 = vmul.f32 %v2886_v22, %v18140_v4  ;;  %v2941_v63 = vmul.f32 %v2886_v22, %v18142_v26  ;;  %v18355_v3 = vmul.f32 0.25, %v18248_v13  ;;  %v18357_v33 = vmul.f32 0.25, %v3987_v20 }
 0x5fa   :  { %14772 = vmatpush3.bf16.msra.mxu1 %v14771_v36  ;;  %v4256_v53 = vsel %vm4227_vm9, %v18350_v45, -inf  ;;  %v18362_v14 = vmul.f32 0.25, %v18252_v0  ;;  %v18369_v13 = vmul.f32 0.25, %v18254_v5  ;;  %v18384_v5 = vmul.f32 0.25, %v18264_v18 }
 0x5fb   :  { %v18288_v55 = vadd.f32 %v17906_v23, %v2940_v46  ;;  %v18291_v17 = vadd.f32 %v17910_v16, %v2941_v63  ;;  %14781 = vmatprep.subr.bf16.mxu1 %v21538_v37  ;;  %v18326_v46 = vadd.f32 %v17906_v23, %v2922_v29  ;;  %v4228_v31 = vsel %vm4227_vm9, %v18355_v3, -inf }
 0x5fc   :  { %v18323_v22 = vpop.permute.xlu0 %2880  ;;  %v4274_v36 = vsel %vm4227_vm9, %v18357_v33, -inf  ;;  %v4235_v20 = vsel %vm4234_vm10, %v18362_v14, -inf  ;;  %v4238_v0 = vsel %vm4227_vm9, %v18369_v13, -inf  ;;  %v18379_v29 = vmul.f32 0.25, %v18262_v24 }
 0x5fd   :  { %21542 = vst [vmem:[#allocation80_spill] sm:$0xff] %v18288_v55  ;;  %21543 = vst [vmem:[#allocation81_spill] sm:$0xff] %v18291_v17  ;;  %v18300_v4 = vpack.i.bf16 %v18285_v19, %v18288_v55  ;;  %v18306_v6 = vpack.i.bf16 %v18294_v28, %v18291_v17  ;;  %v2938_v63 = vmul.f32 %v18323_v22, %v18124_v44  ;;  %v4231_v44 = vsel %vm4227_vm9, %v18342_v62, -inf }
 0x5fe   :  { %21549 = vst [vmem:[#allocation87_spill] sm:$0xff] %v18323_v22  ;;  %21550 = vst [vmem:[#allocation88_spill] sm:$0xff] %v18326_v46  ;;  %v18332_v61 = vpack.i.bf16 %v18321_v7, %v18326_v46  ;;  %v4277_v24 = vsel %vm4227_vm9, %v18389_v41, -inf }
 0x5ff   :  { %21545 = vst [vmem:[#allocation83_spill] sm:$0xff] %v18300_v4  ;;  %21546 = vst [vmem:[#allocation84_spill] sm:$0xff] %v18306_v6  ;;  %15171 = vrot.lane.b32.xlu1 %v18300_v4, %s16179_s11  ;;  %v18337_v60 = vadd.f32 %v17906_v23, %v2938_v63  ;;  %v4241_v23 = vsel %vm4227_vm9, %v18345_v43, -inf  ;;  %v4244_v63 = vsel %vm4234_vm10, %v18374_v38, -inf }
 0x601   :  { %21551 = vst [vmem:[#allocation89_spill] sm:$0xff] %v18337_v60 }
 0x603   :  { %4109 = vrot.lane.b32.xlu1 %v18311_v9, %s16179_s11 }
 0x60e   :  { %15156 = vrot.lane.b32.xlu0 %v18332_v61, %s16179_s11 }
 0x612   :  { %4008 = vrot.lane.b32.xlu0 %v18337_v60, %s16179_s11 }
 0x627   :  { %4232 = vmax.xlane.f32.xlu1 %v4231_v44  ;;  %v4259_v44 = vsel %vm4227_vm9, %v18379_v29, -inf }
 0x62b   :  { %4242 = vmax.xlane.f32.xlu1 %v4241_v23  ;;  %v4262_v23 = vsel %vm4234_vm10, %v18384_v5, -inf }
 0x62f   :  { %4257 = vmax.xlane.f32.xlu1 %v4256_v53  ;;  %v15167_v53 = vpop.permute.xlu1 %15166 }
 0x631   :  { %4229 = vmax.xlane.f32.xlu0 %v4228_v31 }
 0x633   :  { %4275 = vmax.xlane.f32.xlu1 %v4274_v36 }
 0x635   :  { %4236 = vmax.xlane.f32.xlu0 %v4235_v20 }
 0x639   :  { %4239 = vmax.xlane.f32.xlu0 %v4238_v0  ;;  %v2915_v0 = vmul.f32 %v18010_v42, %v17990_v49 }
 0x63d   :  { %4245 = vmax.xlane.f32.xlu0 %v4244_v63  ;;  %v21552_v63 = vpack.c.bf16 %v17988_v48, %v17985_v47  ;;  %v15149_v47 = vunpack.i.h.bf16 %v18191_v56 }
 0x641   :  { %4260 = vmax.xlane.f32.xlu0 %v4259_v44  ;;  %v18411_v44 = vadd.f32 %v17910_v16, %v2915_v0 }
 0x643   :  { %21553 = vst [vmem:[#allocation90_spill] sm:$0xff] %v18411_v44 }
 0x645   :  { %4263 = vmax.xlane.f32.xlu0 %v4262_v23  ;;  %v15148_v23 = vunpack.i.l.bf16 %v18191_v56 }
 0x649   :  { %4278 = vmax.xlane.f32.xlu0 %v4277_v24 }
 0x671   :  { %v15172_v31 = vpop.permute.xlu1 %15171 }
 0x672   :  { %v15174_v36 = vunpack.i.h.bf16 %v15172_v31  ;;  %v15173_v18 = vunpack.i.l.bf16 %v15172_v31 }
 0x674   :  { %v14802_v20 = vpack.c.bf16 %v15174_v36, %v15173_v18  ;;  %v14782_v36 = vpack.c.bf16 %v15149_v47, %v15148_v23 }
 0x675   :  { %v4110_v51 = vpop.permute.xlu1 %4109 }
 0x676   :  { %14804 = vmatpush3.bf16.xpose.msk.msra.mxu0 %vm18161_vm8, %v14802_v20 }
 0x677   :  { %13860 = vmatprep.subr.mxu0 %v21533_v25 }
 0x67e   :  { %13861 = vmatpush3.xpose.msk.msra.mxu0 %vm3403_vm7, %v4110_v51 }
 0x67f   :  { %14811 = vmatprep.subr.bf16.mxu0 %v21538_v37 }
 0x681   :  { %13863 = vmatmul.mubr.msk.f32.vlgmr.msra.gmra.mrb[102].mxu0 %vm3403_vm7, %v18288_v55 }
 0x682   :  { %14813 = vmatpush3.bf16.msra.mxu0 %v21552_v63  ;;  %13865 = vmatprep.mubr.msk.f32.mxu0 %vm16177_vm5, %v21533_v25  ;;  %v21554_v63 = vpack.c.bf16 %v17924_v2, %v17921_v39 }
 0x683   :  { %13893 = vmatprep.subr.mxu0 %v21533_v25 }
 0x685   :  { %13866 = vmatmul.mubr.msk.f32.gmra.mrb[104].mxu0 %vm3403_vm7, %v18285_v19  ;;  %v3301_v42 = vpop.xlane.xlu0 %3300 }
 0x686   :  { %v3302_v49 = vmul.f32 0.015625, %v3301_v42  ;;  %13894 = vmatpush3.msk.msra.mxu0 %vm4664_vm11, %v18411_v44  ;;  %13868 = vmatprep.mubr.msk.f32.mxu0 %vm16177_vm5, %v21533_v25 }
 0x687   :  { %14817 = vmatprep.subr.bf16.mxu0 %v21538_v37 }
 0x688   :  { %v3303_v48 = vadd.f32 1e-05, %v3302_v49 }
 0x689   :  { %13869 = vmatmul.mubr.msk.f32.gmra.mrb[106].mxu0 %vm3403_vm7, %v18311_v9  ;;  %v15157_v18 = vpop.permute.xlu0 %15156 }
 0x68a   :  { %15707 = vrsqrt.f32 %v3303_v48  ;;  %13895 = vmatprep.mubr.msk.f32.mxu0 %vm16177_vm5, %v21533_v25  ;;  %v15159_v20 = vunpack.i.h.bf16 %v15157_v18  ;;  %v15158_v51 = vunpack.i.l.bf16 %v15157_v18 }
 0x68c   :  { %v14790_v56 = vpack.c.bf16 %v15159_v20, %v15158_v51 }
 0x694   :  { %v15708_v24 = vpop.eup %15707 }
 0x695   :  { %v3305_v31 = vmul.f32 %v15708_v24, %v18273_v30  ;;  %v15168_v30 = vunpack.i.l.bf16 %v15167_v53 }
 0x697   :  { %13749 = vmatmul.mubr.msk.f32.vlgmr.msra.gmra.mrb[96].mxu1 %vm620_vm2, %v3305_v31 }
 0x698   :  { %14784 = vmatpush3.bf16.xpose.msk.msra.mxu1 %vm18161_vm8, %v14782_v36  ;;  %13787 = vmatprep.mubr.msk.f32.mxu1 %vm16177_vm5, %v21533_v25 }
 0x699   :  { %13785 = vmatprep.subr.mxu1 %v21533_v25 }
 0x6a0   :  { %13786 = vmatpush3.xpose.msk.msra.mxu1 %vm3403_vm7, %v18203_v15  ;;  %v15169_v15 = vunpack.i.h.bf16 %v15167_v53  ;;  %v2903_v53 = vmul.f32 %v17902_v40, %v17927_v10 }
 0x6a1   :  { %14789 = vmatprep.subr.bf16.mxu1 %v21538_v37 }
 0x6a2   :  { %v14798_v0 = vpack.c.bf16 %v15169_v15, %v15168_v30  ;;  %v18482_v42 = vadd.f32 %v17910_v16, %v2903_v53 }
 0x6a3   :  { %13788 = vmatmul.mubr.msk.f32.vlgmr.msra.gmra.mrb[98].mxu1 %vm3403_vm7, %v17979_v21 }
 0x6a4   :  { %14792 = vmatpush3.bf16.xpose.msk.msra.mxu1 %vm18161_vm8, %v14790_v56  ;;  %13790 = vmatprep.mubr.msk.f32.mxu1 %vm16177_vm5, %v21533_v25  ;;  %21555 = vst [vmem:[#allocation91_spill] sm:$0xff] %v18482_v42 }
 0x6a5   :  { %13815 = vmatprep.subr.mxu1 %v21533_v25 }
 0x6a7   :  { %13791 = vmatmul.mubr.msk.f32.gmra.mrb[100].mxu1 %vm3403_vm7, %v17982_v12 }
 0x6a8   :  { %13793 = vmatprep.mubr.msk.f32.mxu1 %vm16177_vm5, %v21533_v25 }
 0x6ab   :  { %13794 = vmatmul.mubr.msk.f32.gmra.mrb[102].mxu1 %vm3403_vm7, %v18038_v50 }
 0x6ac   :  { %13816 = vmatpush3.xpose.msk.msra.mxu1 %vm3403_vm7, %v18222_v34  ;;  %13817 = vmatprep.mubr.msk.f32.mxu1 %vm16177_vm5, %v21533_v25  ;;  %v4009_v34 = vpop.permute.xlu0 %4008 }
 0x6ad   :  { %14797 = vmatprep.subr.bf16.mxu1 %v21538_v37 }
 0x6af   :  { %13818 = vmatmul.mubr.msk.f32.vlgmr.msra.gmra.mrb[104].mxu1 %vm3403_vm7, %v18326_v46 }
 0x6b0   :  { %14800 = vmatpush3.bf16.xpose.msk.msra.mxu1 %vm18161_vm8, %v14798_v0  ;;  %13820 = vmatprep.mubr.msk.f32.mxu1 %vm16177_vm5, %v21533_v25 }
 0x6b1   :  { %13845 = vmatprep.subr.mxu1 %v21533_v25 }
 0x6b3   :  { %13821 = vmatmul.mubr.msk.f32.gmra.mrb[106].mxu1 %vm3403_vm7, %v18321_v7 }
 0x6b4   :  { %13823 = vmatprep.mubr.msk.f32.mxu1 %vm16177_vm5, %v21533_v25  ;;  %v4233_v30 = vpop.xlane.xlu1 %4232 }
 0x6b7   :  { %13824 = vmatmul.mubr.msk.f32.gmra.mrb[108].mxu1 %vm3403_vm7, %v18102_v59 }
 0x6b8   :  { %13846 = vmatpush3.xpose.msk.msra.mxu1 %vm3403_vm7, %v4009_v34  ;;  %13847 = vmatprep.mubr.msk.f32.mxu1 %vm16177_vm5, %v21533_v25 }
 0x6b9   :  { %14805 = vmatprep.subr.bf16.mxu1 %v21538_v37 }
 0x6bb   :  { %13848 = vmatmul.mubr.msk.f32.vlgmr.msra.gmra.mrb[110].mxu1 %vm3403_vm7, %v18111_v11 }
 0x6bc   :  { %14807 = vmatpush3.bf16.msra.mxu1 %v21554_v63  ;;  %13850 = vmatprep.mubr.msk.f32.mxu1 %vm16177_vm5, %v21533_v25 }
 0x6bd   :  { %13875 = vmatprep.subr.mxu1 %v21533_v25 }
 0x6be   :  { %v4230_v47 = vpop.xlane.xlu0 %4229 }
 0x6bf   :  { %13851 = vmatmul.mubr.msk.f32.gmra.mrb[112].mxu1 %vm3403_vm7, %v18114_v8  ;;  %v4301_v63 = vsub.f32 %v18355_v3, %v4230_v47  ;;  %v4302_v47 = vsub.f32 %v18342_v62, %v4233_v30 }
 0x6c0   :  { %13876 = vmatpush3.msk.msra.mxu1 %vm4664_vm11, %v18482_v42  ;;  %13853 = vmatprep.mubr.msk.f32.mxu1 %vm16177_vm5, %v21533_v25 }
 0x6c1   :  { %14808 = vmatprep.subr.bf16.mxu1 %v21538_v37  ;;  %v4327_v30 = vmul.f32 1.442695, %v4302_v47 }
 0x6c2   :  { %v4237_v20 = vpop.xlane.xlu0 %4236 }
 0x6c3   :  { %13854 = vmatmul.mubr.msk.f32.gmra.mrb[114].mxu1 %vm3403_vm7, %v18337_v60 }
 0x6c4   :  { %13877 = vmatprep.mubr.msk.f32.mxu1 %vm16177_vm5, %v21533_v25 }
 0x754   :  { %v4189_v40 = vpop.f32.mrb[102].mxu0 }
 0x755   :  { %v13864_v39 = vpop.f32.mrb[103].mxu0 }
 0x756   :  { %v4240_v39 = vpop.xlane.xlu0 %4239 }
 0x758   :  { %v4194_v2 = vpop.f32.mrb[104].mxu0 }
 0x759   :  { %v13867_v10 = vpop.f32.mrb[105].mxu0 }
 0x75c   :  { %v18495_v49 = vpop.f32.mrb[106].mxu0 }
 0x75d   :  { %v13870_v48 = vpop.f32.mrb[107].mxu0 }
 0x776   :  { %v3684_v23 = vpop.f32.mrb[98].mxu1 }
 0x777   :  { %v18497_v24 = vmul.f32 0.25, %v3684_v23  ;;  %v13789_v31 = vpop.f32.mrb[99].mxu1 }
 0x779   :  { %v4247_v36 = vsel %vm4227_vm9, %v18497_v24, -inf }
 0x77a   :  { %4248 = vmax.xlane.f32.xlu1 %v4247_v36  ;;  %v3689_v18 = vpop.f32.mrb[100].mxu1  ;;  %v4243_v36 = vpop.xlane.xlu1 %4242 }
 0x77b   :  { %v18501_v51 = vmul.f32 0.25, %v3689_v18  ;;  %v13792_v56 = vpop.f32.mrb[101].mxu1  ;;  %v4325_v18 = vmul.f32 1.442695, %v4301_v63  ;;  %v18522_v63 = vmul.f32 0.25, %v18269_v54 }
 0x77c   :  { %v4303_v56 = vsub.f32 %v18362_v14, %v4237_v20 }
 0x77d   :  { %v4250_v15 = vsel %vm4227_vm9, %v18501_v51, -inf  ;;  %15709 = vpow2.f32 %v4325_v18  ;;  %v18531_v18 = vmul.f32 0.25, %v4194_v2 }
 0x77e   :  { %4251 = vmax.xlane.f32.xlu0 %v4250_v15  ;;  %v3694_v0 = vpop.f32.mrb[102].mxu1  ;;  %v18513_v15 = vmul.f32 0.25, %v4189_v40  ;;  %v4258_v20 = vpop.xlane.xlu1 %4257 }
 0x77f   :  { %v18505_v34 = vmul.f32 0.25, %v3694_v0  ;;  %v13795_v53 = vpop.f32.mrb[103].mxu1  ;;  %v4310_v47 = vsub.f32 %v18350_v45, %v4258_v20 }
 0x780   :  { %v4246_v53 = vpop.xlane.xlu0 %4245  ;;  %v4292_v14 = vsel %vm4227_vm9, %v18513_v15, -inf }
 0x781   :  { %v4253_v10 = vsel %vm4234_vm10, %v18505_v34, -inf  ;;  %v4306_v2 = vsub.f32 %v18374_v38, %v4246_v53  ;;  %v4343_v45 = vmul.f32 1.442695, %v4310_v47 }
 0x782   :  { %4254 = vmax.xlane.f32.xlu1 %v4253_v10  ;;  %v3886_v48 = vpop.f32.mrb[104].mxu1 }
 0x783   :  { %v18510_v23 = vmul.f32 0.25, %v3886_v48  ;;  %v13819_v31 = vpop.f32.mrb[105].mxu1  ;;  %v4305_v48 = vsub.f32 %v18345_v43, %v4243_v36  ;;  %v4304_v36 = vsub.f32 %v18369_v13, %v4240_v39  ;;  %v4276_v13 = vpop.xlane.xlu1 %4275  ;;  %v4335_v38 = vmul.f32 1.442695, %v4306_v2 }
 0x784   :  { %v4329_v31 = vmul.f32 1.442695, %v4303_v56  ;;  %v4261_v54 = vpop.xlane.xlu0 %4260  ;;  %v4280_v56 = vsel %vm4234_vm10, %v18522_v63, -inf  ;;  %v4316_v20 = vsub.f32 %v18357_v33, %v4276_v13 }
 0x785   :  { %v4265_v0 = vsel %vm4227_vm9, %v18510_v23, -inf  ;;  %v4333_v43 = vmul.f32 1.442695, %v4305_v48  ;;  %v4331_v39 = vmul.f32 1.442695, %v4304_v36  ;;  %v4311_v53 = vsub.f32 %v18379_v29, %v4261_v54 }
 0x786   :  { %4266 = vmax.xlane.f32.xlu1 %v4265_v0  ;;  %v3891_v3 = vpop.f32.mrb[106].mxu1  ;;  %15711 = vpow2.f32 %v4329_v31  ;;  %v4295_v31 = vsel %vm4227_vm9, %v18531_v18, -inf  ;;  %v4355_v13 = vmul.f32 1.442695, %v4316_v20 }
 0x787   :  { %v18518_v26 = vmul.f32 0.25, %v3891_v3  ;;  %v13822_v10 = vpop.f32.mrb[107].mxu1  ;;  %15713 = vpow2.f32 %v4327_v30  ;;  %v4345_v2 = vmul.f32 1.442695, %v4311_v53 }
 0x788   :  { %15715 = vpow2.f32 %v4333_v43 }
 0x789   :  { %v4268_v40 = vsel %vm4227_vm9, %v18518_v26, -inf  ;;  %15717 = vpow2.f32 %v4331_v39 }
 0x78a   :  { %4293 = vmax.xlane.f32.xlu1 %v4292_v14  ;;  %4269 = vmax.xlane.f32.xlu0 %v4268_v40  ;;  %v3896_v62 = vpop.f32.mrb[108].mxu1  ;;  %15719 = vpow2.f32 %v4343_v45 }
 0x78b   :  { %v18528_v0 = vmul.f32 0.25, %v3896_v62  ;;  %v13825_v3 = vpop.f32.mrb[109].mxu1  ;;  %15721 = vpow2.f32 %v4335_v38 }
 0x78c   :  { %v18545_v3 = vpop.eup %15709  ;;  %15723 = vpow2.f32 %v4355_v13 }
 0x78d   :  { %v4271_v10 = vsel %vm4234_vm10, %v18528_v0, -inf  ;;  %15725 = vpow2.f32 %v4345_v2 }
 0x78e   :  { %4281 = vmax.xlane.f32.xlu0 %v4280_v56  ;;  %4272 = vmax.xlane.f32.xlu1 %v4271_v10  ;;  %v4088_v14 = vpop.f32.mrb[110].mxu1  ;;  %v4264_v56 = vpop.xlane.xlu0 %4263  ;;  %v18552_v10 = vmul.f32 0.25, %v18495_v49 }
 0x78f   :  { %v18538_v40 = vmul.f32 0.25, %v4088_v14  ;;  %v13849_v48 = vpop.f32.mrb[111].mxu1  ;;  %v4373_v14 = vsel %vm4227_vm9, %v18545_v3, 0.0  ;;  %v4312_v29 = vsub.f32 %v18384_v5, %v4264_v56 }
 0x790   :  { %v18558_v47 = vpop.eup %15711 }
 0x791   :  { %v4283_v62 = vsel %vm4227_vm9, %v18538_v40, -inf  ;;  %v18561_v49 = vpop.eup %15713  ;;  %v4347_v45 = vmul.f32 1.442695, %v4312_v29 }
 0x792   :  { %4296 = vmax.xlane.f32.xlu0 %v4295_v31  ;;  %4284 = vmax.xlane.f32.xlu1 %v4283_v62  ;;  %v4093_v30 = vpop.f32.mrb[112].mxu1  ;;  %v4279_v54 = vpop.xlane.xlu0 %4278  ;;  %v4379_v31 = vsel %vm4234_vm10, %v18558_v47, 0.0  ;;  %v4298_v62 = vsel %vm4234_vm10, %v18552_v10, -inf  ;;  %v4376_v56 = vsel %vm4227_vm9, %v18561_v49, 0.0 }
 0x793   :  { %v18548_v43 = vmul.f32 0.25, %v4093_v30  ;;  %v13852_v36 = vpop.f32.mrb[113].mxu1  ;;  %v18567_v30 = vpop.eup %15715  ;;  %v4317_v20 = vsub.f32 %v18389_v41, %v4279_v54  ;;  %15727 = vpow2.f32 %v4347_v45 }
 0x794   :  { %v4385_v5 = vsel %vm4227_vm9, %v18567_v30, 0.0  ;;  %v18576_v38 = vpop.eup %15717 }
 0x795   :  { %v4286_v48 = vsel %vm4227_vm9, %v18548_v43, -inf  ;;  %v4357_v53 = vmul.f32 1.442695, %v4317_v20 }
 0x796   :  { %4374 = vadd.xlane.f32.xlu1 %v4373_v14  ;;  %4287 = vmax.xlane.f32.xlu0 %v4286_v48  ;;  %v4098_v33 = vpop.f32.mrb[114].mxu1  ;;  %v18578_v14 = vpop.eup %15719  ;;  %v4382_v48 = vsel %vm4227_vm9, %v18576_v38, 0.0 }
 0x797   :  { %v13855_v39 = vpop.f32.mrb[115].mxu1  ;;  %v18570_v36 = vmul.f32 0.25, %v4098_v33  ;;  %v18584_v33 = vpop.eup %15721  ;;  %15729 = vpow2.f32 %v4357_v53  ;;  %v4400_v2 = vsel %vm4227_vm9, %v18578_v14, 0.0 }
 0x798   :  { %v18586_v13 = vpop.eup %15723  ;;  %v4388_v39 = vsel %vm4234_vm10, %v18584_v33, 0.0 }
 0x799   :  { %v4289_v41 = vsel %vm4234_vm10, %v18570_v36, -inf  ;;  %21556 = vst [vmem:[#allocation92_spill] sm:$0xff] %v18586_v13  ;;  %v18592_v29 = vpop.eup %15725 }
 0x79a   :  { %4380 = vadd.xlane.f32.xlu1 %v4379_v31  ;;  %4299 = vmax.xlane.f32.xlu0 %v4298_v62  ;;  %v4403_v54 = vsel %vm4227_vm9, %v18592_v29, 0.0  ;;  %v4418_v31 = vsel %vm4227_vm9, %v18586_v13, 0.0 }
 0x79d   :  { %v18598_v62 = vpop.eup %15727 }
 0x79e   :  { %4386 = vadd.xlane.f32.xlu1 %v4385_v5  ;;  %4377 = vadd.xlane.f32.xlu0 %v4376_v56  ;;  %v4406_v45 = vsel %vm4234_vm10, %v18598_v62, 0.0 }
 0x7a1   :  { %v18602_v20 = vpop.eup %15729 }
 0x7a2   :  { %4383 = vadd.xlane.f32.xlu0 %v4382_v48  ;;  %4290 = vmax.xlane.f32.xlu1 %v4289_v41  ;;  %21557 = vst [vmem:[#allocation93_spill] sm:$0xff] %v18602_v20  ;;  %v4421_v5 = vsel %vm4227_vm9, %v18602_v20, 0.0 }
 0x7a6   :  { %4389 = vadd.xlane.f32.xlu0 %v4388_v39  ;;  %4401 = vadd.xlane.f32.xlu1 %v4400_v2 }
 0x7aa   :  { %4404 = vadd.xlane.f32.xlu0 %v4403_v54  ;;  %4419 = vadd.xlane.f32.xlu1 %v4418_v31 }
 0x7ae   :  { %4407 = vadd.xlane.f32.xlu0 %v4406_v45 }
 0x7b2   :  { %4422 = vadd.xlane.f32.xlu0 %v4421_v5 }
 0x807   :  { %v4249_v56 = vpop.xlane.xlu1 %4248 }
 0x808   :  { %v4307_v53 = vsub.f32 %v18497_v24, %v4249_v56 }
 0x80a   :  { %v4337_v48 = vmul.f32 1.442695, %v4307_v53 }
 0x80b   :  { %v4252_v41 = vpop.xlane.xlu0 %4251 }
 0x80c   :  { %15731 = vpow2.f32 %v4337_v48  ;;  %v4308_v39 = vsub.f32 %v18501_v51, %v4252_v41 }
 0x80e   :  { %v4339_v2 = vmul.f32 1.442695, %v4308_v39 }
 0x80f   :  { %v4255_v54 = vpop.xlane.xlu1 %4254 }
 0x810   :  { %15733 = vpow2.f32 %v4339_v2  ;;  %v4309_v31 = vsub.f32 %v18505_v34, %v4255_v54 }
 0x812   :  { %v4341_v6 = vmul.f32 1.442695, %v4309_v31 }
 0x813   :  { %v4267_v44 = vpop.xlane.xlu1 %4266 }
 0x814   :  { %15735 = vpow2.f32 %v4341_v6  ;;  %v4313_v45 = vsub.f32 %v18510_v23, %v4267_v44 }
 0x816   :  { %v18610_v42 = vpop.eup %15731  ;;  %v4349_v5 = vmul.f32 1.442695, %v4313_v45 }
 0x817   :  { %v4294_v1 = vpop.xlane.xlu1 %4293  ;;  %v4270_v24 = vpop.xlane.xlu0 %4269  ;;  %v4391_v56 = vsel %vm4227_vm9, %v18610_v42, 0.0 }
 0x818   :  { %15737 = vpow2.f32 %v4349_v5  ;;  %v4322_v51 = vsub.f32 %v18513_v15, %v4294_v1  ;;  %v4314_v53 = vsub.f32 %v18518_v26, %v4270_v24  ;;  %4392 = vadd.xlane.f32.xlu1 %v4391_v56 }
 0x81a   :  { %v18616_v34 = vpop.eup %15733  ;;  %v4367_v48 = vmul.f32 1.442695, %v4322_v51  ;;  %v4351_v6 = vmul.f32 1.442695, %v4314_v53 }
 0x81b   :  { %v4282_v41 = vpop.xlane.xlu0 %4281  ;;  %v4273_v44 = vpop.xlane.xlu1 %4272  ;;  %v4394_v23 = vsel %vm4227_vm9, %v18616_v34, 0.0 }
 0x81c   :  { %15739 = vpow2.f32 %v4367_v48  ;;  %v4318_v39 = vsub.f32 %v18522_v63, %v4282_v41  ;;  %v4315_v2 = vsub.f32 %v18528_v0, %v4273_v44  ;;  %4395 = vadd.xlane.f32.xlu0 %v4394_v23 }
 0x81d   :  { %15741 = vpow2.f32 %v4351_v6 }
 0x81e   :  { %v18622_v1 = vpop.eup %15735  ;;  %v4359_v26 = vmul.f32 1.442695, %v4318_v39  ;;  %v4353_v15 = vmul.f32 1.442695, %v4315_v2 }
 0x81f   :  { %v4297_v54 = vpop.xlane.xlu0 %4296  ;;  %v4285_v31 = vpop.xlane.xlu1 %4284  ;;  %v4397_v45 = vsel %vm4234_vm10, %v18622_v1, 0.0 }
 0x820   :  { %15743 = vpow2.f32 %v4359_v26  ;;  %v4323_v5 = vsub.f32 %v18531_v18, %v4297_v54  ;;  %v4319_v24 = vsub.f32 %v18538_v40, %v4285_v31  ;;  %4398 = vadd.xlane.f32.xlu1 %v4397_v45 }
 0x821   :  { %15745 = vpow2.f32 %v4353_v15 }
 0x822   :  { %v18628_v63 = vpop.eup %15737  ;;  %v4369_v0 = vmul.f32 1.442695, %v4323_v5  ;;  %v4361_v56 = vmul.f32 1.442695, %v4319_v24 }
 0x823   :  { %21558 = vst [vmem:[#allocation94_spill] sm:$0xff] %v18628_v63  ;;  %v4375_v51 = vpop.xlane.xlu1 %4374  ;;  %v4288_v53 = vpop.xlane.xlu0 %4287  ;;  %v4409_v48 = vsel %vm4227_vm9, %v18628_v63, 0.0 }
 0x824   :  { %15747 = vpow2.f32 %v4369_v0  ;;  %v4320_v6 = vsub.f32 %v18548_v43, %v4288_v53  ;;  %4410 = vadd.xlane.f32.xlu1 %v4409_v48 }
 0x825   :  { %15749 = vpow2.f32 %v4361_v56 }
 0x826   :  { %v18633_v41 = vpop.eup %15739  ;;  %15751 = vrcp.f32 %v4375_v51  ;;  %v4363_v18 = vmul.f32 1.442695, %v4320_v6 }
 0x827   :  { %21559 = vst [vmem:[#allocation95_spill] sm:$0xff] %v18633_v41  ;;  %v18635_v40 = vpop.eup %15741  ;;  %v4381_v44 = vpop.xlane.xlu1 %4380  ;;  %v4436_v39 = vsel %vm4227_vm9, %v18633_v41, 0.0 }
 0x828   :  { %21560 = vst [vmem:[#allocation96_spill] sm:$0xff] %v18635_v40  ;;  %v4300_v23 = vpop.xlane.xlu0 %4299  ;;  %15753 = vpow2.f32 %v4363_v18  ;;  %v4412_v26 = vsel %vm4227_vm9, %v18635_v40, 0.0  ;;  %4437 = vadd.xlane.f32.xlu1 %v4436_v39 }
 0x829   :  { %v4324_v2 = vsub.f32 %v18552_v10, %v4300_v23  ;;  %15755 = vrcp.f32 %v4381_v44  ;;  %4413 = vadd.xlane.f32.xlu0 %v4412_v26 }
 0x82a   :  { %v18642_v43 = vpop.eup %15743 }
 0x82b   :  { %21561 = vst [vmem:[#allocation97_spill] sm:$0xff] %v18642_v43  ;;  %v4371_v15 = vmul.f32 1.442695, %v4324_v2  ;;  %v18644_v54 = vpop.eup %15745  ;;  %v4387_v31 = vpop.xlane.xlu1 %4386  ;;  %v4424_v5 = vsel %vm4234_vm10, %v18642_v43, 0.0 }
 0x82c   :  { %21562 = vst [vmem:[#allocation98_spill] sm:$0xff] %v18644_v54  ;;  %v4378_v45 = vpop.xlane.xlu0 %4377  ;;  %v4415_v10 = vsel %vm4234_vm10, %v18644_v54, 0.0 }
 0x82d   :  { %15757 = vpow2.f32 %v4371_v15  ;;  %4425 = vadd.xlane.f32.xlu0 %v4424_v5  ;;  %4416 = vadd.xlane.f32.xlu1 %v4415_v10 }
 0x82e   :  { %15759 = vrcp.f32 %v4387_v31  ;;  %v18650_v24 = vpop.eup %15747 }
 0x82f   :  { %21563 = vst [vmem:[#allocation99_spill] sm:$0xff] %v18650_v24  ;;  %15761 = vrcp.f32 %v4378_v45  ;;  %v18652_v0 = vpop.eup %15749  ;;  %v18654_v53 = vpop.xlane.xlu1 %4290  ;;  %v4439_v48 = vsel %vm4227_vm9, %v18650_v24, 0.0 }
 0x830   :  { %21564 = vst [vmem:[#allocation100_spill] sm:$0xff] %v18652_v0  ;;  %v4384_v56 = vpop.xlane.xlu0 %4383  ;;  %v15752_v6 = vpop.eup %15751  ;;  %v4427_v18 = vsel %vm4227_vm9, %v18652_v0, 0.0 }
 0x831   :  { %15763 = vrcp.f32 %v4384_v56  ;;  %v4469_v23 = vmul.f32 %v15752_v6, %v4375_v51  ;;  %4440 = vadd.xlane.f32.xlu0 %v4439_v48  ;;  %4428 = vadd.xlane.f32.xlu1 %v4427_v18 }
 0x832   :  { %v18660_v39 = vpop.eup %15753 }
 0x833   :  { %21565 = vst [vmem:[#allocation101_spill] sm:$0xff] %v18660_v39  ;;  %v15756_v2 = vpop.eup %15755  ;;  %v4402_v15 = vpop.xlane.xlu1 %4401  ;;  %v4430_v5 = vsel %vm4227_vm9, %v18660_v39, 0.0  ;;  %v4493_v17 = vsub.f32 2.0, %v4469_v23 }
 0x834   :  { %v4390_v26 = vpop.xlane.xlu0 %4389  ;;  %v4471_v10 = vmul.f32 %v15756_v2, %v4381_v44 }
 0x835   :  { %15765 = vrcp.f32 %v4390_v26  ;;  %4431 = vadd.xlane.f32.xlu0 %v4430_v5  ;;  %v4517_v41 = vmul.f32 %v15752_v6, %v4493_v17 }
 0x836   :  { %15767 = vrcp.f32 %v4402_v15  ;;  %v4495_v0 = vsub.f32 2.0, %v4471_v10 }
 0x837   :  { %v18664_v28 = vpop.eup %15757  ;;  %v4541_v63 = vmul.f32 %v18545_v3, %v4517_v41 }
 0x838   :  { %21566 = vst [vmem:[#allocation102_spill] sm:$0xff] %v18664_v28  ;;  %v15760_v22 = vpop.eup %15759  ;;  %v4405_v51 = vpop.xlane.xlu0 %4404  ;;  %v4442_v48 = vsel %vm4234_vm10, %v18664_v28, 0.0  ;;  %v4519_v23 = vmul.f32 %v15756_v2, %v4495_v0 }
 0x839   :  { %v15762_v18 = vpop.eup %15761  ;;  %v4473_v57 = vmul.f32 %v15760_v22, %v4387_v31  ;;  %15769 = vrcp.f32 %v4405_v51  ;;  %4443 = vadd.xlane.f32.xlu0 %v4442_v48 }
 0x83a   :  { %v4470_v24 = vmul.f32 %v15762_v18, %v4378_v45  ;;  %v4543_v28 = vmul.f32 %v18558_v47, %v4519_v23 }
 0x83b   :  { %v15764_v39 = vpop.eup %15763  ;;  %v4497_v44 = vsub.f32 2.0, %v4473_v57  ;;  %v4565_v57 = vsel %vm4227_vm9, %v4541_v63, 0.0 }
 0x83c   :  { %v4494_v54 = vsub.f32 2.0, %v4470_v24  ;;  %v4472_v5 = vmul.f32 %v15764_v39, %v4384_v56  ;;  %v4408_v43 = vpop.xlane.xlu0 %4407  ;;  %v4568_v47 = vsel %vm4234_vm10, %v4543_v28, 0.0 }
 0x83d   :  { %15771 = vrcp.f32 %v4408_v43  ;;  %v4521_v13 = vmul.f32 %v15760_v22, %v4497_v44 }
 0x83e   :  { %v4518_v10 = vmul.f32 %v15762_v18, %v4494_v54  ;;  %v4496_v40 = vsub.f32 2.0, %v4472_v5 }
 0x83f   :  { %v15766_v20 = vpop.eup %15765  ;;  %v4545_v3 = vmul.f32 %v18567_v30, %v4521_v13 }
 0x840   :  { %v4542_v31 = vmul.f32 %v18561_v49, %v4518_v10  ;;  %v4520_v17 = vmul.f32 %v15764_v39, %v4496_v40  ;;  %v15768_v45 = vpop.eup %15767  ;;  %v4474_v6 = vmul.f32 %v15766_v20, %v4390_v26 }
 0x841   :  { %v4478_v56 = vmul.f32 %v15768_v45, %v4402_v15  ;;  %v4577_v48 = vsel %vm4227_vm9, %v4545_v3, 0.0 }
 0x842   :  { %v4566_v24 = vsel %vm4227_vm9, %v4542_v31, 0.0  ;;  %v4544_v0 = vmul.f32 %v18576_v38, %v4520_v17  ;;  %v4498_v22 = vsub.f32 2.0, %v4474_v6  ;;  %15176 = vrot.lane.b32.xlu1 %v17931_v35, %s16180_s25 }
 0x843   :  { %v15770_v2 = vpop.eup %15769  ;;  %v4567_v41 = vadd.f32 %v4566_v24, %v4565_v57  ;;  %v4502_v49 = vsub.f32 2.0, %v4478_v56 }
 0x844   :  { %v4479_v40 = vmul.f32 %v15770_v2, %v4405_v51  ;;  %v4576_v63 = vsel %vm4227_vm9, %v4544_v0, 0.0  ;;  %v4522_v39 = vmul.f32 %v15766_v20, %v4498_v22 }
 0x845   :  { %v4569_v54 = vadd.f32 %v4568_v47, %v4567_v41  ;;  %v4526_v26 = vmul.f32 %v15768_v45, %v4502_v49  ;;  %v4578_v18 = vadd.f32 %v4577_v48, %v4576_v63  ;;  %v4321_v63 = vsub.f32 %v18570_v36, %v18654_v53 }
 0x846   :  { %v4503_v38 = vsub.f32 2.0, %v4479_v40  ;;  %v4546_v13 = vmul.f32 %v18584_v33, %v4522_v39  ;;  %5280 = vrot.lane.b32.xlu1 %v17942_v52, %s16180_s25  ;;  %v2909_v40 = vmul.f32 %v17918_v58, %v17959_v27  ;;  %v21572_v27 = vld [vmem:[#allocation49_spill] sm:$0xff] }
 0x847   :  { %v15772_v15 = vpop.eup %15771  ;;  %v4570_v30 = vrot.slane %v4569_v54, 4  ;;  %v4550_v20 = vmul.f32 %v18578_v14, %v4526_v26  ;;  %v21568_v26 = vld [vmem:[#allocation38_spill] sm:$0xff]  ;;  %v4365_v53 = vmul.f32 1.442695, %v4321_v63  ;;  %v21594_v63 = vld [vmem:[#allocation45_spill] sm:$0xff] }
 0x848   :  { %v4527_v44 = vmul.f32 %v15770_v2, %v4503_v38  ;;  %v4480_v28 = vmul.f32 %v15772_v15, %v4408_v43  ;;  %v4579_v51 = vsel %vm4234_vm10, %v4546_v13, 0.0  ;;  %v21569_v38 = vld [vmem:[#allocation37_spill] sm:$0xff]  ;;  %v18706_v58 = vadd.f32 %v17910_v16, %v2909_v40  ;;  %v21592_v40 = vld [vmem:[#allocation52_spill] sm:$0xff] }
 0x849   :  { %v4571_v23 = vadd.f32 %v4570_v30, %v4569_v54  ;;  %v4580_v5 = vadd.f32 %v4579_v51, %v4578_v18  ;;  %v4598_v0 = vsel %vm4227_vm9, %v4550_v20, 0.0  ;;  %v21567_v54 = vld [vmem:[#allocation42_spill] sm:$0xff]  ;;  %v21573_v18 = vld [vmem:[#allocation48_spill] sm:$0xff]  ;;  %v21575_v51 = vld [vmem:[#allocation47_spill] sm:$0xff]  ;;  %15773 = vpow2.f32 %v4365_v53 }
 0x84a   :  { %v4551_v10 = vmul.f32 %v18592_v29, %v4527_v44  ;;  %v4504_v31 = vsub.f32 2.0, %v4480_v28  ;;  %21571 = vst [vmem:[#allocation42_spill] sm:$0xff] %v18706_v58  ;;  %v21574_v44 = vld [vmem:[#allocation51_spill] sm:$0xff]  ;;  %v21597_v53 = vld [vmem:[#allocation58_spill] sm:$0xff] }
 0x84b   :  { %v4572_v17 = vrot.slane %v4571_v23, 2  ;;  %v4581_v45 = vrot.slane %v4580_v5, 4  ;;  %v2921_v28 = vmul.f32 %v21574_v44, %v21573_v18 }
 0x84c   :  { %v4599_v6 = vsel %vm4227_vm9, %v4551_v10, 0.0  ;;  %v4528_v33 = vmul.f32 %v15772_v15, %v4504_v31  ;;  %v21570_v15 = vpack.c.bf16 %v21568_v26, %v21569_v38  ;;  %v21578_v10 = vld [vmem:[#allocation33_spill] sm:$0xff]  ;;  %v21595_v26 = vld [vmem:[#allocation66_spill] sm:$0xff]  ;;  %v4423_v38 = vpop.xlane.xlu0 %4422 }
 0x84d   :  { %v4573_v57 = vadd.f32 %v4572_v17, %v4571_v23  ;;  %v4582_v24 = vadd.f32 %v4581_v45, %v4580_v5  ;;  %v4600_v2 = vadd.f32 %v4599_v6, %v4598_v0  ;;  %v21576_v5 = vld [vmem:[#allocation46_spill] sm:$0xff]  ;;  %v18725_v17 = vadd.f32 %v17910_v16, %v2921_v28  ;;  %v21583_v0 = vld [vmem:[#allocation60_spill] sm:$0xff] }
 0x84e   :  { %v4552_v43 = vmul.f32 %v18598_v62, %v4528_v33  ;;  %v21577_v20 = vpack.c.bf16 %v21575_v51, %v21576_v5  ;;  %v21580_v6 = vld [vmem:[#allocation62_spill] sm:$0xff]  ;;  %v21581_v33 = vld [vmem:[#allocation64_spill] sm:$0xff] }
 0x84f   :  { %v4574_v56 = vrot.slane %v4573_v57, 1  ;;  %v4583_v3 = vrot.slane %v4582_v24, 2  ;;  %15181 = vrot.lane.b32.xlu0 %v17963_v32, %s16180_s25  ;;  %21579 = vst [vmem:[#allocation38_spill] sm:$0xff] %v18725_v17 }
 0x850   :  { %v4601_v41 = vsel %vm4234_vm10, %v4552_v43, 0.0 }
 0x851   :  { %v4602_v14 = vadd.f32 %v4601_v41, %v4600_v2  ;;  %v4575_v29 = vadd.f32 %v4574_v56, %v4573_v57  ;;  %v4584_v22 = vadd.f32 %v4583_v3, %v4582_v24  ;;  %v2933_v57 = vmul.f32 %v21581_v33, %v21580_v6  ;;  %v21582_v24 = vld [vmem:[#allocation61_spill] sm:$0xff]  ;;  %v21586_v41 = vld [vmem:[#allocation63_spill] sm:$0xff] }
 0x852   :  { %v21584_v43 = vpack.c.bf16 %v21582_v24, %v21583_v0 }
 0x853   :  { %v4603_v47 = vrot.slane %v4602_v14, 4  ;;  %v4653_v49 = vmul.f32 0.05, %v4575_v29  ;;  %15186 = vrot.lane.b32.xlu0 %v21567_v54, %s16180_s25  ;;  %v4585_v62 = vrot.slane %v4584_v22, 1  ;;  %v18742_v56 = vadd.f32 %v17910_v16, %v2933_v57  ;;  %v18748_v2 = vpop.eup %15773  ;;  %v21588_v29 = vld [vmem:[#allocation40_spill] sm:$0xff] }
 0x854   :  { %v4433_v3 = vsel %vm4234_vm10, %v18748_v2, 0.0 }
 0x855   :  { %v4604_v39 = vadd.f32 %v4603_v47, %v4602_v14  ;;  %13878 = vmatmul.mubr.msk.f32.vlgmr.msra.gmra.mrb[116].mxu1 %vm4227_vm9, %v4653_v49  ;;  %v4586_v48 = vadd.f32 %v4585_v62, %v4584_v22  ;;  %21585 = vst [vmem:[#allocation37_spill] sm:$0xff] %v18742_v56  ;;  %v21587_v14 = vld [vmem:[#allocation72_spill] sm:$0xff]  ;;  %v21590_v47 = vld [vmem:[#allocation35_spill] sm:$0xff] }
 0x856   :  { %14810 = vmatpush3.bf16.msra.mxu1 %v21570_v15  ;;  %13886 = vmatprep.mubr.msk.f32.mxu1 %vm16177_vm5, %v21533_v25  ;;  %v21589_v22 = vld [vmem:[#allocation32_spill] sm:$0xff] }
 0x857   :  { %v4605_v30 = vrot.slane %v4604_v39, 2  ;;  %13884 = vmatprep.subr.mxu1 %v21533_v25  ;;  %15191 = vrot.lane.b32.xlu0 %v21572_v27, %s16180_s25  ;;  %v4654_v36 = vmul.f32 0.05, %v4586_v48  ;;  %v21591_v49 = vld [vmem:[#allocation36_spill] sm:$0xff] }
 0x858   :  { %v21593_v62 = vld [vmem:[#allocation44_spill] sm:$0xff] }
 0x859   :  { %v4606_v13 = vadd.f32 %v4605_v30, %v4604_v39  ;;  %v4420_v39 = vpop.xlane.xlu1 %4419  ;;  %v21596_v30 = vld [vmem:[#allocation57_spill] sm:$0xff] }
 0x85a   :  { %13885 = vmatpush3.msk.msra.mxu1 %vm4664_vm11, %v18706_v58 }
 0x85b   :  { %14814 = vmatprep.subr.bf16.mxu1 %v21538_v37  ;;  %13887 = vmatmul.mubr.msk.f32.vlgmr.msra.gmra.mrb[118].mxu1 %vm4227_vm9, %v4654_v36  ;;  %v4607_v23 = vrot.slane %v4606_v13, 1 }
 0x85c   :  { %14816 = vmatpush3.bf16.msra.mxu1 %v21577_v20  ;;  %5272 = vrot.lane.b32.xlu0 %v21578_v10, %s16181_s21 }
 0x85d   :  { %13902 = vmatprep.subr.mxu1 %v21533_v25  ;;  %13904 = vmatprep.mubr.msk.f32.mxu1 %vm16177_vm5, %v21533_v25  ;;  %v4608_v31 = vadd.f32 %v4607_v23, %v4606_v13 }
 0x85f   :  { %v4656_v45 = vmul.f32 0.05, %v4608_v31 }
 0x860   :  { %13903 = vmatpush3.msk.msra.mxu1 %vm4664_vm11, %v18725_v17  ;;  %5274 = vrot.lane.b32.xlu0 %v17942_v52, %s16181_s21 }
 0x861   :  { %14820 = vmatprep.subr.bf16.mxu1 %v21538_v37  ;;  %13905 = vmatmul.mubr.msk.f32.vlgmr.msra.gmra.mrb[120].mxu1 %vm4227_vm9, %v4656_v45 }
 0x862   :  { %14822 = vmatpush3.bf16.msra.mxu1 %v21584_v43  ;;  %13922 = vmatprep.mubr.msk.f32.mxu1 %vm16177_vm5, %v21533_v25 }
 0x863   :  { %13920 = vmatprep.subr.mxu1 %v21533_v25 }
 0x864   :  { %5488 = vrot.lane.b32.xlu0 %v18038_v50, %s16180_s25 }
 0x866   :  { %13921 = vmatpush3.msk.msra.mxu1 %vm4664_vm11, %v18742_v56 }
 0x867   :  { %14826 = vmatprep.subr.bf16.mxu1 %v21538_v37 }
 0x868   :  { %15196 = vrot.lane.b32.xlu0 %v18332_v61, %s16180_s25 }
 0x86a   :  { %4434 = vadd.xlane.f32.xlu1 %v4433_v3 }
 0x86c   :  { %15201 = vrot.lane.b32.xlu0 %v21586_v41, %s16180_s25 }
 0x870   :  { %5480 = vrot.lane.b32.xlu0 %v17982_v12, %s16181_s21 }
 0x874   :  { %5482 = vrot.lane.b32.xlu0 %v18038_v50, %s16181_s21 }
 0x878   :  { %5696 = vrot.lane.b32.xlu0 %v18102_v59, %s16180_s25 }
 0x87b   :  { %5384 = vrot.lane.b32.xlu1 %v21588_v29, %s16180_s25 }
 0x87c   :  { %15206 = vrot.lane.b32.xlu0 %v21587_v14, %s16180_s25 }
 0x87f   :  { %5270 = vrot.lane.b32.xlu1 %v21589_v22, %s16181_s21 }
 0x880   :  { %15211 = vrot.lane.b32.xlu0 %v18300_v4, %s16180_s25 }
 0x883   :  { %5374 = vrot.lane.b32.xlu1 %v21590_v47, %s16181_s21 }
 0x884   :  { %5688 = vrot.lane.b32.xlu0 %v18321_v7, %s16181_s21 }
 0x887   :  { %5376 = vrot.lane.b32.xlu1 %v21591_v49, %s16181_s21 }
 0x888   :  { %5690 = vrot.lane.b32.xlu0 %v18102_v59, %s16181_s21 }
 0x88b   :  { %5378 = vrot.lane.b32.xlu1 %v21588_v29, %s16181_s21 }
 0x88c   :  { %5904 = vrot.lane.b32.xlu0 %v18337_v60, %s16180_s25 }
 0x88f   :  { %5592 = vrot.lane.b32.xlu1 %v21592_v40, %s16180_s25 }
 0x890   :  { %5894 = vrot.lane.b32.xlu0 %v18111_v11, %s16181_s21 }
 0x893   :  { %5478 = vrot.lane.b32.xlu1 %v17979_v21, %s16181_s21 }
 0x894   :  { %5896 = vrot.lane.b32.xlu0 %v18114_v8, %s16181_s21 }
 0x897   :  { %5582 = vrot.lane.b32.xlu1 %v21593_v62, %s16181_s21 }
 0x898   :  { %5898 = vrot.lane.b32.xlu0 %v18337_v60, %s16181_s21 }
 0x89b   :  { %5584 = vrot.lane.b32.xlu1 %v21594_v63, %s16181_s21 }
 0x89f   :  { %5586 = vrot.lane.b32.xlu1 %v21592_v40, %s16181_s21 }
 0x8a3   :  { %5800 = vrot.lane.b32.xlu1 %v21595_v26, %s16180_s25 }
 0x8a5   :  { %v4393_v15 = vpop.xlane.xlu1 %4392 }
 0x8a6   :  { %15775 = vrcp.f32 %v4393_v15 }
 0x8a7   :  { %5686 = vrot.lane.b32.xlu1 %v18326_v46, %s16181_s21 }
 0x8a9   :  { %v4396_v48 = vpop.xlane.xlu0 %4395 }
 0x8aa   :  { %15777 = vrcp.f32 %v4396_v48 }
 0x8ab   :  { %5790 = vrot.lane.b32.xlu1 %v21596_v30, %s16181_s21  ;;  %15779 = vrcp.f32 %v4420_v39 }
 0x8ac   :  { %15781 = vrcp.f32 %v4423_v38 }
 0x8ad   :  { %v4399_v36 = vpop.xlane.xlu1 %4398 }
 0x8ae   :  { %15783 = vrcp.f32 %v4399_v36 }
 0x8af   :  { %5792 = vrot.lane.b32.xlu1 %v21597_v53, %s16181_s21 }
 0x8b0   :  { %v15776_v13 = vpop.eup %15775 }
 0x8b1   :  { %v4475_v18 = vmul.f32 %v15776_v13, %v4393_v15  ;;  %v4411_v44 = vpop.xlane.xlu1 %4410 }
 0x8b2   :  { %15785 = vrcp.f32 %v4411_v44 }
 0x8b3   :  { %v4499_v28 = vsub.f32 2.0, %v4475_v18  ;;  %5794 = vrot.lane.b32.xlu1 %v21595_v26, %s16181_s21 }
 0x8b4   :  { %v15778_v23 = vpop.eup %15777 }
 0x8b5   :  { %v4476_v51 = vmul.f32 %v15778_v23, %v4396_v48  ;;  %v4438_v5 = vpop.xlane.xlu1 %4437  ;;  %v15780_v20 = vpop.eup %15779  ;;  %v4523_v6 = vmul.f32 %v15776_v13, %v4499_v28 }
 0x8b6   :  { %v4414_v31 = vpop.xlane.xlu0 %4413  ;;  %v15782_v45 = vpop.eup %15781  ;;  %v4484_v43 = vmul.f32 %v15780_v20, %v4420_v39 }
 0x8b7   :  { %v4500_v33 = vsub.f32 2.0, %v4476_v51  ;;  %15787 = vrcp.f32 %v4414_v31  ;;  %6008 = vrot.lane.b32.xlu1 %v18311_v9, %s16180_s25  ;;  %v4485_v3 = vmul.f32 %v15782_v45, %v4423_v38  ;;  %v4547_v48 = vmul.f32 %v18610_v42, %v4523_v6 }
 0x8b8   :  { %v15784_v57 = vpop.eup %15783  ;;  %15789 = vrcp.f32 %v4438_v5  ;;  %v4508_v51 = vsub.f32 2.0, %v4484_v43 }
 0x8b9   :  { %v4524_v24 = vmul.f32 %v15778_v23, %v4500_v33  ;;  %v4477_v0 = vmul.f32 %v15784_v57, %v4399_v36  ;;  %v4509_v39 = vsub.f32 2.0, %v4485_v3  ;;  %v4587_v33 = vsel %vm4227_vm9, %v4547_v48, 0.0 }
 0x8ba   :  { %v4426_v15 = vpop.xlane.xlu0 %4425  ;;  %v4417_v18 = vpop.xlane.xlu1 %4416 }
 0x8bb   :  { %v4548_v53 = vmul.f32 %v18616_v34, %v4524_v24  ;;  %v4501_v30 = vsub.f32 2.0, %v4477_v0  ;;  %15791 = vrcp.f32 %v4426_v15  ;;  %5998 = vrot.lane.b32.xlu1 %v18288_v55, %s16181_s21  ;;  %v4533_v55 = vmul.f32 %v15782_v45, %v4509_v39  ;;  %v21599_v39 = vld [vmem:[#allocation92_spill] sm:$0xff] }
 0x8bc   :  { %v15786_v13 = vpop.eup %15785  ;;  %15793 = vrcp.f32 %v4417_v18 }
 0x8bd   :  { %v4588_v28 = vsel %vm4227_vm9, %v4548_v53, 0.0  ;;  %v4525_v23 = vmul.f32 %v15784_v57, %v4501_v30  ;;  %v4481_v36 = vmul.f32 %v15786_v13, %v4411_v44  ;;  %v4532_v57 = vmul.f32 %v15780_v20, %v4508_v51  ;;  %v21600_v51 = vld [vmem:[#allocation96_spill] sm:$0xff] }
 0x8be   :  { %v4441_v38 = vpop.xlane.xlu0 %4440  ;;  %v4589_v34 = vadd.f32 %v4588_v28, %v4587_v33  ;;  %v21598_v28 = vld [vmem:[#allocation93_spill] sm:$0xff] }
 0x8bf   :  { %v4549_v42 = vmul.f32 %v18622_v1, %v4525_v23  ;;  %15795 = vrcp.f32 %v4441_v38  ;;  %6000 = vrot.lane.b32.xlu1 %v18285_v19, %s16181_s21  ;;  %v4505_v0 = vsub.f32 2.0, %v4481_v36  ;;  %v4557_v33 = vmul.f32 %v21598_v28, %v4533_v55  ;;  %v21602_v28 = vld [vmem:[#allocation97_spill] sm:$0xff] }
 0x8c1   :  { %v15788_v6 = vpop.eup %15787  ;;  %v4590_v24 = vsel %vm4234_vm10, %v4549_v42, 0.0  ;;  %v4529_v23 = vmul.f32 %v15786_v13, %v4505_v0  ;;  %v4621_v0 = vsel %vm4227_vm9, %v4557_v33, 0.0 }
 0x8c2   :  { %v4591_v53 = vadd.f32 %v4590_v24, %v4589_v34  ;;  %v4482_v30 = vmul.f32 %v15788_v6, %v4414_v31  ;;  %v18821_v44 = vpop.xlane.xlu0 %4431  ;;  %v15790_v43 = vpop.eup %15789  ;;  %v4556_v31 = vmul.f32 %v21599_v39, %v4532_v57 }
 0x8c3   :  { %6002 = vrot.lane.b32.xlu1 %v18311_v9, %s16181_s21  ;;  %v4490_v9 = vmul.f32 %v15790_v43, %v4438_v5 }
 0x8c4   :  { %v4592_v1 = vrot.slane %v4591_v53, 4  ;;  %v4506_v3 = vsub.f32 2.0, %v4482_v30  ;;  %v21601_v30 = vld [vmem:[#allocation94_spill] sm:$0xff] }
 0x8c5   :  { %v15792_v48 = vpop.eup %15791  ;;  %v4553_v62 = vmul.f32 %v21601_v30, %v4529_v23  ;;  %v21603_v23 = vld [vmem:[#allocation98_spill] sm:$0xff]  ;;  %v21604_v30 = vld [vmem:[#allocation55_spill] sm:$0xff] }
 0x8c6   :  { %v15794_v19 = vpop.eup %15793  ;;  %v4593_v46 = vadd.f32 %v4592_v1, %v4591_v53  ;;  %v4530_v42 = vmul.f32 %v15788_v6, %v4506_v3  ;;  %v4486_v36 = vmul.f32 %v15792_v48, %v4426_v15  ;;  %v4444_v45 = vpop.xlane.xlu0 %4443  ;;  %v4620_v15 = vsel %vm4227_vm9, %v4556_v31, 0.0 }
 0x8c7   :  { %v4483_v34 = vmul.f32 %v15794_v19, %v4417_v18  ;;  %15797 = vrcp.f32 %v4444_v45  ;;  %v4514_v3 = vsub.f32 2.0, %v4490_v9  ;;  %v4609_v39 = vsel %vm4227_vm9, %v4553_v62, 0.0  ;;  %v21606_v62 = vld [vmem:[#allocation99_spill] sm:$0xff] }
 0x8c8   :  { %v4594_v20 = vrot.slane %v4593_v46, 2  ;;  %v4554_v24 = vmul.f32 %v21600_v51, %v4530_v42  ;;  %v4510_v26 = vsub.f32 2.0, %v4486_v36  ;;  %v4622_v36 = vadd.f32 %v4621_v0, %v4620_v15 }
 0x8c9   :  { %v15796_v63 = vpop.eup %15795  ;;  %v4507_v13 = vsub.f32 2.0, %v4483_v34  ;;  %v4538_v31 = vmul.f32 %v15790_v43, %v4514_v3  ;;  %v21609_v43 = vld [vmem:[#allocation53_spill] sm:$0xff]  ;;  %15799 = vrcp.f32 %v18821_v44 }
 0x8ca   :  { %v4595_v55 = vadd.f32 %v4594_v20, %v4593_v46  ;;  %v4534_v53 = vmul.f32 %v15792_v48, %v4510_v26  ;;  %v4491_v6 = vmul.f32 %v15796_v63, %v4441_v38  ;;  %v4610_v57 = vsel %vm4227_vm9, %v4554_v24, 0.0 }
 0x8cb   :  { %v4531_v18 = vmul.f32 %v15794_v19, %v4507_v13  ;;  %v4611_v33 = vadd.f32 %v4610_v57, %v4609_v39  ;;  %v21605_v13 = vld [vmem:[#allocation59_spill] sm:$0xff] }
 0x8cc   :  { %v4596_v1 = vrot.slane %v4595_v55, 1  ;;  %v4558_v42 = vmul.f32 %v21602_v28, %v4534_v53  ;;  %v4515_v5 = vsub.f32 2.0, %v4491_v6  ;;  %v2927_v0 = vmul.f32 %v21605_v13, %v21604_v30  ;;  %v21607_v57 = vld [vmem:[#allocation95_spill] sm:$0xff]  ;;  %v21608_v28 = vld [vmem:[#allocation54_spill] sm:$0xff] }
 0x8cd   :  { %v4555_v34 = vmul.f32 %v21603_v23, %v4531_v18  ;;  %v21610_v3 = vpack.c.bf16 %v21608_v28, %v21609_v43 }
 0x8ce   :  { %v4597_v51 = vadd.f32 %v4596_v1, %v4595_v55  ;;  %v4623_v46 = vsel %vm4234_vm10, %v4558_v42, 0.0  ;;  %v4539_v26 = vmul.f32 %v15796_v63, %v4515_v5  ;;  %v4562_v63 = vmul.f32 %v21607_v57, %v4538_v31 }
 0x8cf   :  { %v4624_v38 = vadd.f32 %v4623_v46, %v4622_v36  ;;  %v4612_v48 = vsel %vm4234_vm10, %v4555_v34, 0.0  ;;  %v18849_v5 = vadd.f32 %v17910_v16, %v2927_v0  ;;  %v21613_v0 = vld [vmem:[#allocation74_spill] sm:$0xff] }
 0x8d0   :  { %v4613_v19 = vadd.f32 %v4612_v48, %v4611_v33  ;;  %v4655_v24 = vmul.f32 0.05, %v4597_v51  ;;  %v4563_v6 = vmul.f32 %v21606_v62, %v4539_v26  ;;  %v4642_v34 = vsel %vm4227_vm9, %v4562_v63, 0.0  ;;  %v21612_v51 = vld [vmem:[#allocation102_spill] sm:$0xff] }
 0x8d1   :  { %v15798_v20 = vpop.eup %15797  ;;  %v4625_v9 = vrot.slane %v4624_v38, 4  ;;  %21611 = vst [vmem:[#allocation49_spill] sm:$0xff] %v18849_v5 }
 0x8d2   :  { %v4614_v53 = vrot.slane %v4613_v19, 4  ;;  %v4492_v15 = vmul.f32 %v15798_v20, %v4444_v45  ;;  %13896 = vmatmul.mubr.msk.f32.vlgmr.msra.gmra.mrb[108].mxu0 %vm4227_vm9, %v4655_v24  ;;  %v4643_v36 = vsel %vm4227_vm9, %v4563_v6, 0.0  ;;  %v15182_v24 = vpop.permute.xlu0 %15181 }
 0x8d3   :  { %v4626_v55 = vadd.f32 %v4625_v9, %v4624_v38  ;;  %14819 = vmatpush3.bf16.msra.mxu0 %v21610_v3  ;;  %13913 = vmatprep.mubr.msk.f32.mxu0 %vm16177_vm5, %v21533_v25  ;;  %v4644_v26 = vadd.f32 %v4643_v36, %v4642_v34  ;;  %v21620_v3 = vld [vmem:[#allocation70_spill] sm:$0xff] }
 0x8d4   :  { %v4615_v18 = vadd.f32 %v4614_v53, %v4613_v19  ;;  %v4516_v1 = vsub.f32 2.0, %v4492_v15  ;;  %13911 = vmatprep.subr.mxu0 %v21533_v25  ;;  %v21614_v53 = vld [vmem:[#allocation75_spill] sm:$0xff] }
 0x8d5   :  { %v4627_v42 = vrot.slane %v4626_v55, 2  ;;  %v2945_v62 = vmul.f32 %v21614_v53, %v21613_v0  ;;  %v21615_v15 = vld [vmem:[#allocation71_spill] sm:$0xff] }
 0x8d6   :  { %v4616_v45 = vrot.slane %v4615_v18, 2  ;;  %v4540_v39 = vmul.f32 %v15798_v20, %v4516_v1  ;;  %v21618_v1 = vld [vmem:[#allocation81_spill] sm:$0xff] }
 0x8d7   :  { %v4628_v23 = vadd.f32 %v4627_v42, %v4626_v55  ;;  %13912 = vmatpush3.msk.msra.mxu0 %vm4664_vm11, %v18849_v5  ;;  %v21616_v55 = vld [vmem:[#allocation87_spill] sm:$0xff]  ;;  %v21621_v42 = vld [vmem:[#allocation69_spill] sm:$0xff]  ;;  %v18872_v36 = vadd.f32 %v17910_v16, %v2945_v62 }
 0x8d8   :  { %v4564_v33 = vmul.f32 %v21612_v51, %v4540_v39  ;;  %v4617_v46 = vadd.f32 %v4616_v45, %v4615_v18  ;;  %14823 = vmatprep.subr.bf16.mxu0 %v21538_v37  ;;  %v2939_v57 = vmul.f32 %v21616_v55, %v21615_v15  ;;  %v21617_v18 = vld [vmem:[#allocation82_spill] sm:$0xff]  ;;  %v21622_v45 = vpack.c.bf16 %v21620_v3, %v21621_v42  ;;  %v18874_v39 = vpop.permute.xlu0 %15186 }
 0x8d9   :  { %v4629_v38 = vrot.slane %v4628_v23, 1  ;;  %v21619_v28 = vpack.c.bf16 %v21617_v18, %v21618_v1 }
 0x8da   :  { %v4645_v48 = vsel %vm4234_vm10, %v4564_v33, 0.0  ;;  %v4618_v31 = vrot.slane %v4617_v46, 1  ;;  %v15184_v33 = vunpack.i.h.bf16 %v15182_v24 }
 0x8db   :  { %v4646_v19 = vadd.f32 %v4645_v48, %v4644_v26  ;;  %v4630_v9 = vadd.f32 %v4629_v38, %v4628_v23  ;;  %v18880_v23 = vadd.f32 %v17910_v16, %v2939_v57  ;;  %v4429_v26 = vpop.xlane.xlu1 %4428 }
 0x8dc   :  { %v4619_v20 = vadd.f32 %v4618_v31, %v4617_v46  ;;  %v15183_v46 = vunpack.i.l.bf16 %v15182_v24  ;;  %v15192_v38 = vpop.permute.xlu0 %15191  ;;  %15801 = vrcp.f32 %v4429_v26 }
 0x8dd   :  { %v4647_v30 = vrot.slane %v4646_v19, 4  ;;  %v4658_v13 = vmul.f32 0.05, %v4630_v9  ;;  %v15194_v1 = vunpack.i.h.bf16 %v15192_v38 }
 0x8de   :  { %v4657_v6 = vmul.f32 0.05, %v4619_v20  ;;  %v14834_v31 = vpack.c.bf16 %v15184_v33, %v15183_v46 }
 0x8df   :  { %v4648_v63 = vadd.f32 %v4647_v30, %v4646_v19  ;;  %13923 = vmatmul.mubr.msk.f32.vlgmr.msra.gmra.mrb[122].mxu1 %vm4227_vm9, %v4658_v13  ;;  %v18896_v9 = vpop.permute.xlu1 %15176  ;;  %v15800_v30 = vpop.eup %15799 }
 0x8e0   :  { %13914 = vmatmul.mubr.msk.f32.vlgmr.msra.gmra.mrb[110].mxu0 %vm4227_vm9, %v4657_v6  ;;  %14828 = vmatpush3.bf16.msra.mxu1 %v21619_v28  ;;  %v18899_v24 = vpop.permute.xlu0 %5272  ;;  %v4488_v53 = vmul.f32 %v15800_v30, %v18821_v44  ;;  %v15193_v28 = vunpack.i.l.bf16 %v15192_v38 }
 0x8e1   :  { %v4649_v43 = vrot.slane %v4648_v63, 2  ;;  %14825 = vmatpush3.bf16.msra.mxu0 %v21622_v45  ;;  %13938 = vmatprep.subr.mxu1 %v21533_v25  ;;  %v21624_v45 = vld [vmem:[#allocation101_spill] sm:$0xff] }
 0x8e2   :  { %13929 = vmatprep.subr.mxu0 %v21533_v25  ;;  %13940 = vmatprep.mubr.msk.f32.mxu1 %vm16177_vm5, %v21533_v25  ;;  %v4512_v55 = vsub.f32 2.0, %v4488_v53 }
 0x8e3   :  { %v4650_v34 = vadd.f32 %v4649_v43, %v4648_v63  ;;  %13931 = vmatprep.mubr.msk.f32.mxu0 %vm16177_vm5, %v21533_v25  ;;  %v18901_v20 = vpop.permute.xlu1 %5280 }
 0x8e4   :  { %13939 = vmatpush3.msk.msra.mxu1 %vm4664_vm11, %v18872_v36  ;;  %v18903_v13 = vpop.permute.xlu0 %5274  ;;  %v4536_v18 = vmul.f32 %v15800_v30, %v4512_v55 }
 0x8e5   :  { %13930 = vmatpush3.msk.msra.mxu0 %vm4664_vm11, %v18880_v23  ;;  %14833 = vmatprep.subr.bf16.mxu1 %v21538_v37  ;;  %v4651_v51 = vrot.slane %v4650_v34, 1 }
 0x8e6   :  { %14829 = vmatprep.subr.bf16.mxu0 %v21538_v37  ;;  %v15802_v0 = vpop.eup %15801 }
 0x8e7   :  { %v4652_v16 = vadd.f32 %v4651_v51, %v4650_v34  ;;  %v4487_v6 = vmul.f32 %v15802_v0, %v4429_v26  ;;  %v4560_v34 = vmul.f32 %v21624_v45, %v4536_v18  ;;  %v14842_v51 = vpack.c.bf16 %v15194_v1, %v15193_v28  ;;  %v21625_v26 = vld [vmem:[#allocation100_spill] sm:$0xff] }
 0x8e8   :  { %v18906_v15 = vpop.permute.xlu0 %5488 }
 0x8e9   :  { %v4660_v48 = vmul.f32 0.05, %v4652_v16  ;;  %v4511_v63 = vsub.f32 2.0, %v4487_v6 }
 0x8eb   :  { %13941 = vmatmul.mubr.msk.f32.vlgmr.msra.gmra.mrb[124].mxu1 %vm4227_vm9, %v4660_v48  ;;  %v4535_v44 = vmul.f32 %v15802_v0, %v4511_v63 }
 0x8ec   :  { %14836 = vmatpush3.bf16.xpose.msk.msra.mxu1 %vm18161_vm8, %v14834_v31  ;;  %13964 = vmatprep.mubr.msk.f32.mxu1 %vm16177_vm5, %v21533_v25  ;;  %v18912_v3 = vpop.permute.xlu0 %15196  ;;  %v4632_v31 = vsel %vm4227_vm9, %v4560_v34, 0.0 }
 0x8ed   :  { %13962 = vmatprep.subr.mxu1 %v21533_v25  ;;  %v4559_v16 = vmul.f32 %v21625_v26, %v4535_v44  ;;  %v15179_v26 = vunpack.i.h.bf16 %v18896_v9 }
 0x8ef   :  { %v4631_v53 = vsel %vm4227_vm9, %v4559_v16, 0.0  ;;  %v15178_v16 = vunpack.i.l.bf16 %v18896_v9 }
 0x8f0   :  { %v15202_v38 = vpop.permute.xlu0 %15201  ;;  %v4633_v6 = vadd.f32 %v4632_v31, %v4631_v53 }
 0x8f1   :  { %v15204_v45 = vunpack.i.h.bf16 %v15202_v38  ;;  %v15203_v34 = vunpack.i.l.bf16 %v15202_v38  ;;  %v14830_v53 = vpack.c.bf16 %v15179_v26, %v15178_v16  ;;  %v15199_v26 = vunpack.i.h.bf16 %v18912_v3 }
 0x8f4   :  { %v18929_v63 = vpop.permute.xlu0 %5480 }
 0x8f7   :  { %v4435_v62 = vpop.xlane.xlu1 %4434 }
 0x8f8   :  { %15803 = vrcp.f32 %v4435_v62 }
 0x8fb   :  { %v5385_v57 = vpop.permute.xlu1 %5384 }
 0x8fc   :  { %13963 = vmatpush3.xpose.msk.msra.mxu1 %vm3403_vm7, %v5385_v57 }
 0x8fd   :  { %14841 = vmatprep.subr.bf16.mxu1 %v21538_v37 }
 0x8ff   :  { %v18910_v43 = vpop.permute.xlu1 %5270 }
 0x902   :  { %v15804_v42 = vpop.eup %15803 }
 0x903   :  { %v4489_v33 = vmul.f32 %v15804_v42, %v4435_v62  ;;  %v5375_v46 = vpop.permute.xlu1 %5374 }
 0x904   :  { %13965 = vmatmul.mubr.msk.f32.vlgmr.msra.gmra.mrb[126].mxu1 %vm3403_vm7, %v5375_v46 }
 0x905   :  { %v4513_v48 = vsub.f32 2.0, %v4489_v33  ;;  %14844 = vmatpush3.bf16.xpose.msk.msra.mxu1 %vm18161_vm8, %v14842_v51  ;;  %13967 = vmatprep.mubr.msk.f32.mxu1 %vm16177_vm5, %v21533_v25 }
 0x906   :  { %13992 = vmatprep.subr.mxu1 %v21533_v25 }
 0x907   :  { %v4537_v30 = vmul.f32 %v15804_v42, %v4513_v48  ;;  %v5377_v0 = vpop.permute.xlu1 %5376  ;;  %v14850_v48 = vpack.c.bf16 %v15204_v45, %v15203_v34 }
 0x908   :  { %13968 = vmatmul.mubr.msk.f32.gmra.mrb[128].mxu1 %vm3403_vm7, %v5377_v0 }
 0x909   :  { %v4561_v62 = vmul.f32 %v18748_v2, %v4537_v30  ;;  %13970 = vmatprep.mubr.msk.f32.mxu1 %vm16177_vm5, %v21533_v25  ;;  %v18936_v2 = vpop.permute.xlu0 %5482 }
 0x90b   :  { %v4634_v55 = vsel %vm4234_vm10, %v4561_v62, 0.0  ;;  %v5379_v57 = vpop.permute.xlu1 %5378 }
 0x90c   :  { %v4635_v18 = vadd.f32 %v4634_v55, %v4633_v6  ;;  %13971 = vmatmul.mubr.msk.f32.gmra.mrb[130].mxu1 %vm3403_vm7, %v5379_v57  ;;  %v15189_v55 = vunpack.i.h.bf16 %v18874_v39  ;;  %v15188_v57 = vunpack.i.l.bf16 %v18874_v39 }
 0x90d   :  { %13994 = vmatprep.mubr.msk.f32.mxu1 %vm16177_vm5, %v21533_v25  ;;  %v18942_v30 = vpop.permute.xlu0 %5696 }
 0x90e   :  { %v4636_v1 = vrot.slane %v4635_v18, 4 }
 0x90f   :  { %v5593_v28 = vpop.permute.xlu1 %5592 }
 0x910   :  { %v4637_v44 = vadd.f32 %v4636_v1, %v4635_v18  ;;  %13993 = vmatpush3.xpose.msk.msra.mxu1 %vm3403_vm7, %v5593_v28  ;;  %v14838_v28 = vpack.c.bf16 %v15189_v55, %v15188_v57 }
 0x911   :  { %14849 = vmatprep.subr.bf16.mxu1 %v21538_v37  ;;  %v18956_v9 = vpop.permute.xlu0 %15206 }
 0x912   :  { %v4638_v42 = vrot.slane %v4637_v44, 2 }
 0x913   :  { %v18938_v51 = vpop.permute.xlu1 %5478 }
 0x914   :  { %v4639_v33 = vadd.f32 %v4638_v42, %v4637_v44 }
 0x915   :  { %v15212_v1 = vpop.permute.xlu0 %15211 }
 0x916   :  { %v4640_v46 = vrot.slane %v4639_v33, 1  ;;  %v15214_v44 = vunpack.i.h.bf16 %v15212_v1  ;;  %v15213_v42 = vunpack.i.l.bf16 %v15212_v1 }
 0x917   :  { %v5583_v31 = vpop.permute.xlu1 %5582 }
 0x918   :  { %13995 = vmatmul.mubr.msk.f32.vlgmr.msra.gmra.mrb[132].mxu1 %vm3403_vm7, %v5583_v31  ;;  %v4641_v0 = vadd.f32 %v4640_v46, %v4639_v33  ;;  %v14858_v39 = vpack.c.bf16 %v15214_v44, %v15213_v42 }
 0x919   :  { %14852 = vmatpush3.bf16.xpose.msk.msra.mxu1 %vm18161_vm8, %v14850_v48  ;;  %13997 = vmatprep.mubr.msk.f32.mxu1 %vm16177_vm5, %v21533_v25 }
 0x91a   :  { %v4659_v38 = vmul.f32 0.05, %v4641_v0  ;;  %14022 = vmatprep.subr.mxu1 %v21533_v25  ;;  %v5689_v0 = vpop.permute.xlu0 %5688 }
 0x91b   :  { %v5585_v62 = vpop.permute.xlu1 %5584 }
 0x91c   :  { %13932 = vmatmul.mubr.msk.f32.vlgmr.msra.gmra.mrb[112].mxu0 %vm4227_vm9, %v4659_v38  ;;  %13998 = vmatmul.mubr.msk.f32.gmra.mrb[134].mxu1 %vm3403_vm7, %v5585_v62  ;;  %v15208_v38 = vunpack.i.l.bf16 %v18956_v9 }
 0x91d   :  { %14832 = vmatpush3.bf16.xpose.msk.msra.mxu0 %vm18161_vm8, %v14830_v53  ;;  %14000 = vmatprep.mubr.msk.f32.mxu1 %vm16177_vm5, %v21533_v25 }
 0x91e   :  { %13947 = vmatprep.subr.mxu0 %v21533_v25  ;;  %13949 = vmatprep.mubr.msk.f32.mxu0 %vm16177_vm5, %v21533_v25  ;;  %v5691_v53 = vpop.permute.xlu0 %5690 }
 0x91f   :  { %v5587_v6 = vpop.permute.xlu1 %5586 }
 0x920   :  { %14001 = vmatmul.mubr.msk.f32.gmra.mrb[136].mxu1 %vm3403_vm7, %v5587_v6 }
 0x921   :  { %14024 = vmatprep.mubr.msk.f32.mxu1 %vm16177_vm5, %v21533_v25 }
 0x923   :  { %v5801_v18 = vpop.permute.xlu1 %5800 }
 0x924   :  { %14023 = vmatpush3.xpose.msk.msra.mxu1 %vm3403_vm7, %v5801_v18 }
 0x925   :  { %13948 = vmatpush3.xpose.msk.msra.mxu0 %vm3403_vm7, %v18901_v20  ;;  %14857 = vmatprep.subr.bf16.mxu1 %v21538_v37 }
 0x926   :  { %14837 = vmatprep.subr.bf16.mxu0 %v21538_v37 }
 0x927   :  { %v5687_v34 = vpop.permute.xlu1 %5686 }
 0x928   :  { %v18971_v45 = vpop.f32.mrb[116].mxu1  ;;  %13950 = vmatmul.mubr.msk.f32.vlgmr.msra.gmra.mrb[114].mxu0 %vm3403_vm7, %v18910_v43 }
 0x929   :  { %21626 = vst [vmem:[#allocation48_spill] sm:$0xff] %v18971_v45  ;;  %v13879_v33 = vpop.f32.mrb[117].mxu1  ;;  %14840 = vmatpush3.bf16.xpose.msk.msra.mxu0 %vm18161_vm8, %v14838_v28  ;;  %13952 = vmatprep.mubr.msk.f32.mxu0 %vm16177_vm5, %v21533_v25  ;;  %v21637_v45 = vld [vmem:[#allocation50_spill] sm:$0xff] }
 0x92a   :  { %13977 = vmatprep.subr.mxu0 %v21533_v25 }
 0x92b   :  { %v5791_v20 = vpop.permute.xlu1 %5790 }
 0x92c   :  { %13953 = vmatmul.mubr.msk.f32.gmra.mrb[116].mxu0 %vm3403_vm7, %v18899_v24  ;;  %14025 = vmatmul.mubr.msk.f32.vlgmr.msra.gmra.mrb[138].mxu1 %vm3403_vm7, %v5791_v20  ;;  %v15198_v24 = vunpack.i.l.bf16 %v18912_v3 }
 0x92d   :  { %14860 = vmatpush3.bf16.xpose.msk.msra.mxu1 %vm18161_vm8, %v14858_v39  ;;  %13955 = vmatprep.mubr.msk.f32.mxu0 %vm16177_vm5, %v21533_v25 }
 0x92e   :  { %v18983_v46 = vpop.f32.mrb[118].mxu1  ;;  %14027 = vmatprep.mubr.msk.f32.mxu1 %vm16177_vm5, %v21533_v25  ;;  %14052 = vmatprep.subr.mxu1 %v21533_v25  ;;  %v14846_v48 = vpack.c.bf16 %v15199_v26, %v15198_v24 }
 0x92f   :  { %21627 = vst [vmem:[#allocation51_spill] sm:$0xff] %v18983_v46  ;;  %v13888_v43 = vpop.f32.mrb[119].mxu1  ;;  %v5793_v16 = vpop.permute.xlu1 %5792 }
 0x930   :  { %13956 = vmatmul.mubr.msk.f32.gmra.mrb[118].mxu0 %vm3403_vm7, %v18903_v13  ;;  %14028 = vmatmul.mubr.msk.f32.gmra.mrb[140].mxu1 %vm3403_vm7, %v5793_v16 }
 0x931   :  { %13978 = vmatpush3.xpose.msk.msra.mxu0 %vm3403_vm7, %v18906_v15  ;;  %13979 = vmatprep.mubr.msk.f32.mxu0 %vm16177_vm5, %v21533_v25 }
 0x932   :  { %14030 = vmatprep.mubr.msk.f32.mxu1 %vm16177_vm5, %v21533_v25  ;;  %14845 = vmatprep.subr.bf16.mxu0 %v21538_v37 }
 0x933   :  { %v5795_v31 = vpop.permute.xlu1 %5794 }
 0x934   :  { %v19004_v3 = vpop.f32.mrb[120].mxu1  ;;  %13980 = vmatmul.mubr.msk.f32.vlgmr.msra.gmra.mrb[120].mxu0 %vm3403_vm7, %v18938_v51  ;;  %14031 = vmatmul.mubr.msk.f32.gmra.mrb[142].mxu1 %vm3403_vm7, %v5795_v31  ;;  %v15209_v51 = vunpack.i.h.bf16 %v18956_v9 }
 0x935   :  { %21628 = vst [vmem:[#allocation47_spill] sm:$0xff] %v19004_v3  ;;  %v13906_v13 = vpop.f32.mrb[121].mxu1  ;;  %14848 = vmatpush3.bf16.xpose.msk.msra.mxu0 %vm18161_vm8, %v14846_v48  ;;  %13982 = vmatprep.mubr.msk.f32.mxu0 %vm16177_vm5, %v21533_v25 }
 0x936   :  { %14054 = vmatprep.mubr.msk.f32.mxu1 %vm16177_vm5, %v21533_v25  ;;  %14007 = vmatprep.subr.mxu0 %v21533_v25 }
 0x937   :  { %v6009_v15 = vpop.permute.xlu1 %6008 }
 0x938   :  { %13983 = vmatmul.mubr.msk.f32.gmra.mrb[122].mxu0 %vm3403_vm7, %v18929_v63  ;;  %14053 = vmatpush3.xpose.msk.msra.mxu1 %vm3403_vm7, %v6009_v15  ;;  %v14854_v63 = vpack.c.bf16 %v15209_v51, %v15208_v38 }
 0x939   :  { %13985 = vmatprep.mubr.msk.f32.mxu0 %vm16177_vm5, %v21533_v25  ;;  %14864 = vmatprep.subr.bf16.mxu1 %v21538_v37 }
 0x93b   :  { %v5999_v62 = vpop.permute.xlu1 %5998 }
 0x93c   :  { %13986 = vmatmul.mubr.msk.f32.gmra.mrb[124].mxu0 %vm3403_vm7, %v18936_v2  ;;  %14055 = vmatmul.mubr.msk.f32.vlgmr.msra.gmra.mrb[144].mxu1 %vm3403_vm7, %v5999_v62  ;;  %v5905_v2 = vpop.permute.xlu0 %5904 }
 0x93d   :  { %14008 = vmatpush3.xpose.msk.msra.mxu0 %vm3403_vm7, %v18942_v30  ;;  %14009 = vmatprep.mubr.msk.f32.mxu0 %vm16177_vm5, %v21533_v25 }
 0x93e   :  { %14057 = vmatprep.mubr.msk.f32.mxu1 %vm16177_vm5, %v21533_v25  ;;  %14853 = vmatprep.subr.bf16.mxu0 %v21538_v37 }
 0x93f   :  { %v6001_v9 = vpop.permute.xlu1 %6000 }
 0x940   :  { %14010 = vmatmul.mubr.msk.f32.vlgmr.msra.gmra.mrb[126].mxu0 %vm3403_vm7, %v5687_v34  ;;  %14058 = vmatmul.mubr.msk.f32.gmra.mrb[146].mxu1 %vm3403_vm7, %v6001_v9  ;;  %v5895_v6 = vpop.permute.xlu0 %5894 }
 0x941   :  { %14856 = vmatpush3.bf16.xpose.msk.msra.mxu0 %vm18161_vm8, %v14854_v63  ;;  %14012 = vmatprep.mubr.msk.f32.mxu0 %vm16177_vm5, %v21533_v25 }
 0x942   :  { %14060 = vmatprep.mubr.msk.f32.mxu1 %vm16177_vm5, %v21533_v25  ;;  %14037 = vmatprep.subr.mxu0 %v21533_v25 }
 0x943   :  { %v6003_v30 = vpop.permute.xlu1 %6002 }
 0x944   :  { %14013 = vmatmul.mubr.msk.f32.gmra.mrb[128].mxu0 %vm3403_vm7, %v5689_v0  ;;  %14061 = vmatmul.mubr.msk.f32.gmra.mrb[148].mxu1 %vm3403_vm7, %v6003_v30  ;;  %v5897_v55 = vpop.permute.xlu0 %5896 }
 0x945   :  { %14015 = vmatprep.mubr.msk.f32.mxu0 %vm16177_vm5, %v21533_v25  ;;  %14078 = vmatprep.mubr.msk.f32.mxu1 %vm16177_vm5, %v21533_v25 }
 0x948   :  { %14016 = vmatmul.mubr.msk.f32.gmra.mrb[130].mxu0 %vm3403_vm7, %v5691_v53  ;;  %v5899_v57 = vpop.permute.xlu0 %5898 }
 0x949   :  { %14038 = vmatpush3.xpose.msk.msra.mxu0 %vm3403_vm7, %v5905_v2  ;;  %14039 = vmatprep.mubr.msk.f32.mxu0 %vm16177_vm5, %v21533_v25 }
 0x94a   :  { %14861 = vmatprep.subr.bf16.mxu0 %v21538_v37 }
 0x94c   :  { %14040 = vmatmul.mubr.msk.f32.vlgmr.msra.gmra.mrb[132].mxu0 %vm3403_vm7, %v5895_v6 }
 0x94d   :  { %14042 = vmatprep.mubr.msk.f32.mxu0 %vm16177_vm5, %v21533_v25 }
 0x950   :  { %14043 = vmatmul.mubr.msk.f32.gmra.mrb[134].mxu0 %vm3403_vm7, %v5897_v55 }
 0x951   :  { %14045 = vmatprep.mubr.msk.f32.mxu0 %vm16177_vm5, %v21533_v25 }
 0x954   :  { %14046 = vmatmul.mubr.msk.f32.gmra.mrb[136].mxu0 %vm3403_vm7, %v5899_v57 }
 0x955   :  { %14069 = vmatprep.mubr.msk.f32.mxu0 %vm16177_vm5, %v21533_v25 }
 0x9a5   :  { %v19063_v18 = vpop.f32.mrb[108].mxu0 }
 0x9a6   :  { %21629 = vst [vmem:[#allocation46_spill] sm:$0xff] %v19063_v18  ;;  %v13897_v1 = vpop.f32.mrb[109].mxu0 }
 0x9b2   :  { %v19065_v28 = vpop.f32.mrb[122].mxu1 }
 0x9b3   :  { %21630 = vst [vmem:[#allocation33_spill] sm:$0xff] %v19065_v28  ;;  %v19067_v44 = vpop.f32.mrb[110].mxu0  ;;  %v13924_v42 = vpop.f32.mrb[123].mxu1 }
 0x9b4   :  { %21631 = vst [vmem:[#allocation62_spill] sm:$0xff] %v19067_v44  ;;  %v13915_v34 = vpop.f32.mrb[111].mxu0 }
 0x9be   :  { %v19069_v33 = vpop.f32.mrb[124].mxu1 }
 0x9bf   :  { %21632 = vst [vmem:[#allocation64_spill] sm:$0xff] %v19069_v33  ;;  %v13942_v39 = vpop.f32.mrb[125].mxu1 }
 0x9d7   :  { %v5464_v20 = vpop.f32.mrb[126].mxu1 }
 0x9d8   :  { %v19071_v43 = vmul.f32 0.25, %v5464_v20  ;;  %v13966_v26 = vpop.f32.mrb[127].mxu1 }
 0x9da   :  { %v6135_v24 = vsel %vm4227_vm9, %v19071_v43, -inf }
 0x9db   :  { %6136 = vmax.xlane.f32.xlu0 %v6135_v24  ;;  %v5469_v16 = vpop.f32.mrb[128].mxu1 }
 0x9dc   :  { %v19075_v48 = vmul.f32 0.25, %v5469_v16  ;;  %v13969_v31 = vpop.f32.mrb[129].mxu1 }
 0x9de   :  { %v6138_v13 = vsel %vm4227_vm9, %v19075_v48, -inf }
 0x9df   :  { %6139 = vmax.xlane.f32.xlu0 %v6138_v13  ;;  %v5474_v0 = vpop.f32.mrb[130].mxu1 }
 0x9e0   :  { %v19079_v15 = vmul.f32 0.25, %v5474_v0  ;;  %v13972_v51 = vpop.f32.mrb[131].mxu1 }
 0x9e2   :  { %v6141_v38 = vsel %vm4234_vm10, %v19079_v15, -inf }
 0x9e3   :  { %6142 = vmax.xlane.f32.xlu0 %v6141_v38 }
 0x9eb   :  { %v5672_v53 = vpop.f32.mrb[132].mxu1 }
 0x9ec   :  { %v19083_v62 = vmul.f32 0.25, %v5672_v53  ;;  %v13996_v63 = vpop.f32.mrb[133].mxu1 }
 0x9ee   :  { %v6153_v9 = vsel %vm4227_vm9, %v19083_v62, -inf }
 0x9ef   :  { %v19087_v2 = vpop.f32.mrb[112].mxu0  ;;  %6154 = vmax.xlane.f32.xlu1 %v6153_v9  ;;  %v5677_v30 = vpop.f32.mrb[134].mxu1 }
 0x9f0   :  { %21633 = vst [vmem:[#allocation61_spill] sm:$0xff] %v19087_v2  ;;  %v19089_v6 = vmul.f32 0.25, %v5677_v30  ;;  %v13933_v55 = vpop.f32.mrb[113].mxu0  ;;  %v13999_v57 = vpop.f32.mrb[135].mxu1 }
 0x9f2   :  { %v6156_v1 = vsel %vm4227_vm9, %v19089_v6, -inf }
 0x9f3   :  { %6157 = vmax.xlane.f32.xlu0 %v6156_v1  ;;  %v5682_v42 = vpop.f32.mrb[136].mxu1 }
 0x9f4   :  { %v19093_v34 = vmul.f32 0.25, %v5682_v42  ;;  %v14002_v39 = vpop.f32.mrb[137].mxu1 }
 0x9f6   :  { %v6159_v20 = vsel %vm4234_vm10, %v19093_v34, -inf }
 0x9f7   :  { %6160 = vmax.xlane.f32.xlu0 %v6159_v20 }
 0x9fb   :  { %v19097_v26 = vpop.f32.mrb[114].mxu0 }
 0x9fc   :  { %v13951_v24 = vpop.f32.mrb[115].mxu0 }
 0x9ff   :  { %v19099_v16 = vpop.f32.mrb[116].mxu0  ;;  %v5880_v31 = vpop.f32.mrb[138].mxu1 }
 0xa00   :  { %v13954_v13 = vpop.f32.mrb[117].mxu0  ;;  %v19101_v0 = vmul.f32 0.25, %v5880_v31  ;;  %v14026_v51 = vpop.f32.mrb[139].mxu1 }
 0xa02   :  { %v6171_v38 = vsel %vm4227_vm9, %v19101_v0, -inf }
 0xa03   :  { %v19105_v53 = vpop.f32.mrb[118].mxu0  ;;  %6172 = vmax.xlane.f32.xlu1 %v6171_v38  ;;  %v5885_v63 = vpop.f32.mrb[140].mxu1 }
 0xa04   :  { %v13957_v9 = vpop.f32.mrb[119].mxu0  ;;  %v19107_v30 = vmul.f32 0.25, %v5885_v63  ;;  %v14029_v55 = vpop.f32.mrb[141].mxu1 }
 0xa06   :  { %v6174_v57 = vsel %vm4227_vm9, %v19107_v30, -inf }
 0xa07   :  { %v19111_v1 = vpop.f32.mrb[120].mxu0  ;;  %6175 = vmax.xlane.f32.xlu0 %v6174_v57  ;;  %v5890_v42 = vpop.f32.mrb[142].mxu1 }
 0xa08   :  { %v13981_v39 = vpop.f32.mrb[121].mxu0  ;;  %v19113_v20 = vmul.f32 0.25, %v5890_v42  ;;  %v14032_v24 = vpop.f32.mrb[143].mxu1  ;;  %v21634_v42 = vld [vmem:[#allocation34_spill] sm:$0xff] }
 0xa0a   :  { %v6177_v31 = vsel %vm4234_vm10, %v19113_v20, -inf }
 0xa0b   :  { %v19117_v13 = vpop.f32.mrb[122].mxu0  ;;  %6178 = vmax.xlane.f32.xlu0 %v6177_v31  ;;  %v21635_v31 = vld [vmem:[#allocation91_spill] sm:$0xff] }
 0xa0c   :  { %v13984_v51 = vpop.f32.mrb[123].mxu0 }
 0xa0f   :  { %v19119_v38 = vpop.f32.mrb[124].mxu0  ;;  %v6088_v63 = vpop.f32.mrb[144].mxu1 }
 0xa10   :  { %v13987_v9 = vpop.f32.mrb[125].mxu0  ;;  %v14056_v55 = vpop.f32.mrb[145].mxu1 }
 0xa11   :  { %v21636_v55 = vld [vmem:[#allocation43_spill] sm:$0xff] }
 0xa13   :  { %v19121_v2 = vpop.f32.mrb[126].mxu0  ;;  %v6093_v57 = vpop.f32.mrb[146].mxu1 }
 0xa14   :  { %v14011_v33 = vpop.f32.mrb[127].mxu0  ;;  %15216 = vrot.lane.b32.xlu1 %v21634_v42, %s16181_s21  ;;  %v14059_v39 = vpop.f32.mrb[147].mxu1 }
 0xa15   :  { %v21638_v39 = vld [vmem:[#allocation39_spill] sm:$0xff] }
 0xa17   :  { %v19125_v24 = vpop.f32.mrb[128].mxu0  ;;  %v6098_v28 = vpop.f32.mrb[148].mxu1 }
 0xa18   :  { %v14014_v44 = vpop.f32.mrb[129].mxu0  ;;  %6564 = vrot.lane.b32.xlu1 %v21635_v31, %s16181_s21  ;;  %v14062_v51 = vpop.f32.mrb[149].mxu1 }
 0xa19   :  { %v21639_v51 = vld [vmem:[#allocation56_spill] sm:$0xff] }
 0xa1b   :  { %v19129_v18 = vpop.f32.mrb[130].mxu0 }
 0xa1c   :  { %v14017_v9 = vpop.f32.mrb[131].mxu0  ;;  %15226 = vrot.lane.b32.xlu1 %v21636_v55, %s16181_s21 }
 0xa1f   :  { %v19133_v3 = vpop.f32.mrb[132].mxu0 }
 0xa20   :  { %v14041_v33 = vpop.f32.mrb[133].mxu0  ;;  %15231 = vrot.lane.b32.xlu1 %v21637_v45, %s16181_s21  ;;  %v21641_v45 = vld [vmem:[#allocation90_spill] sm:$0xff] }
 0xa21   :  { %15221 = vrot.lane.b32.xlu0 %v21638_v39, %s16181_s21  ;;  %v21640_v33 = vld [vmem:[#allocation65_spill] sm:$0xff] }
 0xa22   :  { %v21642_v39 = vld [vmem:[#allocation73_spill] sm:$0xff] }
 0xa23   :  { %v19139_v44 = vpop.f32.mrb[134].mxu0 }
 0xa24   :  { %v14044_v46 = vpop.f32.mrb[135].mxu0  ;;  %15236 = vrot.lane.b32.xlu1 %v21639_v51, %s16181_s21 }
 0xa25   :  { %6649 = vrot.lane.b32.xlu0 %v18706_v58, %s16181_s21  ;;  %v19157_v46 = vmul.f32 0.25, %v6088_v63  ;;  %v19159_v58 = vmul.f32 0.25, %v6093_v57 }
 0xa27   :  { %v19145_v9 = vpop.f32.mrb[136].mxu0 }
 0xa28   :  { %v14047_v55 = vpop.f32.mrb[137].mxu0  ;;  %15241 = vrot.lane.b32.xlu1 %v21640_v33, %s16181_s21  ;;  %v6189_v33 = vsel %vm4227_vm9, %v19157_v46, -inf }
 0xa29   :  { %6734 = vrot.lane.b32.xlu0 %v21641_v45, %s16181_s21  ;;  %v19161_v55 = vmul.f32 0.25, %v6098_v28  ;;  %v6192_v45 = vsel %vm4227_vm9, %v19159_v58, -inf }
 0xa2c   :  { %15246 = vrot.lane.b32.xlu1 %v21642_v39, %s16181_s21 }
 0xa2d   :  { %6819 = vrot.lane.b32.xlu0 %v18725_v17, %s16181_s21  ;;  %v6195_v17 = vsel %vm4234_vm10, %v19161_v55, -inf }
 0xa31   :  { %6904 = vrot.lane.b32.xlu0 %v18849_v5, %s16181_s21 }
 0xa50   :  { %6190 = vmax.xlane.f32.xlu1 %v6189_v33  ;;  %6193 = vmax.xlane.f32.xlu0 %v6192_v45 }
 0xa54   :  { %6196 = vmax.xlane.f32.xlu0 %v6195_v17 }
 0xa68   :  { %v6137_v39 = vpop.xlane.xlu0 %6136 }
 0xa69   :  { %v6201_v63 = vsub.f32 %v19071_v43, %v6137_v39 }
 0xa6b   :  { %v6228_v5 = vmul.f32 1.442695, %v6201_v63 }
 0xa6c   :  { %v6140_v57 = vpop.xlane.xlu0 %6139 }
 0xa6d   :  { %15805 = vpow2.f32 %v6228_v5  ;;  %v6202_v28 = vsub.f32 %v19075_v48, %v6140_v57 }
 0xa6f   :  { %v6230_v51 = vmul.f32 1.442695, %v6202_v28 }
 0xa70   :  { %v6143_v31 = vpop.xlane.xlu0 %6142 }
 0xa71   :  { %15807 = vpow2.f32 %v6230_v51  ;;  %v6203_v42 = vsub.f32 %v19079_v15, %v6143_v31 }
 0xa73   :  { %v6232_v19 = vmul.f32 1.442695, %v6203_v42 }
 0xa75   :  { %15809 = vpow2.f32 %v6232_v19 }
 0xa77   :  { %v19172_v45 = vpop.eup %15805 }
 0xa78   :  { %v6279_v17 = vsel %vm4227_vm9, %v19172_v45, 0.0 }
 0xa79   :  { %6280 = vadd.xlane.f32.xlu1 %v6279_v17 }
 0xa7b   :  { %v19176_v33 = vpop.eup %15807 }
 0xa7c   :  { %v6155_v43 = vpop.xlane.xlu1 %6154  ;;  %v6282_v5 = vsel %vm4227_vm9, %v19176_v33, 0.0 }
 0xa7d   :  { %v6207_v48 = vsub.f32 %v19083_v62, %v6155_v43  ;;  %6283 = vadd.xlane.f32.xlu0 %v6282_v5 }
 0xa7f   :  { %v19181_v39 = vpop.eup %15809  ;;  %v6240_v15 = vmul.f32 1.442695, %v6207_v48 }
 0xa80   :  { %v6158_v42 = vpop.xlane.xlu0 %6157  ;;  %v6285_v19 = vsel %vm4234_vm10, %v19181_v39, 0.0 }
 0xa81   :  { %15811 = vpow2.f32 %v6240_v15  ;;  %v6208_v31 = vsub.f32 %v19089_v6, %v6158_v42  ;;  %6286 = vadd.xlane.f32.xlu0 %v6285_v19 }
 0xa83   :  { %v6242_v51 = vmul.f32 1.442695, %v6208_v31 }
 0xa84   :  { %v6161_v63 = vpop.xlane.xlu0 %6160 }
 0xa85   :  { %15813 = vpow2.f32 %v6242_v51  ;;  %v6209_v57 = vsub.f32 %v19093_v34, %v6161_v63 }
 0xa87   :  { %v6244_v28 = vmul.f32 1.442695, %v6209_v57 }
 0xa89   :  { %15815 = vpow2.f32 %v6244_v28 }
 0xa8b   :  { %v19187_v62 = vpop.eup %15811 }
 0xa8c   :  { %v6297_v17 = vsel %vm4227_vm9, %v19187_v62, 0.0 }
 0xa8d   :  { %6298 = vadd.xlane.f32.xlu1 %v6297_v17 }
 0xa8f   :  { %v19191_v43 = vpop.eup %15813 }
 0xa90   :  { %v6173_v5 = vpop.xlane.xlu1 %6172  ;;  %v6300_v6 = vsel %vm4227_vm9, %v19191_v43, 0.0 }
 0xa91   :  { %v6213_v48 = vsub.f32 %v19101_v0, %v6173_v5  ;;  %6301 = vadd.xlane.f32.xlu0 %v6300_v6 }
 0xa93   :  { %v19196_v15 = vpop.eup %15815  ;;  %v6252_v34 = vmul.f32 1.442695, %v6213_v48 }
 0xa94   :  { %v15217_v42 = vpop.permute.xlu1 %15216  ;;  %v6176_v19 = vpop.xlane.xlu0 %6175  ;;  %v6303_v31 = vsel %vm4234_vm10, %v19196_v15, 0.0 }
 0xa95   :  { %15817 = vpow2.f32 %v6252_v34  ;;  %v15219_v51 = vunpack.i.h.bf16 %v15217_v42  ;;  %v15218_v63 = vunpack.i.l.bf16 %v15217_v42  ;;  %v6214_v57 = vsub.f32 %v19107_v30, %v6176_v19  ;;  %6304 = vadd.xlane.f32.xlu0 %v6303_v31 }
 0xa97   :  { %v14862_v28 = vpack.c.bf16 %v15219_v51, %v15218_v63  ;;  %v6254_v17 = vmul.f32 1.442695, %v6214_v57 }
 0xa98   :  { %v6179_v21 = vpop.xlane.xlu0 %6178  ;;  %v6565_v6 = vpop.permute.xlu1 %6564 }
 0xa99   :  { %15819 = vpow2.f32 %v6254_v17  ;;  %v6215_v0 = vsub.f32 %v19113_v20, %v6179_v21  ;;  %14863 = vmatpush3.bf16.msra.mxu0 %v14862_v28 }
 0xa9a   :  { %14067 = vmatprep.subr.mxu0 %v21533_v25 }
 0xa9b   :  { %v6256_v5 = vmul.f32 1.442695, %v6215_v0 }
 0xa9c   :  { %v15222_v48 = vpop.permute.xlu0 %15221  ;;  %v19220_v63 = vpop.permute.xlu1 %15226 }
 0xa9d   :  { %15821 = vpow2.f32 %v6256_v5  ;;  %v15224_v40 = vunpack.i.h.bf16 %v15222_v48  ;;  %14068 = vmatpush3.msk.msra.mxu0 %vm4664_vm11, %v6565_v6  ;;  %v15223_v34 = vunpack.i.l.bf16 %v15222_v48  ;;  %21643 = vst [vmem:[#allocation60_spill] sm:$0xff] %v19220_v63 }
 0xa9e   :  { %14867 = vmatprep.subr.bf16.mxu0 %v21538_v37 }
 0xa9f   :  { %v19205_v30 = vpop.eup %15817  ;;  %v14865_v42 = vpack.c.bf16 %v15224_v40, %v15223_v34 }
 0xaa0   :  { %v6315_v19 = vsel %vm4227_vm9, %v19205_v30, 0.0  ;;  %v6650_v31 = vpop.permute.xlu0 %6649  ;;  %v19222_v57 = vpop.permute.xlu1 %15231 }
 0xaa1   :  { %6316 = vadd.xlane.f32.xlu1 %v6315_v19  ;;  %14866 = vmatpush3.bf16.msra.mxu1 %v14865_v42 }
 0xaa2   :  { %14076 = vmatprep.subr.mxu1 %v21533_v25 }
 0xaa3   :  { %v19209_v21 = vpop.eup %15819 }
 0xaa4   :  { %v6318_v20 = vsel %vm4227_vm9, %v19209_v21, 0.0  ;;  %v19224_v28 = vpop.permute.xlu1 %15236  ;;  %v19226_v17 = vpop.permute.xlu0 %6734 }
 0xaa5   :  { %6319 = vadd.xlane.f32.xlu0 %v6318_v20  ;;  %14077 = vmatpush3.msk.msra.mxu1 %vm4664_vm11, %v6650_v31  ;;  %21644 = vst [vmem:[#allocation63_spill] sm:$0xff] %v19224_v28  ;;  %21645 = vst [vmem:[#allocation72_spill] sm:$0xff] %v19226_v17 }
 0xaa6   :  { %14870 = vmatprep.subr.bf16.mxu1 %v21538_v37 }
 0xaa7   :  { %v19215_v51 = vpop.eup %15821 }
 0xaa8   :  { %v6321_v40 = vsel %vm4234_vm10, %v19215_v51, 0.0  ;;  %v19228_v0 = vpop.permute.xlu1 %15241  ;;  %v19230_v5 = vpop.permute.xlu0 %6819 }
 0xaa9   :  { %6322 = vadd.xlane.f32.xlu0 %v6321_v40 }
 0xaac   :  { %v19232_v6 = vpop.permute.xlu1 %15246  ;;  %v19234_v48 = vpop.permute.xlu0 %6904 }
 0xaad   :  { %21646 = vst [vmem:[#allocation93_spill] sm:$0xff] %v19232_v6  ;;  %21647 = vst [vmem:[#allocation92_spill] sm:$0xff] %v19234_v48  ;;  %v19244_v48 = vmul.f32 0.25, %v19099_v16 }
 0xadd   :  { %v6191_v34 = vpop.xlane.xlu1 %6190  ;;  %v6194_v42 = vpop.xlane.xlu0 %6193 }
 0xade   :  { %v6219_v19 = vsub.f32 %v19157_v46, %v6191_v34  ;;  %v6220_v20 = vsub.f32 %v19159_v58, %v6194_v42 }
 0xae0   :  { %v6264_v31 = vmul.f32 1.442695, %v6219_v19  ;;  %v6266_v40 = vmul.f32 1.442695, %v6220_v20  ;;  %v19273_v20 = vmul.f32 0.25, %v19119_v38  ;;  %v19288_v38 = vmul.f32 0.25, %v19139_v44 }
 0xae1   :  { %v6197_v63 = vpop.xlane.xlu0 %6196 }
 0xae2   :  { %15823 = vpow2.f32 %v6264_v31  ;;  %v6221_v17 = vsub.f32 %v19161_v55, %v6197_v63  ;;  %v19253_v55 = vmul.f32 0.25, %v19105_v53  ;;  %v6129_v63 = vsel %vm4227_vm9, %v19244_v48, -inf }
 0xae3   :  { %15825 = vpow2.f32 %v6266_v40  ;;  %v19268_v53 = vmul.f32 0.25, %v19117_v13  ;;  %v19283_v13 = vmul.f32 0.25, %v19121_v2  ;;  %v6150_v40 = vsel %vm4234_vm10, %v19273_v20, -inf }
 0xae4   :  { %v6268_v28 = vmul.f32 1.442695, %v6221_v17  ;;  %v19263_v17 = vmul.f32 0.25, %v19111_v1  ;;  %v6132_v42 = vsel %vm4234_vm10, %v19253_v55, -inf  ;;  %v19278_v1 = vmul.f32 0.25, %v19125_v24 }
 0xae5   :  { %v6147_v31 = vsel %vm4227_vm9, %v19268_v53, -inf  ;;  %v19293_v24 = vmul.f32 0.25, %v19129_v18  ;;  %v6183_v2 = vsel %vm4227_vm9, %v19288_v38, -inf }
 0xae6   :  { %15827 = vpow2.f32 %v6268_v28  ;;  %v19260_v28 = vmul.f32 0.25, %v19097_v26  ;;  %v6144_v26 = vsel %vm4227_vm9, %v19263_v17, -inf }
 0xae7   :  { %v6168_v44 = vsel %vm4234_vm10, %v19293_v24, -inf }
 0xae8   :  { %v6126_v19 = vsel %vm4227_vm9, %v19260_v28, -inf }
 0xaec   :  { %v19239_v8 = vpop.eup %15823 }
 0xaed   :  { %v19241_v6 = vpop.eup %15825  ;;  %v6333_v46 = vsel %vm4227_vm9, %v19239_v8, 0.0 }
 0xaee   :  { %6334 = vadd.xlane.f32.xlu1 %v6333_v46  ;;  %v6336_v58 = vsel %vm4227_vm9, %v19241_v6, 0.0  ;;  %v6165_v46 = vsel %vm4227_vm9, %v19278_v1, -inf }
 0xaef   :  { %6337 = vadd.xlane.f32.xlu0 %v6336_v58  ;;  %v6162_v58 = vsel %vm4227_vm9, %v19283_v13, -inf }
 0xaf0   :  { %v19250_v34 = vpop.eup %15827 }
 0xaf1   :  { %v6339_v16 = vsel %vm4234_vm10, %v19250_v34, 0.0 }
 0xaf2   :  { %6130 = vmax.xlane.f32.xlu1 %v6129_v63  ;;  %v19300_v63 = vmul.f32 0.25, %v19133_v3 }
 0xaf3   :  { %6340 = vadd.xlane.f32.xlu0 %v6339_v16 }
 0xaf4   :  { %v6180_v18 = vsel %vm4227_vm9, %v19300_v63, -inf }
 0xaf6   :  { %6133 = vmax.xlane.f32.xlu1 %v6132_v42 }
 0xaf7   :  { %6127 = vmax.xlane.f32.xlu0 %v6126_v19 }
 0xafa   :  { %6145 = vmax.xlane.f32.xlu1 %v6144_v26 }
 0xafb   :  { %6148 = vmax.xlane.f32.xlu0 %v6147_v31 }
 0xafe   :  { %6151 = vmax.xlane.f32.xlu1 %v6150_v40 }
 0xaff   :  { %6166 = vmax.xlane.f32.xlu0 %v6165_v46 }
 0xb02   :  { %6163 = vmax.xlane.f32.xlu1 %v6162_v58 }
 0xb03   :  { %6184 = vmax.xlane.f32.xlu0 %v6183_v2 }
 0xb06   :  { %6169 = vmax.xlane.f32.xlu1 %v6168_v44  ;;  %v6281_v16 = vpop.xlane.xlu1 %6280 }
 0xb07   :  { %15829 = vrcp.f32 %v6281_v16 }
 0xb0a   :  { %6181 = vmax.xlane.f32.xlu1 %v6180_v18  ;;  %v6284_v42 = vpop.xlane.xlu0 %6283  ;;  %v21648_v18 = vld [vmem:[#allocation84_spill] sm:$0xff] }
 0xb0b   :  { %15831 = vrcp.f32 %v6284_v42 }
 0xb0e   :  { %v6287_v19 = vpop.xlane.xlu0 %6286 }
 0xb0f   :  { %15833 = vrcp.f32 %v6287_v19 }
 0xb11   :  { %v15830_v26 = vpop.eup %15829 }
 0xb12   :  { %v6369_v31 = vmul.f32 %v15830_v26, %v6281_v16 }
 0xb14   :  { %v6393_v40 = vsub.f32 2.0, %v6369_v31 }
 0xb15   :  { %v15832_v46 = vpop.eup %15831 }
 0xb16   :  { %v6370_v3 = vmul.f32 %v15832_v46, %v6284_v42  ;;  %v6417_v58 = vmul.f32 %v15830_v26, %v6393_v40 }
 0xb18   :  { %v6394_v2 = vsub.f32 2.0, %v6370_v3  ;;  %v6441_v60 = vmul.f32 %v19172_v45, %v6417_v58 }
 0xb19   :  { %v15834_v49 = vpop.eup %15833  ;;  %6989 = vrot.lane.b32.xlu0 %v18742_v56, %s16181_s21 }
 0xb1a   :  { %v6418_v44 = vmul.f32 %v15832_v46, %v6394_v2  ;;  %v6371_v11 = vmul.f32 %v15834_v49, %v6287_v19  ;;  %v6299_v47 = vpop.xlane.xlu1 %6298  ;;  %v6473_v3 = vsel %vm4227_vm9, %v6441_v60, 0.0 }
 0xb1b   :  { %15835 = vrcp.f32 %v6299_v47  ;;  %15251 = vrot.lane.b32.xlu1 %v21648_v18, %s16181_s21 }
 0xb1c   :  { %v6442_v16 = vmul.f32 %v19176_v33, %v6418_v44  ;;  %v6395_v31 = vsub.f32 2.0, %v6371_v11 }
 0xb1e   :  { %v6474_v42 = vsel %vm4227_vm9, %v6442_v16, 0.0  ;;  %v6419_v26 = vmul.f32 %v15834_v49, %v6395_v31  ;;  %v6302_v40 = vpop.xlane.xlu0 %6301 }
 0xb1f   :  { %15837 = vrcp.f32 %v6302_v40  ;;  %v6475_v19 = vadd.f32 %v6474_v42, %v6473_v3  ;;  %v15233_v42 = vunpack.i.l.bf16 %v19222_v57 }
 0xb20   :  { %v6443_v46 = vmul.f32 %v19181_v39, %v6419_v26  ;;  %v15234_v39 = vunpack.i.h.bf16 %v19222_v57 }
 0xb22   :  { %v6476_v2 = vsel %vm4234_vm10, %v6443_v46, 0.0  ;;  %v6305_v56 = vpop.xlane.xlu0 %6304 }
 0xb23   :  { %v6477_v22 = vadd.f32 %v6476_v2, %v6475_v19  ;;  %15839 = vrcp.f32 %v6305_v56 }
 0xb25   :  { %v15836_v18 = vpop.eup %15835  ;;  %v6478_v45 = vrot.slane %v6477_v22, 4 }
 0xb26   :  { %v6375_v58 = vmul.f32 %v15836_v18, %v6299_v47 }
 0xb27   :  { %v6479_v33 = vadd.f32 %v6478_v45, %v6477_v22  ;;  %v14871_v45 = vpack.c.bf16 %v15234_v39, %v15233_v42 }
 0xb28   :  { %v6399_v11 = vsub.f32 2.0, %v6375_v58 }
 0xb29   :  { %v15838_v44 = vpop.eup %15837  ;;  %v6480_v16 = vrot.slane %v6479_v33, 2 }
 0xb2a   :  { %v6376_v49 = vmul.f32 %v15838_v44, %v6302_v40  ;;  %v6423_v29 = vmul.f32 %v15836_v18, %v6399_v11 }
 0xb2b   :  { %v6481_v31 = vadd.f32 %v6480_v16, %v6479_v33  ;;  %v15244_v16 = vunpack.i.h.bf16 %v19228_v0 }
 0xb2c   :  { %v6400_v7 = vsub.f32 2.0, %v6376_v49  ;;  %v6447_v19 = vmul.f32 %v19187_v62, %v6423_v29  ;;  %v19332_v62 = vmul.f32 0.25, %v19145_v9  ;;  %v15243_v49 = vunpack.i.l.bf16 %v19228_v0 }
 0xb2d   :  { %v15840_v60 = vpop.eup %15839  ;;  %v6482_v4 = vrot.slane %v6481_v31, 1 }
 0xb2e   :  { %v6424_v26 = vmul.f32 %v15838_v44, %v6400_v7  ;;  %v6377_v3 = vmul.f32 %v15840_v60, %v6305_v56  ;;  %v6495_v58 = vsel %vm4227_vm9, %v6447_v19, 0.0  ;;  %v6186_v57 = vsel %vm4234_vm10, %v19332_v62, -inf  ;;  %v6317_v39 = vpop.xlane.xlu1 %6316 }
 0xb2f   :  { %v6483_v46 = vadd.f32 %v6482_v4, %v6481_v31 }
 0xb30   :  { %v6448_v22 = vmul.f32 %v19191_v43, %v6424_v26  ;;  %v6401_v47 = vsub.f32 2.0, %v6377_v3 }
 0xb31   :  { %v6551_v2 = vmul.f32 0.05, %v6483_v46 }
 0xb32   :  { %v6496_v40 = vsel %vm4227_vm9, %v6448_v22, 0.0  ;;  %v6425_v18 = vmul.f32 %v15840_v60, %v6401_v47  ;;  %v14877_v60 = vpack.c.bf16 %v15244_v16, %v15243_v49  ;;  %v6320_v9 = vpop.xlane.xlu0 %6319 }
 0xb33   :  { %14079 = vmatmul.mubr.msk.f32.vlgmr.msra.gmra.mrb[150].mxu1 %vm4227_vm9, %v6551_v2  ;;  %v6497_v4 = vadd.f32 %v6496_v40, %v6495_v58  ;;  %15841 = vrcp.f32 %v6320_v9 }
 0xb34   :  { %v6449_v33 = vmul.f32 %v19196_v15, %v6425_v18  ;;  %14872 = vmatpush3.bf16.msra.mxu1 %v14871_v45  ;;  %14096 = vmatprep.mubr.msk.f32.mxu1 %vm16177_vm5, %v21533_v25  ;;  %15843 = vrcp.f32 %v6317_v39 }
 0xb35   :  { %14094 = vmatprep.subr.mxu1 %v21533_v25 }
 0xb36   :  { %v6498_v7 = vsel %vm4234_vm10, %v6449_v33, 0.0  ;;  %v6323_v42 = vpop.xlane.xlu0 %6322 }
 0xb37   :  { %v6499_v56 = vadd.f32 %v6498_v7, %v6497_v4  ;;  %15845 = vrcp.f32 %v6323_v42 }
 0xb38   :  { %14095 = vmatpush3.msk.msra.mxu1 %vm4664_vm11, %v19230_v5 }
 0xb39   :  { %v6500_v29 = vrot.slane %v6499_v56, 4  ;;  %14876 = vmatprep.subr.bf16.mxu1 %v21538_v37 }
 0xb3b   :  { %v6501_v43 = vadd.f32 %v6500_v29, %v6499_v56 }
 0xb3d   :  { %v6502_v15 = vrot.slane %v6501_v43, 2  ;;  %v15842_v26 = vpop.eup %15841 }
 0xb3e   :  { %v15844_v3 = vpop.eup %15843  ;;  %v6382_v46 = vmul.f32 %v15842_v26, %v6320_v9 }
 0xb3f   :  { %6187 = vmax.xlane.f32.xlu1 %v6186_v57  ;;  %v6503_v11 = vadd.f32 %v6502_v15, %v6501_v43  ;;  %v6381_v19 = vmul.f32 %v15844_v3, %v6317_v39 }
 0xb40   :  { %v6406_v47 = vsub.f32 2.0, %v6382_v46 }
 0xb41   :  { %v6504_v44 = vrot.slane %v6503_v11, 1  ;;  %v15846_v0 = vpop.eup %15845  ;;  %v6405_v2 = vsub.f32 2.0, %v6381_v19 }
 0xb42   :  { %v6383_v22 = vmul.f32 %v15846_v0, %v6323_v42  ;;  %v6430_v40 = vmul.f32 %v15842_v26, %v6406_v47 }
 0xb43   :  { %v6505_v31 = vadd.f32 %v6504_v44, %v6503_v11  ;;  %v6429_v18 = vmul.f32 %v15844_v3, %v6405_v2 }
 0xb44   :  { %v6407_v45 = vsub.f32 2.0, %v6383_v22  ;;  %v6454_v33 = vmul.f32 %v19209_v21, %v6430_v40 }
 0xb45   :  { %v6553_v5 = vmul.f32 0.05, %v6505_v31  ;;  %v6453_v4 = vmul.f32 %v19205_v30, %v6429_v18 }
 0xb46   :  { %v6431_v58 = vmul.f32 %v15846_v0, %v6407_v45  ;;  %v6518_v56 = vsel %vm4227_vm9, %v6454_v33, 0.0 }
 0xb47   :  { %14097 = vmatmul.mubr.msk.f32.vlgmr.msra.gmra.mrb[152].mxu1 %vm4227_vm9, %v6553_v5  ;;  %v6517_v29 = vsel %vm4227_vm9, %v6453_v4, 0.0 }
 0xb48   :  { %14878 = vmatpush3.bf16.msra.mxu1 %v14877_v60  ;;  %14114 = vmatprep.mubr.msk.f32.mxu1 %vm16177_vm5, %v21533_v25  ;;  %v6455_v7 = vmul.f32 %v19215_v51, %v6431_v58  ;;  %v6519_v15 = vadd.f32 %v6518_v56, %v6517_v29 }
 0xb49   :  { %14112 = vmatprep.subr.mxu1 %v21533_v25 }
 0xb4a   :  { %v6520_v43 = vsel %vm4234_vm10, %v6455_v7, 0.0 }
 0xb4b   :  { %v6521_v57 = vadd.f32 %v6520_v43, %v6519_v15 }
 0xb4d   :  { %v6522_v44 = vrot.slane %v6521_v57, 4 }
 0xb4f   :  { %v6523_v31 = vadd.f32 %v6522_v44, %v6521_v57 }
 0xb51   :  { %v6524_v60 = vrot.slane %v6523_v31, 2 }
 0xb53   :  { %v6525_v22 = vadd.f32 %v6524_v60, %v6523_v31 }
 0xb55   :  { %v6526_v18 = vrot.slane %v6525_v22, 1 }
 0xb57   :  { %v6527_v29 = vadd.f32 %v6526_v18, %v6525_v22 }
 0xb59   :  { %v6555_v44 = vmul.f32 0.05, %v6527_v29 }
 0xb7b   :  { %v19348_v11 = vpop.xlane.xlu1 %6334 }
 0xb7c   :  { %v19350_v16 = vpop.xlane.xlu0 %6337 }
 0xb7f   :  { %v6131_v49 = vpop.xlane.xlu1 %6130 }
 0xb80   :  { %v6199_v21 = vsub.f32 %v19244_v48, %v6131_v49  ;;  %v19353_v30 = vpop.xlane.xlu0 %6340 }
 0xb82   :  { %v6224_v51 = vmul.f32 1.442695, %v6199_v21 }
 0xb83   :  { %v6134_v5 = vpop.xlane.xlu1 %6133 }
 0xb84   :  { %15847 = vpow2.f32 %v6224_v51  ;;  %v6200_v9 = vsub.f32 %v19253_v55, %v6134_v5  ;;  %v6128_v39 = vpop.xlane.xlu0 %6127 }
 0xb85   :  { %v6198_v42 = vsub.f32 %v19260_v28, %v6128_v39 }
 0xb86   :  { %v6226_v26 = vmul.f32 1.442695, %v6200_v9 }
 0xb87   :  { %v6222_v3 = vmul.f32 1.442695, %v6198_v42  ;;  %v6146_v0 = vpop.xlane.xlu1 %6145 }
 0xb88   :  { %v6204_v46 = vsub.f32 %v19263_v17, %v6146_v0  ;;  %v6149_v19 = vpop.xlane.xlu0 %6148 }
 0xb89   :  { %15849 = vpow2.f32 %v6222_v3  ;;  %v6205_v48 = vsub.f32 %v19268_v53, %v6149_v19 }
 0xb8a   :  { %15851 = vpow2.f32 %v6226_v26  ;;  %v6234_v47 = vmul.f32 1.442695, %v6204_v46 }
 0xb8b   :  { %v6236_v2 = vmul.f32 1.442695, %v6205_v48  ;;  %v6152_v45 = vpop.xlane.xlu1 %6151 }
 0xb8c   :  { %v6206_v40 = vsub.f32 %v19273_v20, %v6152_v45  ;;  %v6167_v55 = vpop.xlane.xlu0 %6166 }
 0xb8d   :  { %15853 = vpow2.f32 %v6236_v2  ;;  %v6211_v28 = vsub.f32 %v19278_v1, %v6167_v55 }
 0xb8e   :  { %v19361_v58 = vpop.eup %15847  ;;  %15855 = vpow2.f32 %v6234_v47  ;;  %v6238_v17 = vmul.f32 1.442695, %v6206_v40 }
 0xb8f   :  { %v6248_v33 = vmul.f32 1.442695, %v6211_v28  ;;  %v6164_v4 = vpop.xlane.xlu1 %6163  ;;  %v6273_v53 = vsel %vm4227_vm9, %v19361_v58, 0.0 }
 0xb90   :  { %v6210_v7 = vsub.f32 %v19283_v13, %v6164_v4  ;;  %v6185_v56 = vpop.xlane.xlu0 %6184  ;;  %6274 = vadd.xlane.f32.xlu0 %v6273_v53 }
 0xb91   :  { %15857 = vpow2.f32 %v6248_v33  ;;  %v6217_v47 = vsub.f32 %v19288_v38, %v6185_v56 }
 0xb92   :  { %15859 = vpow2.f32 %v6238_v17  ;;  %v6246_v43 = vmul.f32 1.442695, %v6210_v7 }
 0xb93   :  { %v19366_v20 = vpop.eup %15849  ;;  %v6170_v1 = vpop.xlane.xlu1 %6169  ;;  %v6260_v2 = vmul.f32 1.442695, %v6217_v47 }
 0xb94   :  { %v6990_v15 = vpop.permute.xlu0 %6989  ;;  %v6270_v57 = vsel %vm4227_vm9, %v19366_v20, 0.0  ;;  %v19370_v49 = vpop.eup %15851  ;;  %15861 = vpow2.f32 %v6246_v43  ;;  %v6212_v45 = vsub.f32 %v19293_v24, %v6170_v1 }
 0xb95   :  { %6271 = vadd.xlane.f32.xlu1 %v6270_v57  ;;  %14113 = vmatpush3.msk.msra.mxu1 %vm4664_vm11, %v6990_v15  ;;  %v6276_v21 = vsel %vm4234_vm10, %v19370_v49, 0.0  ;;  %15863 = vpow2.f32 %v6260_v2 }
 0xb96   :  { %14115 = vmatmul.mubr.msk.f32.vlgmr.msra.gmra.mrb[154].mxu1 %vm4227_vm9, %v6555_v44  ;;  %14882 = vmatprep.subr.bf16.mxu1 %v21538_v37  ;;  %v6250_v40 = vmul.f32 1.442695, %v6212_v45 }
 0xb97   :  { %v19375_v13 = vpop.eup %15853  ;;  %v6182_v31 = vpop.xlane.xlu1 %6181  ;;  %14132 = vmatprep.mubr.msk.f32.mxu1 %vm16177_vm5, %v21533_v25 }
 0xb98   :  { %v6291_v51 = vsel %vm4227_vm9, %v19375_v13, 0.0  ;;  %v19383_v5 = vpop.eup %15855  ;;  %v6216_v55 = vsub.f32 %v19300_v63, %v6182_v31  ;;  %15865 = vpow2.f32 %v6250_v40 }
 0xb99   :  { %6277 = vadd.xlane.f32.xlu1 %v6276_v21  ;;  %6292 = vadd.xlane.f32.xlu0 %v6291_v51  ;;  %v6288_v26 = vsel %vm4227_vm9, %v19383_v5, 0.0 }
 0xb9a   :  { %v6258_v18 = vmul.f32 1.442695, %v6216_v55  ;;  %v21652_v55 = vld [vmem:[#allocation86_spill] sm:$0xff] }
 0xb9b   :  { %v19385_v60 = vpop.eup %15857  ;;  %v15252_v9 = vpop.permute.xlu1 %15251 }
 0xb9c   :  { %v15254_v39 = vunpack.i.h.bf16 %v15252_v9  ;;  %v15253_v42 = vunpack.i.l.bf16 %v15252_v9  ;;  %v6309_v3 = vsel %vm4227_vm9, %v19385_v60, 0.0  ;;  %v19391_v0 = vpop.eup %15859  ;;  %15867 = vpow2.f32 %v6258_v18 }
 0xb9d   :  { %6289 = vadd.xlane.f32.xlu1 %v6288_v26  ;;  %6310 = vadd.xlane.f32.xlu0 %v6309_v3  ;;  %v6294_v19 = vsel %vm4234_vm10, %v19391_v0, 0.0  ;;  %15869 = vrcp.f32 %v19348_v11 }
 0xb9e   :  { %v14883_v46 = vpack.c.bf16 %v15254_v39, %v15253_v42  ;;  %v19395_v22 = vpop.eup %15861  ;;  %15871 = vrcp.f32 %v19350_v16 }
 0xb9f   :  { %v6306_v48 = vsel %vm4227_vm9, %v19395_v22, 0.0  ;;  %v19407_v28 = vpop.eup %15863  ;;  %15873 = vrcp.f32 %v19353_v30 }
 0xba0   :  { %14884 = vmatpush3.bf16.msra.mxu1 %v14883_v46  ;;  %v6327_v17 = vsel %vm4227_vm9, %v19407_v28, 0.0 }
 0xba1   :  { %6295 = vadd.xlane.f32.xlu1 %v6294_v19  ;;  %14130 = vmatprep.subr.mxu1 %v21533_v25 }
 0xba2   :  { %v19411_v33 = vpop.eup %15865 }
 0xba3   :  { %v6312_v38 = vsel %vm4234_vm10, %v19411_v33, 0.0 }
 0xba5   :  { %6307 = vadd.xlane.f32.xlu1 %v6306_v48 }
 0xba6   :  { %v19415_v4 = vpop.eup %15867 }
 0xba7   :  { %v6324_v24 = vsel %vm4227_vm9, %v19415_v4, 0.0  ;;  %v15870_v7 = vpop.eup %15869 }
 0xba8   :  { %v15872_v29 = vpop.eup %15871  ;;  %v6387_v1 = vmul.f32 %v15870_v7, %v19348_v11 }
 0xba9   :  { %v15874_v43 = vpop.eup %15873  ;;  %v6388_v15 = vmul.f32 %v15872_v29, %v19350_v16 }
 0xbaa   :  { %v6389_v44 = vmul.f32 %v15874_v43, %v19353_v30  ;;  %v6411_v31 = vsub.f32 2.0, %v6387_v1 }
 0xbab   :  { %v6412_v21 = vsub.f32 2.0, %v6388_v15 }
 0xbac   :  { %v6413_v51 = vsub.f32 2.0, %v6389_v44  ;;  %v6435_v9 = vmul.f32 %v15870_v7, %v6411_v31  ;;  %v21657_v31 = vld [vmem:[#allocation67_spill] sm:$0xff] }
 0xbad   :  { %v6436_v39 = vmul.f32 %v15872_v29, %v6412_v21  ;;  %v21655_v29 = vld [vmem:[#allocation89_spill] sm:$0xff] }
 0xbae   :  { %v6437_v16 = vmul.f32 %v15874_v43, %v6413_v51  ;;  %v6459_v30 = vmul.f32 %v19239_v8, %v6435_v9 }
 0xbaf   :  { %v6460_v42 = vmul.f32 %v19241_v6, %v6436_v39 }
 0xbb0   :  { %v6461_v3 = vmul.f32 %v19250_v34, %v6437_v16  ;;  %v6539_v46 = vsel %vm4227_vm9, %v6459_v30, 0.0  ;;  %v21651_v34 = vld [vmem:[#allocation83_spill] sm:$0xff] }
 0xbb1   :  { %v6540_v19 = vsel %vm4227_vm9, %v6460_v42, 0.0  ;;  %v21658_v42 = vld [vmem:[#allocation36_spill] sm:$0xff] }
 0xbb2   :  { %v6542_v48 = vsel %vm4234_vm10, %v6461_v3, 0.0  ;;  %v6541_v47 = vadd.f32 %v6540_v19, %v6539_v46 }
 0xbb3   :  { %7074 = vrot.lane.b32.xlu0 %v18880_v23, %s16181_s21 }
 0xbb4   :  { %v6543_v8 = vadd.f32 %v6542_v48, %v6541_v47 }
 0xbb6   :  { %7159 = vrot.lane.b32.xlu1 %v18872_v36, %s16181_s21  ;;  %v6544_v40 = vrot.slane %v6543_v8, 4 }
 0xbb8   :  { %v6545_v18 = vadd.f32 %v6544_v40, %v6543_v8 }
 0xbcc   :  { %v6188_v63 = vpop.xlane.xlu1 %6187 }
 0xbcd   :  { %v6218_v53 = vsub.f32 %v19332_v62, %v6188_v63 }
 0xbcf   :  { %v6262_v56 = vmul.f32 1.442695, %v6218_v53 }
 0xbd1   :  { %15875 = vpow2.f32 %v6262_v56  ;;  %v21654_v56 = vld [vmem:[#allocation32_spill] sm:$0xff] }
 0xbd2   :  { %6328 = vadd.xlane.f32.xlu0 %v6327_v17 }
 0xbda   :  { %6313 = vadd.xlane.f32.xlu1 %v6312_v38  ;;  %v21653_v38 = vld [vmem:[#allocation40_spill] sm:$0xff] }
 0xbdb   :  { %v19450_v11 = vpop.eup %15875 }
 0xbdc   :  { %v6330_v26 = vsel %vm4234_vm10, %v19450_v11, 0.0 }
 0xbde   :  { %6325 = vadd.xlane.f32.xlu1 %v6324_v24  ;;  %v6546_v24 = vrot.slane %v6545_v18, 2 }
 0xbe0   :  { %v6547_v15 = vadd.f32 %v6546_v24, %v6545_v18 }
 0xbe2   :  { %v6548_v39 = vrot.slane %v6547_v15, 1 }
 0xbe4   :  { %v6549_v8 = vadd.f32 %v6548_v39, %v6547_v15 }
 0xbe6   :  { %v6557_v15 = vmul.f32 0.05, %v6549_v8  ;;  %v21661_v8 = vld [vmem:[#allocation41_spill] sm:$0xff] }
 0xbe8   :  { %15256 = vrot.lane.b32.xlu0 %v17931_v35, %s16182_s23 }
 0xbec   :  { %7248 = vrot.lane.b32.xlu0 %v17942_v52, %s16182_s23 }
 0xbef   :  { %15261 = vrot.lane.b32.xlu1 %v17963_v32, %s16182_s23 }
 0xbf0   :  { %15266 = vrot.lane.b32.xlu0 %v21567_v54, %s16182_s23 }
 0xbf4   :  { %15271 = vrot.lane.b32.xlu0 %v21572_v27, %s16182_s23 }
 0xbf8   :  { %7240 = vrot.lane.b32.xlu0 %v21578_v10, %s16183_s26 }
 0xbfc   :  { %7242 = vrot.lane.b32.xlu0 %v17942_v52, %s16183_s26 }
 0xc00   :  { %7456 = vrot.lane.b32.xlu0 %v18038_v50, %s16182_s23 }
 0xc04   :  { %15276 = vrot.lane.b32.xlu0 %v18332_v61, %s16182_s23 }
 0xc06   :  { %v19443_v57 = vpop.f32.mrb[150].mxu1 }
 0xc07   :  { %21649 = vst [vmem:[#allocation96_spill] sm:$0xff] %v19443_v57  ;;  %v14080_v62 = vpop.f32.mrb[151].mxu1 }
 0xc08   :  { %15281 = vrot.lane.b32.xlu0 %v21586_v41, %s16182_s23  ;;  %v21656_v62 = vld [vmem:[#allocation35_spill] sm:$0xff] }
 0xc0c   :  { %7448 = vrot.lane.b32.xlu0 %v17982_v12, %s16183_s26 }
 0xc10   :  { %7450 = vrot.lane.b32.xlu0 %v18038_v50, %s16183_s26 }
 0xc13   :  { %6331 = vadd.xlane.f32.xlu1 %v6330_v26  ;;  %v21659_v26 = vld [vmem:[#allocation68_spill] sm:$0xff] }
 0xc14   :  { %7664 = vrot.lane.b32.xlu0 %v18102_v59, %s16182_s23 }
 0xc18   :  { %15286 = vrot.lane.b32.xlu0 %v21587_v14, %s16182_s23 }
 0xc1a   :  { %v19466_v6 = vpop.f32.mrb[152].mxu1 }
 0xc1b   :  { %21650 = vst [vmem:[#allocation94_spill] sm:$0xff] %v19466_v6  ;;  %v14098_v2 = vpop.f32.mrb[153].mxu1 }
 0xc1c   :  { %15291 = vrot.lane.b32.xlu0 %v21651_v34, %s16182_s23 }
 0xc1d   :  { %v6275_v45 = vpop.xlane.xlu0 %6274 }
 0xc1e   :  { %15877 = vrcp.f32 %v6275_v45 }
 0xc20   :  { %7656 = vrot.lane.b32.xlu0 %v21652_v55, %s16183_s26 }
 0xc22   :  { %v6272_v17 = vpop.xlane.xlu1 %6271 }
 0xc23   :  { %15879 = vrcp.f32 %v6272_v17 }
 0xc24   :  { %7352 = vrot.lane.b32.xlu1 %v21653_v38, %s16182_s23  ;;  %7658 = vrot.lane.b32.xlu0 %v18102_v59, %s16183_s26 }
 0xc26   :  { %v6278_v63 = vpop.xlane.xlu1 %6277  ;;  %v6293_v53 = vpop.xlane.xlu0 %6292 }
 0xc27   :  { %15881 = vrcp.f32 %v6278_v63 }
 0xc28   :  { %v15878_v7 = vpop.eup %15877  ;;  %15883 = vrcp.f32 %v6293_v53  ;;  %7238 = vrot.lane.b32.xlu1 %v21654_v56, %s16183_s26  ;;  %7872 = vrot.lane.b32.xlu0 %v21655_v29, %s16182_s23 }
 0xc29   :  { %v6367_v43 = vmul.f32 %v15878_v7, %v6275_v45 }
 0xc2a   :  { %v6290_v1 = vpop.xlane.xlu1 %6289 }
 0xc2b   :  { %15885 = vrcp.f32 %v6290_v1  ;;  %v6391_v44 = vsub.f32 2.0, %v6367_v43 }
 0xc2c   :  { %7342 = vrot.lane.b32.xlu1 %v21656_v62, %s16183_s26  ;;  %7862 = vrot.lane.b32.xlu0 %v21657_v31, %s16183_s26 }
 0xc2d   :  { %v15880_v21 = vpop.eup %15879  ;;  %v6415_v16 = vmul.f32 %v15878_v7, %v6391_v44 }
 0xc2e   :  { %v6366_v51 = vmul.f32 %v15880_v21, %v6272_v17  ;;  %v6296_v9 = vpop.xlane.xlu1 %6295 }
 0xc2f   :  { %15887 = vrcp.f32 %v6296_v9  ;;  %v6439_v45 = vmul.f32 %v19361_v58, %v6415_v16 }
 0xc30   :  { %v6390_v30 = vsub.f32 2.0, %v6366_v51  ;;  %7344 = vrot.lane.b32.xlu1 %v21658_v42, %s16183_s26  ;;  %7864 = vrot.lane.b32.xlu0 %v21659_v26, %s16183_s26  ;;  %v21660_v51 = vld [vmem:[#allocation52_spill] sm:$0xff] }
 0xc31   :  { %v15882_v3 = vpop.eup %15881  ;;  %v6463_v58 = vsel %vm4227_vm9, %v6439_v45, 0.0 }
 0xc32   :  { %v15884_v46 = vpop.eup %15883  ;;  %v6414_v19 = vmul.f32 %v15880_v21, %v6390_v30  ;;  %v6368_v48 = vmul.f32 %v15882_v3, %v6278_v63  ;;  %v19488_v47 = vpop.xlane.xlu1 %6307 }
 0xc33   :  { %v6373_v2 = vmul.f32 %v15884_v46, %v6293_v53  ;;  %15889 = vrcp.f32 %v19488_v47 }
 0xc34   :  { %v6438_v40 = vmul.f32 %v19366_v20, %v6414_v19  ;;  %v6392_v18 = vsub.f32 2.0, %v6368_v48  ;;  %7346 = vrot.lane.b32.xlu1 %v21653_v38, %s16183_s26  ;;  %7866 = vrot.lane.b32.xlu0 %v21655_v29, %s16183_s26 }
 0xc35   :  { %v15886_v17 = vpop.eup %15885  ;;  %v6397_v24 = vsub.f32 2.0, %v6373_v2 }
 0xc36   :  { %v6462_v7 = vsel %vm4227_vm9, %v6438_v40, 0.0  ;;  %v6416_v63 = vmul.f32 %v15882_v3, %v6392_v18  ;;  %v6372_v43 = vmul.f32 %v15886_v17, %v6290_v1  ;;  %v7160_v44 = vpop.permute.xlu1 %7159 }
 0xc37   :  { %14131 = vmatpush3.msk.msra.mxu1 %vm4664_vm11, %v7160_v44  ;;  %v6421_v53 = vmul.f32 %v15884_v46, %v6397_v24  ;;  %v6464_v16 = vadd.f32 %v6463_v58, %v6462_v7  ;;  %v21663_v44 = vld [vmem:[#allocation45_spill] sm:$0xff] }
 0xc38   :  { %v6440_v20 = vmul.f32 %v19370_v49, %v6416_v63  ;;  %v6396_v21 = vsub.f32 2.0, %v6372_v43  ;;  %7560 = vrot.lane.b32.xlu1 %v21660_v51, %s16182_s23  ;;  %14133 = vmatmul.mubr.msk.f32.vlgmr.msra.gmra.mrb[156].mxu1 %vm4227_vm9, %v6557_v15 }
 0xc39   :  { %v15888_v39 = vpop.eup %15887  ;;  %14889 = vmatprep.subr.bf16.mxu1 %v21538_v37  ;;  %14156 = vmatprep.mubr.msk.f32.mxu1 %vm16177_vm5, %v21533_v25  ;;  %v6445_v49 = vmul.f32 %v19375_v13, %v6421_v53 }
 0xc3a   :  { %v6465_v1 = vsel %vm4234_vm10, %v6440_v20, 0.0  ;;  %v6420_v30 = vmul.f32 %v15886_v17, %v6396_v21  ;;  %v6374_v3 = vmul.f32 %v15888_v39, %v6296_v9  ;;  %v21662_v9 = vld [vmem:[#allocation44_spill] sm:$0xff] }
 0xc3b   :  { %v6466_v19 = vadd.f32 %v6465_v1, %v6464_v16  ;;  %v6485_v24 = vsel %vm4227_vm9, %v6445_v49, 0.0  ;;  %v21664_v20 = vld [vmem:[#allocation60_spill] sm:$0xff] }
 0xc3c   :  { %v6444_v46 = vmul.f32 %v19383_v5, %v6420_v30  ;;  %v6398_v48 = vsub.f32 2.0, %v6374_v3  ;;  %7446 = vrot.lane.b32.xlu1 %v21661_v8, %s16183_s26  ;;  %v15229_v53 = vunpack.i.h.bf16 %v21664_v20  ;;  %v15228_v21 = vunpack.i.l.bf16 %v21664_v20 }
 0xc3d   :  { %v6467_v2 = vrot.slane %v6466_v19, 4 }
 0xc3e   :  { %v6484_v45 = vsel %vm4227_vm9, %v6444_v46, 0.0  ;;  %v6422_v40 = vmul.f32 %v15888_v39, %v6398_v48  ;;  %v14868_v30 = vpack.c.bf16 %v15229_v53, %v15228_v21  ;;  %v21666_v46 = vld [vmem:[#allocation63_spill] sm:$0xff] }
 0xc3f   :  { %v6468_v18 = vadd.f32 %v6467_v2, %v6466_v19  ;;  %v6486_v13 = vadd.f32 %v6485_v24, %v6484_v45  ;;  %v21665_v19 = vld [vmem:[#allocation66_spill] sm:$0xff]  ;;  %v15239_v48 = vunpack.i.h.bf16 %v21666_v46  ;;  %v15238_v2 = vunpack.i.l.bf16 %v21666_v46 }
 0xc40   :  { %v6446_v7 = vmul.f32 %v19391_v0, %v6422_v40  ;;  %7550 = vrot.lane.b32.xlu1 %v21662_v9, %s16183_s26  ;;  %v21667_v40 = vld [vmem:[#allocation72_spill] sm:$0xff] }
 0xc41   :  { %v6469_v17 = vrot.slane %v6468_v18, 2 }
 0xc42   :  { %v6487_v5 = vsel %vm4234_vm10, %v6446_v7, 0.0  ;;  %v14874_v7 = vpack.c.bf16 %v15239_v48, %v15238_v2 }
 0xc43   :  { %v6470_v63 = vadd.f32 %v6469_v17, %v6468_v18  ;;  %v6488_v43 = vadd.f32 %v6487_v5, %v6486_v13  ;;  %v21668_v18 = vld [vmem:[#allocation88_spill] sm:$0xff]  ;;  %v21669_v17 = vld [vmem:[#allocation57_spill] sm:$0xff]  ;;  %v21671_v5 = vld [vmem:[#allocation58_spill] sm:$0xff] }
 0xc44   :  { %7552 = vrot.lane.b32.xlu1 %v21663_v44, %s16183_s26  ;;  %v21670_v13 = vld [vmem:[#allocation92_spill] sm:$0xff] }
 0xc45   :  { %v6471_v15 = vrot.slane %v6470_v63, 1  ;;  %v6489_v58 = vrot.slane %v6488_v43, 4 }
 0xc47   :  { %v6472_v39 = vadd.f32 %v6471_v15, %v6470_v63  ;;  %v6490_v0 = vadd.f32 %v6489_v58, %v6488_v43  ;;  %v6311_v63 = vpop.xlane.xlu0 %6310  ;;  %v21672_v43 = vld [vmem:[#allocation85_spill] sm:$0xff]  ;;  %v15890_v15 = vpop.eup %15889  ;;  %v21673_v58 = vld [vmem:[#allocation80_spill] sm:$0xff] }
 0xc48   :  { %7554 = vrot.lane.b32.xlu1 %v21660_v51, %s16183_s26  ;;  %15891 = vrcp.f32 %v6311_v63  ;;  %v6378_v53 = vmul.f32 %v15890_v15, %v19488_v47 }
 0xc49   :  { %v6491_v16 = vrot.slane %v6490_v0, 2  ;;  %v6550_v1 = vmul.f32 0.05, %v6472_v39  ;;  %v21674_v39 = vld [vmem:[#allocation79_spill] sm:$0xff] }
 0xc4b   :  { %14070 = vmatmul.mubr.msk.f32.vlgmr.msra.gmra.mrb[138].mxu0 %vm4227_vm9, %v6550_v1  ;;  %v6492_v3 = vadd.f32 %v6491_v16, %v6490_v0 }
 0xc4c   :  { %14869 = vmatpush3.bf16.msra.mxu0 %v14868_v30  ;;  %7768 = vrot.lane.b32.xlu1 %v21665_v19, %s16182_s23  ;;  %v6402_v30 = vsub.f32 2.0, %v6378_v53 }
 0xc4d   :  { %14085 = vmatprep.subr.mxu0 %v21533_v25  ;;  %14087 = vmatprep.mubr.msk.f32.mxu0 %vm16177_vm5, %v21533_v25  ;;  %v6493_v49 = vrot.slane %v6492_v3, 1 }
 0xc4e   :  { %v6426_v46 = vmul.f32 %v15890_v15, %v6402_v30 }
 0xc4f   :  { %v6494_v45 = vadd.f32 %v6493_v49, %v6492_v3 }
 0xc50   :  { %14086 = vmatpush3.msk.msra.mxu0 %vm4664_vm11, %v21667_v40  ;;  %7654 = vrot.lane.b32.xlu1 %v21668_v18, %s16183_s26 }
 0xc51   :  { %14873 = vmatprep.subr.bf16.mxu0 %v21538_v37  ;;  %v6552_v24 = vmul.f32 0.05, %v6494_v45 }
 0xc52   :  { %v15892_v20 = vpop.eup %15891 }
 0xc53   :  { %14088 = vmatmul.mubr.msk.f32.vlgmr.msra.gmra.mrb[140].mxu0 %vm4227_vm9, %v6552_v24  ;;  %v6379_v0 = vmul.f32 %v15892_v20, %v6311_v63 }
 0xc54   :  { %14875 = vmatpush3.bf16.msra.mxu0 %v14874_v7  ;;  %7758 = vrot.lane.b32.xlu1 %v21669_v17, %s16183_s26  ;;  %v6450_v7 = vmul.f32 %v19395_v22, %v6426_v46 }
 0xc55   :  { %14103 = vmatprep.subr.mxu0 %v21533_v25  ;;  %14105 = vmatprep.mubr.msk.f32.mxu0 %vm16177_vm5, %v21533_v25  ;;  %v6403_v49 = vsub.f32 2.0, %v6379_v0 }
 0xc56   :  { %v6506_v15 = vsel %vm4227_vm9, %v6450_v7, 0.0  ;;  %v21677_v7 = vld [vmem:[#allocation93_spill] sm:$0xff] }
 0xc57   :  { %v6427_v47 = vmul.f32 %v15892_v20, %v6403_v49 }
 0xc58   :  { %14104 = vmatpush3.msk.msra.mxu0 %vm4664_vm11, %v21670_v13  ;;  %7760 = vrot.lane.b32.xlu1 %v21671_v5, %s16183_s26 }
 0xc59   :  { %14879 = vmatprep.subr.bf16.mxu0 %v21538_v37  ;;  %v6451_v53 = vmul.f32 %v19385_v60, %v6427_v47 }
 0xc5b   :  { %v6507_v30 = vsel %vm4227_vm9, %v6451_v53, 0.0 }
 0xc5c   :  { %7762 = vrot.lane.b32.xlu1 %v21665_v19, %s16183_s26 }
 0xc60   :  { %7976 = vrot.lane.b32.xlu1 %v21672_v43, %s16182_s23 }
 0xc64   :  { %7966 = vrot.lane.b32.xlu1 %v21673_v58, %s16183_s26 }
 0xc67   :  { %v6314_v21 = vpop.xlane.xlu1 %6313 }
 0xc68   :  { %15893 = vrcp.f32 %v6314_v21  ;;  %7968 = vrot.lane.b32.xlu1 %v21674_v39, %s16183_s26 }
 0xc69   :  { %v19557_v16 = vpop.f32.mrb[154].mxu1 }
 0xc6a   :  { %21675 = vst [vmem:[#allocation97_spill] sm:$0xff] %v19557_v16  ;;  %v14116_v1 = vpop.f32.mrb[155].mxu1 }
 0xc6b   :  { %v6326_v3 = vpop.xlane.xlu1 %6325  ;;  %v7075_v1 = vpop.permute.xlu0 %7074 }
 0xc6c   :  { %7970 = vrot.lane.b32.xlu1 %v21672_v43, %s16183_s26  ;;  %15895 = vrcp.f32 %v6326_v3 }
 0xc6f   :  { %v15262_v48 = vpop.permute.xlu1 %15261  ;;  %v6329_v20 = vpop.xlane.xlu0 %6328 }
 0xc70   :  { %v15264_v2 = vunpack.i.h.bf16 %v15262_v48  ;;  %v15263_v45 = vunpack.i.l.bf16 %v15262_v48  ;;  %v6508_v48 = vadd.f32 %v6507_v30, %v6506_v15  ;;  %15897 = vrcp.f32 %v6329_v20 }
 0xc72   :  { %v15894_v40 = vpop.eup %15893  ;;  %v14890_v24 = vpack.c.bf16 %v15264_v2, %v15263_v45 }
 0xc73   :  { %v6380_v13 = vmul.f32 %v15894_v40, %v6314_v21  ;;  %v19570_v2 = vpop.permute.xlu0 %15256 }
 0xc74   :  { %14892 = vmatpush3.bf16.xpose.msk.msra.mxu1 %vm18161_vm8, %v14890_v24 }
 0xc75   :  { %v6404_v16 = vsub.f32 2.0, %v6380_v13  ;;  %14154 = vmatprep.subr.mxu1 %v21533_v25 }
 0xc77   :  { %v6428_v0 = vmul.f32 %v15894_v40, %v6404_v16  ;;  %v19572_v24 = vpop.permute.xlu0 %7248  ;;  %v15249_v16 = vunpack.i.h.bf16 %v21677_v7  ;;  %v15248_v40 = vunpack.i.l.bf16 %v21677_v7 }
 0xc79   :  { %v6452_v49 = vmul.f32 %v19411_v33, %v6428_v0  ;;  %v14880_v33 = vpack.c.bf16 %v15249_v16, %v15248_v40 }
 0xc7b   :  { %v6509_v22 = vsel %vm4234_vm10, %v6452_v49, 0.0  ;;  %v19576_v15 = vpop.permute.xlu0 %15266  ;;  %v15896_v49 = vpop.eup %15895 }
 0xc7c   :  { %v6510_v21 = vadd.f32 %v6509_v22, %v6508_v48  ;;  %v15898_v22 = vpop.eup %15897 }
 0xc7e   :  { %v6511_v46 = vrot.slane %v6510_v21, 4 }
 0xc7f   :  { %v15272_v0 = vpop.permute.xlu0 %15271 }
 0xc80   :  { %v6512_v60 = vadd.f32 %v6511_v46, %v6510_v21  ;;  %v6385_v46 = vmul.f32 %v15898_v22, %v6329_v20  ;;  %v15274_v7 = vunpack.i.h.bf16 %v15272_v0  ;;  %v15273_v16 = vunpack.i.l.bf16 %v15272_v0 }
 0xc82   :  { %v6513_v45 = vrot.slane %v6512_v60, 2  ;;  %v14898_v57 = vpack.c.bf16 %v15274_v7, %v15273_v16 }
 0xc83   :  { %v19584_v30 = vpop.permute.xlu0 %7240 }
 0xc84   :  { %v6514_v47 = vadd.f32 %v6513_v45, %v6512_v60 }
 0xc86   :  { %v6515_v13 = vrot.slane %v6514_v47, 1 }
 0xc87   :  { %v19586_v48 = vpop.permute.xlu0 %7242 }
 0xc88   :  { %v6516_v53 = vadd.f32 %v6515_v13, %v6514_v47 }
 0xc8a   :  { %v6554_v6 = vmul.f32 0.05, %v6516_v53 }
 0xc8b   :  { %v19588_v60 = vpop.permute.xlu0 %7456 }
 0xc8c   :  { %14106 = vmatmul.mubr.msk.f32.vlgmr.msra.gmra.mrb[142].mxu0 %vm4227_vm9, %v6554_v6  ;;  %v6384_v6 = vmul.f32 %v15896_v49, %v6326_v3 }
 0xc8d   :  { %14881 = vmatpush3.bf16.msra.mxu0 %v14880_v33  ;;  %14123 = vmatprep.mubr.msk.f32.mxu0 %vm16177_vm5, %v21533_v25 }
 0xc8e   :  { %14121 = vmatprep.subr.mxu0 %v21533_v25  ;;  %v6408_v45 = vsub.f32 2.0, %v6384_v6 }
 0xc8f   :  { %v19594_v53 = vpop.permute.xlu0 %15276 }
 0xc90   :  { %v6432_v13 = vmul.f32 %v15896_v49, %v6408_v45 }
 0xc91   :  { %14122 = vmatpush3.msk.msra.mxu0 %vm4664_vm11, %v7075_v1  ;;  %v6409_v1 = vsub.f32 2.0, %v6385_v46 }
 0xc92   :  { %14885 = vmatprep.subr.bf16.mxu0 %v21538_v37  ;;  %v6456_v20 = vmul.f32 %v19415_v4, %v6432_v13 }
 0xc93   :  { %v6433_v3 = vmul.f32 %v15898_v22, %v6409_v1  ;;  %v15282_v0 = vpop.permute.xlu0 %15281 }
 0xc94   :  { %v6528_v49 = vsel %vm4227_vm9, %v6456_v20, 0.0  ;;  %v15284_v20 = vunpack.i.h.bf16 %v15282_v0 }
 0xc95   :  { %v6457_v46 = vmul.f32 %v19407_v28, %v6433_v3 }
 0xc97   :  { %v19611_v1 = vpop.permute.xlu0 %7448 }
 0xca0   :  { %v6332_v21 = vpop.xlane.xlu1 %6331 }
 0xca1   :  { %15899 = vrcp.f32 %v6332_v21 }
 0xca4   :  { %v7353_v47 = vpop.permute.xlu1 %7352 }
 0xca5   :  { %14155 = vmatpush3.xpose.msk.msra.mxu1 %vm3403_vm7, %v7353_v47 }
 0xca6   :  { %14897 = vmatprep.subr.bf16.mxu1 %v21538_v37 }
 0xca8   :  { %v19592_v40 = vpop.permute.xlu1 %7238 }
 0xcab   :  { %v15900_v33 = vpop.eup %15899 }
 0xcac   :  { %v6386_v39 = vmul.f32 %v15900_v33, %v6332_v21  ;;  %v7343_v6 = vpop.permute.xlu1 %7342  ;;  %v6529_v21 = vsel %vm4227_vm9, %v6457_v46, 0.0 }
 0xcad   :  { %14157 = vmatmul.mubr.msk.f32.vlgmr.msra.gmra.mrb[158].mxu1 %vm3403_vm7, %v7343_v6  ;;  %v15283_v6 = vunpack.i.l.bf16 %v15282_v0 }
 0xcae   :  { %v6410_v47 = vsub.f32 2.0, %v6386_v39  ;;  %14900 = vmatpush3.bf16.xpose.msk.msra.mxu1 %vm18161_vm8, %v14898_v57  ;;  %14159 = vmatprep.mubr.msk.f32.mxu1 %vm16177_vm5, %v21533_v25  ;;  %v6530_v57 = vadd.f32 %v6529_v21, %v6528_v49 }
 0xcaf   :  { %14184 = vmatprep.subr.mxu1 %v21533_v25  ;;  %v14906_v21 = vpack.c.bf16 %v15284_v20, %v15283_v6 }
 0xcb0   :  { %v6434_v4 = vmul.f32 %v15900_v33, %v6410_v47  ;;  %v7345_v22 = vpop.permute.xlu1 %7344 }
 0xcb1   :  { %14160 = vmatmul.mubr.msk.f32.gmra.mrb[160].mxu1 %vm3403_vm7, %v7345_v22  ;;  %v15258_v22 = vunpack.i.l.bf16 %v19570_v2 }
 0xcb2   :  { %v6458_v28 = vmul.f32 %v19450_v11, %v6434_v4  ;;  %14162 = vmatprep.mubr.msk.f32.mxu1 %vm16177_vm5, %v21533_v25  ;;  %v19618_v11 = vpop.permute.xlu0 %7450  ;;  %v15259_v4 = vunpack.i.h.bf16 %v19570_v2 }
 0xcb4   :  { %v6531_v39 = vsel %vm4234_vm10, %v6458_v28, 0.0  ;;  %v7347_v45 = vpop.permute.xlu1 %7346 }
 0xcb5   :  { %v6532_v13 = vadd.f32 %v6531_v39, %v6530_v57  ;;  %14163 = vmatmul.mubr.msk.f32.gmra.mrb[162].mxu1 %vm3403_vm7, %v7347_v45  ;;  %v14886_v45 = vpack.c.bf16 %v15259_v4, %v15258_v22  ;;  %v15278_v22 = vunpack.i.l.bf16 %v19594_v53 }
 0xcb6   :  { %14186 = vmatprep.mubr.msk.f32.mxu1 %vm16177_vm5, %v21533_v25  ;;  %v19622_v57 = vpop.permute.xlu0 %7664 }
 0xcb7   :  { %v6533_v7 = vrot.slane %v6532_v13, 4 }
 0xcb8   :  { %v7561_v16 = vpop.permute.xlu1 %7560 }
 0xcb9   :  { %v6534_v3 = vadd.f32 %v6533_v7, %v6532_v13  ;;  %14185 = vmatpush3.xpose.msk.msra.mxu1 %vm3403_vm7, %v7561_v16  ;;  %v15269_v16 = vunpack.i.h.bf16 %v19576_v15 }
 0xcba   :  { %14905 = vmatprep.subr.bf16.mxu1 %v21538_v37  ;;  %v19636_v2 = vpop.permute.xlu0 %15286 }
 0xcbb   :  { %v6535_v33 = vrot.slane %v6534_v3, 2 }
 0xcbc   :  { %v7447_v46 = vpop.permute.xlu1 %7446 }
 0xcbd   :  { %v6536_v47 = vadd.f32 %v6535_v33, %v6534_v3  ;;  %v15268_v3 = vunpack.i.l.bf16 %v19576_v15 }
 0xcbe   :  { %v15292_v20 = vpop.permute.xlu0 %15291 }
 0xcbf   :  { %v6537_v49 = vrot.slane %v6536_v47, 1  ;;  %v14894_v6 = vpack.c.bf16 %v15269_v16, %v15268_v3 }
 0xcc0   :  { %v7551_v28 = vpop.permute.xlu1 %7550 }
 0xcc1   :  { %14187 = vmatmul.mubr.msk.f32.vlgmr.msra.gmra.mrb[164].mxu1 %vm3403_vm7, %v7551_v28  ;;  %v6538_v39 = vadd.f32 %v6537_v49, %v6536_v47  ;;  %v15294_v47 = vunpack.i.h.bf16 %v15292_v20  ;;  %v15293_v49 = vunpack.i.l.bf16 %v15292_v20 }
 0xcc2   :  { %14908 = vmatpush3.bf16.xpose.msk.msra.mxu1 %vm18161_vm8, %v14906_v21  ;;  %14189 = vmatprep.mubr.msk.f32.mxu1 %vm16177_vm5, %v21533_v25 }
 0xcc3   :  { %v6556_v0 = vmul.f32 0.05, %v6538_v39  ;;  %14214 = vmatprep.subr.mxu1 %v21533_v25 }
 0xcc4   :  { %v7553_v13 = vpop.permute.xlu1 %7552 }
 0xcc5   :  { %14124 = vmatmul.mubr.msk.f32.vlgmr.msra.gmra.mrb[144].mxu0 %vm4227_vm9, %v6556_v0  ;;  %14190 = vmatmul.mubr.msk.f32.gmra.mrb[166].mxu1 %vm3403_vm7, %v7553_v13 }
 0xcc6   :  { %14888 = vmatpush3.bf16.xpose.msk.msra.mxu0 %vm18161_vm8, %v14886_v45  ;;  %14192 = vmatprep.mubr.msk.f32.mxu1 %vm16177_vm5, %v21533_v25 }
 0xcc7   :  { %14139 = vmatprep.subr.mxu0 %v21533_v25  ;;  %14141 = vmatprep.mubr.msk.f32.mxu0 %vm16177_vm5, %v21533_v25 }
 0xcc8   :  { %v7555_v7 = vpop.permute.xlu1 %7554 }
 0xcc9   :  { %14193 = vmatmul.mubr.msk.f32.gmra.mrb[168].mxu1 %vm3403_vm7, %v7555_v7 }
 0xcca   :  { %14216 = vmatprep.mubr.msk.f32.mxu1 %vm16177_vm5, %v21533_v25 }
 0xccc   :  { %v7769_v33 = vpop.permute.xlu1 %7768 }
 0xccd   :  { %14215 = vmatpush3.xpose.msk.msra.mxu1 %vm3403_vm7, %v7769_v33 }
 0xcce   :  { %14140 = vmatpush3.xpose.msk.msra.mxu0 %vm3403_vm7, %v19572_v24  ;;  %14913 = vmatprep.subr.bf16.mxu1 %v21538_v37  ;;  %v14914_v24 = vpack.c.bf16 %v15294_v47, %v15293_v49 }
 0xccf   :  { %14893 = vmatprep.subr.bf16.mxu0 %v21538_v37 }
 0xcd0   :  { %v7655_v4 = vpop.permute.xlu1 %7654 }
 0xcd1   :  { %14142 = vmatmul.mubr.msk.f32.vlgmr.msra.gmra.mrb[146].mxu0 %vm3403_vm7, %v19592_v40  ;;  %v15279_v40 = vunpack.i.h.bf16 %v19594_v53  ;;  %v15289_v53 = vunpack.i.h.bf16 %v19636_v2 }
 0xcd2   :  { %14896 = vmatpush3.bf16.xpose.msk.msra.mxu0 %vm18161_vm8, %v14894_v6  ;;  %14144 = vmatprep.mubr.msk.f32.mxu0 %vm16177_vm5, %v21533_v25 }
 0xcd3   :  { %14169 = vmatprep.subr.mxu0 %v21533_v25 }
 0xcd4   :  { %v7759_v15 = vpop.permute.xlu1 %7758 }
 0xcd5   :  { %14145 = vmatmul.mubr.msk.f32.gmra.mrb[148].mxu0 %vm3403_vm7, %v19584_v30  ;;  %14217 = vmatmul.mubr.msk.f32.vlgmr.msra.gmra.mrb[170].mxu1 %vm3403_vm7, %v7759_v15  ;;  %v14902_v30 = vpack.c.bf16 %v15279_v40, %v15278_v22 }
 0xcd6   :  { %14916 = vmatpush3.bf16.xpose.msk.msra.mxu1 %vm18161_vm8, %v14914_v24  ;;  %14147 = vmatprep.mubr.msk.f32.mxu0 %vm16177_vm5, %v21533_v25 }
 0xcd7   :  { %14219 = vmatprep.mubr.msk.f32.mxu1 %vm16177_vm5, %v21533_v25  ;;  %14244 = vmatprep.subr.mxu1 %v21533_v25 }
 0xcd8   :  { %v7761_v21 = vpop.permute.xlu1 %7760 }
 0xcd9   :  { %14148 = vmatmul.mubr.msk.f32.gmra.mrb[150].mxu0 %vm3403_vm7, %v19586_v48  ;;  %14220 = vmatmul.mubr.msk.f32.gmra.mrb[172].mxu1 %vm3403_vm7, %v7761_v21  ;;  %v7657_v48 = vpop.permute.xlu0 %7656 }
 0xcda   :  { %14170 = vmatpush3.xpose.msk.msra.mxu0 %vm3403_vm7, %v19588_v60  ;;  %14171 = vmatprep.mubr.msk.f32.mxu0 %vm16177_vm5, %v21533_v25 }
 0xcdb   :  { %14901 = vmatprep.subr.bf16.mxu0 %v21538_v37  ;;  %14222 = vmatprep.mubr.msk.f32.mxu1 %vm16177_vm5, %v21533_v25 }
 0xcdc   :  { %v7763_v28 = vpop.permute.xlu1 %7762 }
 0xcdd   :  { %14172 = vmatmul.mubr.msk.f32.vlgmr.msra.gmra.mrb[152].mxu0 %vm3403_vm7, %v7447_v46  ;;  %14223 = vmatmul.mubr.msk.f32.gmra.mrb[174].mxu1 %vm3403_vm7, %v7763_v28  ;;  %v15288_v46 = vunpack.i.l.bf16 %v19636_v2  ;;  %v7659_v39 = vpop.permute.xlu0 %7658 }
 0xcde   :  { %14904 = vmatpush3.bf16.xpose.msk.msra.mxu0 %vm18161_vm8, %v14902_v30  ;;  %14174 = vmatprep.mubr.msk.f32.mxu0 %vm16177_vm5, %v21533_v25 }
 0xcdf   :  { %14199 = vmatprep.subr.mxu0 %v21533_v25  ;;  %14246 = vmatprep.mubr.msk.f32.mxu1 %vm16177_vm5, %v21533_v25 }
 0xce0   :  { %v7977_v60 = vpop.permute.xlu1 %7976 }
 0xce1   :  { %14175 = vmatmul.mubr.msk.f32.gmra.mrb[154].mxu0 %vm3403_vm7, %v19611_v1  ;;  %14245 = vmatpush3.xpose.msk.msra.mxu1 %vm3403_vm7, %v7977_v60  ;;  %v14910_v1 = vpack.c.bf16 %v15289_v53, %v15288_v46 }
 0xce2   :  { %14177 = vmatprep.mubr.msk.f32.mxu0 %vm16177_vm5, %v21533_v25  ;;  %14920 = vmatprep.subr.bf16.mxu1 %v21538_v37 }
 0xce4   :  { %v7967_v0 = vpop.permute.xlu1 %7966 }
 0xce5   :  { %14178 = vmatmul.mubr.msk.f32.gmra.mrb[156].mxu0 %vm3403_vm7, %v19618_v11  ;;  %14247 = vmatmul.mubr.msk.f32.vlgmr.msra.gmra.mrb[176].mxu1 %vm3403_vm7, %v7967_v0  ;;  %v7873_v11 = vpop.permute.xlu0 %7872 }
 0xce6   :  { %14200 = vmatpush3.xpose.msk.msra.mxu0 %vm3403_vm7, %v19622_v57  ;;  %14201 = vmatprep.mubr.msk.f32.mxu0 %vm16177_vm5, %v21533_v25 }
 0xce7   :  { %14909 = vmatprep.subr.bf16.mxu0 %v21538_v37  ;;  %14249 = vmatprep.mubr.msk.f32.mxu1 %vm16177_vm5, %v21533_v25 }
 0xce8   :  { %v7969_v45 = vpop.permute.xlu1 %7968 }
 0xce9   :  { %14202 = vmatmul.mubr.msk.f32.vlgmr.msra.gmra.mrb[158].mxu0 %vm3403_vm7, %v7655_v4  ;;  %14250 = vmatmul.mubr.msk.f32.gmra.mrb[178].mxu1 %vm3403_vm7, %v7969_v45  ;;  %v7863_v13 = vpop.permute.xlu0 %7862 }
 0xcea   :  { %14912 = vmatpush3.bf16.xpose.msk.msra.mxu0 %vm18161_vm8, %v14910_v1  ;;  %14204 = vmatprep.mubr.msk.f32.mxu0 %vm16177_vm5, %v21533_v25 }
 0xceb   :  { %14252 = vmatprep.mubr.msk.f32.mxu1 %vm16177_vm5, %v21533_v25  ;;  %14229 = vmatprep.subr.mxu0 %v21533_v25 }
 0xcec   :  { %v7971_v57 = vpop.permute.xlu1 %7970 }
 0xced   :  { %14205 = vmatmul.mubr.msk.f32.gmra.mrb[160].mxu0 %vm3403_vm7, %v7657_v48  ;;  %14253 = vmatmul.mubr.msk.f32.gmra.mrb[180].mxu1 %vm3403_vm7, %v7971_v57  ;;  %v7865_v2 = vpop.permute.xlu0 %7864 }
 0xcee   :  { %14207 = vmatprep.mubr.msk.f32.mxu0 %vm16177_vm5, %v21533_v25  ;;  %14270 = vmatprep.mubr.msk.f32.mxu1 %vm16177_vm5, %v21533_v25 }
 0xcf1   :  { %14208 = vmatmul.mubr.msk.f32.gmra.mrb[162].mxu0 %vm3403_vm7, %v7659_v39  ;;  %v7867_v7 = vpop.permute.xlu0 %7866 }
 0xcf2   :  { %14230 = vmatpush3.xpose.msk.msra.mxu0 %vm3403_vm7, %v7873_v11  ;;  %14231 = vmatprep.mubr.msk.f32.mxu0 %vm16177_vm5, %v21533_v25 }
 0xcf3   :  { %14917 = vmatprep.subr.bf16.mxu0 %v21538_v37 }
 0xcf5   :  { %14232 = vmatmul.mubr.msk.f32.vlgmr.msra.gmra.mrb[164].mxu0 %vm3403_vm7, %v7863_v13 }
 0xcf6   :  { %14234 = vmatprep.mubr.msk.f32.mxu0 %vm16177_vm5, %v21533_v25 }
 0xcf9   :  { %14235 = vmatmul.mubr.msk.f32.gmra.mrb[166].mxu0 %vm3403_vm7, %v7865_v2 }
 0xcfa   :  { %14237 = vmatprep.mubr.msk.f32.mxu0 %vm16177_vm5, %v21533_v25 }
 0xcfd   :  { %14238 = vmatmul.mubr.msk.f32.gmra.mrb[168].mxu0 %vm3403_vm7, %v7867_v7 }
 0xcfe   :  { %14261 = vmatprep.mubr.msk.f32.mxu0 %vm16177_vm5, %v21533_v25 }
 0xd0b   :  { %v19736_v16 = vpop.f32.mrb[156].mxu1 }
 0xd0c   :  { %21678 = vst [vmem:[#allocation98_spill] sm:$0xff] %v19736_v16  ;;  %v14134_v3 = vpop.f32.mrb[157].mxu1 }
 0xd1e   :  { %v19738_v33 = vpop.f32.mrb[138].mxu0 }
 0xd1f   :  { %21679 = vst [vmem:[#allocation55_spill] sm:$0xff] %v19738_v33  ;;  %v14071_v20 = vpop.f32.mrb[139].mxu0 }
 0xd26   :  { %v19740_v6 = vpop.f32.mrb[140].mxu0 }
 0xd27   :  { %21680 = vst [vmem:[#allocation59_spill] sm:$0xff] %v19740_v6  ;;  %v14089_v47 = vpop.f32.mrb[141].mxu0 }
 0xd5f   :  { %v19742_v49 = vpop.f32.mrb[142].mxu0 }
 0xd60   :  { %21681 = vst [vmem:[#allocation99_spill] sm:$0xff] %v19742_v49  ;;  %v14107_v4 = vpop.f32.mrb[143].mxu0 }
 0xd80   :  { %v7432_v24 = vpop.f32.mrb[158].mxu1 }
 0xd81   :  { %v19744_v15 = vmul.f32 0.25, %v7432_v24  ;;  %v14158_v40 = vpop.f32.mrb[159].mxu1 }
 0xd83   :  { %v8103_v22 = vsel %vm4227_vm9, %v19744_v15, -inf }
 0xd84   :  { %8104 = vmax.xlane.f32.xlu0 %v8103_v22  ;;  %v7437_v21 = vpop.f32.mrb[160].mxu1 }
 0xd85   :  { %v19748_v30 = vmul.f32 0.25, %v7437_v21  ;;  %v14161_v28 = vpop.f32.mrb[161].mxu1 }
 0xd87   :  { %v8106_v48 = vsel %vm4227_vm9, %v19748_v30, -inf }
 0xd88   :  { %8107 = vmax.xlane.f32.xlu0 %v8106_v48  ;;  %v7442_v60 = vpop.f32.mrb[162].mxu1 }
 0xd89   :  { %v19752_v53 = vmul.f32 0.25, %v7442_v60  ;;  %v14164_v46 = vpop.f32.mrb[163].mxu1 }
 0xd8b   :  { %v8109_v39 = vsel %vm4234_vm10, %v19752_v53, -inf }
 0xd8c   :  { %8110 = vmax.xlane.f32.xlu0 %v8109_v39 }
 0xd94   :  { %v7640_v0 = vpop.f32.mrb[164].mxu1 }
 0xd95   :  { %v19756_v1 = vmul.f32 0.25, %v7640_v0  ;;  %v14188_v45 = vpop.f32.mrb[165].mxu1 }
 0xd97   :  { %v8121_v11 = vsel %vm4227_vm9, %v19756_v1, -inf }
 0xd98   :  { %v19760_v57 = vpop.f32.mrb[144].mxu0  ;;  %8122 = vmax.xlane.f32.xlu1 %v8121_v11  ;;  %v7645_v13 = vpop.f32.mrb[166].mxu1 }
 0xd99   :  { %21682 = vst [vmem:[#allocation95_spill] sm:$0xff] %v19760_v57  ;;  %v19762_v2 = vmul.f32 0.25, %v7645_v13  ;;  %v14125_v7 = vpop.f32.mrb[145].mxu0  ;;  %v14191_v3 = vpop.f32.mrb[167].mxu1 }
 0xd9b   :  { %v8124_v20 = vsel %vm4227_vm9, %v19762_v2, -inf }
 0xd9c   :  { %8125 = vmax.xlane.f32.xlu0 %v8124_v20  ;;  %v7650_v47 = vpop.f32.mrb[168].mxu1 }
 0xd9d   :  { %v19766_v4 = vmul.f32 0.25, %v7650_v47  ;;  %v14194_v24 = vpop.f32.mrb[169].mxu1 }
 0xd9f   :  { %v8127_v40 = vsel %vm4234_vm10, %v19766_v4, -inf }
 0xda0   :  { %8128 = vmax.xlane.f32.xlu0 %v8127_v40 }
 0xda4   :  { %v19770_v22 = vpop.f32.mrb[146].mxu0 }
 0xda5   :  { %v14143_v21 = vpop.f32.mrb[147].mxu0 }
 0xda8   :  { %v19772_v28 = vpop.f32.mrb[148].mxu0  ;;  %v7848_v48 = vpop.f32.mrb[170].mxu1 }
 0xda9   :  { %v14146_v60 = vpop.f32.mrb[149].mxu0  ;;  %v19774_v46 = vmul.f32 0.25, %v7848_v48  ;;  %v14218_v39 = vpop.f32.mrb[171].mxu1 }
 0xdab   :  { %v8139_v0 = vsel %vm4227_vm9, %v19774_v46, -inf }
 0xdac   :  { %v19778_v45 = vpop.f32.mrb[150].mxu0  ;;  %8140 = vmax.xlane.f32.xlu1 %v8139_v0  ;;  %v7853_v11 = vpop.f32.mrb[172].mxu1 }
 0xdad   :  { %v14149_v13 = vpop.f32.mrb[151].mxu0  ;;  %v19780_v7 = vmul.f32 0.25, %v7853_v11  ;;  %v14221_v3 = vpop.f32.mrb[173].mxu1 }
 0xdaf   :  { %v8142_v20 = vsel %vm4227_vm9, %v19780_v7, -inf }
 0xdb0   :  { %v19784_v47 = vpop.f32.mrb[152].mxu0  ;;  %8143 = vmax.xlane.f32.xlu0 %v8142_v20  ;;  %v7858_v24 = vpop.f32.mrb[174].mxu1 }
 0xdb1   :  { %v14173_v40 = vpop.f32.mrb[153].mxu0  ;;  %v19786_v21 = vmul.f32 0.25, %v7858_v24  ;;  %v14224_v48 = vpop.f32.mrb[175].mxu1  ;;  %v21683_v24 = vld [vmem:[#allocation34_spill] sm:$0xff] }
 0xdb3   :  { %v8145_v60 = vsel %vm4234_vm10, %v19786_v21, -inf }
 0xdb4   :  { %v19790_v39 = vpop.f32.mrb[154].mxu0  ;;  %8146 = vmax.xlane.f32.xlu0 %v8145_v60  ;;  %v21684_v60 = vld [vmem:[#allocation91_spill] sm:$0xff] }
 0xdb5   :  { %v14176_v0 = vpop.f32.mrb[155].mxu0 }
 0xdb8   :  { %v19792_v11 = vpop.f32.mrb[156].mxu0  ;;  %v8056_v13 = vpop.f32.mrb[176].mxu1 }
 0xdb9   :  { %v14179_v3 = vpop.f32.mrb[157].mxu0  ;;  %v14248_v16 = vpop.f32.mrb[177].mxu1  ;;  %v19830_v5 = vmul.f32 0.25, %v8056_v13 }
 0xdba   :  { %v21685_v16 = vld [vmem:[#allocation43_spill] sm:$0xff] }
 0xdbc   :  { %v19794_v57 = vpop.f32.mrb[158].mxu0  ;;  %v8061_v20 = vpop.f32.mrb[178].mxu1 }
 0xdbd   :  { %v14203_v49 = vpop.f32.mrb[159].mxu0  ;;  %15296 = vrot.lane.b32.xlu1 %v21683_v24, %s16183_s26  ;;  %v14251_v40 = vpop.f32.mrb[179].mxu1  ;;  %v21686_v24 = vld [vmem:[#allocation50_spill] sm:$0xff] }
 0xdbe   :  { %v21687_v40 = vld [vmem:[#allocation39_spill] sm:$0xff] }
 0xdc0   :  { %v19798_v48 = vpop.f32.mrb[160].mxu0  ;;  %v8066_v33 = vpop.f32.mrb[180].mxu1 }
 0xdc1   :  { %v14206_v6 = vpop.f32.mrb[161].mxu0  ;;  %8530 = vrot.lane.b32.xlu1 %v21684_v60, %s16183_s26  ;;  %v14254_v0 = vpop.f32.mrb[181].mxu1 }
 0xdc2   :  { %v21688_v0 = vld [vmem:[#allocation56_spill] sm:$0xff] }
 0xdc4   :  { %v19802_v63 = vpop.f32.mrb[162].mxu0 }
 0xdc5   :  { %v14209_v3 = vpop.f32.mrb[163].mxu0  ;;  %15306 = vrot.lane.b32.xlu1 %v21685_v16, %s16183_s26 }
 0xdc6   :  { %v21689_v3 = vld [vmem:[#allocation42_spill] sm:$0xff] }
 0xdc8   :  { %v19806_v58 = vpop.f32.mrb[164].mxu0 }
 0xdc9   :  { %v14233_v49 = vpop.f32.mrb[165].mxu0  ;;  %15311 = vrot.lane.b32.xlu1 %v21686_v24, %s16183_s26  ;;  %v21691_v24 = vld [vmem:[#allocation90_spill] sm:$0xff] }
 0xdca   :  { %15301 = vrot.lane.b32.xlu0 %v21687_v40, %s16183_s26  ;;  %v21690_v49 = vld [vmem:[#allocation65_spill] sm:$0xff] }
 0xdcb   :  { %v21692_v40 = vld [vmem:[#allocation73_spill] sm:$0xff] }
 0xdcc   :  { %v19812_v6 = vpop.f32.mrb[166].mxu0 }
 0xdcd   :  { %v14236_v43 = vpop.f32.mrb[167].mxu0  ;;  %15316 = vrot.lane.b32.xlu1 %v21688_v0, %s16183_s26  ;;  %v21694_v0 = vld [vmem:[#allocation49_spill] sm:$0xff] }
 0xdce   :  { %8613 = vrot.lane.b32.xlu0 %v21689_v3, %s16183_s26  ;;  %v21693_v43 = vld [vmem:[#allocation38_spill] sm:$0xff]  ;;  %v19832_v3 = vmul.f32 0.25, %v8061_v20 }
 0xdd0   :  { %v19818_v60 = vpop.f32.mrb[168].mxu0 }
 0xdd1   :  { %v14239_v16 = vpop.f32.mrb[169].mxu0  ;;  %15321 = vrot.lane.b32.xlu1 %v21690_v49, %s16183_s26  ;;  %v8157_v49 = vsel %vm4227_vm9, %v19830_v5, -inf }
 0xdd2   :  { %8696 = vrot.lane.b32.xlu0 %v21691_v24, %s16183_s26  ;;  %v19834_v16 = vmul.f32 0.25, %v8066_v33  ;;  %v8160_v24 = vsel %vm4227_vm9, %v19832_v3, -inf }
 0xdd5   :  { %15326 = vrot.lane.b32.xlu1 %v21692_v40, %s16183_s26  ;;  %v8163_v40 = vsel %vm4234_vm10, %v19834_v16, -inf }
 0xdd6   :  { %8779 = vrot.lane.b32.xlu0 %v21693_v43, %s16183_s26 }
 0xdda   :  { %8862 = vrot.lane.b32.xlu0 %v21694_v0, %s16183_s26 }
 0xdf9   :  { %8158 = vmax.xlane.f32.xlu1 %v8157_v49  ;;  %8161 = vmax.xlane.f32.xlu0 %v8160_v24 }
 0xdfd   :  { %8164 = vmax.xlane.f32.xlu0 %v8163_v40 }
 0xe11   :  { %v8105_v43 = vpop.xlane.xlu0 %8104 }
 0xe12   :  { %v8169_v13 = vsub.f32 %v19744_v15, %v8105_v43 }
 0xe14   :  { %v8196_v0 = vmul.f32 1.442695, %v8169_v13 }
 0xe15   :  { %v8108_v20 = vpop.xlane.xlu0 %8107 }
 0xe16   :  { %15901 = vpow2.f32 %v8196_v0  ;;  %v8170_v33 = vsub.f32 %v19748_v30, %v8108_v20 }
 0xe18   :  { %v8198_v17 = vmul.f32 1.442695, %v8170_v33 }
 0xe19   :  { %v8111_v18 = vpop.xlane.xlu0 %8110 }
 0xe1a   :  { %15903 = vpow2.f32 %v8198_v17  ;;  %v8171_v19 = vsub.f32 %v19752_v53, %v8111_v18 }
 0xe1c   :  { %v8200_v44 = vmul.f32 1.442695, %v8171_v19 }
 0xe1e   :  { %15905 = vpow2.f32 %v8200_v44 }
 0xe20   :  { %v19845_v24 = vpop.eup %15901 }
 0xe21   :  { %v8247_v40 = vsel %vm4227_vm9, %v19845_v24, 0.0 }
 0xe22   :  { %8248 = vadd.xlane.f32.xlu1 %v8247_v40 }
 0xe24   :  { %v19849_v49 = vpop.eup %15903 }
 0xe25   :  { %v8123_v15 = vpop.xlane.xlu1 %8122  ;;  %v8250_v0 = vsel %vm4227_vm9, %v19849_v49, 0.0 }
 0xe26   :  { %v8175_v30 = vsub.f32 %v19756_v1, %v8123_v15  ;;  %8251 = vadd.xlane.f32.xlu0 %v8250_v0 }
 0xe28   :  { %v19854_v17 = vpop.eup %15905  ;;  %v8208_v18 = vmul.f32 1.442695, %v8175_v30 }
 0xe29   :  { %v8126_v19 = vpop.xlane.xlu0 %8125  ;;  %v8253_v44 = vsel %vm4234_vm10, %v19854_v17, 0.0 }
 0xe2a   :  { %15907 = vpow2.f32 %v8208_v18  ;;  %v8176_v53 = vsub.f32 %v19762_v2, %v8126_v19  ;;  %8254 = vadd.xlane.f32.xlu0 %v8253_v44 }
 0xe2c   :  { %v8210_v43 = vmul.f32 1.442695, %v8176_v53 }
 0xe2d   :  { %v8129_v13 = vpop.xlane.xlu0 %8128 }
 0xe2e   :  { %15909 = vpow2.f32 %v8210_v43  ;;  %v8177_v20 = vsub.f32 %v19766_v4, %v8129_v13 }
 0xe30   :  { %v8212_v33 = vmul.f32 1.442695, %v8177_v20 }
 0xe32   :  { %15911 = vpow2.f32 %v8212_v33 }
 0xe34   :  { %v19860_v1 = vpop.eup %15907 }
 0xe35   :  { %v8265_v40 = vsel %vm4227_vm9, %v19860_v1, 0.0 }
 0xe36   :  { %8266 = vadd.xlane.f32.xlu1 %v8265_v40 }
 0xe38   :  { %v19864_v15 = vpop.eup %15909 }
 0xe39   :  { %v8141_v0 = vpop.xlane.xlu1 %8140  ;;  %v8268_v2 = vsel %vm4227_vm9, %v19864_v15, 0.0 }
 0xe3a   :  { %v8181_v30 = vsub.f32 %v19774_v46, %v8141_v0  ;;  %8269 = vadd.xlane.f32.xlu0 %v8268_v2 }
 0xe3c   :  { %v19869_v18 = vpop.eup %15911  ;;  %v8220_v4 = vmul.f32 1.442695, %v8181_v30 }
 0xe3d   :  { %v15297_v19 = vpop.permute.xlu1 %15296  ;;  %v8144_v44 = vpop.xlane.xlu0 %8143  ;;  %v8271_v53 = vsel %vm4234_vm10, %v19869_v18, 0.0 }
 0xe3e   :  { %15913 = vpow2.f32 %v8220_v4  ;;  %v15299_v43 = vunpack.i.h.bf16 %v15297_v19  ;;  %v15298_v13 = vunpack.i.l.bf16 %v15297_v19  ;;  %v8182_v20 = vsub.f32 %v19780_v7, %v8144_v44  ;;  %8272 = vadd.xlane.f32.xlu0 %v8271_v53 }
 0xe40   :  { %v14918_v33 = vpack.c.bf16 %v15299_v43, %v15298_v13  ;;  %v8222_v40 = vmul.f32 1.442695, %v8182_v20 }
 0xe41   :  { %v8147_v9 = vpop.xlane.xlu0 %8146  ;;  %v8531_v2 = vpop.permute.xlu1 %8530 }
 0xe42   :  { %15915 = vpow2.f32 %v8222_v40  ;;  %v8183_v46 = vsub.f32 %v19786_v21, %v8147_v9  ;;  %14919 = vmatpush3.bf16.msra.mxu0 %v14918_v33 }
 0xe43   :  { %14259 = vmatprep.subr.mxu0 %v21533_v25 }
 0xe44   :  { %v8224_v0 = vmul.f32 1.442695, %v8183_v46 }
 0xe45   :  { %v15302_v30 = vpop.permute.xlu0 %15301  ;;  %v19893_v13 = vpop.permute.xlu1 %15306 }
 0xe46   :  { %15917 = vpow2.f32 %v8224_v0  ;;  %v15304_v8 = vunpack.i.h.bf16 %v15302_v30  ;;  %14260 = vmatpush3.msk.msra.mxu0 %vm4664_vm11, %v8531_v2  ;;  %v15303_v4 = vunpack.i.l.bf16 %v15302_v30  ;;  %21695 = vst [vmem:[#allocation54_spill] sm:$0xff] %v19893_v13 }
 0xe47   :  { %14923 = vmatprep.subr.bf16.mxu0 %v21538_v37 }
 0xe48   :  { %v19878_v7 = vpop.eup %15913  ;;  %v14921_v19 = vpack.c.bf16 %v15304_v8, %v15303_v4 }
 0xe49   :  { %v8283_v44 = vsel %vm4227_vm9, %v19878_v7, 0.0  ;;  %v8614_v53 = vpop.permute.xlu0 %8613  ;;  %v19895_v20 = vpop.permute.xlu1 %15311 }
 0xe4a   :  { %8284 = vadd.xlane.f32.xlu1 %v8283_v44  ;;  %14922 = vmatpush3.bf16.msra.mxu1 %v14921_v19 }
 0xe4b   :  { %14268 = vmatprep.subr.mxu1 %v21533_v25 }
 0xe4c   :  { %v19882_v9 = vpop.eup %15915 }
 0xe4d   :  { %v8286_v21 = vsel %vm4227_vm9, %v19882_v9, 0.0  ;;  %v19897_v33 = vpop.permute.xlu1 %15316  ;;  %v19899_v40 = vpop.permute.xlu0 %8696 }
 0xe4e   :  { %8287 = vadd.xlane.f32.xlu0 %v8286_v21  ;;  %14269 = vmatpush3.msk.msra.mxu1 %vm4664_vm11, %v8614_v53  ;;  %21696 = vst [vmem:[#allocation53_spill] sm:$0xff] %v19897_v33  ;;  %21697 = vst [vmem:[#allocation102_spill] sm:$0xff] %v19899_v40 }
 0xe4f   :  { %14926 = vmatprep.subr.bf16.mxu1 %v21538_v37 }
 0xe50   :  { %v19888_v43 = vpop.eup %15917 }
 0xe51   :  { %v8289_v8 = vsel %vm4234_vm10, %v19888_v43, 0.0  ;;  %v19901_v46 = vpop.permute.xlu1 %15321  ;;  %v19903_v0 = vpop.permute.xlu0 %8779 }
 0xe52   :  { %8290 = vadd.xlane.f32.xlu0 %v8289_v8 }
 0xe55   :  { %v19905_v2 = vpop.permute.xlu1 %15326  ;;  %v19907_v30 = vpop.permute.xlu0 %8862 }
 0xe56   :  { %21698 = vst [vmem:[#allocation74_spill] sm:$0xff] %v19905_v2  ;;  %21699 = vst [vmem:[#allocation75_spill] sm:$0xff] %v19907_v30  ;;  %v19917_v30 = vmul.f32 0.25, %v19772_v28 }
 0xe86   :  { %v8159_v4 = vpop.xlane.xlu1 %8158  ;;  %v8162_v19 = vpop.xlane.xlu0 %8161 }
 0xe87   :  { %v8187_v44 = vsub.f32 %v19830_v5, %v8159_v4  ;;  %v8188_v21 = vsub.f32 %v19832_v3, %v8162_v19 }
 0xe89   :  { %v8232_v53 = vmul.f32 1.442695, %v8187_v44  ;;  %v8234_v8 = vmul.f32 1.442695, %v8188_v21  ;;  %v19946_v21 = vmul.f32 0.25, %v19792_v11  ;;  %v19961_v11 = vmul.f32 0.25, %v19812_v6 }
 0xe8a   :  { %v8165_v13 = vpop.xlane.xlu0 %8164 }
 0xe8b   :  { %15919 = vpow2.f32 %v8232_v53  ;;  %v8189_v40 = vsub.f32 %v19834_v16, %v8165_v13  ;;  %v19926_v16 = vmul.f32 0.25, %v19778_v45  ;;  %v8097_v13 = vsel %vm4227_vm9, %v19917_v30, -inf }
 0xe8c   :  { %15921 = vpow2.f32 %v8234_v8  ;;  %v19941_v45 = vmul.f32 0.25, %v19790_v39  ;;  %v19956_v39 = vmul.f32 0.25, %v19794_v57  ;;  %v8118_v8 = vsel %vm4234_vm10, %v19946_v21, -inf }
 0xe8d   :  { %v8236_v33 = vmul.f32 1.442695, %v8189_v40  ;;  %v19936_v40 = vmul.f32 0.25, %v19784_v47  ;;  %v8100_v19 = vsel %vm4234_vm10, %v19926_v16, -inf  ;;  %v19951_v47 = vmul.f32 0.25, %v19798_v48 }
 0xe8e   :  { %v8115_v53 = vsel %vm4227_vm9, %v19941_v45, -inf  ;;  %v19966_v48 = vmul.f32 0.25, %v19802_v63  ;;  %v8151_v57 = vsel %vm4227_vm9, %v19961_v11, -inf }
 0xe8f   :  { %15923 = vpow2.f32 %v8236_v33  ;;  %v19933_v33 = vmul.f32 0.25, %v19770_v22  ;;  %v8112_v22 = vsel %vm4227_vm9, %v19936_v40, -inf }
 0xe90   :  { %v8136_v6 = vsel %vm4234_vm10, %v19966_v48, -inf }
 0xe91   :  { %v8094_v44 = vsel %vm4227_vm9, %v19933_v33, -inf }
 0xe95   :  { %v19912_v51 = vpop.eup %15919 }
 0xe96   :  { %v19914_v2 = vpop.eup %15921  ;;  %v8301_v5 = vsel %vm4227_vm9, %v19912_v51, 0.0 }
 0xe97   :  { %8302 = vadd.xlane.f32.xlu1 %v8301_v5  ;;  %v8304_v3 = vsel %vm4227_vm9, %v19914_v2, 0.0  ;;  %v8133_v5 = vsel %vm4227_vm9, %v19951_v47, -inf }
 0xe98   :  { %8305 = vadd.xlane.f32.xlu0 %v8304_v3  ;;  %v8130_v3 = vsel %vm4227_vm9, %v19956_v39, -inf }
 0xe99   :  { %v19923_v4 = vpop.eup %15923 }
 0xe9a   :  { %v8307_v28 = vsel %vm4234_vm10, %v19923_v4, 0.0 }
 0xe9b   :  { %8098 = vmax.xlane.f32.xlu1 %v8097_v13  ;;  %v19973_v13 = vmul.f32 0.25, %v19806_v58 }
 0xe9c   :  { %8308 = vadd.xlane.f32.xlu0 %v8307_v28 }
 0xe9d   :  { %v8148_v63 = vsel %vm4227_vm9, %v19973_v13, -inf }
 0xe9f   :  { %8101 = vmax.xlane.f32.xlu1 %v8100_v19 }
 0xea0   :  { %8095 = vmax.xlane.f32.xlu0 %v8094_v44 }
 0xea3   :  { %8113 = vmax.xlane.f32.xlu1 %v8112_v22 }
 0xea4   :  { %8116 = vmax.xlane.f32.xlu0 %v8115_v53 }
 0xea7   :  { %8119 = vmax.xlane.f32.xlu1 %v8118_v8 }
 0xea8   :  { %8134 = vmax.xlane.f32.xlu0 %v8133_v5 }
 0xeab   :  { %8131 = vmax.xlane.f32.xlu1 %v8130_v3 }
 0xeac   :  { %8152 = vmax.xlane.f32.xlu0 %v8151_v57 }
 0xeaf   :  { %8137 = vmax.xlane.f32.xlu1 %v8136_v6  ;;  %v8249_v28 = vpop.xlane.xlu1 %8248  ;;  %v21700_v6 = vld [vmem:[#allocation37_spill] sm:$0xff] }
 0xeb0   :  { %15925 = vrcp.f32 %v8249_v28 }
 0xeb3   :  { %8149 = vmax.xlane.f32.xlu1 %v8148_v63  ;;  %v8252_v19 = vpop.xlane.xlu0 %8251  ;;  %v21701_v63 = vld [vmem:[#allocation84_spill] sm:$0xff] }
 0xeb4   :  { %15927 = vrcp.f32 %v8252_v19 }
 0xeb7   :  { %v8255_v44 = vpop.xlane.xlu0 %8254 }
 0xeb8   :  { %15929 = vrcp.f32 %v8255_v44 }
 0xeba   :  { %v15926_v22 = vpop.eup %15925 }
 0xebb   :  { %v8337_v53 = vmul.f32 %v15926_v22, %v8249_v28 }
 0xebd   :  { %v8361_v8 = vsub.f32 2.0, %v8337_v53 }
 0xebe   :  { %v15928_v5 = vpop.eup %15927 }
 0xebf   :  { %v8338_v58 = vmul.f32 %v15928_v5, %v8252_v19  ;;  %v8385_v3 = vmul.f32 %v15926_v22, %v8361_v8 }
 0xec1   :  { %v8362_v57 = vsub.f32 2.0, %v8338_v58  ;;  %v8409_v29 = vmul.f32 %v19845_v24, %v8385_v3 }
 0xec2   :  { %v15930_v26 = vpop.eup %15929  ;;  %8945 = vrot.lane.b32.xlu0 %v21700_v6, %s16183_s26 }
 0xec3   :  { %v8386_v42 = vmul.f32 %v15928_v5, %v8362_v57  ;;  %v8339_v31 = vmul.f32 %v15930_v26, %v8255_v44  ;;  %v8267_v62 = vpop.xlane.xlu1 %8266  ;;  %v8441_v58 = vsel %vm4227_vm9, %v8409_v29, 0.0 }
 0xec4   :  { %15931 = vrcp.f32 %v8267_v62  ;;  %15331 = vrot.lane.b32.xlu1 %v21701_v63, %s16183_s26 }
 0xec5   :  { %v8410_v28 = vmul.f32 %v19849_v49, %v8386_v42  ;;  %v8363_v53 = vsub.f32 2.0, %v8339_v31 }
 0xec7   :  { %v8442_v19 = vsel %vm4227_vm9, %v8410_v28, 0.0  ;;  %v8387_v22 = vmul.f32 %v15930_v26, %v8363_v53  ;;  %v8270_v8 = vpop.xlane.xlu0 %8269 }
 0xec8   :  { %15933 = vrcp.f32 %v8270_v8  ;;  %v8443_v44 = vadd.f32 %v8442_v19, %v8441_v58  ;;  %v15313_v19 = vunpack.i.l.bf16 %v19895_v20 }
 0xec9   :  { %v8411_v5 = vmul.f32 %v19854_v17, %v8387_v22  ;;  %v15314_v17 = vunpack.i.h.bf16 %v19895_v20 }
 0xecb   :  { %v8444_v57 = vsel %vm4234_vm10, %v8411_v5, 0.0  ;;  %v8273_v6 = vpop.xlane.xlu0 %8272 }
 0xecc   :  { %v8445_v56 = vadd.f32 %v8444_v57, %v8443_v44  ;;  %15935 = vrcp.f32 %v8273_v6 }
 0xece   :  { %v15932_v63 = vpop.eup %15931  ;;  %v8446_v24 = vrot.slane %v8445_v56, 4 }
 0xecf   :  { %v8343_v3 = vmul.f32 %v15932_v63, %v8267_v62 }
 0xed0   :  { %v8447_v42 = vadd.f32 %v8446_v24, %v8445_v56  ;;  %v14927_v24 = vpack.c.bf16 %v15314_v17, %v15313_v19 }
 0xed1   :  { %v8367_v31 = vsub.f32 2.0, %v8343_v3 }
 0xed2   :  { %v15934_v49 = vpop.eup %15933  ;;  %v8448_v28 = vrot.slane %v8447_v42, 2 }
 0xed3   :  { %v8344_v26 = vmul.f32 %v15934_v49, %v8270_v8  ;;  %v8391_v38 = vmul.f32 %v15932_v63, %v8367_v31 }
 0xed4   :  { %v8449_v53 = vadd.f32 %v8448_v28, %v8447_v42  ;;  %v15324_v28 = vunpack.i.h.bf16 %v19901_v46 }
 0xed5   :  { %v8368_v55 = vsub.f32 2.0, %v8344_v26  ;;  %v8415_v44 = vmul.f32 %v19860_v1, %v8391_v38  ;;  %v15323_v26 = vunpack.i.l.bf16 %v19901_v46 }
 0xed6   :  { %v15936_v29 = vpop.eup %15935  ;;  %v8450_v34 = vrot.slane %v8449_v53, 1 }
 0xed7   :  { %v8392_v22 = vmul.f32 %v15934_v49, %v8368_v55  ;;  %v8345_v58 = vmul.f32 %v15936_v29, %v8273_v6  ;;  %v8463_v3 = vsel %vm4227_vm9, %v8415_v44, 0.0  ;;  %v8285_v17 = vpop.xlane.xlu1 %8284 }
 0xed8   :  { %v8451_v5 = vadd.f32 %v8450_v34, %v8449_v53 }
 0xed9   :  { %v8416_v56 = vmul.f32 %v19864_v15, %v8392_v22  ;;  %v8369_v62 = vsub.f32 2.0, %v8345_v58  ;;  %v20005_v15 = vmul.f32 0.25, %v19818_v60 }
 0xeda   :  { %v8519_v57 = vmul.f32 0.05, %v8451_v5 }
 0xedb   :  { %v8464_v8 = vsel %vm4227_vm9, %v8416_v56, 0.0  ;;  %v8393_v63 = vmul.f32 %v15936_v29, %v8369_v62  ;;  %v8154_v6 = vsel %vm4234_vm10, %v20005_v15, -inf  ;;  %v14933_v29 = vpack.c.bf16 %v15324_v28, %v15323_v26  ;;  %v8288_v60 = vpop.xlane.xlu0 %8287 }
 0xedc   :  { %14271 = vmatmul.mubr.msk.f32.vlgmr.msra.gmra.mrb[182].mxu1 %vm4227_vm9, %v8519_v57  ;;  %v8465_v34 = vadd.f32 %v8464_v8, %v8463_v3  ;;  %15937 = vrcp.f32 %v8288_v60 }
 0xedd   :  { %v8417_v42 = vmul.f32 %v19869_v18, %v8393_v63  ;;  %14928 = vmatpush3.bf16.msra.mxu1 %v14927_v24  ;;  %14288 = vmatprep.mubr.msk.f32.mxu1 %vm16177_vm5, %v21533_v25  ;;  %15939 = vrcp.f32 %v8285_v17 }
 0xede   :  { %14286 = vmatprep.subr.mxu1 %v21533_v25 }
 0xedf   :  { %v8466_v55 = vsel %vm4234_vm10, %v8417_v42, 0.0  ;;  %v8291_v19 = vpop.xlane.xlu0 %8290 }
 0xee0   :  { %v8467_v38 = vadd.f32 %v8466_v55, %v8465_v34  ;;  %15941 = vrcp.f32 %v8291_v19 }
 0xee1   :  { %14287 = vmatpush3.msk.msra.mxu1 %vm4664_vm11, %v19903_v0 }
 0xee2   :  { %v8468_v1 = vrot.slane %v8467_v38, 4  ;;  %14932 = vmatprep.subr.bf16.mxu1 %v21538_v37 }
 0xee4   :  { %v8469_v18 = vadd.f32 %v8468_v1, %v8467_v38 }
 0xee6   :  { %v8470_v20 = vrot.slane %v8469_v18, 2  ;;  %v15938_v22 = vpop.eup %15937 }
 0xee7   :  { %v15940_v58 = vpop.eup %15939  ;;  %v8350_v5 = vmul.f32 %v15938_v22, %v8288_v60 }
 0xee8   :  { %8155 = vmax.xlane.f32.xlu1 %v8154_v6  ;;  %v8471_v31 = vadd.f32 %v8470_v20, %v8469_v18  ;;  %v8349_v44 = vmul.f32 %v15940_v58, %v8285_v17 }
 0xee9   :  { %v8374_v62 = vsub.f32 2.0, %v8350_v5 }
 0xeea   :  { %v8472_v49 = vrot.slane %v8471_v31, 1  ;;  %v15942_v46 = vpop.eup %15941  ;;  %v8373_v57 = vsub.f32 2.0, %v8349_v44 }
 0xeeb   :  { %v8351_v56 = vmul.f32 %v15942_v46, %v8291_v19  ;;  %v8398_v8 = vmul.f32 %v15938_v22, %v8374_v62 }
 0xeec   :  { %v8473_v53 = vadd.f32 %v8472_v49, %v8471_v31  ;;  %v8397_v63 = vmul.f32 %v15940_v58, %v8373_v57 }
 0xeed   :  { %v8375_v24 = vsub.f32 2.0, %v8351_v56  ;;  %v8422_v42 = vmul.f32 %v19882_v9, %v8398_v8 }
 0xeee   :  { %v8521_v0 = vmul.f32 0.05, %v8473_v53  ;;  %v8421_v34 = vmul.f32 %v19878_v7, %v8397_v63 }
 0xeef   :  { %v8399_v3 = vmul.f32 %v15942_v46, %v8375_v24  ;;  %v8486_v38 = vsel %vm4227_vm9, %v8422_v42, 0.0 }
 0xef0   :  { %14289 = vmatmul.mubr.msk.f32.vlgmr.msra.gmra.mrb[184].mxu1 %vm4227_vm9, %v8521_v0  ;;  %v8485_v1 = vsel %vm4227_vm9, %v8421_v34, 0.0 }
 0xef1   :  { %14934 = vmatpush3.bf16.msra.mxu1 %v14933_v29  ;;  %14306 = vmatprep.mubr.msk.f32.mxu1 %vm16177_vm5, %v21533_v25  ;;  %v8423_v55 = vmul.f32 %v19888_v43, %v8399_v3  ;;  %v8487_v20 = vadd.f32 %v8486_v38, %v8485_v1 }
 0xef2   :  { %14304 = vmatprep.subr.mxu1 %v21533_v25 }
 0xef3   :  { %v8488_v18 = vsel %vm4234_vm10, %v8423_v55, 0.0 }
 0xef4   :  { %v8489_v6 = vadd.f32 %v8488_v18, %v8487_v20 }
 0xef6   :  { %v8490_v49 = vrot.slane %v8489_v6, 4 }
 0xef8   :  { %v8491_v53 = vadd.f32 %v8490_v49, %v8489_v6 }
 0xefa   :  { %v8492_v29 = vrot.slane %v8491_v53, 2 }
 0xefc   :  { %v8493_v56 = vadd.f32 %v8492_v29, %v8491_v53 }
 0xefe   :  { %v8494_v63 = vrot.slane %v8493_v56, 1 }
 0xf00   :  { %v8495_v1 = vadd.f32 %v8494_v63, %v8493_v56 }
 0xf02   :  { %v8523_v49 = vmul.f32 0.05, %v8495_v1 }
 0xf24   :  { %v20021_v31 = vpop.xlane.xlu1 %8302 }
 0xf25   :  { %v20023_v28 = vpop.xlane.xlu0 %8305 }
 0xf28   :  { %v8099_v26 = vpop.xlane.xlu1 %8098 }
 0xf29   :  { %v8167_v9 = vsub.f32 %v19917_v30, %v8099_v26  ;;  %v20026_v7 = vpop.xlane.xlu0 %8308 }
 0xf2b   :  { %v8192_v43 = vmul.f32 1.442695, %v8167_v9 }
 0xf2c   :  { %v8102_v0 = vpop.xlane.xlu1 %8101 }
 0xf2d   :  { %15943 = vpow2.f32 %v8192_v43  ;;  %v8168_v60 = vsub.f32 %v19926_v16, %v8102_v0  ;;  %v8096_v17 = vpop.xlane.xlu0 %8095 }
 0xf2e   :  { %v8166_v19 = vsub.f32 %v19933_v33, %v8096_v17 }
 0xf2f   :  { %v8194_v22 = vmul.f32 1.442695, %v8168_v60 }
 0xf30   :  { %v8190_v58 = vmul.f32 1.442695, %v8166_v19  ;;  %v8114_v46 = vpop.xlane.xlu1 %8113 }
 0xf31   :  { %v8172_v5 = vsub.f32 %v19936_v40, %v8114_v46  ;;  %v8117_v44 = vpop.xlane.xlu0 %8116 }
 0xf32   :  { %15945 = vpow2.f32 %v8190_v58  ;;  %v8173_v30 = vsub.f32 %v19941_v45, %v8117_v44 }
 0xf33   :  { %15947 = vpow2.f32 %v8194_v22  ;;  %v8202_v62 = vmul.f32 1.442695, %v8172_v5 }
 0xf34   :  { %v8204_v57 = vmul.f32 1.442695, %v8173_v30  ;;  %v8120_v24 = vpop.xlane.xlu1 %8119 }
 0xf35   :  { %v8174_v8 = vsub.f32 %v19946_v21, %v8120_v24  ;;  %v8135_v16 = vpop.xlane.xlu0 %8134 }
 0xf36   :  { %15949 = vpow2.f32 %v8204_v57  ;;  %v8179_v33 = vsub.f32 %v19951_v47, %v8135_v16 }
 0xf37   :  { %v20034_v3 = vpop.eup %15943  ;;  %15951 = vpow2.f32 %v8202_v62  ;;  %v8206_v40 = vmul.f32 1.442695, %v8174_v8 }
 0xf38   :  { %v8216_v42 = vmul.f32 1.442695, %v8179_v33  ;;  %v8132_v34 = vpop.xlane.xlu1 %8131  ;;  %v8241_v45 = vsel %vm4227_vm9, %v20034_v3, 0.0 }
 0xf39   :  { %v8178_v55 = vsub.f32 %v19956_v39, %v8132_v34  ;;  %v8153_v38 = vpop.xlane.xlu0 %8152  ;;  %8242 = vadd.xlane.f32.xlu0 %v8241_v45 }
 0xf3a   :  { %15953 = vpow2.f32 %v8216_v42  ;;  %v8185_v62 = vsub.f32 %v19961_v11, %v8153_v38 }
 0xf3b   :  { %15955 = vpow2.f32 %v8206_v40  ;;  %v8214_v18 = vmul.f32 1.442695, %v8178_v55 }
 0xf3c   :  { %v20039_v21 = vpop.eup %15945  ;;  %v8138_v47 = vpop.xlane.xlu1 %8137  ;;  %v8228_v57 = vmul.f32 1.442695, %v8185_v62 }
 0xf3d   :  { %v8946_v20 = vpop.permute.xlu0 %8945  ;;  %v8238_v6 = vsel %vm4227_vm9, %v20039_v21, 0.0  ;;  %v20043_v26 = vpop.eup %15947  ;;  %15957 = vpow2.f32 %v8214_v18  ;;  %v8180_v24 = vsub.f32 %v19966_v48, %v8138_v47 }
 0xf3e   :  { %8239 = vadd.xlane.f32.xlu1 %v8238_v6  ;;  %14305 = vmatpush3.msk.msra.mxu1 %vm4664_vm11, %v8946_v20  ;;  %v8244_v9 = vsel %vm4234_vm10, %v20043_v26, 0.0  ;;  %15959 = vpow2.f32 %v8228_v57  ;;  %v21705_v57 = vld [vmem:[#allocation32_spill] sm:$0xff] }
 0xf3f   :  { %14307 = vmatmul.mubr.msk.f32.vlgmr.msra.gmra.mrb[186].mxu1 %vm4227_vm9, %v8523_v49  ;;  %14938 = vmatprep.subr.bf16.mxu1 %v21538_v37  ;;  %v8218_v8 = vmul.f32 1.442695, %v8180_v24  ;;  %v21706_v24 = vld [vmem:[#allocation89_spill] sm:$0xff] }
 0xf40   :  { %v20048_v39 = vpop.eup %15949  ;;  %v8150_v53 = vpop.xlane.xlu1 %8149  ;;  %14324 = vmatprep.mubr.msk.f32.mxu1 %vm16177_vm5, %v21533_v25 }
 0xf41   :  { %v8259_v43 = vsel %vm4227_vm9, %v20048_v39, 0.0  ;;  %v20056_v0 = vpop.eup %15951  ;;  %v8184_v16 = vsub.f32 %v19973_v13, %v8150_v53  ;;  %15961 = vpow2.f32 %v8218_v8 }
 0xf42   :  { %8245 = vadd.xlane.f32.xlu1 %v8244_v9  ;;  %8260 = vadd.xlane.f32.xlu0 %v8259_v43  ;;  %v8256_v22 = vsel %vm4227_vm9, %v20056_v0, 0.0 }
 0xf43   :  { %v8226_v63 = vmul.f32 1.442695, %v8184_v16 }
 0xf44   :  { %v20058_v29 = vpop.eup %15953  ;;  %v15332_v60 = vpop.permute.xlu1 %15331 }
 0xf45   :  { %v15334_v17 = vunpack.i.h.bf16 %v15332_v60  ;;  %v15333_v19 = vunpack.i.l.bf16 %v15332_v60  ;;  %v8277_v58 = vsel %vm4227_vm9, %v20058_v29, 0.0  ;;  %v20064_v46 = vpop.eup %15955  ;;  %15963 = vpow2.f32 %v8226_v63 }
 0xf46   :  { %8257 = vadd.xlane.f32.xlu1 %v8256_v22  ;;  %8278 = vadd.xlane.f32.xlu0 %v8277_v58  ;;  %v8262_v44 = vsel %vm4234_vm10, %v20064_v46, 0.0  ;;  %15965 = vrcp.f32 %v20021_v31 }
 0xf47   :  { %v14939_v5 = vpack.c.bf16 %v15334_v17, %v15333_v19  ;;  %v20068_v56 = vpop.eup %15957  ;;  %15967 = vrcp.f32 %v20023_v28  ;;  %v21703_v19 = vld [vmem:[#allocation86_spill] sm:$0xff] }
 0xf48   :  { %v8274_v30 = vsel %vm4227_vm9, %v20068_v56, 0.0  ;;  %v20080_v33 = vpop.eup %15959  ;;  %15969 = vrcp.f32 %v20026_v7 }
 0xf49   :  { %14940 = vmatpush3.bf16.msra.mxu1 %v14939_v5  ;;  %v8295_v40 = vsel %vm4227_vm9, %v20080_v33, 0.0  ;;  %v21704_v5 = vld [vmem:[#allocation40_spill] sm:$0xff] }
 0xf4a   :  { %8263 = vadd.xlane.f32.xlu1 %v8262_v44  ;;  %14322 = vmatprep.subr.mxu1 %v21533_v25 }
 0xf4b   :  { %v20084_v42 = vpop.eup %15961 }
 0xf4c   :  { %v8280_v11 = vsel %vm4234_vm10, %v20084_v42, 0.0 }
 0xf4e   :  { %8275 = vadd.xlane.f32.xlu1 %v8274_v30 }
 0xf4f   :  { %v20088_v34 = vpop.eup %15963 }
 0xf50   :  { %v8292_v48 = vsel %vm4227_vm9, %v20088_v34, 0.0 }
 0xf5c   :  { %9028 = vrot.lane.b32.xlu0 %v18880_v23, %s16183_s26 }
 0xf5f   :  { %9111 = vrot.lane.b32.xlu1 %v18872_v36, %s16183_s26 }
 0xf7b   :  { %8296 = vadd.xlane.f32.xlu0 %v8295_v40 }
 0xf83   :  { %8281 = vadd.xlane.f32.xlu1 %v8280_v11  ;;  %v21707_v11 = vld [vmem:[#allocation35_spill] sm:$0xff] }
 0xf87   :  { %8293 = vadd.xlane.f32.xlu1 %v8292_v48 }
 0xf91   :  { %15336 = vrot.lane.b32.xlu0 %v17931_v35, %s16184_s13  ;;  %v8156_v35 = vpop.xlane.xlu1 %8155 }
 0xf95   :  { %9200 = vrot.lane.b32.xlu0 %v17942_v52, %s16184_s13 }
 0xf98   :  { %15341 = vrot.lane.b32.xlu1 %v17963_v32, %s16184_s13  ;;  %v8186_v32 = vsub.f32 %v20005_v15, %v8156_v35 }
 0xf99   :  { %15346 = vrot.lane.b32.xlu0 %v21567_v54, %s16184_s13  ;;  %v15966_v54 = vpop.eup %15965 }
 0xf9a   :  { %v15968_v13 = vpop.eup %15967 }
 0xf9b   :  { %v15970_v45 = vpop.eup %15969  ;;  %v8356_v55 = vmul.f32 %v15968_v13, %v20023_v28 }
 0xf9d   :  { %15351 = vrot.lane.b32.xlu0 %v21572_v27, %s16184_s13  ;;  %v8230_v27 = vmul.f32 1.442695, %v8186_v32  ;;  %v8380_v18 = vsub.f32 2.0, %v8356_v55 }
 0xf9f   :  { %15971 = vpow2.f32 %v8230_v27  ;;  %v8404_v20 = vmul.f32 %v15968_v13, %v8380_v18 }
 0xfa1   :  { %9192 = vrot.lane.b32.xlu0 %v21578_v10, %s16185_s1  ;;  %v8355_v10 = vmul.f32 %v15966_v54, %v20021_v31  ;;  %v8428_v6 = vmul.f32 %v19914_v2, %v8404_v20 }
 0xfa3   :  { %v8379_v1 = vsub.f32 2.0, %v8355_v10  ;;  %v8508_v53 = vsel %vm4227_vm9, %v8428_v6, 0.0  ;;  %v21710_v10 = vld [vmem:[#allocation68_spill] sm:$0xff] }
 0xfa5   :  { %9194 = vrot.lane.b32.xlu0 %v17942_v52, %s16185_s1  ;;  %v8357_v52 = vmul.f32 %v15970_v45, %v20026_v7 }
 0xfa7   :  { %v8381_v47 = vsub.f32 2.0, %v8357_v52 }
 0xfa9   :  { %9408 = vrot.lane.b32.xlu0 %v18038_v50, %s16184_s13  ;;  %v20123_v31 = vpop.eup %15971  ;;  %v8405_v28 = vmul.f32 %v15970_v45, %v8381_v47  ;;  %v21709_v45 = vld [vmem:[#allocation36_spill] sm:$0xff] }
 0xfab   :  { %v8429_v49 = vmul.f32 %v19923_v4, %v8405_v28  ;;  %v21702_v4 = vld [vmem:[#allocation83_spill] sm:$0xff] }
 0xfad   :  { %15356 = vrot.lane.b32.xlu0 %v18332_v61, %s16184_s13  ;;  %v8403_v61 = vmul.f32 %v15966_v54, %v8379_v1  ;;  %v8510_v9 = vsel %vm4234_vm10, %v8429_v49, 0.0 }
 0xfaf   :  { %v20116_v38 = vpop.f32.mrb[182].mxu1  ;;  %v8427_v7 = vmul.f32 %v19912_v51, %v8403_v61 }
 0xfb0   :  { %v14272_v15 = vpop.f32.mrb[183].mxu1 }
 0xfb1   :  { %15361 = vrot.lane.b32.xlu0 %v21586_v41, %s16184_s13  ;;  %v8298_v41 = vsel %vm4234_vm10, %v20123_v31, 0.0 }
 0xfb5   :  { %9400 = vrot.lane.b32.xlu0 %v17982_v12, %s16185_s1  ;;  %v8507_v12 = vsel %vm4227_vm9, %v8427_v7, 0.0 }
 0xfb9   :  { %9402 = vrot.lane.b32.xlu0 %v18038_v50, %s16185_s1  ;;  %v8509_v50 = vadd.f32 %v8508_v53, %v8507_v12 }
 0xfbb   :  { %v8511_v51 = vadd.f32 %v8510_v9, %v8509_v50 }
 0xfbc   :  { %8299 = vadd.xlane.f32.xlu1 %v8298_v41 }
 0xfbd   :  { %9616 = vrot.lane.b32.xlu0 %v18102_v59, %s16184_s13  ;;  %v8512_v17 = vrot.slane %v8511_v51, 4 }
 0xfbf   :  { %v8513_v22 = vadd.f32 %v8512_v17, %v8511_v51 }
 0xfc1   :  { %15366 = vrot.lane.b32.xlu0 %v21587_v14, %s16184_s13  ;;  %v8514_v14 = vrot.slane %v8513_v22, 2 }
 0xfc3   :  { %v20139_v2 = vpop.f32.mrb[184].mxu1  ;;  %v8515_v63 = vadd.f32 %v8514_v14, %v8513_v22 }
 0xfc4   :  { %v14290_v43 = vpop.f32.mrb[185].mxu1 }
 0xfc5   :  { %15371 = vrot.lane.b32.xlu0 %v21702_v4, %s16184_s13  ;;  %v8516_v54 = vrot.slane %v8515_v63, 1  ;;  %v21711_v4 = vld [vmem:[#allocation52_spill] sm:$0xff] }
 0xfc6   :  { %v8243_v60 = vpop.xlane.xlu0 %8242 }
 0xfc7   :  { %15973 = vrcp.f32 %v8243_v60  ;;  %v8517_v47 = vadd.f32 %v8516_v54, %v8515_v63 }
 0xfc9   :  { %9608 = vrot.lane.b32.xlu0 %v21703_v19, %s16185_s1  ;;  %v8525_v50 = vmul.f32 0.05, %v8517_v47  ;;  %v21716_v47 = vld [vmem:[#allocation66_spill] sm:$0xff] }
 0xfcb   :  { %v8240_v58 = vpop.xlane.xlu1 %8239 }
 0xfcc   :  { %15975 = vrcp.f32 %v8240_v58 }
 0xfcd   :  { %9304 = vrot.lane.b32.xlu1 %v21704_v5, %s16184_s13  ;;  %9610 = vrot.lane.b32.xlu0 %v18102_v59, %s16185_s1  ;;  %v21708_v59 = vld [vmem:[#allocation67_spill] sm:$0xff] }
 0xfcf   :  { %v8246_v44 = vpop.xlane.xlu1 %8245  ;;  %v8261_v30 = vpop.xlane.xlu0 %8260 }
 0xfd0   :  { %15977 = vrcp.f32 %v8246_v44 }
 0xfd1   :  { %v15974_v62 = vpop.eup %15973  ;;  %15979 = vrcp.f32 %v8261_v30  ;;  %9190 = vrot.lane.b32.xlu1 %v21705_v57, %s16185_s1  ;;  %9824 = vrot.lane.b32.xlu0 %v21706_v24, %s16184_s13 }
 0xfd2   :  { %v8335_v8 = vmul.f32 %v15974_v62, %v8243_v60 }
 0xfd3   :  { %v8258_v16 = vpop.xlane.xlu1 %8257 }
 0xfd4   :  { %15981 = vrcp.f32 %v8258_v16  ;;  %v8359_v40 = vsub.f32 2.0, %v8335_v8 }
 0xfd5   :  { %9294 = vrot.lane.b32.xlu1 %v21707_v11, %s16185_s1  ;;  %9814 = vrot.lane.b32.xlu0 %v21708_v59, %s16185_s1 }
 0xfd6   :  { %v15976_v48 = vpop.eup %15975  ;;  %v8383_v27 = vmul.f32 %v15974_v62, %v8359_v40  ;;  %v21713_v40 = vld [vmem:[#allocation44_spill] sm:$0xff] }
 0xfd7   :  { %v8334_v35 = vmul.f32 %v15976_v48, %v8240_v58  ;;  %v8264_v32 = vpop.xlane.xlu1 %8263 }
 0xfd8   :  { %15983 = vrcp.f32 %v8264_v32  ;;  %v8407_v20 = vmul.f32 %v20034_v3, %v8383_v27  ;;  %v21715_v27 = vld [vmem:[#allocation54_spill] sm:$0xff] }
 0xfd9   :  { %v8358_v13 = vsub.f32 2.0, %v8334_v35  ;;  %9296 = vrot.lane.b32.xlu1 %v21709_v45, %s16185_s1  ;;  %9816 = vrot.lane.b32.xlu0 %v21710_v10, %s16185_s1  ;;  %v21714_v35 = vld [vmem:[#allocation45_spill] sm:$0xff]  ;;  %v15308_v45 = vunpack.i.l.bf16 %v21715_v27 }
 0xfda   :  { %v15978_v55 = vpop.eup %15977  ;;  %v8431_v3 = vsel %vm4227_vm9, %v8407_v20, 0.0  ;;  %v21717_v20 = vld [vmem:[#allocation53_spill] sm:$0xff] }
 0xfdb   :  { %v15980_v52 = vpop.eup %15979  ;;  %v8382_v15 = vmul.f32 %v15976_v48, %v8358_v13  ;;  %v8336_v1 = vmul.f32 %v15978_v55, %v8246_v44  ;;  %v20161_v18 = vpop.xlane.xlu1 %8275  ;;  %v15309_v13 = vunpack.i.h.bf16 %v21715_v27 }
 0xfdc   :  { %v8341_v61 = vmul.f32 %v15980_v52, %v8261_v30  ;;  %v21712_v30 = vld [vmem:[#allocation41_spill] sm:$0xff]  ;;  %15985 = vrcp.f32 %v20161_v18 }
 0xfdd   :  { %v8406_v28 = vmul.f32 %v20039_v21, %v8382_v15  ;;  %v8360_v7 = vsub.f32 2.0, %v8336_v1  ;;  %9298 = vrot.lane.b32.xlu1 %v21704_v5, %s16185_s1  ;;  %9818 = vrot.lane.b32.xlu0 %v21706_v24, %s16185_s1  ;;  %v14924_v15 = vpack.c.bf16 %v15309_v13, %v15308_v45 }
 0xfde   :  { %v15982_v6 = vpop.eup %15981  ;;  %v8365_v41 = vsub.f32 2.0, %v8341_v61 }
 0xfdf   :  { %v8430_v49 = vsel %vm4227_vm9, %v8406_v28, 0.0  ;;  %v8384_v12 = vmul.f32 %v15978_v55, %v8360_v7  ;;  %v8340_v53 = vmul.f32 %v15982_v6, %v8258_v16  ;;  %v9112_v9 = vpop.permute.xlu1 %9111  ;;  %v15319_v28 = vunpack.i.h.bf16 %v21717_v20 }
 0xfe0   :  { %14323 = vmatpush3.msk.msra.mxu1 %vm4664_vm11, %v9112_v9  ;;  %v8389_v51 = vmul.f32 %v15980_v52, %v8365_v41  ;;  %v8432_v17 = vadd.f32 %v8431_v3, %v8430_v49  ;;  %v15318_v7 = vunpack.i.l.bf16 %v21717_v20  ;;  %v21718_v41 = vld [vmem:[#allocation102_spill] sm:$0xff]  ;;  %v21719_v49 = vld [vmem:[#allocation88_spill] sm:$0xff]  ;;  %v21720_v9 = vld [vmem:[#allocation57_spill] sm:$0xff] }
 0xfe1   :  { %v8408_v21 = vmul.f32 %v20043_v26, %v8384_v12  ;;  %v8364_v43 = vsub.f32 2.0, %v8340_v53  ;;  %9512 = vrot.lane.b32.xlu1 %v21711_v4, %s16184_s13  ;;  %14325 = vmatmul.mubr.msk.f32.vlgmr.msra.gmra.mrb[188].mxu1 %vm4227_vm9, %v8525_v50  ;;  %v21721_v50 = vld [vmem:[#allocation75_spill] sm:$0xff]  ;;  %v21722_v3 = vld [vmem:[#allocation58_spill] sm:$0xff] }
 0xfe2   :  { %v15984_v60 = vpop.eup %15983  ;;  %14945 = vmatprep.subr.bf16.mxu1 %v21538_v37  ;;  %14348 = vmatprep.mubr.msk.f32.mxu1 %vm16177_vm5, %v21533_v25  ;;  %v8413_v26 = vmul.f32 %v20048_v39, %v8389_v51  ;;  %v14930_v53 = vpack.c.bf16 %v15319_v28, %v15318_v7  ;;  %v21723_v51 = vld [vmem:[#allocation85_spill] sm:$0xff] }
 0xfe3   :  { %v8433_v19 = vsel %vm4234_vm10, %v8408_v21, 0.0  ;;  %v8388_v22 = vmul.f32 %v15982_v6, %v8364_v43  ;;  %v8342_v58 = vmul.f32 %v15984_v60, %v8264_v32  ;;  %v8279_v21 = vpop.xlane.xlu0 %8278 }
 0xfe4   :  { %v8434_v5 = vadd.f32 %v8433_v19, %v8432_v17  ;;  %v8453_v16 = vsel %vm4227_vm9, %v8413_v26, 0.0  ;;  %15987 = vrcp.f32 %v8279_v21 }
 0xfe5   :  { %v8412_v14 = vmul.f32 %v20056_v0, %v8388_v22  ;;  %v8366_v44 = vsub.f32 2.0, %v8342_v58  ;;  %9398 = vrot.lane.b32.xlu1 %v21712_v30, %s16185_s1  ;;  %v21725_v22 = vld [vmem:[#allocation79_spill] sm:$0xff] }
 0xfe6   :  { %v8435_v62 = vrot.slane %v8434_v5, 4  ;;  %v15986_v43 = vpop.eup %15985 }
 0xfe7   :  { %v8452_v57 = vsel %vm4227_vm9, %v8412_v14, 0.0  ;;  %v8390_v24 = vmul.f32 %v15984_v60, %v8366_v44  ;;  %v8346_v17 = vmul.f32 %v15986_v43, %v20161_v18 }
 0xfe8   :  { %v8436_v8 = vadd.f32 %v8435_v62, %v8434_v5  ;;  %v8454_v39 = vadd.f32 %v8453_v16, %v8452_v57 }
 0xfe9   :  { %v8414_v63 = vmul.f32 %v20064_v46, %v8390_v24  ;;  %9502 = vrot.lane.b32.xlu1 %v21713_v40, %s16185_s1  ;;  %v8370_v14 = vsub.f32 2.0, %v8346_v17 }
 0xfea   :  { %v8437_v11 = vrot.slane %v8436_v8, 2 }
 0xfeb   :  { %v8455_v0 = vsel %vm4234_vm10, %v8414_v63, 0.0  ;;  %v8394_v62 = vmul.f32 %v15986_v43, %v8370_v14 }
 0xfec   :  { %v8438_v59 = vadd.f32 %v8437_v11, %v8436_v8  ;;  %v8456_v48 = vadd.f32 %v8455_v0, %v8454_v39 }
 0xfed   :  { %9504 = vrot.lane.b32.xlu1 %v21714_v35, %s16185_s1  ;;  %v8418_v40 = vmul.f32 %v20068_v56, %v8394_v62 }
 0xfee   :  { %v8439_v32 = vrot.slane %v8438_v59, 1  ;;  %v8457_v54 = vrot.slane %v8456_v48, 4  ;;  %v15988_v60 = vpop.eup %15987 }
 0xfef   :  { %v8347_v58 = vmul.f32 %v15988_v60, %v8279_v21  ;;  %v8474_v35 = vsel %vm4227_vm9, %v8418_v40, 0.0 }
 0xff0   :  { %v8440_v10 = vadd.f32 %v8439_v32, %v8438_v59  ;;  %v8458_v46 = vadd.f32 %v8457_v54, %v8456_v48  ;;  %v9029_v59 = vpop.permute.xlu0 %9028 }
 0xff1   :  { %9506 = vrot.lane.b32.xlu1 %v21711_v4, %s16185_s1  ;;  %v21724_v4 = vld [vmem:[#allocation80_spill] sm:$0xff]  ;;  %v8371_v30 = vsub.f32 2.0, %v8347_v58 }
 0xff2   :  { %v8459_v55 = vrot.slane %v8458_v46, 2  ;;  %v8518_v52 = vmul.f32 0.05, %v8440_v10 }
 0xff3   :  { %v8395_v18 = vmul.f32 %v15988_v60, %v8371_v30 }
 0xff4   :  { %14262 = vmatmul.mubr.msk.f32.vlgmr.msra.gmra.mrb[170].mxu0 %vm4227_vm9, %v8518_v52  ;;  %v8460_v1 = vadd.f32 %v8459_v55, %v8458_v46 }
 0xff5   :  { %14925 = vmatpush3.bf16.msra.mxu0 %v14924_v15  ;;  %9720 = vrot.lane.b32.xlu1 %v21716_v47, %s16184_s13  ;;  %v8419_v0 = vmul.f32 %v20058_v29, %v8395_v18 }
 0xff6   :  { %14277 = vmatprep.subr.mxu0 %v21533_v25  ;;  %14279 = vmatprep.mubr.msk.f32.mxu0 %vm16177_vm5, %v21533_v25  ;;  %v8461_v61 = vrot.slane %v8460_v1, 1 }
 0xff7   :  { %v8475_v54 = vsel %vm4227_vm9, %v8419_v0, 0.0 }
 0xff8   :  { %v8462_v6 = vadd.f32 %v8461_v61, %v8460_v1  ;;  %v8476_v45 = vadd.f32 %v8475_v54, %v8474_v35  ;;  %v21727_v61 = vld [vmem:[#allocation74_spill] sm:$0xff] }
 0xff9   :  { %14278 = vmatpush3.msk.msra.mxu0 %vm4664_vm11, %v21718_v41  ;;  %9606 = vrot.lane.b32.xlu1 %v21719_v49, %s16185_s1  ;;  %v15329_v20 = vunpack.i.h.bf16 %v21727_v61  ;;  %v15328_v28 = vunpack.i.l.bf16 %v21727_v61 }
 0xffa   :  { %14929 = vmatprep.subr.bf16.mxu0 %v21538_v37  ;;  %v8520_v12 = vmul.f32 0.05, %v8462_v6 }
 0xffc   :  { %14280 = vmatmul.mubr.msk.f32.vlgmr.msra.gmra.mrb[172].mxu0 %vm4227_vm9, %v8520_v12 }
 0xffd   :  { %14931 = vmatpush3.bf16.msra.mxu0 %v14930_v53  ;;  %9710 = vrot.lane.b32.xlu1 %v21720_v9, %s16185_s1 }
 0xffe   :  { %14295 = vmatprep.subr.mxu0 %v21533_v25  ;;  %14297 = vmatprep.mubr.msk.f32.mxu0 %vm16177_vm5, %v21533_v25 }
0x1001   :  { %14296 = vmatpush3.msk.msra.mxu0 %vm4664_vm11, %v21721_v50  ;;  %9712 = vrot.lane.b32.xlu1 %v21722_v3, %s16185_s1 }
0x1002   :  { %14935 = vmatprep.subr.bf16.mxu0 %v21538_v37 }
0x1005   :  { %9714 = vrot.lane.b32.xlu1 %v21716_v47, %s16185_s1 }
0x1008   :  { %v8297_v27 = vpop.xlane.xlu0 %8296 }
0x1009   :  { %9928 = vrot.lane.b32.xlu1 %v21723_v51, %s16184_s13 }
0x100c   :  { %v20243_v55 = vpop.permute.xlu0 %15336 }
0x100d   :  { %9918 = vrot.lane.b32.xlu1 %v21724_v4, %s16185_s1  ;;  %v15338_v61 = vunpack.i.l.bf16 %v20243_v55 }
0x1010   :  { %v8282_v19 = vpop.xlane.xlu1 %8281  ;;  %v20245_v1 = vpop.permute.xlu0 %9200 }
0x1011   :  { %15989 = vrcp.f32 %v8282_v19  ;;  %9920 = vrot.lane.b32.xlu1 %v21725_v22, %s16185_s1 }
0x1012   :  { %v20230_v5 = vpop.f32.mrb[186].mxu1 }
0x1013   :  { %v14308_v26 = vpop.f32.mrb[187].mxu1 }
0x1014   :  { %v8294_v44 = vpop.xlane.xlu1 %8293  ;;  %v20249_v41 = vpop.permute.xlu0 %15346 }
0x1015   :  { %9922 = vrot.lane.b32.xlu1 %v21723_v51, %s16185_s1  ;;  %15991 = vrcp.f32 %v8294_v44 }
0x1016   :  { %15993 = vrcp.f32 %v8297_v27 }
0x1018   :  { %v15342_v57 = vpop.permute.xlu1 %15341  ;;  %v15352_v49 = vpop.permute.xlu0 %15351 }
0x1019   :  { %v15344_v24 = vunpack.i.h.bf16 %v15342_v57  ;;  %v15343_v8 = vunpack.i.l.bf16 %v15342_v57  ;;  %v15354_v22 = vunpack.i.h.bf16 %v15352_v49  ;;  %v15353_v58 = vunpack.i.l.bf16 %v15352_v49 }
0x101b   :  { %v15990_v16 = vpop.eup %15989  ;;  %v14946_v63 = vpack.c.bf16 %v15344_v24, %v15343_v8  ;;  %v14954_v57 = vpack.c.bf16 %v15354_v22, %v15353_v58 }
0x101c   :  { %v8348_v11 = vmul.f32 %v15990_v16, %v8282_v19  ;;  %v20257_v12 = vpop.permute.xlu0 %9192 }
0x101d   :  { %14948 = vmatpush3.bf16.xpose.msk.msra.mxu1 %vm18161_vm8, %v14946_v63 }
0x101e   :  { %v8372_v48 = vsub.f32 2.0, %v8348_v11  ;;  %14346 = vmatprep.subr.mxu1 %v21533_v25 }
0x101f   :  { %v15992_v53 = vpop.eup %15991 }
0x1020   :  { %v8396_v32 = vmul.f32 %v15990_v16, %v8372_v48  ;;  %v20259_v9 = vpop.permute.xlu0 %9194  ;;  %v15994_v50 = vpop.eup %15993  ;;  %v8352_v3 = vmul.f32 %v15992_v53, %v8294_v44 }
0x1021   :  { %v8353_v51 = vmul.f32 %v15994_v50, %v8297_v27 }
0x1022   :  { %v8420_v13 = vmul.f32 %v20084_v42, %v8396_v32  ;;  %v14936_v42 = vpack.c.bf16 %v15329_v20, %v15328_v28  ;;  %v8376_v4 = vsub.f32 2.0, %v8352_v3  ;;  %v15349_v3 = vunpack.i.h.bf16 %v20249_v41 }
0x1023   :  { %v8377_v17 = vsub.f32 2.0, %v8353_v51 }
0x1024   :  { %v8477_v56 = vsel %vm4234_vm10, %v8420_v13, 0.0  ;;  %v20261_v43 = vpop.permute.xlu0 %9408  ;;  %v8400_v19 = vmul.f32 %v15992_v53, %v8376_v4 }
0x1025   :  { %v8478_v10 = vadd.f32 %v8477_v56, %v8476_v45  ;;  %v8401_v44 = vmul.f32 %v15994_v50, %v8377_v17 }
0x1026   :  { %v8424_v62 = vmul.f32 %v20088_v34, %v8400_v19 }
0x1027   :  { %v8479_v46 = vrot.slane %v8478_v10, 4  ;;  %v8425_v18 = vmul.f32 %v20080_v33, %v8401_v44 }
0x1028   :  { %v20267_v14 = vpop.permute.xlu0 %15356  ;;  %v8496_v40 = vsel %vm4227_vm9, %v8424_v62, 0.0 }
0x1029   :  { %v8480_v29 = vadd.f32 %v8479_v46, %v8478_v10  ;;  %v8497_v0 = vsel %vm4227_vm9, %v8425_v18, 0.0  ;;  %v15359_v58 = vunpack.i.h.bf16 %v20267_v14 }
0x102b   :  { %v8481_v52 = vrot.slane %v8480_v29, 2 }
0x102c   :  { %v15362_v63 = vpop.permute.xlu0 %15361 }
0x102d   :  { %v8482_v15 = vadd.f32 %v8481_v52, %v8480_v29  ;;  %v15364_v10 = vunpack.i.h.bf16 %v15362_v63  ;;  %v15363_v46 = vunpack.i.l.bf16 %v15362_v63 }
0x102f   :  { %v8483_v47 = vrot.slane %v8482_v15, 1  ;;  %v14962_v20 = vpack.c.bf16 %v15364_v10, %v15363_v46 }
0x1030   :  { %v20284_v32 = vpop.permute.xlu0 %9400 }
0x1031   :  { %v8484_v7 = vadd.f32 %v8483_v47, %v8482_v15  ;;  %v15339_v47 = vunpack.i.h.bf16 %v20243_v55 }
0x1033   :  { %v8522_v6 = vmul.f32 0.05, %v8484_v7  ;;  %v14942_v49 = vpack.c.bf16 %v15339_v47, %v15338_v61 }
0x1035   :  { %14298 = vmatmul.mubr.msk.f32.vlgmr.msra.gmra.mrb[174].mxu0 %vm4227_vm9, %v8522_v6 }
0x1036   :  { %14937 = vmatpush3.bf16.msra.mxu0 %v14936_v42  ;;  %14315 = vmatprep.mubr.msk.f32.mxu0 %vm16177_vm5, %v21533_v25 }
0x1037   :  { %14313 = vmatprep.subr.mxu0 %v21533_v25 }
0x103a   :  { %14314 = vmatpush3.msk.msra.mxu0 %vm4664_vm11, %v9029_v59  ;;  %v8498_v59 = vadd.f32 %v8497_v0, %v8496_v40 }
0x103b   :  { %14941 = vmatprep.subr.bf16.mxu0 %v21538_v37 }
0x1049   :  { %v8300_v21 = vpop.xlane.xlu1 %8299 }
0x104a   :  { %15995 = vrcp.f32 %v8300_v21 }
0x104d   :  { %v9305_v60 = vpop.permute.xlu1 %9304 }
0x104e   :  { %14347 = vmatpush3.xpose.msk.msra.mxu1 %vm3403_vm7, %v9305_v60 }
0x104f   :  { %14953 = vmatprep.subr.bf16.mxu1 %v21538_v37 }
0x1051   :  { %v20265_v26 = vpop.permute.xlu1 %9190 }
0x1054   :  { %v15996_v30 = vpop.eup %15995 }
0x1055   :  { %v8354_v24 = vmul.f32 %v15996_v30, %v8300_v21  ;;  %v9295_v8 = vpop.permute.xlu1 %9294  ;;  %v15348_v21 = vunpack.i.l.bf16 %v20249_v41 }
0x1056   :  { %14349 = vmatmul.mubr.msk.f32.vlgmr.msra.gmra.mrb[190].mxu1 %vm3403_vm7, %v9295_v8 }
0x1057   :  { %v8378_v16 = vsub.f32 2.0, %v8354_v24  ;;  %14956 = vmatpush3.bf16.xpose.msk.msra.mxu1 %vm18161_vm8, %v14954_v57  ;;  %14351 = vmatprep.mubr.msk.f32.mxu1 %vm16177_vm5, %v21533_v25  ;;  %v14950_v60 = vpack.c.bf16 %v15349_v3, %v15348_v21 }
0x1058   :  { %14376 = vmatprep.subr.mxu1 %v21533_v25 }
0x1059   :  { %v8402_v34 = vmul.f32 %v15996_v30, %v8378_v16  ;;  %v9297_v11 = vpop.permute.xlu1 %9296 }
0x105a   :  { %14352 = vmatmul.mubr.msk.f32.gmra.mrb[192].mxu1 %vm3403_vm7, %v9297_v11 }
0x105b   :  { %v8426_v33 = vmul.f32 %v20123_v31, %v8402_v34  ;;  %14354 = vmatprep.mubr.msk.f32.mxu1 %vm16177_vm5, %v21533_v25  ;;  %v20291_v31 = vpop.permute.xlu0 %9402 }
0x105d   :  { %v8499_v48 = vsel %vm4234_vm10, %v8426_v33, 0.0  ;;  %v9299_v35 = vpop.permute.xlu1 %9298 }
0x105e   :  { %v8500_v54 = vadd.f32 %v8499_v48, %v8498_v59  ;;  %14355 = vmatmul.mubr.msk.f32.gmra.mrb[194].mxu1 %vm3403_vm7, %v9299_v35 }
0x105f   :  { %14378 = vmatprep.mubr.msk.f32.mxu1 %vm16177_vm5, %v21533_v25  ;;  %v20295_v7 = vpop.permute.xlu0 %9616 }
0x1060   :  { %v8501_v27 = vrot.slane %v8500_v54, 4 }
0x1061   :  { %v9513_v13 = vpop.permute.xlu1 %9512 }
0x1062   :  { %v8502_v45 = vadd.f32 %v8501_v27, %v8500_v54  ;;  %14377 = vmatpush3.xpose.msk.msra.mxu1 %vm3403_vm7, %v9513_v13 }
0x1063   :  { %14961 = vmatprep.subr.bf16.mxu1 %v21538_v37  ;;  %v20309_v55 = vpop.permute.xlu0 %15366 }
0x1064   :  { %v8503_v56 = vrot.slane %v8502_v45, 2  ;;  %v15368_v62 = vunpack.i.l.bf16 %v20309_v55 }
0x1065   :  { %v9399_v29 = vpop.permute.xlu1 %9398 }
0x1066   :  { %v8504_v52 = vadd.f32 %v8503_v56, %v8502_v45 }
0x1067   :  { %v15372_v4 = vpop.permute.xlu0 %15371 }
0x1068   :  { %v8505_v15 = vrot.slane %v8504_v52, 1  ;;  %v15374_v17 = vunpack.i.h.bf16 %v15372_v4  ;;  %v15373_v19 = vunpack.i.l.bf16 %v15372_v4 }
0x1069   :  { %v9503_v28 = vpop.permute.xlu1 %9502 }
0x106a   :  { %14379 = vmatmul.mubr.msk.f32.vlgmr.msra.gmra.mrb[196].mxu1 %vm3403_vm7, %v9503_v28  ;;  %v8506_v6 = vadd.f32 %v8505_v15, %v8504_v52 }
0x106b   :  { %14964 = vmatpush3.bf16.xpose.msk.msra.mxu1 %vm18161_vm8, %v14962_v20  ;;  %14381 = vmatprep.mubr.msk.f32.mxu1 %vm16177_vm5, %v21533_v25 }
0x106c   :  { %v8524_v42 = vmul.f32 0.05, %v8506_v6  ;;  %14406 = vmatprep.subr.mxu1 %v21533_v25 }
0x106d   :  { %v9505_v53 = vpop.permute.xlu1 %9504 }
0x106e   :  { %14316 = vmatmul.mubr.msk.f32.vlgmr.msra.gmra.mrb[176].mxu0 %vm4227_vm9, %v8524_v42  ;;  %14382 = vmatmul.mubr.msk.f32.gmra.mrb[198].mxu1 %vm3403_vm7, %v9505_v53 }
0x106f   :  { %14944 = vmatpush3.bf16.xpose.msk.msra.mxu0 %vm18161_vm8, %v14942_v49  ;;  %14384 = vmatprep.mubr.msk.f32.mxu1 %vm16177_vm5, %v21533_v25 }
0x1070   :  { %14331 = vmatprep.subr.mxu0 %v21533_v25  ;;  %14333 = vmatprep.mubr.msk.f32.mxu0 %vm16177_vm5, %v21533_v25 }
0x1071   :  { %v9507_v50 = vpop.permute.xlu1 %9506 }
0x1072   :  { %14385 = vmatmul.mubr.msk.f32.gmra.mrb[200].mxu1 %vm3403_vm7, %v9507_v50 }
0x1073   :  { %14408 = vmatprep.mubr.msk.f32.mxu1 %vm16177_vm5, %v21533_v25 }
0x1075   :  { %v9721_v51 = vpop.permute.xlu1 %9720 }
0x1076   :  { %14407 = vmatpush3.xpose.msk.msra.mxu1 %vm3403_vm7, %v9721_v51 }
0x1077   :  { %14332 = vmatpush3.xpose.msk.msra.mxu0 %vm3403_vm7, %v20245_v1  ;;  %14969 = vmatprep.subr.bf16.mxu1 %v21538_v37  ;;  %v14970_v1 = vpack.c.bf16 %v15374_v17, %v15373_v19 }
0x1078   :  { %14949 = vmatprep.subr.bf16.mxu0 %v21538_v37 }
0x1079   :  { %v9607_v22 = vpop.permute.xlu1 %9606 }
0x107a   :  { %14334 = vmatmul.mubr.msk.f32.vlgmr.msra.gmra.mrb[178].mxu0 %vm3403_vm7, %v20265_v26  ;;  %v15358_v26 = vunpack.i.l.bf16 %v20267_v14  ;;  %v15369_v14 = vunpack.i.h.bf16 %v20309_v55 }
0x107b   :  { %14952 = vmatpush3.bf16.xpose.msk.msra.mxu0 %vm18161_vm8, %v14950_v60  ;;  %14336 = vmatprep.mubr.msk.f32.mxu0 %vm16177_vm5, %v21533_v25 }
0x107c   :  { %14361 = vmatprep.subr.mxu0 %v21533_v25  ;;  %v14966_v8 = vpack.c.bf16 %v15369_v14, %v15368_v62 }
0x107d   :  { %v9711_v41 = vpop.permute.xlu1 %9710 }
0x107e   :  { %14337 = vmatmul.mubr.msk.f32.gmra.mrb[180].mxu0 %vm3403_vm7, %v20257_v12  ;;  %14409 = vmatmul.mubr.msk.f32.vlgmr.msra.gmra.mrb[202].mxu1 %vm3403_vm7, %v9711_v41  ;;  %v14958_v12 = vpack.c.bf16 %v15359_v58, %v15358_v26 }
0x107f   :  { %14972 = vmatpush3.bf16.xpose.msk.msra.mxu1 %vm18161_vm8, %v14970_v1  ;;  %14339 = vmatprep.mubr.msk.f32.mxu0 %vm16177_vm5, %v21533_v25 }
0x1080   :  { %14411 = vmatprep.mubr.msk.f32.mxu1 %vm16177_vm5, %v21533_v25  ;;  %14436 = vmatprep.subr.mxu1 %v21533_v25 }
0x1081   :  { %v9713_v44 = vpop.permute.xlu1 %9712 }
0x1082   :  { %14340 = vmatmul.mubr.msk.f32.gmra.mrb[182].mxu0 %vm3403_vm7, %v20259_v9  ;;  %14412 = vmatmul.mubr.msk.f32.gmra.mrb[204].mxu1 %vm3403_vm7, %v9713_v44  ;;  %v9609_v9 = vpop.permute.xlu0 %9608 }
0x1083   :  { %14362 = vmatpush3.xpose.msk.msra.mxu0 %vm3403_vm7, %v20261_v43  ;;  %14363 = vmatprep.mubr.msk.f32.mxu0 %vm16177_vm5, %v21533_v25 }
0x1084   :  { %14957 = vmatprep.subr.bf16.mxu0 %v21538_v37  ;;  %14414 = vmatprep.mubr.msk.f32.mxu1 %vm16177_vm5, %v21533_v25 }
0x1085   :  { %v9715_v30 = vpop.permute.xlu1 %9714 }
0x1086   :  { %14364 = vmatmul.mubr.msk.f32.vlgmr.msra.gmra.mrb[184].mxu0 %vm3403_vm7, %v9399_v29  ;;  %14415 = vmatmul.mubr.msk.f32.gmra.mrb[206].mxu1 %vm3403_vm7, %v9715_v30  ;;  %v9611_v57 = vpop.permute.xlu0 %9610 }
0x1087   :  { %14960 = vmatpush3.bf16.xpose.msk.msra.mxu0 %vm18161_vm8, %v14958_v12  ;;  %14366 = vmatprep.mubr.msk.f32.mxu0 %vm16177_vm5, %v21533_v25 }
0x1088   :  { %14391 = vmatprep.subr.mxu0 %v21533_v25  ;;  %14438 = vmatprep.mubr.msk.f32.mxu1 %vm16177_vm5, %v21533_v25 }
0x1089   :  { %v9929_v43 = vpop.permute.xlu1 %9928 }
0x108a   :  { %14367 = vmatmul.mubr.msk.f32.gmra.mrb[186].mxu0 %vm3403_vm7, %v20284_v32  ;;  %14437 = vmatpush3.xpose.msk.msra.mxu1 %vm3403_vm7, %v9929_v43  ;;  %v9825_v16 = vpop.permute.xlu0 %9824 }
0x108b   :  { %14369 = vmatprep.mubr.msk.f32.mxu0 %vm16177_vm5, %v21533_v25  ;;  %14976 = vmatprep.subr.bf16.mxu1 %v21538_v37 }
0x108d   :  { %v9919_v24 = vpop.permute.xlu1 %9918 }
0x108e   :  { %14370 = vmatmul.mubr.msk.f32.gmra.mrb[188].mxu0 %vm3403_vm7, %v20291_v31  ;;  %14439 = vmatmul.mubr.msk.f32.vlgmr.msra.gmra.mrb[208].mxu1 %vm3403_vm7, %v9919_v24  ;;  %v9815_v39 = vpop.permute.xlu0 %9814 }
0x108f   :  { %14392 = vmatpush3.xpose.msk.msra.mxu0 %vm3403_vm7, %v20295_v7  ;;  %14393 = vmatprep.mubr.msk.f32.mxu0 %vm16177_vm5, %v21533_v25 }
0x1090   :  { %14965 = vmatprep.subr.bf16.mxu0 %v21538_v37  ;;  %14441 = vmatprep.mubr.msk.f32.mxu1 %vm16177_vm5, %v21533_v25 }
0x1091   :  { %v9921_v18 = vpop.permute.xlu1 %9920 }
0x1092   :  { %14394 = vmatmul.mubr.msk.f32.vlgmr.msra.gmra.mrb[190].mxu0 %vm3403_vm7, %v9607_v22  ;;  %14442 = vmatmul.mubr.msk.f32.gmra.mrb[210].mxu1 %vm3403_vm7, %v9921_v18  ;;  %v9817_v40 = vpop.permute.xlu0 %9816 }
0x1093   :  { %14968 = vmatpush3.bf16.xpose.msk.msra.mxu0 %vm18161_vm8, %v14966_v8  ;;  %14396 = vmatprep.mubr.msk.f32.mxu0 %vm16177_vm5, %v21533_v25 }
0x1094   :  { %14444 = vmatprep.mubr.msk.f32.mxu1 %vm16177_vm5, %v21533_v25  ;;  %14421 = vmatprep.subr.mxu0 %v21533_v25 }
0x1095   :  { %v9923_v63 = vpop.permute.xlu1 %9922 }
0x1096   :  { %14397 = vmatmul.mubr.msk.f32.gmra.mrb[192].mxu0 %vm3403_vm7, %v9609_v9  ;;  %14445 = vmatmul.mubr.msk.f32.gmra.mrb[212].mxu1 %vm3403_vm7, %v9923_v63  ;;  %v9819_v34 = vpop.permute.xlu0 %9818 }
0x1097   :  { %14399 = vmatprep.mubr.msk.f32.mxu0 %vm16177_vm5, %v21533_v25  ;;  %14462 = vmatprep.mubr.msk.f32.mxu1 %vm16177_vm5, %v21533_v25 }
0x109a   :  { %14400 = vmatmul.mubr.msk.f32.gmra.mrb[194].mxu0 %vm3403_vm7, %v9611_v57 }
0x109b   :  { %14422 = vmatpush3.xpose.msk.msra.mxu0 %vm3403_vm7, %v9825_v16  ;;  %14423 = vmatprep.mubr.msk.f32.mxu0 %vm16177_vm5, %v21533_v25 }
0x109c   :  { %14973 = vmatprep.subr.bf16.mxu0 %v21538_v37 }
0x109e   :  { %14424 = vmatmul.mubr.msk.f32.vlgmr.msra.gmra.mrb[196].mxu0 %vm3403_vm7, %v9815_v39 }
0x109f   :  { %14426 = vmatprep.mubr.msk.f32.mxu0 %vm16177_vm5, %v21533_v25 }
0x10a2   :  { %14427 = vmatmul.mubr.msk.f32.gmra.mrb[198].mxu0 %vm3403_vm7, %v9817_v40 }
0x10a3   :  { %14429 = vmatprep.mubr.msk.f32.mxu0 %vm16177_vm5, %v21533_v25 }
0x10a6   :  { %14430 = vmatmul.mubr.msk.f32.gmra.mrb[200].mxu0 %vm3403_vm7, %v9819_v34 }
0x10a7   :  { %14453 = vmatprep.mubr.msk.f32.mxu0 %vm16177_vm5, %v21533_v25 }
0x10b4   :  { %v20409_v11 = vpop.f32.mrb[188].mxu1 }
0x10b5   :  { %v14326_v0 = vpop.f32.mrb[189].mxu1 }
0x10c7   :  { %v20411_v33 = vpop.f32.mrb[170].mxu0 }
0x10c8   :  { %v14263_v59 = vpop.f32.mrb[171].mxu0 }
0x10cf   :  { %v20413_v48 = vpop.f32.mrb[172].mxu0 }
0x10d0   :  { %v14281_v35 = vpop.f32.mrb[173].mxu0 }
0x1108   :  { %v20415_v32 = vpop.f32.mrb[174].mxu0 }
0x1109   :  { %v14299_v54 = vpop.f32.mrb[175].mxu0 }
0x1129   :  { %v9384_v27 = vpop.f32.mrb[190].mxu1 }
0x112a   :  { %v20417_v13 = vmul.f32 0.25, %v9384_v27  ;;  %v14350_v45 = vpop.f32.mrb[191].mxu1 }
0x112c   :  { %v10055_v31 = vsel %vm4227_vm9, %v20417_v13, -inf }
0x112d   :  { %10056 = vmax.xlane.f32.xlu0 %v10055_v31  ;;  %v9389_v56 = vpop.f32.mrb[192].mxu1 }
0x112e   :  { %v20421_v10 = vmul.f32 0.25, %v9389_v56  ;;  %v14353_v46 = vpop.f32.mrb[193].mxu1 }
0x1130   :  { %v10058_v29 = vsel %vm4227_vm9, %v20421_v10, -inf }
0x1131   :  { %10059 = vmax.xlane.f32.xlu0 %v10058_v29  ;;  %v9394_v52 = vpop.f32.mrb[194].mxu1 }
0x1132   :  { %v20425_v15 = vmul.f32 0.25, %v9394_v52  ;;  %v14356_v47 = vpop.f32.mrb[195].mxu1 }
0x1134   :  { %v10061_v61 = vsel %vm4234_vm10, %v20425_v15, -inf }
0x1135   :  { %10062 = vmax.xlane.f32.xlu0 %v10061_v61 }
0x113d   :  { %v9592_v20 = vpop.f32.mrb[196].mxu1 }
0x113e   :  { %v20429_v28 = vmul.f32 0.25, %v9592_v20  ;;  %v14380_v7 = vpop.f32.mrb[197].mxu1 }
0x1140   :  { %v10073_v6 = vsel %vm4227_vm9, %v20429_v28, -inf }
0x1141   :  { %v20433_v42 = vpop.f32.mrb[176].mxu0  ;;  %10074 = vmax.xlane.f32.xlu1 %v10073_v6  ;;  %v9597_v49 = vpop.f32.mrb[198].mxu1 }
0x1142   :  { %v20435_v53 = vmul.f32 0.25, %v9597_v49  ;;  %v14317_v55 = vpop.f32.mrb[177].mxu0  ;;  %v14383_v50 = vpop.f32.mrb[199].mxu1 }
0x1144   :  { %v10076_v3 = vsel %vm4227_vm9, %v20435_v53, -inf }
0x1145   :  { %10077 = vmax.xlane.f32.xlu0 %v10076_v3  ;;  %v9602_v21 = vpop.f32.mrb[200].mxu1 }
0x1146   :  { %v20439_v51 = vmul.f32 0.25, %v9602_v21  ;;  %v14386_v4 = vpop.f32.mrb[201].mxu1 }
0x1148   :  { %v10079_v60 = vsel %vm4234_vm10, %v20439_v51, -inf }
0x1149   :  { %10080 = vmax.xlane.f32.xlu0 %v10079_v60 }
0x114d   :  { %v20443_v17 = vpop.f32.mrb[178].mxu0 }
0x114e   :  { %v14335_v19 = vpop.f32.mrb[179].mxu0 }
0x1151   :  { %v20445_v22 = vpop.f32.mrb[180].mxu0  ;;  %v9800_v1 = vpop.f32.mrb[202].mxu1 }
0x1152   :  { %v14338_v41 = vpop.f32.mrb[181].mxu0  ;;  %v20447_v58 = vmul.f32 0.25, %v9800_v1  ;;  %v14410_v26 = vpop.f32.mrb[203].mxu1 }
0x1154   :  { %v10091_v44 = vsel %vm4227_vm9, %v20447_v58, -inf }
0x1155   :  { %v20451_v12 = vpop.f32.mrb[182].mxu0  ;;  %10092 = vmax.xlane.f32.xlu1 %v10091_v44  ;;  %v9805_v30 = vpop.f32.mrb[204].mxu1 }
0x1156   :  { %v14341_v9 = vpop.f32.mrb[183].mxu0  ;;  %v20453_v43 = vmul.f32 0.25, %v9805_v30  ;;  %v14413_v14 = vpop.f32.mrb[205].mxu1 }
0x1158   :  { %v10094_v62 = vsel %vm4227_vm9, %v20453_v43, -inf }
0x1159   :  { %v20457_v57 = vpop.f32.mrb[184].mxu0  ;;  %10095 = vmax.xlane.f32.xlu0 %v10094_v62  ;;  %v9810_v24 = vpop.f32.mrb[206].mxu1 }
0x115a   :  { %v14365_v8 = vpop.f32.mrb[185].mxu0  ;;  %v20459_v18 = vmul.f32 0.25, %v9810_v24  ;;  %v14416_v16 = vpop.f32.mrb[207].mxu1 }
0x115c   :  { %v10097_v63 = vsel %vm4234_vm10, %v20459_v18, -inf }
0x115d   :  { %v9493_v39 = vpop.f32.mrb[186].mxu0  ;;  %10098 = vmax.xlane.f32.xlu0 %v10097_v63  ;;  %v20491_v63 = vmul.f32 0.25, %v20445_v22 }
0x115e   :  { %v14368_v40 = vpop.f32.mrb[187].mxu0 }
0x1161   :  { %v20463_v34 = vpop.f32.mrb[188].mxu0  ;;  %v10008_v0 = vpop.f32.mrb[208].mxu1 }
0x1162   :  { %v14371_v59 = vpop.f32.mrb[189].mxu0  ;;  %v20465_v35 = vmul.f32 0.25, %v10008_v0  ;;  %v14440_v54 = vpop.f32.mrb[209].mxu1  ;;  %v20501_v0 = vmul.f32 0.25, %v20451_v12 }
0x1163   :  { %v10049_v59 = vsel %vm4227_vm9, %v20491_v63, -inf }
0x1164   :  { %v10109_v27 = vsel %vm4227_vm9, %v20465_v35, -inf  ;;  %v10052_v12 = vsel %vm4234_vm10, %v20501_v0, -inf }
0x1165   :  { %v20469_v45 = vpop.f32.mrb[190].mxu0  ;;  %10110 = vmax.xlane.f32.xlu1 %v10109_v27  ;;  %v10013_v31 = vpop.f32.mrb[210].mxu1 }
0x1166   :  { %v14395_v56 = vpop.f32.mrb[191].mxu0  ;;  %v20471_v46 = vmul.f32 0.25, %v10013_v31  ;;  %v14443_v29 = vpop.f32.mrb[211].mxu1  ;;  %v20509_v31 = vmul.f32 0.25, %v20457_v57 }
0x1168   :  { %v10112_v52 = vsel %vm4227_vm9, %v20471_v46, -inf  ;;  %v10064_v57 = vsel %vm4227_vm9, %v20509_v31, -inf }
0x1169   :  { %v9701_v47 = vpop.f32.mrb[192].mxu0  ;;  %10113 = vmax.xlane.f32.xlu0 %v10112_v52  ;;  %v10018_v61 = vpop.f32.mrb[212].mxu1 }
0x116a   :  { %v14398_v20 = vpop.f32.mrb[193].mxu0  ;;  %v20475_v7 = vmul.f32 0.25, %v10018_v61  ;;  %v14446_v6 = vpop.f32.mrb[213].mxu1 }
0x116c   :  { %v10115_v49 = vsel %vm4234_vm10, %v20475_v7, -inf }
0x116d   :  { %v20479_v55 = vpop.f32.mrb[194].mxu0  ;;  %10116 = vmax.xlane.f32.xlu0 %v10115_v49 }
0x116e   :  { %v14401_v50 = vpop.f32.mrb[195].mxu0 }
0x116f   :  { %v20525_v50 = vmul.f32 0.25, %v9701_v47  ;;  %v20541_v47 = vmul.f32 0.25, %v20469_v45 }
0x1171   :  { %v20481_v3 = vpop.f32.mrb[196].mxu0  ;;  %v10082_v45 = vsel %vm4227_vm9, %v20541_v47, -inf }
0x1172   :  { %v14425_v21 = vpop.f32.mrb[197].mxu0 }
0x1175   :  { %v9909_v4 = vpop.f32.mrb[198].mxu0 }
0x1176   :  { %v14428_v60 = vpop.f32.mrb[199].mxu0 }
0x1177   :  { %v20532_v60 = vmul.f32 0.25, %v20463_v34 }
0x1179   :  { %v20483_v19 = vpop.f32.mrb[200].mxu0 }
0x117a   :  { %v14431_v1 = vpop.f32.mrb[201].mxu0 }
0x117b   :  { %v20534_v1 = vmul.f32 0.25, %v9909_v4 }
0x117d   :  { %v10103_v34 = vsel %vm4227_vm9, %v20534_v1, -inf }
0x11ba   :  { %v10057_v41 = vpop.xlane.xlu0 %10056 }
0x11bb   :  { %v10121_v26 = vsub.f32 %v20417_v13, %v10057_v41  ;;  %v10085_v41 = vsel %vm4227_vm9, %v20525_v50, -inf }
0x11bd   :  { %v10148_v44 = vmul.f32 1.442695, %v10121_v26 }
0x11be   :  { %v10060_v30 = vpop.xlane.xlu0 %10059 }
0x11bf   :  { %15997 = vpow2.f32 %v10148_v44  ;;  %v10122_v9 = vsub.f32 %v20421_v10, %v10060_v30  ;;  %v20498_v10 = vmul.f32 0.25, %v20443_v17  ;;  %v20511_v17 = vmul.f32 0.25, %v9493_v39 }
0x11c0   :  { %v10070_v44 = vsel %vm4234_vm10, %v20532_v60, -inf }
0x11c1   :  { %v10150_v14 = vmul.f32 1.442695, %v10122_v9  ;;  %v10046_v29 = vsel %vm4227_vm9, %v20498_v10, -inf  ;;  %v10067_v39 = vsel %vm4227_vm9, %v20511_v17, -inf }
0x11c2   :  { %v10063_v62 = vpop.xlane.xlu0 %10062 }
0x11c3   :  { %15999 = vpow2.f32 %v10150_v14  ;;  %v10123_v24 = vsub.f32 %v20425_v15, %v10063_v62  ;;  %v20551_v14 = vmul.f32 0.25, %v20479_v55 }
0x11c5   :  { %v10152_v16 = vmul.f32 1.442695, %v10123_v24 }
0x11c7   :  { %16001 = vpow2.f32 %v10152_v16 }
0x11c9   :  { %v20488_v8 = vpop.eup %15997 }
0x11ca   :  { %v10199_v40 = vsel %vm4227_vm9, %v20488_v8, 0.0 }
0x11cb   :  { %10200 = vadd.xlane.f32.xlu1 %v10199_v40 }
0x11cd   :  { %v20495_v13 = vpop.eup %15999 }
0x11ce   :  { %v10075_v15 = vpop.xlane.xlu1 %10074  ;;  %v10202_v22 = vsel %vm4227_vm9, %v20495_v13, 0.0 }
0x11cf   :  { %v10127_v54 = vsub.f32 %v20429_v28, %v10075_v15  ;;  %10050 = vmax.xlane.f32.xlu1 %v10049_v59  ;;  %10203 = vadd.xlane.f32.xlu0 %v10202_v22  ;;  %v20561_v15 = vmul.f32 0.25, %v20481_v3  ;;  %v10088_v59 = vsel %vm4234_vm10, %v20551_v14, -inf }
0x11d1   :  { %v10160_v27 = vmul.f32 1.442695, %v10127_v54  ;;  %v20522_v20 = vpop.eup %16001 }
0x11d2   :  { %v10078_v56 = vpop.xlane.xlu0 %10077 }
0x11d3   :  { %16003 = vpow2.f32 %v10160_v27  ;;  %v10128_v52 = vsub.f32 %v20435_v53, %v10078_v56  ;;  %10053 = vmax.xlane.f32.xlu1 %v10052_v12  ;;  %10047 = vmax.xlane.f32.xlu0 %v10046_v29  ;;  %v10205_v53 = vsel %vm4234_vm10, %v20522_v20, 0.0 }
0x11d5   :  { %v10162_v28 = vmul.f32 1.442695, %v10128_v52 }
0x11d6   :  { %v10081_v61 = vpop.xlane.xlu0 %10080 }
0x11d7   :  { %v10129_v6 = vsub.f32 %v20439_v51, %v10081_v61  ;;  %10065 = vmax.xlane.f32.xlu1 %v10064_v57  ;;  %10068 = vmax.xlane.f32.xlu0 %v10067_v39  ;;  %16005 = vpow2.f32 %v10162_v28 }
0x11d9   :  { %v10164_v49 = vmul.f32 1.442695, %v10129_v6 }
0x11db   :  { %10206 = vadd.xlane.f32.xlu0 %v10205_v53  ;;  %16007 = vpow2.f32 %v10164_v49 }
0x11dd   :  { %v20529_v21 = vpop.eup %16003 }
0x11de   :  { %v10217_v51 = vsel %vm4227_vm9, %v20529_v21, 0.0 }
0x11df   :  { %10218 = vadd.xlane.f32.xlu1 %v10217_v51  ;;  %10086 = vmax.xlane.f32.xlu0 %v10085_v41 }
0x11e1   :  { %v20547_v4 = vpop.eup %16005 }
0x11e2   :  { %v10093_v26 = vpop.xlane.xlu1 %10092  ;;  %v10220_v24 = vsel %vm4227_vm9, %v20547_v4, 0.0 }
0x11e3   :  { %v10133_v30 = vsub.f32 %v20447_v58, %v10093_v26  ;;  %10071 = vmax.xlane.f32.xlu1 %v10070_v44  ;;  %10104 = vmax.xlane.f32.xlu0 %v10103_v34 }
0x11e5   :  { %v10172_v9 = vmul.f32 1.442695, %v10133_v30  ;;  %v20557_v16 = vpop.eup %16007  ;;  %v21728_v30 = vld [vmem:[#allocation34_spill] sm:$0xff] }
0x11e6   :  { %v10096_v62 = vpop.xlane.xlu0 %10095  ;;  %v10223_v22 = vsel %vm4234_vm10, %v20557_v16, 0.0 }
0x11e7   :  { %16009 = vpow2.f32 %v10172_v9  ;;  %v10134_v40 = vsub.f32 %v20453_v43, %v10096_v62  ;;  %10083 = vmax.xlane.f32.xlu1 %v10082_v45  ;;  %10221 = vadd.xlane.f32.xlu0 %v10220_v24  ;;  %v10100_v43 = vsel %vm4227_vm9, %v20561_v15, -inf  ;;  %v20600_v9 = vmul.f32 0.25, %v20483_v19 }
0x11e9   :  { %v10174_v58 = vmul.f32 1.442695, %v10134_v40  ;;  %v10106_v62 = vsel %vm4234_vm10, %v20600_v9, -inf }
0x11ea   :  { %v10099_v55 = vpop.xlane.xlu0 %10098 }
0x11eb   :  { %16011 = vpow2.f32 %v10174_v58  ;;  %v10135_v54 = vsub.f32 %v20459_v18, %v10099_v55  ;;  %10089 = vmax.xlane.f32.xlu1 %v10088_v59  ;;  %10224 = vadd.xlane.f32.xlu0 %v10223_v22 }
0x11ed   :  { %v10176_v27 = vmul.f32 1.442695, %v10135_v54 }
0x11ef   :  { %16013 = vpow2.f32 %v10176_v27  ;;  %10101 = vmax.xlane.f32.xlu1 %v10100_v43 }
0x11f1   :  { %v20570_v3 = vpop.eup %16009 }
0x11f2   :  { %v10111_v56 = vpop.xlane.xlu1 %10110  ;;  %v10235_v12 = vsel %vm4227_vm9, %v20570_v3, 0.0 }
0x11f3   :  { %v10139_v29 = vsub.f32 %v20465_v35, %v10111_v56  ;;  %10236 = vadd.xlane.f32.xlu1 %v10235_v12 }
0x11f5   :  { %v20575_v52 = vpop.eup %16011  ;;  %v10184_v18 = vmul.f32 1.442695, %v10139_v29 }
0x11f6   :  { %v10114_v28 = vpop.xlane.xlu0 %10113  ;;  %v10238_v61 = vsel %vm4227_vm9, %v20575_v52, 0.0 }
0x11f7   :  { %16015 = vpow2.f32 %v10184_v18  ;;  %v10140_v57 = vsub.f32 %v20471_v46, %v10114_v28  ;;  %10239 = vadd.xlane.f32.xlu0 %v10238_v61 }
0x11f9   :  { %v20580_v39 = vpop.eup %16013  ;;  %v10186_v6 = vmul.f32 1.442695, %v10140_v57 }
0x11fa   :  { %v10117_v49 = vpop.xlane.xlu0 %10116  ;;  %v10241_v53 = vsel %vm4234_vm10, %v20580_v39, 0.0 }
0x11fb   :  { %16017 = vpow2.f32 %v10186_v6  ;;  %v10141_v35 = vsub.f32 %v20475_v7, %v10117_v49  ;;  %10242 = vadd.xlane.f32.xlu0 %v10241_v53 }
0x11fd   :  { %v10188_v51 = vmul.f32 1.442695, %v10141_v35 }
0x11ff   :  { %16019 = vpow2.f32 %v10188_v51 }
0x1201   :  { %v20585_v41 = vpop.eup %16015 }
0x1202   :  { %v10253_v26 = vsel %vm4227_vm9, %v20585_v41, 0.0 }
0x1203   :  { %10254 = vadd.xlane.f32.xlu1 %v10253_v26 }
0x1205   :  { %v20589_v46 = vpop.eup %16017 }
0x1206   :  { %v10256_v44 = vsel %vm4227_vm9, %v20589_v46, 0.0 }
0x1207   :  { %10257 = vadd.xlane.f32.xlu0 %v10256_v44 }
0x1209   :  { %v20593_v34 = vpop.eup %16019 }
0x120a   :  { %v10259_v7 = vsel %vm4234_vm10, %v20593_v34, 0.0 }
0x120b   :  { %10260 = vadd.xlane.f32.xlu0 %v10259_v7 }
0x1214   :  { %15376 = vrot.lane.b32.xlu1 %v21728_v30, %s16185_s1 }
0x1238   :  { %10107 = vmax.xlane.f32.xlu1 %v10106_v62 }
0x1258   :  { %v10201_v45 = vpop.xlane.xlu1 %10200 }
0x1259   :  { %16021 = vrcp.f32 %v10201_v45 }
0x125c   :  { %v10051_v24 = vpop.xlane.xlu1 %10050  ;;  %v10204_v40 = vpop.xlane.xlu0 %10203 }
0x125d   :  { %v10119_v58 = vsub.f32 %v20491_v63, %v10051_v24  ;;  %16023 = vrcp.f32 %v10204_v40 }
0x125f   :  { %v10144_v55 = vmul.f32 1.442695, %v10119_v58 }
0x1260   :  { %v10054_v59 = vpop.xlane.xlu1 %10053  ;;  %v10048_v22 = vpop.xlane.xlu0 %10047 }
0x1261   :  { %16025 = vpow2.f32 %v10144_v55  ;;  %v10120_v54 = vsub.f32 %v20501_v0, %v10054_v59  ;;  %v10118_v19 = vsub.f32 %v20498_v10, %v10048_v22 }
0x1263   :  { %v16022_v27 = vpop.eup %16021  ;;  %v10142_v43 = vmul.f32 1.442695, %v10118_v19  ;;  %v10146_v18 = vmul.f32 1.442695, %v10120_v54 }
0x1264   :  { %v10289_v56 = vmul.f32 %v16022_v27, %v10201_v45  ;;  %v10066_v12 = vpop.xlane.xlu1 %10065  ;;  %v10069_v29 = vpop.xlane.xlu0 %10068 }
0x1265   :  { %v10124_v28 = vsub.f32 %v20509_v31, %v10066_v12  ;;  %v10125_v61 = vsub.f32 %v20511_v17, %v10069_v29  ;;  %16027 = vpow2.f32 %v10142_v43 }
0x1266   :  { %v10313_v63 = vsub.f32 2.0, %v10289_v56  ;;  %16029 = vpow2.f32 %v10146_v18 }
0x1267   :  { %v16024_v57 = vpop.eup %16023  ;;  %v10156_v6 = vmul.f32 1.442695, %v10125_v61  ;;  %v10154_v35 = vmul.f32 1.442695, %v10124_v28 }
0x1268   :  { %v10337_v49 = vmul.f32 %v16022_v27, %v10313_v63  ;;  %v10290_v53 = vmul.f32 %v16024_v57, %v10204_v40  ;;  %v10207_v0 = vpop.xlane.xlu0 %10206 }
0x1269   :  { %16031 = vpow2.f32 %v10156_v6 }
0x126a   :  { %v10314_v10 = vsub.f32 2.0, %v10290_v53  ;;  %16033 = vrcp.f32 %v10207_v0  ;;  %v10361_v26 = vmul.f32 %v20488_v8, %v10337_v49 }
0x126b   :  { %v20609_v51 = vpop.eup %16025  ;;  %16035 = vpow2.f32 %v10154_v35 }
0x126c   :  { %v10338_v44 = vmul.f32 %v16024_v57, %v10314_v10  ;;  %v10219_v31 = vpop.xlane.xlu1 %10218  ;;  %v20612_v17 = vpop.xlane.xlu0 %10086  ;;  %v10193_v7 = vsel %vm4227_vm9, %v20609_v51, 0.0  ;;  %v10393_v45 = vsel %vm4227_vm9, %v10361_v26, 0.0 }
0x126d   :  { %16037 = vrcp.f32 %v10219_v31  ;;  %10194 = vadd.xlane.f32.xlu0 %v10193_v7 }
0x126e   :  { %v10362_v30 = vmul.f32 %v20495_v13, %v10338_v44 }
0x126f   :  { %v20617_v62 = vpop.eup %16027 }
0x1270   :  { %v10394_v24 = vsel %vm4227_vm9, %v10362_v30, 0.0  ;;  %v20621_v40 = vpop.xlane.xlu1 %10071  ;;  %v20623_v8 = vpop.xlane.xlu0 %10104  ;;  %v10190_v55 = vsel %vm4227_vm9, %v20617_v62, 0.0 }
0x1271   :  { %v10395_v58 = vadd.f32 %v10394_v24, %v10393_v45  ;;  %v20627_v59 = vpop.eup %16029  ;;  %10191 = vadd.xlane.f32.xlu1 %v10190_v55 }
0x1272   :  { %v10196_v12 = vsel %vm4234_vm10, %v20627_v59, 0.0 }
0x1273   :  { %v20629_v22 = vpop.eup %16031 }
0x1274   :  { %v20631_v13 = vpop.xlane.xlu1 %10083  ;;  %v10222_v54 = vpop.xlane.xlu0 %10221  ;;  %v10211_v27 = vsel %vm4227_vm9, %v20629_v22, 0.0 }
0x1275   :  { %v16034_v19 = vpop.eup %16033  ;;  %10212 = vadd.xlane.f32.xlu0 %v10211_v27  ;;  %16039 = vrcp.f32 %v10222_v54  ;;  %10197 = vadd.xlane.f32.xlu1 %v10196_v12 }
0x1276   :  { %v20635_v43 = vpop.eup %16035  ;;  %v10291_v56 = vmul.f32 %v16034_v19, %v10207_v0 }
0x1277   :  { %v16038_v29 = vpop.eup %16037  ;;  %v10208_v6 = vsel %vm4227_vm9, %v20635_v43, 0.0 }
0x1278   :  { %v10315_v18 = vsub.f32 2.0, %v10291_v56  ;;  %v20639_v28 = vpop.xlane.xlu1 %10089  ;;  %v10225_v61 = vpop.xlane.xlu0 %10224  ;;  %v10295_v57 = vmul.f32 %v16038_v29, %v10219_v31 }
0x1279   :  { %16041 = vrcp.f32 %v10225_v61  ;;  %10209 = vadd.xlane.f32.xlu1 %v10208_v6 }
0x127a   :  { %v10339_v63 = vmul.f32 %v16034_v19, %v10315_v18  ;;  %v10319_v0 = vsub.f32 2.0, %v10295_v57 }
0x127c   :  { %v10363_v49 = vmul.f32 %v20522_v20, %v10339_v63  ;;  %v20644_v53 = vpop.xlane.xlu1 %10101  ;;  %v10343_v7 = vmul.f32 %v16038_v29, %v10319_v0 }
0x127e   :  { %v10396_v35 = vsel %vm4234_vm10, %v10363_v49, 0.0  ;;  %v10367_v19 = vmul.f32 %v20529_v21, %v10343_v7  ;;  %v21730_v21 = vld [vmem:[#allocation39_spill] sm:$0xff] }
0x127f   :  { %v20647_v10 = vadd.f32 %v10396_v35, %v10395_v58  ;;  %v16040_v44 = vpop.eup %16039  ;;  %v21731_v7 = vld [vmem:[#allocation43_spill] sm:$0xff] }
0x1280   :  { %v10237_v26 = vpop.xlane.xlu1 %10236  ;;  %v10296_v30 = vmul.f32 %v16040_v44, %v10222_v54  ;;  %v10415_v58 = vsel %vm4227_vm9, %v10367_v19, 0.0 }
0x1281   :  { %16043 = vrcp.f32 %v10237_v26 }
0x1282   :  { %v10320_v45 = vsub.f32 2.0, %v10296_v30 }
0x1283   :  { %v16042_v31 = vpop.eup %16041 }
0x1284   :  { %v10240_v24 = vpop.xlane.xlu0 %10239  ;;  %v10297_v55 = vmul.f32 %v16042_v31, %v10225_v61  ;;  %v10344_v20 = vmul.f32 %v16040_v44, %v10320_v45  ;;  %v21729_v61 = vld [vmem:[#allocation91_spill] sm:$0xff] }
0x1285   :  { %16045 = vrcp.f32 %v10240_v24 }
0x1286   :  { %v10321_v27 = vsub.f32 2.0, %v10297_v55  ;;  %v10368_v56 = vmul.f32 %v20547_v4, %v10344_v20 }
0x1288   :  { %v10243_v12 = vpop.xlane.xlu0 %10242  ;;  %v10345_v18 = vmul.f32 %v16042_v31, %v10321_v27  ;;  %v10416_v29 = vsel %vm4227_vm9, %v10368_v56, 0.0 }
0x1289   :  { %16047 = vrcp.f32 %v10243_v12  ;;  %v10417_v54 = vadd.f32 %v10416_v29, %v10415_v58 }
0x128a   :  { %v10369_v63 = vmul.f32 %v20557_v16, %v10345_v18  ;;  %10482 = vrot.lane.b32.xlu1 %v21729_v61, %s16185_s1 }
0x128b   :  { %v16044_v57 = vpop.eup %16043  ;;  %15381 = vrot.lane.b32.xlu0 %v21730_v21, %s16185_s1 }
0x128c   :  { %v10418_v6 = vsel %vm4234_vm10, %v10369_v63, 0.0  ;;  %v10301_v4 = vmul.f32 %v16044_v57, %v10237_v26  ;;  %v10131_v26 = vsub.f32 %v20525_v50, %v20612_v17 }
0x128d   :  { %v20659_v49 = vadd.f32 %v10418_v6, %v10417_v54 }
0x128e   :  { %v10325_v0 = vsub.f32 2.0, %v10301_v4  ;;  %15386 = vrot.lane.b32.xlu1 %v21731_v7, %s16185_s1 }
0x128f   :  { %v16046_v35 = vpop.eup %16045 }
0x1290   :  { %v10302_v44 = vmul.f32 %v16046_v35, %v10240_v24  ;;  %v10255_v30 = vpop.xlane.xlu1 %10254  ;;  %v10349_v16 = vmul.f32 %v16044_v57, %v10325_v0  ;;  %v10126_v0 = vsub.f32 %v20532_v60, %v20621_v40 }
0x1291   :  { %16049 = vrcp.f32 %v10255_v30 }
0x1292   :  { %v10326_v31 = vsub.f32 2.0, %v10302_v44  ;;  %v10373_v55 = vmul.f32 %v20570_v3, %v10349_v16  ;;  %v10168_v3 = vmul.f32 1.442695, %v10131_v26  ;;  %v10158_v16 = vmul.f32 1.442695, %v10126_v0 }
0x1293   :  { %v16048_v45 = vpop.eup %16047 }
0x1294   :  { %v10350_v19 = vmul.f32 %v16046_v35, %v10326_v31  ;;  %v10303_v20 = vmul.f32 %v16048_v45, %v10243_v12  ;;  %v15377_v27 = vpop.permute.xlu1 %15376  ;;  %v10258_v56 = vpop.xlane.xlu0 %10257  ;;  %v10437_v63 = vsel %vm4227_vm9, %v10373_v55, 0.0  ;;  %v10137_v12 = vsub.f32 %v20534_v1, %v20623_v8 }
0x1295   :  { %v15379_v18 = vunpack.i.h.bf16 %v15377_v27  ;;  %v15378_v58 = vunpack.i.l.bf16 %v15377_v27  ;;  %16051 = vrcp.f32 %v10258_v56 }
0x1296   :  { %v10374_v24 = vmul.f32 %v20575_v52, %v10350_v19  ;;  %v10327_v29 = vsub.f32 2.0, %v10303_v20  ;;  %16053 = vpow2.f32 %v10168_v3  ;;  %v10180_v4 = vmul.f32 1.442695, %v10137_v12  ;;  %v21735_v3 = vld [vmem:[#allocation50_spill] sm:$0xff]  ;;  %v21736_v12 = vld [vmem:[#allocation49_spill] sm:$0xff] }
0x1297   :  { %v14974_v54 = vpack.c.bf16 %v15379_v18, %v15378_v58  ;;  %v10132_v19 = vsub.f32 %v20551_v14, %v20639_v28 }
0x1298   :  { %v10438_v57 = vsel %vm4227_vm9, %v10374_v24, 0.0  ;;  %v10351_v61 = vmul.f32 %v16048_v45, %v10327_v29  ;;  %16055 = vpow2.f32 %v10180_v4  ;;  %v21740_v4 = vld [vmem:[#allocation94_spill] sm:$0xff] }
0x1299   :  { %v10439_v21 = vadd.f32 %v10438_v57, %v10437_v63  ;;  %14975 = vmatpush3.bf16.msra.mxu0 %v14974_v54  ;;  %16057 = vpow2.f32 %v10158_v16  ;;  %v21732_v63 = vld [vmem:[#allocation42_spill] sm:$0xff] }
0x129a   :  { %v10375_v50 = vmul.f32 %v20580_v39, %v10351_v61  ;;  %14451 = vmatprep.subr.mxu0 %v21533_v25  ;;  %v10130_v39 = vsub.f32 %v20541_v47, %v20631_v13  ;;  %v10170_v47 = vmul.f32 1.442695, %v10132_v19  ;;  %v21733_v57 = vld [vmem:[#allocation90_spill] sm:$0xff] }
0x129b   :  { %v16050_v17 = vpop.eup %16049  ;;  %v21734_v61 = vld [vmem:[#allocation38_spill] sm:$0xff] }
0x129c   :  { %v10440_v52 = vsel %vm4234_vm10, %v10375_v50, 0.0  ;;  %v10307_v6 = vmul.f32 %v16050_v17, %v10255_v30  ;;  %v10166_v55 = vmul.f32 1.442695, %v10130_v39  ;;  %v21738_v50 = vld [vmem:[#allocation37_spill] sm:$0xff] }
0x129d   :  { %v20674_v35 = vadd.f32 %v10440_v52, %v10439_v21  ;;  %v21737_v21 = vld [vmem:[#allocation56_spill] sm:$0xff] }
0x129e   :  { %v10331_v44 = vsub.f32 2.0, %v10307_v6  ;;  %16059 = vpow2.f32 %v10166_v55 }
0x129f   :  { %v16052_v7 = vpop.eup %16051  ;;  %16061 = vpow2.f32 %v10170_v47 }
0x12a0   :  { %v10355_v1 = vmul.f32 %v16050_v17, %v10331_v44  ;;  %v10308_v8 = vmul.f32 %v16052_v7, %v10258_v56  ;;  %v20684_v40 = vpop.eup %16053  ;;  %v21739_v17 = vld [vmem:[#allocation96_spill] sm:$0xff] }
0x12a1   :  { %v10229_v13 = vsel %vm4227_vm9, %v20684_v40, 0.0 }
0x12a2   :  { %v10332_v31 = vsub.f32 2.0, %v10308_v8  ;;  %v10379_v45 = vmul.f32 %v20585_v41, %v10355_v1  ;;  %v10136_v41 = vsub.f32 %v20561_v15, %v20644_v53  ;;  %v20694_v26 = vpop.eup %16055 }
0x12a3   :  { %v20698_v28 = vpop.eup %16057 }
0x12a4   :  { %v10356_v30 = vmul.f32 %v16052_v7, %v10332_v31  ;;  %v10459_v20 = vsel %vm4227_vm9, %v10379_v45, 0.0  ;;  %v10178_v14 = vmul.f32 1.442695, %v10136_v41  ;;  %v10214_v18 = vsel %vm4234_vm10, %v20698_v28, 0.0  ;;  %v20739_v7 = vpop.xlane.xlu0 %10260 }
0x12a6   :  { %v10380_v60 = vmul.f32 %v20589_v46, %v10356_v30  ;;  %v10247_v46 = vsel %vm4227_vm9, %v20694_v26, 0.0  ;;  %16063 = vpow2.f32 %v10178_v14 }
0x12a8   :  { %v10460_v27 = vsel %vm4227_vm9, %v10380_v60, 0.0  ;;  %v20702_v58 = vpop.eup %16059 }
0x12a9   :  { %v20688_v56 = vadd.f32 %v10460_v27, %v10459_v20  ;;  %v10226_v15 = vsel %vm4227_vm9, %v20702_v58, 0.0  ;;  %v20706_v53 = vpop.eup %16061  ;;  %v21741_v20 = vld [vmem:[#allocation65_spill] sm:$0xff] }
0x12aa   :  { %10230 = vadd.xlane.f32.xlu0 %v10229_v13  ;;  %v10232_v24 = vsel %vm4234_vm10, %v20706_v53, 0.0 }
0x12ae   :  { %10248 = vadd.xlane.f32.xlu0 %v10247_v46 }
0x12b0   :  { %v20710_v29 = vpop.eup %16063 }
0x12b1   :  { %v10244_v54 = vsel %vm4227_vm9, %v20710_v29, 0.0 }
0x12b2   :  { %10215 = vadd.xlane.f32.xlu1 %v10214_v18  ;;  %v21742_v18 = vld [vmem:[#allocation73_spill] sm:$0xff] }
0x12b6   :  { %10227 = vadd.xlane.f32.xlu1 %v10226_v15 }
0x12ba   :  { %10233 = vadd.xlane.f32.xlu1 %v10232_v24 }
0x12be   :  { %10245 = vadd.xlane.f32.xlu1 %v10244_v54 }
0x12c4   :  { %10565 = vrot.lane.b32.xlu0 %v21732_v63, %s16185_s1 }
0x12c5   :  { %v10108_v52 = vpop.xlane.xlu1 %10107 }
0x12c6   :  { %v10138_v6 = vsub.f32 %v20600_v9, %v10108_v52 }
0x12c8   :  { %10648 = vrot.lane.b32.xlu0 %v21733_v57, %s16185_s1  ;;  %v10182_v0 = vmul.f32 1.442695, %v10138_v6 }
0x12ca   :  { %16065 = vpow2.f32 %v10182_v0 }
0x12cc   :  { %10731 = vrot.lane.b32.xlu0 %v21734_v61, %s16185_s1 }
0x12cf   :  { %15391 = vrot.lane.b32.xlu1 %v21735_v3, %s16185_s1 }
0x12d0   :  { %10814 = vrot.lane.b32.xlu0 %v21736_v12, %s16185_s1 }
0x12d3   :  { %15396 = vrot.lane.b32.xlu1 %v21737_v21, %s16185_s1  ;;  %v21743_v21 = vld [vmem:[#allocation84_spill] sm:$0xff] }
0x12d4   :  { %10897 = vrot.lane.b32.xlu0 %v21738_v50, %s16185_s1  ;;  %v20737_v44 = vpop.eup %16065 }
0x12d8   :  { %10980 = vrot.lane.b32.xlu0 %v18880_v23, %s16185_s1  ;;  %v10250_v23 = vsel %vm4234_vm10, %v20737_v44, 0.0 }
0x12dc   :  { %11152 = vrot.lane.b32.xlu0 %v21739_v17, %s16184_s13 }
0x12e0   :  { %11184 = vrot.lane.b32.xlu0 %v20116_v38, %s16182_s23 }
0x12e4   :  { %11156 = vrot.lane.b32.xlu0 %v21740_v4, %s16184_s13 }
0x12f7   :  { %10251 = vadd.xlane.f32.xlu1 %v10250_v23 }
0x12fa   :  { %v10195_v1 = vpop.xlane.xlu0 %10194 }
0x12fb   :  { %16067 = vrcp.f32 %v10195_v1 }
0x12fe   :  { %v10192_v8 = vpop.xlane.xlu1 %10191 }
0x12ff   :  { %16069 = vrcp.f32 %v10192_v8 }
0x1302   :  { %v10213_v38 = vpop.xlane.xlu0 %10212  ;;  %v10198_v16 = vpop.xlane.xlu1 %10197 }
0x1303   :  { %16071 = vrcp.f32 %v10213_v38 }
0x1304   :  { %16073 = vrcp.f32 %v10198_v16 }
0x1305   :  { %v16068_v9 = vpop.eup %16067 }
0x1306   :  { %v10287_v39 = vmul.f32 %v16068_v9, %v10195_v1  ;;  %v15382_v31 = vpop.permute.xlu0 %15381  ;;  %v10210_v45 = vpop.xlane.xlu1 %10209 }
0x1307   :  { %v15384_v30 = vunpack.i.h.bf16 %v15382_v31  ;;  %v15383_v55 = vunpack.i.l.bf16 %v15382_v31  ;;  %16075 = vrcp.f32 %v10210_v45 }
0x1308   :  { %v10311_v19 = vsub.f32 2.0, %v10287_v39  ;;  %15401 = vrot.lane.b32.xlu1 %v21741_v20, %s16185_s1  ;;  %v21744_v39 = vld [vmem:[#allocation59_spill] sm:$0xff] }
0x1309   :  { %v14977_v60 = vpack.c.bf16 %v15384_v30, %v15383_v55  ;;  %v16070_v27 = vpop.eup %16069 }
0x130a   :  { %v10286_v47 = vmul.f32 %v16070_v27, %v10192_v8  ;;  %v10483_v41 = vpop.permute.xlu1 %10482  ;;  %v10335_v14 = vmul.f32 %v16068_v9, %v10311_v19 }
0x130b   :  { %14978 = vmatpush3.bf16.msra.mxu1 %v14977_v60  ;;  %14452 = vmatpush3.msk.msra.mxu0 %vm4664_vm11, %v10483_v41  ;;  %v21746_v41 = vld [vmem:[#allocation99_spill] sm:$0xff] }
0x130c   :  { %14460 = vmatprep.subr.mxu1 %v21533_v25  ;;  %v10310_v46 = vsub.f32 2.0, %v10286_v47  ;;  %15406 = vrot.lane.b32.xlu1 %v21742_v18, %s16185_s1  ;;  %v10359_v61 = vmul.f32 %v20609_v51, %v10335_v14  ;;  %v10398_v14 = vrot.slane %v20647_v10, 4  ;;  %v21747_v18 = vld [vmem:[#allocation97_spill] sm:$0xff] }
0x130d   :  { %v16072_v13 = vpop.eup %16071  ;;  %14979 = vmatprep.subr.bf16.mxu0 %v21538_v37 }
0x130e   :  { %v16074_v15 = vpop.eup %16073  ;;  %v10293_v24 = vmul.f32 %v16072_v13, %v10213_v38  ;;  %v10334_v54 = vmul.f32 %v16070_v27, %v10310_v46  ;;  %v10383_v0 = vsel %vm4227_vm9, %v10359_v61, 0.0  ;;  %v15387_v60 = vpop.permute.xlu1 %15386 }
0x130f   :  { %v10288_v63 = vmul.f32 %v16074_v15, %v10198_v16  ;;  %v15389_v20 = vunpack.i.h.bf16 %v15387_v60  ;;  %v15388_v27 = vunpack.i.l.bf16 %v15387_v60 }
0x1310   :  { %v10317_v57 = vsub.f32 2.0, %v10293_v24  ;;  %v10358_v3 = vmul.f32 %v20617_v62, %v10334_v54  ;;  %15411 = vrot.lane.b32.xlu1 %v21743_v21, %s16185_s1  ;;  %v21748_v24 = vld [vmem:[#allocation95_spill] sm:$0xff] }
0x1311   :  { %v10312_v12 = vsub.f32 2.0, %v10288_v63  ;;  %v16076_v50 = vpop.eup %16075  ;;  %v14980_v46 = vpack.c.bf16 %v15389_v20, %v15388_v27 }
0x1312   :  { %v10382_v17 = vsel %vm4227_vm9, %v10358_v3, 0.0  ;;  %v10341_v6 = vmul.f32 %v16072_v13, %v10317_v57  ;;  %v10292_v4 = vmul.f32 %v16076_v50, %v10210_v45  ;;  %v10420_v3 = vrot.slane %v20659_v49, 4 }
0x1313   :  { %v10336_v52 = vmul.f32 %v16074_v15, %v10312_v12  ;;  %v10384_v51 = vadd.f32 %v10383_v0, %v10382_v17 }
0x1314   :  { %v10316_v1 = vsub.f32 2.0, %v10292_v4  ;;  %11063 = vrot.lane.b32.xlu1 %v18872_v36, %s16185_s1  ;;  %v10365_v8 = vmul.f32 %v20629_v22, %v10341_v6  ;;  %v21745_v36 = vld [vmem:[#allocation55_spill] sm:$0xff] }
0x1315   :  { %v10360_v23 = vmul.f32 %v20627_v59, %v10336_v52 }
0x1316   :  { %v10340_v38 = vmul.f32 %v16076_v50, %v10316_v1  ;;  %v10405_v45 = vsel %vm4227_vm9, %v10365_v8, 0.0 }
0x1317   :  { %v10385_v62 = vsel %vm4234_vm10, %v10360_v23, 0.0 }
0x1318   :  { %v10386_v16 = vadd.f32 %v10385_v62, %v10384_v51  ;;  %v10364_v9 = vmul.f32 %v20635_v43, %v10340_v38  ;;  %11154 = vrot.lane.b32.xlu1 %v21744_v39, %s16184_s13 }
0x131a   :  { %v10387_v31 = vrot.slane %v10386_v16, 4  ;;  %v10404_v59 = vsel %vm4227_vm9, %v10364_v9, 0.0 }
0x131b   :  { %v20766_v55 = vadd.f32 %v10405_v45, %v10404_v59 }
0x131c   :  { %v10388_v30 = vadd.f32 %v10387_v31, %v10386_v16  ;;  %11150 = vrot.lane.b32.xlu1 %v21745_v36, %s16184_s13 }
0x131e   :  { %v10389_v19 = vrot.slane %v10388_v30, 2 }
0x1320   :  { %v10390_v22 = vadd.f32 %v10389_v19, %v10388_v30  ;;  %11186 = vrot.lane.b32.xlu1 %v20413_v48, %s16182_s23  ;;  %v10399_v48 = vadd.f32 %v10398_v14, %v20647_v10 }
0x1322   :  { %v10391_v43 = vrot.slane %v10390_v22, 1  ;;  %v10400_v15 = vrot.slane %v10399_v48, 2 }
0x1324   :  { %v10392_v47 = vadd.f32 %v10391_v43, %v10390_v22  ;;  %11158 = vrot.lane.b32.xlu1 %v21746_v41, %s16184_s13  ;;  %v10401_v54 = vadd.f32 %v10400_v15, %v10399_v48 }
0x1326   :  { %v10470_v13 = vmul.f32 0.05, %v10392_v47  ;;  %v10402_v63 = vrot.slane %v10401_v54, 1 }
0x1328   :  { %14454 = vmatmul.mubr.msk.f32.vlgmr.msra.gmra.mrb[202].mxu0 %vm4227_vm9, %v10470_v13  ;;  %11188 = vrot.lane.b32.xlu1 %v20139_v2, %s16182_s23  ;;  %v10403_v57 = vadd.f32 %v10402_v63, %v10401_v54 }
0x1329   :  { %14981 = vmatpush3.bf16.msra.mxu0 %v14980_v46  ;;  %14471 = vmatprep.mubr.msk.f32.mxu0 %vm16177_vm5, %v21533_v25 }
0x132a   :  { %14469 = vmatprep.subr.mxu0 %v21533_v25  ;;  %v10471_v10 = vmul.f32 0.05, %v10403_v57 }
0x132c   :  { %11160 = vrot.lane.b32.xlu1 %v21747_v18, %s16184_s13 }
0x1330   :  { %11162 = vrot.lane.b32.xlu1 %v21748_v24, %s16184_s13 }
0x1334   :  { %11194 = vrot.lane.b32.xlu1 %v20433_v42, %s16182_s23 }
0x1337   :  { %v10231_v2 = vpop.xlane.xlu0 %10230 }
0x1338   :  { %11196 = vrot.lane.b32.xlu1 %v20409_v11, %s16182_s23  ;;  %16077 = vrcp.f32 %v10231_v2  ;;  %v10421_v11 = vadd.f32 %v10420_v3, %v20659_v49 }
0x133a   :  { %v10422_v52 = vrot.slane %v10421_v11, 2 }
0x133b   :  { %v10249_v61 = vpop.xlane.xlu0 %10248 }
0x133c   :  { %v10423_v23 = vadd.f32 %v10422_v52, %v10421_v11 }
0x133e   :  { %v10424_v16 = vrot.slane %v10423_v23, 1 }
0x133f   :  { %v10566_v12 = vpop.permute.xlu0 %10565  ;;  %v10216_v21 = vpop.xlane.xlu1 %10215 }
0x1340   :  { %14461 = vmatpush3.msk.msra.mxu1 %vm4664_vm11, %v10566_v12  ;;  %16079 = vrcp.f32 %v10216_v21  ;;  %v10425_v20 = vadd.f32 %v10424_v16, %v10423_v23 }
0x1341   :  { %14463 = vmatmul.mubr.msk.f32.vlgmr.msra.gmra.mrb[214].mxu1 %vm4227_vm9, %v10471_v10  ;;  %14982 = vmatprep.subr.bf16.mxu1 %v21538_v37  ;;  %16081 = vrcp.f32 %v10249_v61 }
0x1342   :  { %14480 = vmatprep.mubr.msk.f32.mxu1 %vm16177_vm5, %v21533_v25  ;;  %v16078_v17 = vpop.eup %16077  ;;  %v10473_v24 = vmul.f32 0.05, %v10425_v20 }
0x1343   :  { %v10649_v42 = vpop.permute.xlu0 %10648  ;;  %v10228_v50 = vpop.xlane.xlu1 %10227  ;;  %v10299_v4 = vmul.f32 %v16078_v17, %v10231_v2 }
0x1344   :  { %14470 = vmatpush3.msk.msra.mxu0 %vm4664_vm11, %v10649_v42  ;;  %16083 = vrcp.f32 %v10228_v50 }
0x1345   :  { %14985 = vmatprep.subr.bf16.mxu0 %v21538_v37  ;;  %v10323_v49 = vsub.f32 2.0, %v10299_v4 }
0x1347   :  { %v10234_v6 = vpop.xlane.xlu1 %10233  ;;  %v10347_v36 = vmul.f32 %v16078_v17, %v10323_v49  ;;  %v10732_v57 = vpop.permute.xlu0 %10731 }
0x1348   :  { %16085 = vrcp.f32 %v10234_v6 }
0x1349   :  { %v10371_v46 = vmul.f32 %v20684_v40, %v10347_v36 }
0x134a   :  { %v16080_v0 = vpop.eup %16079 }
0x134b   :  { %v10294_v1 = vmul.f32 %v16080_v0, %v10216_v21  ;;  %v10246_v51 = vpop.xlane.xlu1 %10245  ;;  %v16082_v62 = vpop.eup %16081 }
0x134c   :  { %16087 = vrcp.f32 %v10246_v51  ;;  %v10305_v9 = vmul.f32 %v16082_v62, %v10249_v61 }
0x134d   :  { %v10318_v8 = vsub.f32 2.0, %v10294_v1  ;;  %16089 = vrcp.f32 %v20739_v7 }
0x134e   :  { %v16084_v38 = vpop.eup %16083  ;;  %v10329_v27 = vsub.f32 2.0, %v10305_v9 }
0x134f   :  { %v10342_v39 = vmul.f32 %v16080_v0, %v10318_v8  ;;  %v10298_v31 = vmul.f32 %v16084_v38, %v10228_v50  ;;  %v15392_v45 = vpop.permute.xlu1 %15391 }
0x1350   :  { %v15394_v59 = vunpack.i.h.bf16 %v15392_v45  ;;  %v15393_v30 = vunpack.i.l.bf16 %v15392_v45  ;;  %v10353_v54 = vmul.f32 %v16082_v62, %v10329_v27 }
0x1351   :  { %v10366_v19 = vmul.f32 %v20698_v28, %v10342_v39  ;;  %v10322_v22 = vsub.f32 2.0, %v10298_v31  ;;  %v10815_v31 = vpop.permute.xlu0 %10814 }
0x1352   :  { %v16086_v60 = vpop.eup %16085  ;;  %v14983_v43 = vpack.c.bf16 %v15394_v59, %v15393_v30  ;;  %v10377_v21 = vmul.f32 %v20694_v26, %v10353_v54 }
0x1353   :  { %v10407_v47 = vsel %vm4234_vm10, %v10366_v19, 0.0  ;;  %v10346_v41 = vmul.f32 %v16084_v38, %v10322_v22  ;;  %v10300_v13 = vmul.f32 %v16086_v60, %v10234_v6 }
0x1354   :  { %v10408_v14 = vadd.f32 %v10407_v47, %v20766_v55  ;;  %14984 = vmatpush3.bf16.msra.mxu1 %v14983_v43  ;;  %v10427_v55 = vsel %vm4227_vm9, %v10371_v46, 0.0  ;;  %v10449_v0 = vsel %vm4227_vm9, %v10377_v21, 0.0 }
0x1355   :  { %v10370_v48 = vmul.f32 %v20702_v58, %v10346_v41  ;;  %v10324_v18 = vsub.f32 2.0, %v10300_v13  ;;  %14478 = vmatprep.subr.mxu1 %v21533_v25 }
0x1356   :  { %v16088_v28 = vpop.eup %16087  ;;  %v10409_v15 = vrot.slane %v10408_v14, 4 }
0x1357   :  { %v10426_v63 = vsel %vm4227_vm9, %v10370_v48, 0.0  ;;  %v10348_v2 = vmul.f32 %v16086_v60, %v10324_v18  ;;  %v10304_v61 = vmul.f32 %v16088_v28, %v10246_v51  ;;  %v10442_v60 = vrot.slane %v20674_v35, 4 }
0x1358   :  { %v10410_v10 = vadd.f32 %v10409_v15, %v10408_v14  ;;  %14479 = vmatpush3.msk.msra.mxu1 %vm4664_vm11, %v10732_v57  ;;  %v10428_v12 = vadd.f32 %v10427_v55, %v10426_v63 }
0x1359   :  { %v10372_v40 = vmul.f32 %v20706_v53, %v10348_v2  ;;  %v10328_v58 = vsub.f32 2.0, %v10304_v61  ;;  %14481 = vmatmul.mubr.msk.f32.vlgmr.msra.gmra.mrb[216].mxu1 %vm4227_vm9, %v10473_v24  ;;  %14988 = vmatprep.subr.bf16.mxu1 %v21538_v37  ;;  %v15397_v53 = vpop.permute.xlu1 %15396 }
0x135a   :  { %v10411_v3 = vrot.slane %v10410_v10, 2  ;;  %14498 = vmatprep.mubr.msk.f32.mxu1 %vm16177_vm5, %v21533_v25  ;;  %v15399_v1 = vunpack.i.h.bf16 %v15397_v53  ;;  %v15398_v51 = vunpack.i.l.bf16 %v15397_v53 }
0x135b   :  { %v10429_v11 = vsel %vm4234_vm10, %v10372_v40, 0.0  ;;  %v10352_v42 = vmul.f32 %v16088_v28, %v10328_v58 }
0x135c   :  { %v10412_v50 = vadd.f32 %v10411_v3, %v10410_v10  ;;  %v10430_v17 = vadd.f32 %v10429_v11, %v10428_v12  ;;  %v14986_v16 = vpack.c.bf16 %v15399_v1, %v15398_v51 }
0x135d   :  { %v10376_v52 = vmul.f32 %v20710_v29, %v10352_v42  ;;  %v16090_v29 = vpop.eup %16089 }
0x135e   :  { %v10431_v6 = vrot.slane %v10430_v17, 4  ;;  %v10413_v4 = vrot.slane %v10412_v50, 1  ;;  %v10309_v59 = vmul.f32 %v16090_v29, %v20739_v7  ;;  %v10443_v7 = vadd.f32 %v10442_v60, %v20674_v35  ;;  %v10898_v35 = vpop.permute.xlu0 %10897 }
0x135f   :  { %v10448_v23 = vsel %vm4227_vm9, %v10376_v52, 0.0 }
0x1360   :  { %v10432_v62 = vadd.f32 %v10431_v6, %v10430_v17  ;;  %v20819_v26 = vadd.f32 %v10449_v0, %v10448_v23  ;;  %v10414_v49 = vadd.f32 %v10413_v4, %v10412_v50  ;;  %v10333_v36 = vsub.f32 2.0, %v10309_v59 }
0x1361   :  { %v10444_v27 = vrot.slane %v10443_v7, 2 }
0x1362   :  { %v10433_v8 = vrot.slane %v10432_v62, 2  ;;  %v10472_v38 = vmul.f32 0.05, %v10414_v49  ;;  %v10357_v19 = vmul.f32 %v16090_v29, %v10333_v36  ;;  %v10981_v42 = vpop.permute.xlu0 %10980 }
0x1363   :  { %v10445_v41 = vadd.f32 %v10444_v27, %v10443_v7  ;;  %v11274_v7 = vld [vmem:[%s21303_s9 + $0x18] sm:$0xff] }
0x1364   :  { %v10434_v9 = vadd.f32 %v10433_v8, %v10432_v62  ;;  %14472 = vmatmul.mubr.msk.f32.vlgmr.msra.gmra.mrb[204].mxu0 %vm4227_vm9, %v10472_v38  ;;  %v10381_v22 = vmul.f32 %v20593_v34, %v10357_v19 }
0x1365   :  { %14987 = vmatpush3.bf16.msra.mxu0 %v14986_v16  ;;  %14489 = vmatprep.mubr.msk.f32.mxu0 %vm16177_vm5, %v21533_v25  ;;  %v10446_v18 = vrot.slane %v10445_v41, 1 }
0x1366   :  { %14487 = vmatprep.subr.mxu0 %v21533_v25  ;;  %v10435_v39 = vrot.slane %v10434_v9, 1  ;;  %v10462_v43 = vsel %vm4234_vm10, %v10381_v22, 0.0  ;;  %v11273_v22 = vld [vmem:[%s21303_s9 + $0x10] sm:$0xff] }
0x1367   :  { %v10463_v20 = vadd.f32 %v10462_v43, %v20688_v56  ;;  %v10447_v63 = vadd.f32 %v10446_v18, %v10445_v41  ;;  %v15001_v27 = vpack.c.bf16 %v11274_v7, %v11273_v22  ;;  %v11275_v41 = vld [vmem:[%s21303_s9 + $0x20] sm:$0xff] }
0x1368   :  { %v10436_v45 = vadd.f32 %v10435_v39, %v10434_v9 }
0x1369   :  { %14488 = vmatpush3.msk.msra.mxu0 %vm4664_vm11, %v10815_v31  ;;  %v10464_v47 = vrot.slane %v10463_v20, 4  ;;  %v10475_v40 = vmul.f32 0.05, %v10447_v63  ;;  %v21749_v31 = vld [vmem:[#allocation98_spill] sm:$0xff]  ;;  %v11382_v63 = vld [vmem:[%s21308_s14 + $0x8] sm:$0xff] }
0x136a   :  { %v10474_v30 = vmul.f32 0.05, %v10436_v45  ;;  %14991 = vmatprep.subr.bf16.mxu0 %v21538_v37 }
0x136b   :  { %v10465_v13 = vadd.f32 %v10464_v47, %v10463_v20 }
0x136c   :  { %14490 = vmatmul.mubr.msk.f32.vlgmr.msra.gmra.mrb[206].mxu0 %vm4227_vm9, %v10474_v30 }
0x136d   :  { %14507 = vmatprep.mubr.msk.f32.mxu0 %vm16177_vm5, %v21533_v25  ;;  %v10466_v46 = vrot.slane %v10465_v13, 2 }
0x136f   :  { %v10467_v24 = vadd.f32 %v10466_v46, %v10465_v13  ;;  %v11276_v13 = vld [vmem:[%s21303_s9 + $0x28] sm:$0xff] }
0x1370   :  { %v15004_v46 = vpack.c.bf16 %v11276_v13, %v11275_v41 }
0x1371   :  { %v10468_v58 = vrot.slane %v10467_v24, 1 }
0x1373   :  { %v10469_v17 = vadd.f32 %v10468_v58, %v10467_v24 }
0x1375   :  { %v10477_v4 = vmul.f32 0.05, %v10469_v17  ;;  %v11389_v17 = vld [vmem:[%s21308_s14 + $0x40] sm:$0xff] }
0x1384   :  { %v10252_v14 = vpop.xlane.xlu1 %10251 }
0x1385   :  { %16091 = vrcp.f32 %v10252_v14 }
0x1388   :  { %v15402_v48 = vpop.permute.xlu1 %15401 }
0x1389   :  { %v15404_v28 = vunpack.i.h.bf16 %v15402_v48  ;;  %v15403_v15 = vunpack.i.l.bf16 %v15402_v48 }
0x138b   :  { %v14989_v34 = vpack.c.bf16 %v15404_v28, %v15403_v15  ;;  %v11277_v15 = vld [vmem:[%s21303_s9 + $0x30] sm:$0xff] }
0x138c   :  { %v15407_v54 = vpop.permute.xlu1 %15406 }
0x138d   :  { %v15409_v2 = vunpack.i.h.bf16 %v15407_v54  ;;  %v15408_v57 = vunpack.i.l.bf16 %v15407_v54  ;;  %14990 = vmatpush3.bf16.msra.mxu1 %v14989_v34  ;;  %v11278_v34 = vld [vmem:[%s21303_s9 + $0x38] sm:$0xff] }
0x138e   :  { %14496 = vmatprep.subr.mxu1 %v21533_v25  ;;  %v15007_v24 = vpack.c.bf16 %v11278_v34, %v11277_v15 }
0x138f   :  { %v16092_v56 = vpop.eup %16091  ;;  %v14992_v61 = vpack.c.bf16 %v15409_v2, %v15408_v57  ;;  %v11384_v2 = vld [vmem:[%s21308_s14 + $0x18] sm:$0xff]  ;;  %v11381_v57 = vld [vmem:[%s21308_s14] sm:$0xff] }
0x1390   :  { %v10306_v10 = vmul.f32 %v16092_v56, %v10252_v14  ;;  %v15412_v55 = vpop.permute.xlu1 %15411 }
0x1391   :  { %v15414_v3 = vunpack.i.h.bf16 %v15412_v55  ;;  %v15413_v12 = vunpack.i.l.bf16 %v15412_v55  ;;  %14497 = vmatpush3.msk.msra.mxu1 %vm4664_vm11, %v10898_v35  ;;  %14993 = vmatpush3.bf16.msra.mxu0 %v14992_v61  ;;  %v11153_v35 = vpop.permute.xlu0 %11152  ;;  %v11383_v61 = vld [vmem:[%s21308_s14 + $0x10] sm:$0xff]  ;;  %v11388_v55 = vld [vmem:[%s21308_s14 + $0x38] sm:$0xff] }
0x1392   :  { %v10330_v21 = vsub.f32 2.0, %v10306_v10  ;;  %14499 = vmatmul.mubr.msk.f32.vlgmr.msra.gmra.mrb[218].mxu1 %vm4227_vm9, %v10475_v40  ;;  %14505 = vmatprep.subr.mxu0 %v21533_v25  ;;  %v11386_v10 = vld [vmem:[%s21308_s14 + $0x28] sm:$0xff]  ;;  %v15011_v40 = vpack.c.bf16 %v11383_v61, %v11381_v57 }
0x1393   :  { %v14995_v11 = vpack.c.bf16 %v15414_v3, %v15413_v12  ;;  %14994 = vmatprep.subr.bf16.mxu1 %v21538_v37  ;;  %14516 = vmatprep.mubr.msk.f32.mxu1 %vm16177_vm5, %v21533_v25  ;;  %v15013_v58 = vpack.c.bf16 %v11388_v55, %v11386_v10  ;;  %v11385_v3 = vld [vmem:[%s21308_s14 + $0x20] sm:$0xff]  ;;  %v11387_v12 = vld [vmem:[%s21308_s14 + $0x30] sm:$0xff] }
0x1394   :  { %v10354_v50 = vmul.f32 %v16092_v56, %v10330_v21  ;;  %v11064_v6 = vpop.permute.xlu1 %11063  ;;  %v15009_v56 = vpack.c.bf16 %v11384_v2, %v11382_v63  ;;  %v11390_v21 = vld [vmem:[%s21308_s14 + $0x48] sm:$0xff] }
0x1395   :  { %14506 = vmatpush3.msk.msra.mxu0 %vm4664_vm11, %v10981_v42  ;;  %14996 = vmatpush3.bf16.msra.mxu1 %v14995_v11  ;;  %v11392_v11 = vld [vmem:[%s21308_s14 + $0x58] sm:$0xff]  ;;  %v15015_v42 = vpack.c.bf16 %v11387_v12, %v11385_v3  ;;  %v21756_v12 = vld [vmem:[#allocation64_spill] sm:$0xff] }
0x1396   :  { %v10378_v53 = vmul.f32 %v20737_v44, %v10354_v50  ;;  %14514 = vmatprep.subr.mxu1 %v21533_v25  ;;  %15010 = vmatprep.subr.bf16.mxu0 %v15009_v56  ;;  %v15017_v50 = vpack.c.bf16 %v11392_v11, %v11390_v21 }
0x1398   :  { %v10451_v52 = vsel %vm4234_vm10, %v10378_v53, 0.0  ;;  %v11391_v53 = vld [vmem:[%s21308_s14 + $0x50] sm:$0xff] }
0x1399   :  { %v10452_v0 = vadd.f32 %v10451_v52, %v20819_v26  ;;  %14515 = vmatpush3.msk.msra.mxu1 %vm4664_vm11, %v11064_v6  ;;  %v11394_v6 = vld [vmem:[%s21308_s14 + $0x68] sm:$0xff] }
0x139a   :  { %14517 = vmatmul.mubr.msk.f32.vlgmr.msra.gmra.mrb[220].mxu1 %vm4227_vm9, %v10477_v4  ;;  %14997 = vmatprep.subr.bf16.mxu1 %v21538_v37  ;;  %v11396_v4 = vld [vmem:[%s21308_s14 + $0x78] sm:$0xff] }
0x139b   :  { %v10453_v23 = vrot.slane %v10452_v0, 4  ;;  %14535 = vmatprep.mubr.msk.f32.mxu1 %vm16177_vm5, %v21533_v25 }
0x139d   :  { %v10454_v1 = vadd.f32 %v10453_v23, %v10452_v0  ;;  %v11185_v0 = vpop.permute.xlu0 %11184 }
0x139f   :  { %v10455_v44 = vrot.slane %v10454_v1, 2 }
0x13a1   :  { %v10456_v51 = vadd.f32 %v10455_v44, %v10454_v1  ;;  %v15019_v44 = vpack.c.bf16 %v11391_v53, %v11389_v17 }
0x13a3   :  { %v10457_v62 = vrot.slane %v10456_v51, 1 }
0x13a5   :  { %v10458_v49 = vadd.f32 %v10457_v62, %v10456_v51  ;;  %v15021_v51 = vpack.c.bf16 %v11396_v4, %v11394_v6 }
0x13a7   :  { %v10476_v8 = vmul.f32 0.05, %v10458_v49  ;;  %v11157_v49 = vpop.permute.xlu0 %11156 }
0x13a9   :  { %14508 = vmatmul.mubr.msk.f32.vlgmr.msra.gmra.mrb[208].mxu0 %vm4227_vm9, %v10476_v8  ;;  %v21750_v8 = vld [vmem:[#allocation51_spill] sm:$0xff] }
0x13aa   :  { %11476 = vmatprep.mubr.f32.mxu0 %v21533_v25  ;;  %15012 = vmatpush1.bf16.msra.mxu0 %v15011_v40 }
0x13ab   :  { %15014 = vmatprep.subr.bf16.mxu0 %v15013_v58 }
0x13ae   :  { %15016 = vmatpush1.bf16.msra.mxu0 %v15015_v42  ;;  %v21757_v42 = vld [vmem:[#allocation61_spill] sm:$0xff] }
0x13af   :  { %15018 = vmatprep.subr.bf16.mxu0 %v15017_v50 }
0x13b2   :  { %15020 = vmatpush1.bf16.msra.mxu0 %v15019_v44 }
0x13b3   :  { %15022 = vmatprep.subr.bf16.mxu0 %v15021_v51 }
0x13fb   :  { %v10557_v26 = vpop.f32.mrb[202].mxu0 }
0x13fc   :  { %11214 = vrot.lane.b32.xlu1 %v10557_v26, %s16180_s25  ;;  %v14455_v38 = vpop.f32.mrb[203].mxu0  ;;  %v11239_v26 = vsel %vm3403_vm7, %v21750_v8, %v11153_v35  ;;  %v11517_v8 = vld [vmem:[%s21309_s15 + $0x80] sm:$0xff] }
0x1414   :  { %v10640_v16 = vpop.f32.mrb[214].mxu1 }
0x1415   :  { %11216 = vrot.lane.b32.xlu0 %v10640_v16, %s16180_s25  ;;  %v14464_v9 = vpop.f32.mrb[215].mxu1  ;;  %v11247_v16 = vsel %vm1125_vm3, %v11239_v26, %v11185_v0  ;;  %v11518_v26 = vld [vmem:[%s21309_s15 + $0x88] sm:$0xff] }
0x1419   :  { %11182 = vrot.lane.b32.xlu0 %v20411_v33, %s16182_s23  ;;  %v20867_v33 = vpop.permute.xlu1 %11154 }
0x141d   :  { %11190 = vrot.lane.b32.xlu0 %v20415_v32, %s16182_s23  ;;  %v20869_v19 = vpop.permute.xlu1 %11150  ;;  %v11271_v32 = vld [vmem:[%s21303_s9] sm:$0xff] }
0x1421   :  { %v20880_v60 = vpop.permute.xlu1 %11186 }
0x1425   :  { %v20893_v14 = vpop.permute.xlu1 %11158 }
0x1429   :  { %v20899_v28 = vpop.permute.xlu1 %11188 }
0x142c   :  { %v10806_v29 = vpop.f32.mrb[216].mxu1 }
0x142d   :  { %11220 = vrot.lane.b32.xlu0 %v10806_v29, %s16180_s25  ;;  %v14482_v39 = vpop.f32.mrb[217].mxu1  ;;  %v20907_v54 = vpop.permute.xlu1 %11160 }
0x142e   :  { %v21751_v39 = vld [vmem:[#allocation48_spill] sm:$0xff] }
0x1431   :  { %11192 = vrot.lane.b32.xlu0 %v20230_v5, %s16182_s23  ;;  %v11272_v5 = vld [vmem:[%s21303_s9 + $0x8] sm:$0xff]  ;;  %v20946_v52 = vpop.permute.xlu1 %11162 }
0x1432   :  { %v14998_v43 = vpack.c.bf16 %v11272_v5, %v11271_v32  ;;  %v11244_v50 = vsel %vm3403_vm7, %v21757_v42, %v20946_v52  ;;  %v11393_v52 = vld [vmem:[%s21308_s14 + $0x60] sm:$0xff] }
0x1434   :  { %14999 = vmatpush3.bf16.msra.mxu1 %v14998_v43 }
0x1435   :  { %11164 = vrot.lane.b32.xlu0 %v21749_v31, %s16184_s13  ;;  %15000 = vmatprep.subr.bf16.mxu1 %v21538_v37  ;;  %v11195_v62 = vpop.permute.xlu1 %11194  ;;  %v11238_v31 = vsel %vm3403_vm7, %v21751_v39, %v20869_v19  ;;  %v21753_v19 = vld [vmem:[#allocation46_spill] sm:$0xff]  ;;  %v11519_v39 = vld [vmem:[%s21309_s15 + $0x90] sm:$0xff] }
0x1436   :  { %v11252_v53 = vsel %vm1125_vm3, %v11244_v50, %v11195_v62  ;;  %v11395_v62 = vld [vmem:[%s21308_s14 + $0x70] sm:$0xff] }
0x1437   :  { %v10723_v45 = vpop.f32.mrb[204].mxu0  ;;  %v11515_v50 = vld [vmem:[%s21309_s15 + $0x70] sm:$0xff] }
0x1438   :  { %v14473_v59 = vpop.f32.mrb[205].mxu0  ;;  %15002 = vmatpush3.bf16.msra.mxu1 %v15001_v27 }
0x1439   :  { %15003 = vmatprep.subr.bf16.mxu1 %v21538_v37  ;;  %v11197_v9 = vpop.permute.xlu1 %11196 }
0x143c   :  { %15005 = vmatpush3.bf16.msra.mxu1 %v15004_v46  ;;  %v11240_v46 = vsel %vm3403_vm7, %v21753_v19, %v20867_v33 }
0x143d   :  { %15006 = vmatprep.subr.bf16.mxu1 %v21538_v37  ;;  %v11248_v34 = vsel %vm1125_vm3, %v11240_v46, %v20880_v60  ;;  %v11524_v46 = vld [vmem:[%s21309_s15 + $0xb8] sm:$0xff] }
0x143f   :  { %v10889_v30 = vpop.f32.mrb[206].mxu0 }
0x1440   :  { %11222 = vrot.lane.b32.xlu1 %v10889_v30, %s16180_s25  ;;  %v14491_v36 = vpop.f32.mrb[207].mxu0  ;;  %15008 = vmatpush3.bf16.msra.mxu1 %v15007_v24  ;;  %v21755_v24 = vld [vmem:[#allocation33_spill] sm:$0xff] }
0x1441   :  { %15057 = vmatprep.subr.bf16.mxu1 %v21538_v37  ;;  %v11243_v63 = vsel %vm3403_vm7, %v21755_v24, %v20907_v54  ;;  %v11526_v24 = vld [vmem:[%s21309_s15 + $0xc8] sm:$0xff] }
0x1465   :  { %v10972_v20 = vpop.f32.mrb[218].mxu1 }
0x1466   :  { %11224 = vrot.lane.b32.xlu0 %v10972_v20, %s16180_s25  ;;  %v14500_v47 = vpop.f32.mrb[219].mxu1 }
0x1467   :  { %v21752_v47 = vld [vmem:[#allocation47_spill] sm:$0xff] }
0x1468   :  { %v11241_v41 = vsel %vm3403_vm7, %v21752_v47, %v11157_v49  ;;  %v15023_v49 = vpack.c.bf16 %v11395_v62, %v11393_v52  ;;  %v11505_v47 = vld [vmem:[%s21309_s15 + $0x20] sm:$0xff] }
0x1469   :  { %v11249_v15 = vsel %vm1125_vm3, %v11241_v41, %v20899_v28  ;;  %v11506_v41 = vld [vmem:[%s21309_s15 + $0x28] sm:$0xff] }
0x146a   :  { %11218 = vrot.lane.b32.xlu0 %v10723_v45, %s16180_s25  ;;  %15024 = vmatpush1.bf16.msra.mxu0 %v15023_v49  ;;  %v15035_v19 = vpack.c.bf16 %v11506_v41, %v11505_v47  ;;  %v21758_v52 = vld [vmem:[#allocation31_spill] sm:$0xff] }
0x146b   :  { %v21759_v62 = vsub.s32 0, %v21758_v52 }
0x146d   :  { %v11138_v48 = vpop.f32.mrb[220].mxu1 }
0x146e   :  { %11228 = vrot.lane.b32.xlu1 %v11138_v48, %s16180_s25  ;;  %v14518_v18 = vpop.f32.mrb[221].mxu1  ;;  %v11215_v59 = vpop.permute.xlu1 %11214  ;;  %v21754_v48 = vld [vmem:[#allocation62_spill] sm:$0xff] }
0x146f   :  { %v11242_v18 = vsel %vm3403_vm7, %v21754_v48, %v20893_v14  ;;  %v11507_v48 = vld [vmem:[%s21309_s15 + $0x30] sm:$0xff] }
0x147c   :  { %v11055_v23 = vpop.f32.mrb[208].mxu0 }
0x147d   :  { %v14509_v1 = vpop.f32.mrb[209].mxu0  ;;  %11226 = vrot.lane.b32.xlu0 %v11055_v23, %s16180_s25 }
0x1487   :  { %v11217_v38 = vpop.permute.xlu0 %11216 }
0x1488   :  { %v11256_v29 = vsel %vm11254_vm12, %v11247_v16, %v11217_v38  ;;  %v15025_v38 = vpack.c.bf16 %v11518_v26, %v11517_v8  ;;  %v11501_v16 = vld [vmem:[%s21309_s15] sm:$0xff]  ;;  %v21760_v8 = vsub.s32 1, %v21758_v52  ;;  %v11634_v52 = vld [vmem:[%s21310_s16 + $0x78] sm:$0xff] }
0x1489   :  { %v11287_v30 = vrot.slane %v11256_v29, 7  ;;  %v12527_v29 = vld [vmem:[#allocation2 + $0xc] ss:$0 sm:$0xff] }
0x148a   :  { %15026 = vmatprep.subr.bf16.mxu0 %v15025_v38 }
0x148b   :  { %v11183_v45 = vpop.permute.xlu0 %11182 }
0x148c   :  { %v11246_v36 = vsel %vm1125_vm3, %v11238_v31, %v11183_v45  ;;  %v11520_v31 = vld [vmem:[%s21309_s15 + $0x98] sm:$0xff] }
0x148d   :  { %v11255_v32 = vsel %vm11254_vm12, %v11246_v36, %v11215_v59 }
0x148e   :  { %v11289_v5 = vsel %vm11288_vm13, %v11287_v30, %v11255_v32  ;;  %v15029_v32 = vpack.c.bf16 %v11520_v31, %v11519_v39 }
0x148f   :  { %v11191_v22 = vpop.permute.xlu0 %11190 }
0x1490   :  { %v11250_v2 = vsel %vm1125_vm3, %v11242_v18, %v11191_v22  ;;  %v11504_v22 = vld [vmem:[%s21309_s15 + $0x18] sm:$0xff] }
0x1491   :  { %v11508_v18 = vld [vmem:[%s21309_s15 + $0x38] sm:$0xff] }
0x149f   :  { %v11221_v43 = vpop.permute.xlu0 %11220 }
0x14a0   :  { %v11258_v57 = vsel %vm11254_vm12, %v11249_v15, %v11221_v43 }
0x14a1   :  { %v11293_v61 = vrot.slane %v11258_v57, 5  ;;  %v11509_v57 = vld [vmem:[%s21309_s15 + $0x40] sm:$0xff] }
0x14a3   :  { %v11193_v7 = vpop.permute.xlu0 %11192 }
0x14a4   :  { %v11251_v33 = vsel %vm1125_vm3, %v11243_v63, %v11193_v7  ;;  %v11521_v7 = vld [vmem:[%s21309_s15 + $0xa0] sm:$0xff]  ;;  %v15039_v63 = vpack.c.bf16 %v11508_v18, %v11507_v48 }
0x14a7   :  { %v11165_v20 = vpop.permute.xlu0 %11164 }
0x14a8   :  { %v11245_v21 = vsel %vm3403_vm7, %v21756_v12, %v11165_v20  ;;  %v11522_v20 = vld [vmem:[%s21309_s15 + $0xa8] sm:$0xff]  ;;  %v11531_v12 = vld [vmem:[%s21309_s15 + $0xf0] sm:$0xff] }
0x14a9   :  { %v11253_v17 = vsel %vm1125_vm3, %v11245_v21, %v11197_v9  ;;  %v11502_v9 = vld [vmem:[%s21309_s15 + $0x8] sm:$0xff]  ;;  %v11532_v21 = vld [vmem:[%s21309_s15 + $0xf8] sm:$0xff]  ;;  %vm11712_vm3 = vcmask 7168  }
0x14aa   :  { %v15027_v59 = vpack.c.bf16 %v11502_v9, %v11501_v16  ;;  %v15053_v42 = vpack.c.bf16 %v11532_v21, %v11531_v12  ;;  %vm21131_vm7 = vmpackc.low %vm11712_vm3, %vm11712_vm3  ;;  %v11625_v21 = vld [vmem:[%s21310_s16 + $0x30] sm:$0xff] }
0x14b2   :  { %v11223_v13 = vpop.permute.xlu1 %11222 }
0x14b3   :  { %v11259_v56 = vsel %vm11254_vm12, %v11250_v2, %v11223_v13  ;;  %v11523_v13 = vld [vmem:[%s21309_s15 + $0xb0] sm:$0xff] }
0x14b4   :  { %v11296_v10 = vrot.slane %v11259_v56, 4  ;;  %v15037_v15 = vpack.c.bf16 %v11524_v46, %v11523_v13  ;;  %v11528_v56 = vld [vmem:[%s21309_s15 + $0xd8] sm:$0xff] }
0x14d8   :  { %v11225_v27 = vpop.permute.xlu0 %11224 }
0x14d9   :  { %v11260_v28 = vsel %vm11254_vm12, %v11251_v33, %v11225_v27  ;;  %v15033_v27 = vpack.c.bf16 %v11522_v20, %v11521_v7  ;;  %v11527_v33 = vld [vmem:[%s21309_s15 + $0xd0] sm:$0xff] }
0x14da   :  { %v11299_v55 = vrot.slane %v11260_v28, 3  ;;  %v15045_v28 = vpack.c.bf16 %v11528_v56, %v11527_v33  ;;  %v21770_v56 = vld [vmem:[#allocation19_spill] sm:$0xff] }
0x14dc   :  { %v11219_v35 = vpop.permute.xlu0 %11218 }
0x14dd   :  { %v11257_v14 = vsel %vm11254_vm12, %v11248_v34, %v11219_v35  ;;  %v11525_v34 = vld [vmem:[%s21309_s15 + $0xc0] sm:$0xff]  ;;  %v11510_v35 = vld [vmem:[%s21309_s15 + $0x48] sm:$0xff] }
0x14de   :  { %v11290_v60 = vrot.slane %v11257_v14, 6  ;;  %v15041_v2 = vpack.c.bf16 %v11526_v24, %v11525_v34  ;;  %v15043_v14 = vpack.c.bf16 %v11510_v35, %v11509_v57  ;;  %v21764_v34 = vld [vmem:[#allocation10_spill] sm:$0xff]  ;;  %v21767_v57 = vld [vmem:[#allocation15_spill] sm:$0xff]  ;;  %v21768_v35 = vld [vmem:[#allocation16_spill] sm:$0xff] }
0x14df   :  { %v21769_v33 = vpack.c.bf16 %v21767_v57, %v21768_v35  ;;  %v21793_v57 = vld [vmem:[#allocation30_spill] sm:$0xff] }
0x14e0   :  { %v11292_v54 = vsel %vm11291_vm14, %v11290_v60, %v11289_v5  ;;  %v11229_v11 = vpop.permute.xlu1 %11228  ;;  %v11503_v5 = vld [vmem:[%s21309_s15 + $0x10] sm:$0xff] }
0x14e1   :  { %v11295_v40 = vsel %vm11294_vm15, %v11293_v61, %v11292_v54  ;;  %v11262_v6 = vsel %vm11254_vm12, %v11253_v17, %v11229_v11  ;;  %v15031_v43 = vpack.c.bf16 %v11504_v22, %v11503_v5  ;;  %v11511_v60 = vld [vmem:[%s21309_s15 + $0x50] sm:$0xff]  ;;  %v11512_v61 = vld [vmem:[%s21309_s15 + $0x58] sm:$0xff]  ;;  %v11530_v54 = vld [vmem:[%s21309_s15 + $0xe8] sm:$0xff] }
0x14e2   :  { %v11298_v58 = vsel %vm11297_vm0, %v11296_v10, %v11295_v40  ;;  %v11305_v1 = vrot.slane %v11262_v6, 1  ;;  %v11529_v10 = vld [vmem:[%s21309_s15 + $0xe0] sm:$0xff]  ;;  %v11516_v17 = vld [vmem:[%s21309_s15 + $0x78] sm:$0xff] }
0x14e3   :  { %v11301_v3 = vsel %vm11300_vm1, %v11299_v55, %v11298_v58  ;;  %v15047_v55 = vpack.c.bf16 %v11512_v61, %v11511_v60  ;;  %v15049_v40 = vpack.c.bf16 %v11530_v54, %v11529_v10  ;;  %v11513_v58 = vld [vmem:[%s21309_s15 + $0x60] sm:$0xff]  ;;  %v21774_v61 = vld [vmem:[#allocation25_spill] sm:$0xff]  ;;  %v21775_v10 = vld [vmem:[#allocation28_spill] sm:$0xff] }
0x14e4   :  { %v11619_v6 = vld [vmem:[%s21310_s16] sm:$0xff] }
0x14e5   :  { %v21776_v54 = vld [vmem:[#allocation27_spill] sm:$0xff] }
0x14ef   :  { %v11227_v4 = vpop.permute.xlu0 %11226 }
0x14f0   :  { %v11261_v0 = vsel %vm11254_vm12, %v11252_v53, %v11227_v4  ;;  %v15055_v53 = vpack.c.bf16 %v11516_v17, %v11515_v50  ;;  %v11620_v4 = vld [vmem:[%s21310_s16 + $0x8] sm:$0xff]  ;;  %v11627_v50 = vld [vmem:[%s21310_s16 + $0x40] sm:$0xff] }
0x14f1   :  { %v11302_v23 = vrot.slane %v11261_v0, 2  ;;  %v11621_v0 = vld [vmem:[%s21310_s16 + $0x10] sm:$0xff]  ;;  %v11628_v17 = vld [vmem:[%s21310_s16 + $0x48] sm:$0xff] }
0x14f3   :  { %v11304_v44 = vsel %vm11303_vm4, %v11302_v23, %v11301_v3  ;;  %v11514_v3 = vld [vmem:[%s21309_s15 + $0x68] sm:$0xff]  ;;  %v15058_v23 = vpack.c.bf16 %v11620_v4, %v11619_v6  ;;  %v11629_v6 = vld [vmem:[%s21310_s16 + $0x50] sm:$0xff]  ;;  %v11630_v4 = vld [vmem:[%s21310_s16 + $0x58] sm:$0xff] }
0x14f4   :  { %v11307_v51 = vsel %vm11306_vm6, %v11305_v1, %v11304_v44  ;;  %v15051_v11 = vpack.c.bf16 %v11514_v3, %v11513_v58  ;;  %v11622_v1 = vld [vmem:[%s21310_s16 + $0x18] sm:$0xff]  ;;  %v11623_v58 = vld [vmem:[%s21310_s16 + $0x20] sm:$0xff]  ;;  %v11624_v3 = vld [vmem:[%s21310_s16 + $0x28] sm:$0xff] }
0x14f5   :  { %14536 = vmatmul.mubr.msk.f32.vlgmr.msra.gmra.mrb[96].mxu1 %vm620_vm2, %v11307_v51  ;;  %v15061_v44 = vpack.c.bf16 %v11622_v1, %v11621_v0  ;;  %v11397_v51 = vld [vmem:[#allocation2 + $0xd] sm:$0x3]  ;;  %v15064_v12 = vpack.c.bf16 %v11624_v3, %v11623_v58  ;;  %v15073_v0 = vpack.c.bf16 %v11630_v4, %v11629_v6 }
0x14f6   :  { %14570 = vmatprep.mubr.msk.f32.mxu1 %vm16177_vm5, %v21533_v25  ;;  %15059 = vmatpush3.bf16.msra.mxu1 %v15058_v23  ;;  %v11402_v49 = vrot.slane %v11397_v51, %v21759_v62  ;;  %v11406_v26 = vrot.slane %v11397_v51, %v21760_v8  ;;  %v11631_v23 = vld [vmem:[%s21310_s16 + $0x60] sm:$0xff]  ;;  %v11632_v1 = vld [vmem:[%s21310_s16 + $0x68] sm:$0xff]  ;;  %v11633_v51 = vld [vmem:[%s21310_s16 + $0x70] sm:$0xff] }
0x14f7   :  { %15060 = vmatprep.subr.bf16.mxu1 %v21538_v37  ;;  %v15079_v62 = vpack.c.bf16 %v11634_v52, %v11633_v51  ;;  %v12787_v8 = vld [vmem:[#allocation2 + $0xf] ss:$0 sm:$0xff] }
0x14fa   :  { %15062 = vmatpush3.bf16.msra.mxu1 %v15061_v44  ;;  %v15076_v44 = vpack.c.bf16 %v11632_v1, %v11631_v23 }
0x14fb   :  { %15063 = vmatprep.subr.bf16.mxu1 %v21538_v37 }
0x14fe   :  { %15065 = vmatpush3.bf16.msra.mxu1 %v15064_v12 }
0x14ff   :  { %15066 = vmatprep.subr.bf16.mxu1 %v21538_v37 }
0x15c8   :  { %v11376_v45 = vpop.f32.mrb[96].mxu1 }
0x15c9   :  { %v21028_v30 = vadd.f32 %v12527_v29, %v11376_v45  ;;  %v14537_v36 = vpop.f32.mrb[97].mxu1 }
0x15cb   :  { %12786 = vmatmul.mubr.msk.f32.vlgmr.msra.gmra.mrb[210].mxu0 %vm620_vm2, %v21028_v30 }
0x15cc   :  { %15028 = vmatpush3.bf16.msra.mxu0 %v15027_v59 }
0x15cd   :  { %15030 = vmatprep.subr.bf16.mxu0 %v15029_v32 }
0x15d0   :  { %15032 = vmatpush3.bf16.msra.mxu0 %v15031_v43 }
0x15d1   :  { %15034 = vmatprep.subr.bf16.mxu0 %v15033_v27 }
0x15d4   :  { %15036 = vmatpush3.bf16.msra.mxu0 %v15035_v19 }
0x15d5   :  { %15038 = vmatprep.subr.bf16.mxu0 %v15037_v15  ;;  %v21763_v15 = vld [vmem:[#allocation9_spill] sm:$0xff] }
0x15d6   :  { %v21765_v24 = vpack.c.bf16 %v21763_v15, %v21764_v34  ;;  %v21790_v15 = vld [vmem:[#allocation26_spill] sm:$0xff]  ;;  %v21791_v34 = vld [vmem:[#allocation77_spill] sm:$0xff] }
0x15d8   :  { %15040 = vmatpush3.bf16.msra.mxu0 %v15039_v63  ;;  %v21766_v63 = vld [vmem:[#allocation12_spill] sm:$0xff] }
0x15d9   :  { %15042 = vmatprep.subr.bf16.mxu0 %v15041_v2  ;;  %v16186_v2 = vmov 1.0  }
0x15dc   :  { %15044 = vmatpush3.bf16.msra.mxu0 %v15043_v14  ;;  %v21771_v14 = vld [vmem:[#allocation22_spill] sm:$0xff] }
0x15dd   :  { %15046 = vmatprep.subr.bf16.mxu0 %v15045_v28  ;;  %v21772_v28 = vld [vmem:[#allocation21_spill] sm:$0xff] }
0x15de   :  { %v21773_v60 = vpack.c.bf16 %v21771_v14, %v21772_v28 }
0x15e0   :  { %15048 = vmatpush3.bf16.msra.mxu0 %v15047_v55  ;;  %v21777_v55 = vpack.c.bf16 %v21775_v10, %v21776_v54 }
0x15e1   :  { %15050 = vmatprep.subr.bf16.mxu0 %v15049_v40  ;;  %v21778_v40 = vld [vmem:[#allocation78_spill] sm:$0xff] }
0x15e4   :  { %15052 = vmatpush3.bf16.msra.mxu0 %v15051_v11  ;;  %v11626_v11 = vld [vmem:[%s21310_s16 + $0x38] sm:$0xff] }
0x15e5   :  { %15054 = vmatprep.subr.bf16.mxu0 %v15053_v42  ;;  %v15067_v42 = vpack.c.bf16 %v11626_v11, %v11625_v21 }
0x15e7   :  { %15068 = vmatpush3.bf16.msra.mxu1 %v15067_v42 }
0x15e8   :  { %15056 = vmatpush3.bf16.msra.mxu0 %v15055_v53  ;;  %v15070_v53 = vpack.c.bf16 %v11628_v17, %v11627_v50  ;;  %15069 = vmatprep.subr.bf16.mxu1 %v21538_v37 }
0x15e9   :  { %15081 = vmatprep.subr.bf16.mxu0 %v21538_v37 }
0x15eb   :  { %15071 = vmatpush3.bf16.msra.mxu1 %v15070_v53 }
0x15ec   :  { %15072 = vmatprep.subr.bf16.mxu1 %v21538_v37 }
0x15ef   :  { %15074 = vmatpush3.bf16.msra.mxu1 %v15073_v0 }
0x15f0   :  { %15075 = vmatprep.subr.bf16.mxu1 %v21538_v37 }
0x15f3   :  { %15077 = vmatpush3.bf16.msra.mxu1 %v15076_v44 }
0x15f4   :  { %15078 = vmatprep.subr.bf16.mxu1 %v21538_v37 }
0x15f7   :  { %15080 = vmatpush3.bf16.msra.mxu1 %v15079_v62 }
0x15f8   :  { %15085 = vmatprep.subr.bf16.mxu1 %v21538_v37 }
0x169e   :  { %v11478_v38 = vpop.f32.mrb[210].mxu0 }
0x169f   :  { %v11479_v16 = vadd.f32 %v11478_v38, %v11402_v49  ;;  %v11480_v9 = vpop.f32.mrb[211].mxu0 }
0x16a0   :  { %v11481_v29 = vadd.f32 %v11480_v9, %v11406_v26 }
0x16a1   :  { %v11485_v39 = vmul.f32 %v11479_v16, %v11479_v16  ;;  %v11483_v19 = vmul.f32 0.5, %v11479_v16 }
0x16a2   :  { %v11486_v31 = vmul.f32 %v11481_v29, %v11481_v29  ;;  %v11484_v41 = vmul.f32 0.5, %v11481_v29 }
0x16a3   :  { %v11487_v45 = vmul.f32 %v11485_v39, %v11479_v16 }
0x16a4   :  { %v11488_v59 = vmul.f32 %v11486_v31, %v11481_v29 }
0x16a5   :  { %v11489_v36 = vmul.f32 0.044715, %v11487_v45 }
0x16a6   :  { %v11490_v32 = vmul.f32 0.044715, %v11488_v59 }
0x16a7   :  { %v11491_v5 = vadd.f32 %v11489_v36, %v11479_v16 }
0x16a8   :  { %v11492_v22 = vadd.f32 %v11490_v32, %v11481_v29 }
0x16a9   :  { %v11493_v43 = vmul.f32 0.7978846, %v11491_v5 }
0x16aa   :  { %v11494_v7 = vmul.f32 0.7978846, %v11492_v22  ;;  %v21779_v22 = vld [vmem:[#allocation13_spill] sm:$0xff] }
0x16ab   :  { %16093 = vtanh.f32 %v11493_v43  ;;  %v21780_v43 = vld [vmem:[#allocation11_spill] sm:$0xff] }
0x16ac   :  { %16095 = vtanh.f32 %v11494_v7  ;;  %v21781_v7 = vpack.c.bf16 %v21779_v22, %v21780_v43 }
0x16b5   :  { %v16094_v20 = vpop.eup %16093 }
0x16b6   :  { %v16096_v27 = vpop.eup %16095  ;;  %v11497_v47 = vadd.f32 1.0, %v16094_v20  ;;  %v21782_v20 = vld [vmem:[#allocation14_spill] sm:$0xff] }
0x16b7   :  { %v11498_v13 = vadd.f32 1.0, %v16096_v27  ;;  %v21783_v27 = vld [vmem:[#allocation18_spill] sm:$0xff] }
0x16b8   :  { %v11499_v48 = vmul.f32 %v11497_v47, %v11483_v19  ;;  %v21784_v47 = vld [vmem:[#allocation17_spill] sm:$0xff]  ;;  %v21787_v19 = vld [vmem:[#allocation24_spill] sm:$0xff] }
0x16b9   :  { %v11500_v46 = vmul.f32 %v11498_v13, %v11484_v41  ;;  %v21785_v41 = vpack.c.bf16 %v21783_v27, %v21784_v47  ;;  %v21786_v13 = vld [vmem:[#allocation20_spill] sm:$0xff] }
0x16bb   :  { %11604 = vmatprep.mubr.f32.mxu0 %v11500_v46  ;;  %v21788_v46 = vld [vmem:[#allocation23_spill] sm:$0xff] }
0x16bc   :  { %11605 = vmatmul.mubr.f32.vlgmr.msra.gmra.mrb[212].mxu0 %v11499_v48  ;;  %v21789_v48 = vpack.c.bf16 %v21787_v19, %v21788_v46 }
0x16bd   :  { %15084 = vmatpush3.bf16.xpose.msk.msra.mxu0 %vm21131_vm7, %v21765_v24  ;;  %14579 = vmatprep.mubr.msk.f32.mxu0 %vm16177_vm5, %v21533_v25  ;;  %v21792_v24 = vld [vmem:[#allocation29_spill] sm:$0xff] }
0x16be   :  { %14577 = vmatprep.subr.mxu0 %v21533_v25 }
0x16c5   :  { %14578 = vmatpush3.xpose.msk.msra.mxu0 %vm11712_vm3, %v21766_v63  ;;  %v15110_v63 = vpack.c.bf16 %v21792_v24, %v21791_v34 }
0x16c6   :  { %15089 = vmatprep.subr.bf16.mxu0 %v21538_v37 }
0x16c8   :  { %14580 = vmatmul.mubr.msk.f32.vlgmr.msra.gmra.mrb[214].mxu0 %vm11712_vm3, %v16186_v2 }
0x16c9   :  { %15092 = vmatpush3.bf16.xpose.msk.msra.mxu0 %vm21131_vm7, %v21769_v33  ;;  %14597 = vmatprep.mubr.msk.f32.mxu0 %vm16177_vm5, %v21533_v25 }
0x16ca   :  { %14595 = vmatprep.subr.mxu0 %v21533_v25 }
0x16d1   :  { %14596 = vmatpush3.xpose.msk.msra.mxu0 %vm11712_vm3, %v21770_v56 }
0x16d2   :  { %15097 = vmatprep.subr.bf16.mxu0 %v21538_v37 }
0x16d4   :  { %14598 = vmatmul.mubr.msk.f32.vlgmr.msra.gmra.mrb[216].mxu0 %vm11712_vm3, %v16186_v2 }
0x16d5   :  { %15100 = vmatpush3.bf16.xpose.msk.msra.mxu0 %vm21131_vm7, %v21773_v60  ;;  %14615 = vmatprep.mubr.msk.f32.mxu0 %vm16177_vm5, %v21533_v25 }
0x16d6   :  { %14613 = vmatprep.subr.mxu0 %v21533_v25 }
0x16dd   :  { %14614 = vmatpush3.xpose.msk.msra.mxu0 %vm11712_vm3, %v21774_v61  ;;  %v12788_v61 = vld [vmem:[#allocation2 + $0x10] ss:$0 sm:$0xff] }
0x16de   :  { %15105 = vmatprep.subr.bf16.mxu0 %v21538_v37 }
0x16e0   :  { %14616 = vmatmul.mubr.msk.f32.vlgmr.msra.gmra.mrb[218].mxu0 %vm11712_vm3, %v16186_v2 }
0x16e1   :  { %15108 = vmatpush3.bf16.xpose.msk.msra.mxu0 %vm21131_vm7, %v21777_v55  ;;  %14633 = vmatprep.mubr.msk.f32.mxu0 %vm16177_vm5, %v21533_v25 }
0x16e2   :  { %14631 = vmatprep.subr.mxu0 %v21533_v25 }
0x16e9   :  { %14632 = vmatpush3.xpose.msk.msra.mxu0 %vm11712_vm3, %v21778_v40 }
0x16ec   :  { %14634 = vmatmul.mubr.msk.f32.vlgmr.msra.gmra.mrb[220].mxu0 %vm11712_vm3, %v16186_v2 }
0x178f   :  { %v13373_v49 = vpop.f32.mrb[212].mxu0 }
0x1790   :  { %v13374_v26 = vpop.f32.mrb[213].mxu0 }
0x1791   :  { %v13375_v38 = vadd.f32 %v13374_v26, %v13373_v49 }
0x1793   :  { %v11607_v16 = vadd.f32 %v13375_v38, %v12787_v8 }
0x1795   :  { %v11611_v9 = vmul.f32 %v11607_v16, %v11607_v16  ;;  %v11610_v36 = vmul.f32 0.5, %v11607_v16 }
0x1797   :  { %v11612_v29 = vmul.f32 %v11611_v9, %v11607_v16 }
0x1799   :  { %v11613_v39 = vmul.f32 0.044715, %v11612_v29 }
0x179b   :  { %v11614_v31 = vadd.f32 %v11613_v39, %v11607_v16 }
0x179d   :  { %v11615_v45 = vmul.f32 0.7978846, %v11614_v31 }
0x179f   :  { %16097 = vtanh.f32 %v11615_v45 }
0x17a9   :  { %v16098_v59 = vpop.eup %16097 }
0x17aa   :  { %v11617_v32 = vadd.f32 1.0, %v16098_v59 }
0x17ac   :  { %v11618_v5 = vmul.f32 %v11617_v32, %v11610_v36 }
0x17ae   :  { %14571 = vmatmul.mubr.f32.vlgmr.msra.gmra.mrb[222].mxu1 %v11618_v5 }
0x17af   :  { %15088 = vmatpush3.bf16.xpose.msk.msra.mxu1 %vm21131_vm7, %v21781_v7  ;;  %14588 = vmatprep.mubr.msk.f32.mxu1 %vm16177_vm5, %v21533_v25 }
0x17b0   :  { %14586 = vmatprep.subr.mxu1 %v21533_v25 }
0x17b7   :  { %14587 = vmatpush3.xpose.msk.msra.mxu1 %vm11712_vm3, %v21782_v20 }
0x17b8   :  { %15093 = vmatprep.subr.bf16.mxu1 %v21538_v37 }
0x17ba   :  { %14589 = vmatmul.mubr.msk.f32.vlgmr.msra.gmra.mrb[224].mxu1 %vm11712_vm3, %v16186_v2 }
0x17bb   :  { %15096 = vmatpush3.bf16.xpose.msk.msra.mxu1 %vm21131_vm7, %v21785_v41  ;;  %14606 = vmatprep.mubr.msk.f32.mxu1 %vm16177_vm5, %v21533_v25 }
0x17bc   :  { %14604 = vmatprep.subr.mxu1 %v21533_v25 }
0x17c3   :  { %14605 = vmatpush3.xpose.msk.msra.mxu1 %vm11712_vm3, %v21786_v13 }
0x17c4   :  { %15101 = vmatprep.subr.bf16.mxu1 %v21538_v37 }
0x17c6   :  { %14607 = vmatmul.mubr.msk.f32.vlgmr.msra.gmra.mrb[226].mxu1 %vm11712_vm3, %v16186_v2 }
0x17c7   :  { %15104 = vmatpush3.bf16.xpose.msk.msra.mxu1 %vm21131_vm7, %v21789_v48  ;;  %14624 = vmatprep.mubr.msk.f32.mxu1 %vm16177_vm5, %v21533_v25 }
0x17c8   :  { %14622 = vmatprep.subr.mxu1 %v21533_v25 }
0x17cf   :  { %14623 = vmatpush3.xpose.msk.msra.mxu1 %vm11712_vm3, %v21790_v15 }
0x17d0   :  { %15109 = vmatprep.subr.bf16.mxu1 %v21538_v37  ;;  %v11788_v37 = vpop.f32.mrb[214].mxu0 }
0x17d1   :  { %v14581_v35 = vpop.f32.mrb[215].mxu0 }
0x17d2   :  { %14625 = vmatmul.mubr.msk.f32.vlgmr.msra.gmra.mrb[228].mxu1 %vm11712_vm3, %v16186_v2  ;;  %v11940_v33 = vpop.f32.mrb[216].mxu0 }
0x17d3   :  { %15112 = vmatpush3.bf16.xpose.msk.msra.mxu1 %vm21131_vm7, %v15110_v63  ;;  %14642 = vmatprep.mubr.msk.f32.mxu1 %vm16177_vm5, %v21533_v25  ;;  %v14599_v56 = vpop.f32.mrb[217].mxu0  ;;  %v12342_v40 = vrot.slane %v11940_v33, 6  ;;  %vm12358_vm5 = vcmask 719872  }
0x17d4   :  { %14640 = vmatprep.subr.mxu1 %v21533_v25  ;;  %v12092_v14 = vpop.f32.mrb[218].mxu0 }
0x17d5   :  { %v14617_v28 = vpop.f32.mrb[219].mxu0  ;;  %v12346_v11 = vrot.slane %v12092_v14, 4 }
0x17d6   :  { %v12244_v60 = vpop.f32.mrb[220].mxu0 }
0x17d7   :  { %v14635_v18 = vpop.f32.mrb[221].mxu0  ;;  %v12350_v4 = vrot.slane %v12244_v60, 2 }
0x17db   :  { %14641 = vmatpush3.xpose.msk.msra.mxu1 %vm11712_vm3, %v21793_v57 }
0x17de   :  { %14643 = vmatmul.mubr.msk.f32.vlgmr.msra.gmra.mrb[230].mxu1 %vm11712_vm3, %v16186_v2 }
0x1881   :  { %v11708_v10 = vpop.f32.mrb[222].mxu1 }
0x1882   :  { %v11709_v54 = vadd.f32 %v12788_v61, %v11708_v10  ;;  %v14572_v55 = vpop.f32.mrb[223].mxu1 }
0x1884   :  { %12360 = vst [vmem:[%s21794_s17] sm:$0xff] %v11709_v54 }
0x188d   :  { %v11864_v25 = vpop.f32.mrb[224].mxu1 }
0x188e   :  { %v12340_v58 = vrot.slane %v11864_v25, 7  ;;  %v14590_v2 = vpop.f32.mrb[225].mxu1 }
0x1890   :  { %v12341_v3 = vsel %vm11288_vm13, %v12340_v58, %v11788_v37 }
0x1891   :  { %v12343_v12 = vsel %vm11291_vm14, %v12342_v40, %v12341_v3 }
0x1899   :  { %v12016_v21 = vpop.f32.mrb[226].mxu1 }
0x189a   :  { %v12344_v42 = vrot.slane %v12016_v21, 5  ;;  %v14608_v50 = vpop.f32.mrb[227].mxu1 }
0x189c   :  { %v12345_v17 = vsel %vm11294_vm15, %v12344_v42, %v12343_v12 }
0x189d   :  { %v12347_v53 = vsel %vm11297_vm0, %v12346_v11, %v12345_v17 }
0x18a5   :  { %v12168_v6 = vpop.f32.mrb[228].mxu1 }
0x18a6   :  { %v12348_v0 = vrot.slane %v12168_v6, 3  ;;  %v14626_v23 = vpop.f32.mrb[229].mxu1 }
0x18a8   :  { %v12349_v1 = vsel %vm11300_vm1, %v12348_v0, %v12347_v53 }
0x18a9   :  { %v12351_v44 = vsel %vm11303_vm4, %v12350_v4, %v12349_v1 }
0x18b1   :  { %v12320_v51 = vpop.f32.mrb[230].mxu1 }
0x18b2   :  { %v12352_v52 = vrot.slane %v12320_v51, 1  ;;  %v14644_v62 = vpop.f32.mrb[231].mxu1 }
0x18b4   :  { %v12353_v49 = vsel %vm11306_vm6, %v12352_v52, %v12351_v44 }
0x18b5   :  { %12354 = vrot.lane.b32.xlu0 %v12353_v49, %s16179_s11 }
0x1927   :  { %v12355_v8 = vpop.permute.xlu0 %12354 }
0x1928   :  { %v12357_v26 = vsel %vm620_vm2, %v21028_v30, %v12355_v8 }
0x1929   :  { %v12359_v38 = vsel %vm12358_vm5, %v12357_v26, 0.0 }
0x192a   :  { %12361 = vst [vmem:[%s21794_s17 + $0x8] sm:$0xff] %v12359_v38 }
0x192b   :  { %12366 = vsyncpa [#allocation3], 1 }
0x192c   :  { %12367 = vsyncpa [#allocation5], 1 }

</bundles_post_ra>
